<compile_context>
chip_gen: v7x
topology: tpu7x:2x2x1
jax: 0.10.0
libtpu: 0.0.40
codegen_flags: <defaults>
</compile_context>

<pallas_src>
import functools

import jax
import jax.numpy as jnp
from jax.experimental import pallas as pl
from jax.experimental.pallas import tpu as pltpu

EPS = 1e-5


def _round_up(x, m):
    return (x + m - 1) // m * m


# ------------------------------- kernel ------------------------------------ #

def _fused_kernel(x_ref, w1_ref, w2_ref, w3_ref,
                  g1_ref, be1_ref, g2_ref, be2_ref, b3_ref,
                  z_ref, p_ref,
                  hbuf, sum_ref, scale_ref, shift_ref,
                  *, b_true):
    """Fused forward over a (pass, batch_tile) grid (both axes sequential).

      pass 0: h1 = x @ W1                  -> hbuf[i]; accumulate sum(h1)
      pass 1: (tile 0) fold BN1 stats into scale/shift (centered variance
              sweep over the VMEM-resident hbuf)
              z = ReLU(BN1(h1)) (padded rows masked) -> z HBM
              h2 = bf16(z) @ W2            -> hbuf[i] (overwrites h1 slot);
              accumulate sum(h2)
      pass 2: (tile 0) fold BN2 stats into scale/shift
              p = ReLU(BN2(h2)) @ W3 + b3  -> p HBM

    h1/h2 never touch HBM.  z/p output BlockSpecs are pass-pinned so each HBM
    block is written exactly once (during its pass) with correct data.
    """
    pz = pl.program_id(0)                       # pass index (0, 1, 2)
    i = pl.program_id(1)                        # batch-tile index
    nb = pl.num_programs(1)
    tm = z_ref.shape[0]
    inv_b = 1.0 / b_true

    # rows of this tile that are real (not batch padding)
    gid = i * tm + jax.lax.broadcasted_iota(jnp.int32, (tm, 1), 0)
    valid = gid < b_true

    def finalize_bn(g_ref, be_ref):
        """Fold full-batch BN stats into per-feature scale/shift.
        Mean comes from the running sum; variance is a centered (two-look)
        sweep over hbuf (VMEM-resident -> cheap), masking padded rows."""
        mu = sum_ref[...] * inv_b

        def body(t, acc):
            rows = hbuf[t]                                       # (tm, H) f32
            rid = t * tm + jax.lax.broadcasted_iota(jnp.int32, (tm, 1), 0)
            d = jnp.where(rid < b_true, rows - mu, 0.0)
            return acc + jnp.sum(d * d, axis=0, keepdims=True)

        ss = jax.lax.fori_loop(0, nb, body,
                               jnp.zeros(sum_ref.shape, sum_ref.dtype))
        var = ss * inv_b
        sc = g_ref[...] * jax.lax.rsqrt(var + EPS)               # EUP rsqrt
        scale_ref[...] = sc
        shift_ref[...] = be_ref[...] - mu * sc
        sum_ref[...] = jnp.zeros_like(sum_ref)                   # next-stage sum

    # -------- pass 0: h1 = x @ W1 ; accumulate sum(h1) --------
    @pl.when(pz == 0)
    def _pass0():
        @pl.when(i == 0)
        def _():
            sum_ref[...] = jnp.zeros_like(sum_ref)
        h1 = jnp.dot(x_ref[...], w1_ref[...],
                     preferred_element_type=jnp.float32)
        hbuf[i] = h1
        sum_ref[...] += jnp.sum(h1, axis=0, keepdims=True)

    # -------- pass 1: z = ReLU(BN1(h1)) ; h2 = z @ W2 ; accumulate sum(h2) ---
    @pl.when((pz == 1) & (i == 0))
    def _bn1():
        finalize_bn(g1_ref, be1_ref)

    @pl.when(pz == 1)
    def _pass1():
        h1 = hbuf[i]
        zt = jnp.maximum(h1 * scale_ref[...] + shift_ref[...], 0.0)
        zt = jnp.where(valid, zt, 0.0)      # keep padded rows out of BN2 stats
        z_ref[...] = zt
        h2 = jnp.dot(zt.astype(jnp.bfloat16), w2_ref[...],
                     preferred_element_type=jnp.float32)
        hbuf[i] = h2                        # h1 tile no longer needed
        sum_ref[...] += jnp.sum(h2, axis=0, keepdims=True)

    # -------- pass 2: p = ReLU(BN2(h2)) @ W3 + b3 --------
    @pl.when((pz == 2) & (i == 0))
    def _bn2():
        finalize_bn(g2_ref, be2_ref)

    @pl.when(pz == 2)
    def _pass2():
        h2 = hbuf[i]
        a = jnp.maximum(h2 * scale_ref[...] + shift_ref[...], 0.0)
        # padded rows produce junk p rows; the wrapper slices them off.
        p_out = jnp.dot(a.astype(jnp.bfloat16), w3_ref[...],
                        preferred_element_type=jnp.float32) + b3_ref[...]
        p_ref[...] = p_out


# ------------------------------- wrapper ----------------------------------- #

def language_model_forward(x, params, tm=None):
    """x: (B, input_dim) float32.  Returns (z, p), each (B, hidden_dim) f32."""
    B, K = x.shape
    K_pad, H = params["w1"].shape

    # Batch tile: fill the MXU row dim (>=128 whenever B allows), cap at 256
    # (keeps the per-step VMEM footprint safe on v5e's 16 MiB scoped default).
    if tm is None:
        tm = min(256, _round_up(B, 8))
    tm = min(tm, _round_up(B, 8))
    B_pad = _round_up(B, tm)
    nb = B_pad // tm

    # Fused kernel keeps the full (B_pad, H) activation buffer in VMEM.
    assert B_pad * H * 4 <= 12 * 1024 * 1024, (
        "fused kernel keeps the full (B, H) activation in VMEM; use a streamed "
        "multi-call variant for batches/hidden sizes this large")

    # Single wrapper op: pad batch to the tile and features to the stored
    # (128-aligned) weight shape, cast to bf16 for the MXU.
    xp = jnp.pad(x, ((0, B_pad - B), (0, K_pad - K))).astype(jnp.bfloat16)

    f32 = jnp.float32

    # Pass-pinned index maps: each array is streamed only during the pass that
    # uses it and its block index is held constant otherwise, so every z/p HBM
    # block is written exactly once (with correct data) and x is fetched once.
    x_spec = pl.BlockSpec(
        (tm, K_pad), lambda pz, i: (jnp.where(pz == 0, i, nb - 1), 0))
    z_spec = pl.BlockSpec(
        (tm, H),
        lambda pz, i: (jnp.where(pz == 0, 0, jnp.where(pz == 1, i, nb - 1)), 0))
    p_spec = pl.BlockSpec(
        (tm, H), lambda pz, i: (jnp.where(pz == 2, i, 0), 0))
    vec_spec = pl.BlockSpec((1, H), lambda pz, i: (0, 0))

    z_full, p_full = pl.pallas_call(
        functools.partial(_fused_kernel, b_true=B),
        out_shape=(jax.ShapeDtypeStruct((B_pad, H), f32),
                   jax.ShapeDtypeStruct((B_pad, H), f32)),
        grid=(3, nb),
        in_specs=[x_spec,
                  pl.BlockSpec((K_pad, H), lambda pz, i: (0, 0)),   # W1 (resident)
                  pl.BlockSpec((H, H), lambda pz, i: (0, 0)),       # W2 (resident)
                  pl.BlockSpec((H, H), lambda pz, i: (0, 0)),       # W3 (resident)
                  vec_spec, vec_spec, vec_spec, vec_spec, vec_spec],
        out_specs=(z_spec, p_spec),
        scratch_shapes=[pltpu.VMEM((nb, tm, H), f32),   # hbuf: h1 then h2
                        pltpu.VMEM((1, H), f32),        # running per-feature sum
                        pltpu.VMEM((1, H), f32),        # BN scale
                        pltpu.VMEM((1, H), f32)],       # BN shift
        compiler_params=pltpu.CompilerParams(
            dimension_semantics=("arbitrary", "arbitrary")),
    )(xp, params["w1"], params["w2"], params["w3"],
      params["g1"], params["be1"], params["g2"], params["be2"], params["b3"])

    if B_pad != B:
        return z_full[:B], p_full[:B]
    return z_full, p_full


# -------------------------- params / reference ----------------------------- #

def init_params(key, input_dim, hidden_dim):
    """PyTorch-default-style init (Linear: U(+-1/sqrt(fan_in)); BN: gamma=1,
    beta=0).  Weights stored pre-transposed (in, out) in bf16; W1's input dim
    is zero-padded to a multiple of 128.  b1/b2 are kept only for the reference
    (they are exactly cancelled by training-mode BatchNorm)."""
    k_pad = _round_up(input_dim, 128)
    ks = jax.random.split(key, 6)

    def linear(kw, kb, fan_in, fan_out, pad_to=None):
        bound = fan_in ** -0.5
        w = jax.random.uniform(kw, (fan_in, fan_out), jnp.float32, -bound, bound)
        b = jax.random.uniform(kb, (1, fan_out), jnp.float32, -bound, bound)
        if pad_to is not None and pad_to > fan_in:
            w = jnp.pad(w, ((0, pad_to - fan_in), (0, 0)))
        return w.astype(jnp.bfloat16), b

    w1, b1 = linear(ks[0], ks[1], input_dim, hidden_dim, pad_to=k_pad)
    w2, b2 = linear(ks[2], ks[3], hidden_dim, hidden_dim)
    w3, b3 = linear(ks[4], ks[5], hidden_dim, hidden_dim)
    ones = jnp.ones((1, hidden_dim), jnp.float32)
    zeros = jnp.zeros((1, hidden_dim), jnp.float32)
    return dict(w1=w1, b1=b1, g1=ones, be1=zeros,
                w2=w2, b2=b2, g2=ones, be2=zeros,
                w3=w3, b3=b3)


def _reference_forward(x, params):
    """Pure-JAX reference mirroring the PyTorch module (training-mode BN,
    biases included) with the same bf16-input matmuls."""
    k_pad = params["w1"].shape[0]
    xp = jnp.pad(x, ((0, 0), (0, k_pad - x.shape[1])))

    def dot(a, w):
        return jnp.dot(a.astype(jnp.bfloat16), w,
                       preferred_element_type=jnp.float32)

    def bn_relu(h, g, be):
        mu = jnp.mean(h, axis=0, keepdims=True)
        var = jnp.mean((h - mu) ** 2, axis=0, keepdims=True)
        return jnp.maximum(g * (h - mu) * jax.lax.rsqrt(var + EPS) + be, 0.0)

    h1 = dot(xp, params["w1"]) + params["b1"]
    z = bn_relu(h1, params["g1"], params["be1"])
    h2 = dot(z, params["w2"]) + params["b2"]
    a = bn_relu(h2, params["g2"], params["be2"])
    p = dot(a, params["w3"]) + params["b3"]
    return z, p


# --------------------------------- demo ------------------------------------ #

if __name__ == "__main__":
    # LanguageModel defaults: input_dim=140, hidden_dim=512.  B=384 with the
    # default tile (256) exercises multiple batch tiles AND the padded-row
    # masking path (B_pad=512, last tile half padding).
    B, INPUT_DIM, HIDDEN_DIM = 384, 140, 512

    key = jax.random.PRNGKey(0)
    kx, kp = jax.random.split(key)
    x = jax.random.normal(kx, (B, INPUT_DIM), jnp.float32)
    params = init_params(kp, INPUT_DIM, HIDDEN_DIM)

    fwd = jax.jit(language_model_forward)
    z, p = fwd(x, params)
    jax.block_until_ready((z, p))

    z_ref, p_ref = _reference_forward(x, params)
    assert z.shape == (B, HIDDEN_DIM) and p.shape == (B, HIDDEN_DIM)
    assert jnp.allclose(z, z_ref, atol=2e-3, rtol=2e-3), "z mismatch"
    assert jnp.allclose(p, p_ref, atol=1e-2, rtol=1e-2), "p mismatch"

    print("KERNEL_OK")
</pallas_src>

<mosaic_0001>
module attributes {stable_mosaic.version = 11 : i64} {
  func.func @_fused_kernel(%arg0: i32, %arg1: i32, %arg2: memref<256x256xbf16, #tpu.memory_space<vmem>>, %arg3: memref<256x512xbf16, #tpu.memory_space<vmem>>, %arg4: memref<512x512xbf16, #tpu.memory_space<vmem>>, %arg5: memref<512x512xbf16, #tpu.memory_space<vmem>>, %arg6: memref<1x512xf32, #tpu.memory_space<vmem>>, %arg7: memref<1x512xf32, #tpu.memory_space<vmem>>, %arg8: memref<1x512xf32, #tpu.memory_space<vmem>>, %arg9: memref<1x512xf32, #tpu.memory_space<vmem>>, %arg10: memref<1x512xf32, #tpu.memory_space<vmem>>, %arg11: memref<256x512xf32, #tpu.memory_space<vmem>>, %arg12: memref<256x512xf32, #tpu.memory_space<vmem>>, %arg13: memref<2x256x512xf32, #tpu.memory_space<vmem>>, %arg14: memref<1x512xf32, #tpu.memory_space<vmem>>, %arg15: memref<1x512xf32, #tpu.memory_space<vmem>>, %arg16: memref<1x512xf32, #tpu.memory_space<vmem>>) attributes {dimension_semantics = [#tpu.dimension_semantics<arbitrary>, #tpu.dimension_semantics<arbitrary>], iteration_bounds = array<i64: 3, 2>, scalar_prefetch = 0 : i64, scratch_operands = 4 : i64, tpu.core_type = #tpu.core_type<tc>, window_params = [{transform_indices = @transform_0, window_bounds = array<i64: 256, 256>}, {pipeline_mode = #tpu.pipeline_mode<synchronous>, transform_indices = @transform_1, window_bounds = array<i64: 256, 512>}, {pipeline_mode = #tpu.pipeline_mode<synchronous>, transform_indices = @transform_2, window_bounds = array<i64: 512, 512>}, {pipeline_mode = #tpu.pipeline_mode<synchronous>, transform_indices = @transform_3, window_bounds = array<i64: 512, 512>}, {pipeline_mode = #tpu.pipeline_mode<synchronous>, transform_indices = @transform_4, window_bounds = array<i64: 1, 512>}, {pipeline_mode = #tpu.pipeline_mode<synchronous>, transform_indices = @transform_5, window_bounds = array<i64: 1, 512>}, {pipeline_mode = #tpu.pipeline_mode<synchronous>, transform_indices = @transform_6, window_bounds = array<i64: 1, 512>}, {pipeline_mode = #tpu.pipeline_mode<synchronous>, transform_indices = @transform_7, window_bounds = array<i64: 1, 512>}, {pipeline_mode = #tpu.pipeline_mode<synchronous>, transform_indices = @transform_8, window_bounds = array<i64: 1, 512>}, {transform_indices = @transform_9, window_bounds = array<i64: 256, 512>}, {transform_indices = @transform_10, window_bounds = array<i64: 256, 512>}]} {
    %c256_i32 = arith.constant 256 : i32
    %0 = arith.muli %arg1, %c256_i32 : i32
    %1 = tpu.iota {dimensions = array<i32: 0>} : vector<256x1xi32>
    %2 = vector.broadcast %0 : i32 to vector<256x1xi32>
    %3 = arith.addi %2, %1 : vector<256x1xi32>
    %c384_i32 = arith.constant 384 : i32
    %4 = vector.broadcast %c384_i32 : i32 to vector<256x1xi32>
    %5 = arith.cmpi slt, %3, %4 : vector<256x1xi32>
    %c0_i32 = arith.constant 0 : i32
    %6 = arith.cmpi eq, %arg0, %c0_i32 : i32
    %7 = arith.extui %6 : i1 to i32
    %c0_i32_0 = arith.constant 0 : i32
    %8 = arith.cmpi ne, %7, %c0_i32_0 : i32
    scf.if %8 {
      %c0_i32_9 = arith.constant 0 : i32
      %25 = arith.cmpi eq, %arg1, %c0_i32_9 : i32
      %26 = arith.extui %25 : i1 to i32
      %c0_i32_10 = arith.constant 0 : i32
      %27 = arith.cmpi ne, %26, %c0_i32_10 : i32
      scf.if %27 {
        %cst_21 = arith.constant 0.000000e+00 : f32
        %40 = vector.broadcast %cst_21 : f32 to vector<1x512xf32>
        %c0_22 = arith.constant 0 : index
        %c0_23 = arith.constant 0 : index
        %41 = vector.load %arg14[%c0_22, %c0_23] : memref<1x512xf32, #tpu.memory_space<vmem>>, vector<1x512xf32>
        tpu.vector_store %arg14[%c0_22, %c0_23], %40 {strides = array<i32>} : memref<1x512xf32, #tpu.memory_space<vmem>>, vector<1x512xf32>,
      } else {
      }
      %c0 = arith.constant 0 : index
      %c0_11 = arith.constant 0 : index
      %28 = vector.load %arg2[%c0, %c0_11] : memref<256x256xbf16, #tpu.memory_space<vmem>>, vector<256x256xbf16>
      %c0_12 = arith.constant 0 : index
      %c0_13 = arith.constant 0 : index
      %29 = vector.load %arg3[%c0_12, %c0_13] : memref<256x512xbf16, #tpu.memory_space<vmem>>, vector<256x512xbf16>
      %cst = arith.constant dense<0.000000e+00> : vector<256x512xf32>
      %30 = tpu.matmul %28, %29, %cst {dimension_numbers = #tpu.dot_dimension_numbers<[1], [0], [0], [1], [0, 0, 1, 1], [], []>} : vector<256x256xbf16>, vector<256x512xbf16>, vector<256x512xf32> -> vector<256x512xf32>
      %31 = arith.index_cast %arg1 : i32 to index
      %c0_14 = arith.constant 0 : index
      %c0_15 = arith.constant 0 : index
      %32 = vector.load %arg13[%31, %c0_14, %c0_15] : memref<2x256x512xf32, #tpu.memory_space<vmem>>, vector<1x256x512xf32>
      %33 = vector.shape_cast %32 : vector<1x256x512xf32> to vector<256x512xf32>
      %34 = vector.shape_cast %30 : vector<256x512xf32> to vector<1x256x512xf32>
      tpu.vector_store %arg13[%31, %c0_14, %c0_15], %34 {strides = array<i32>} : memref<2x256x512xf32, #tpu.memory_space<vmem>>, vector<1x256x512xf32>,
      %c0_16 = arith.constant 0 : index
      %c0_17 = arith.constant 0 : index
      %35 = vector.load %arg14[%c0_16, %c0_17] : memref<1x512xf32, #tpu.memory_space<vmem>>, vector<1x512xf32>
      %cst_18 = arith.constant dense<0.000000e+00> : vector<512xf32>
      %36 = vector.multi_reduction <add>, %30, %cst_18 [0] : vector<256x512xf32> to vector<512xf32>
      %37 = vector.shape_cast %36 : vector<512xf32> to vector<1x512xf32>
      %38 = arith.addf %35, %37 : vector<1x512xf32>
      %c0_19 = arith.constant 0 : index
      %c0_20 = arith.constant 0 : index
      %39 = vector.load %arg14[%c0_19, %c0_20] : memref<1x512xf32, #tpu.memory_space<vmem>>, vector<1x512xf32>
      tpu.vector_store %arg14[%c0_19, %c0_20], %38 {strides = array<i32>} : memref<1x512xf32, #tpu.memory_space<vmem>>, vector<1x512xf32>,
    } else {
    }
    %c1_i32 = arith.constant 1 : i32
    %9 = arith.cmpi eq, %arg0, %c1_i32 : i32
    %c0_i32_1 = arith.constant 0 : i32
    %10 = arith.cmpi eq, %arg1, %c0_i32_1 : i32
    %11 = arith.andi %9, %10 : i1
    %12 = arith.extui %11 : i1 to i32
    %c0_i32_2 = arith.constant 0 : i32
    %13 = arith.cmpi ne, %12, %c0_i32_2 : i32
    scf.if %13 {
      %c0 = arith.constant 0 : index
      %c0_9 = arith.constant 0 : index
      %25 = vector.load %arg14[%c0, %c0_9] : memref<1x512xf32, #tpu.memory_space<vmem>>, vector<1x512xf32>
      %cst = arith.constant 0.00260416674 : f32
      %26 = vector.broadcast %cst : f32 to vector<1x512xf32>
      %27 = arith.mulf %25, %26 : vector<1x512xf32>
      %cst_10 = arith.constant 0.000000e+00 : f32
      %28 = vector.broadcast %cst_10 : f32 to vector<1x512xf32>
      %c0_i32_11 = arith.constant 0 : i32
      %c2_i32_12 = arith.constant 2 : i32
      %29 = arith.addi %c0_i32_11, %c2_i32_12 : i32
      %c1_i32_13 = arith.constant 1 : i32
      %30 = scf.for %arg17 = %c0_i32_11 to %29 step %c1_i32_13 iter_args(%arg18 = %28) -> (vector<1x512xf32>)  : i32 {
        %45 = arith.index_cast %arg17 : i32 to index
        %c0_28 = arith.constant 0 : index
        %c0_29 = arith.constant 0 : index
        %46 = vector.load %arg13[%45, %c0_28, %c0_29] : memref<2x256x512xf32, #tpu.memory_space<vmem>>, vector<1x256x512xf32>
        %47 = vector.shape_cast %46 : vector<1x256x512xf32> to vector<256x512xf32>
        %c256_i32_30 = arith.constant 256 : i32
        %48 = arith.muli %arg17, %c256_i32_30 : i32
        %49 = tpu.iota {dimensions = array<i32: 0>} : vector<256x1xi32>
        %50 = vector.broadcast %48 : i32 to vector<256x1xi32>
        %51 = arith.addi %50, %49 : vector<256x1xi32>
        %c384_i32_31 = arith.constant 384 : i32
        %52 = vector.broadcast %c384_i32_31 : i32 to vector<256x1xi32>
        %53 = arith.cmpi slt, %51, %52 : vector<256x1xi32>
        %54 = vector.broadcast %27 : vector<1x512xf32> to vector<256x512xf32>
        %55 = arith.subf %47, %54 : vector<256x512xf32>
        %cst_32 = arith.constant 0.000000e+00 : f32
        %56 = vector.shape_cast %53 : vector<256x1xi1> to vector<256x1xi1>
        %57 = vector.broadcast %56 : vector<256x1xi1> to vector<256x512xi1>
        %58 = vector.broadcast %cst_32 : f32 to vector<256x512xf32>
        %59 = arith.select %57, %55, %58 : vector<256x512xi1>, vector<256x512xf32>
        %60 = arith.mulf %59, %59 : vector<256x512xf32>
        %cst_33 = arith.constant dense<0.000000e+00> : vector<512xf32>
        %61 = vector.multi_reduction <add>, %60, %cst_33 [0] : vector<256x512xf32> to vector<512xf32>
        %62 = vector.shape_cast %61 : vector<512xf32> to vector<1x512xf32>
        %63 = arith.addf %arg18, %62 : vector<1x512xf32>
        scf.yield %63 : vector<1x512xf32>
      }
      %c2_i32_14 = arith.constant 2 : i32
      %cst_15 = arith.constant 0.00260416674 : f32
      %31 = vector.broadcast %cst_15 : f32 to vector<1x512xf32>
      %32 = arith.mulf %30, %31 : vector<1x512xf32>
      %c0_16 = arith.constant 0 : index
      %c0_17 = arith.constant 0 : index
      %33 = vector.load %arg6[%c0_16, %c0_17] : memref<1x512xf32, #tpu.memory_space<vmem>>, vector<1x512xf32>
      %cst_18 = arith.constant 9.99999974E-6 : f32
      %34 = vector.broadcast %cst_18 : f32 to vector<1x512xf32>
      %35 = arith.addf %32, %34 : vector<1x512xf32>
      %36 = math.rsqrt %35 : vector<1x512xf32>
      %37 = arith.mulf %33, %36 : vector<1x512xf32>
      %c0_19 = arith.constant 0 : index
      %c0_20 = arith.constant 0 : index
      %38 = vector.load %arg15[%c0_19, %c0_20] : memref<1x512xf32, #tpu.memory_space<vmem>>, vector<1x512xf32>
      tpu.vector_store %arg15[%c0_19, %c0_20], %37 {strides = array<i32>} : memref<1x512xf32, #tpu.memory_space<vmem>>, vector<1x512xf32>,
      %c0_21 = arith.constant 0 : index
      %c0_22 = arith.constant 0 : index
      %39 = vector.load %arg7[%c0_21, %c0_22] : memref<1x512xf32, #tpu.memory_space<vmem>>, vector<1x512xf32>
      %40 = arith.mulf %27, %37 : vector<1x512xf32>
      %41 = arith.subf %39, %40 : vector<1x512xf32>
      %c0_23 = arith.constant 0 : index
      %c0_24 = arith.constant 0 : index
      %42 = vector.load %arg16[%c0_23, %c0_24] : memref<1x512xf32, #tpu.memory_space<vmem>>, vector<1x512xf32>
      tpu.vector_store %arg16[%c0_23, %c0_24], %41 {strides = array<i32>} : memref<1x512xf32, #tpu.memory_space<vmem>>, vector<1x512xf32>,
      %cst_25 = arith.constant 0.000000e+00 : f32
      %43 = vector.broadcast %cst_25 : f32 to vector<1x512xf32>
      %c0_26 = arith.constant 0 : index
      %c0_27 = arith.constant 0 : index
      %44 = vector.load %arg14[%c0_26, %c0_27] : memref<1x512xf32, #tpu.memory_space<vmem>>, vector<1x512xf32>
      tpu.vector_store %arg14[%c0_26, %c0_27], %43 {strides = array<i32>} : memref<1x512xf32, #tpu.memory_space<vmem>>, vector<1x512xf32>,
    } else {
    }
    %c1_i32_3 = arith.constant 1 : i32
    %14 = arith.cmpi eq, %arg0, %c1_i32_3 : i32
    %15 = arith.extui %14 : i1 to i32
    %c0_i32_4 = arith.constant 0 : i32
    %16 = arith.cmpi ne, %15, %c0_i32_4 : i32
    scf.if %16 {
      %25 = arith.index_cast %arg1 : i32 to index
      %c0 = arith.constant 0 : index
      %c0_9 = arith.constant 0 : index
      %26 = vector.load %arg13[%25, %c0, %c0_9] : memref<2x256x512xf32, #tpu.memory_space<vmem>>, vector<1x256x512xf32>
      %27 = vector.shape_cast %26 : vector<1x256x512xf32> to vector<256x512xf32>
      %c0_10 = arith.constant 0 : index
      %c0_11 = arith.constant 0 : index
      %28 = vector.load %arg15[%c0_10, %c0_11] : memref<1x512xf32, #tpu.memory_space<vmem>>, vector<1x512xf32>
      %29 = vector.broadcast %28 : vector<1x512xf32> to vector<256x512xf32>
      %30 = arith.mulf %27, %29 : vector<256x512xf32>
      %c0_12 = arith.constant 0 : index
      %c0_13 = arith.constant 0 : index
      %31 = vector.load %arg16[%c0_12, %c0_13] : memref<1x512xf32, #tpu.memory_space<vmem>>, vector<1x512xf32>
      %32 = vector.broadcast %31 : vector<1x512xf32> to vector<256x512xf32>
      %33 = arith.addf %30, %32 : vector<256x512xf32>
      %cst = arith.constant 0.000000e+00 : f32
      %34 = vector.broadcast %cst : f32 to vector<256x512xf32>
      %35 = arith.maximumf %33, %34 : vector<256x512xf32>
      %cst_14 = arith.constant 0.000000e+00 : f32
      %36 = vector.shape_cast %5 : vector<256x1xi1> to vector<256x1xi1>
      %37 = vector.broadcast %36 : vector<256x1xi1> to vector<256x512xi1>
      %38 = vector.broadcast %cst_14 : f32 to vector<256x512xf32>
      %39 = arith.select %37, %35, %38 : vector<256x512xi1>, vector<256x512xf32>
      %c0_15 = arith.constant 0 : index
      %c0_16 = arith.constant 0 : index
      %40 = vector.load %arg11[%c0_15, %c0_16] : memref<256x512xf32, #tpu.memory_space<vmem>>, vector<256x512xf32>
      tpu.vector_store %arg11[%c0_15, %c0_16], %39 {strides = array<i32>} : memref<256x512xf32, #tpu.memory_space<vmem>>, vector<256x512xf32>,
      %41 = arith.truncf %39 : vector<256x512xf32> to vector<256x512xbf16>
      %c0_17 = arith.constant 0 : index
      %c0_18 = arith.constant 0 : index
      %42 = vector.load %arg4[%c0_17, %c0_18] : memref<512x512xbf16, #tpu.memory_space<vmem>>, vector<512x512xbf16>
      %cst_19 = arith.constant dense<0.000000e+00> : vector<256x512xf32>
      %43 = tpu.matmul %41, %42, %cst_19 {dimension_numbers = #tpu.dot_dimension_numbers<[1], [0], [0], [1], [0, 0, 1, 1], [], []>} : vector<256x512xbf16>, vector<512x512xbf16>, vector<256x512xf32> -> vector<256x512xf32>
      %44 = arith.index_cast %arg1 : i32 to index
      %c0_20 = arith.constant 0 : index
      %c0_21 = arith.constant 0 : index
      %45 = vector.load %arg13[%44, %c0_20, %c0_21] : memref<2x256x512xf32, #tpu.memory_space<vmem>>, vector<1x256x512xf32>
      %46 = vector.shape_cast %45 : vector<1x256x512xf32> to vector<256x512xf32>
      %47 = vector.shape_cast %43 : vector<256x512xf32> to vector<1x256x512xf32>
      tpu.vector_store %arg13[%44, %c0_20, %c0_21], %47 {strides = array<i32>} : memref<2x256x512xf32, #tpu.memory_space<vmem>>, vector<1x256x512xf32>,
      %c0_22 = arith.constant 0 : index
      %c0_23 = arith.constant 0 : index
      %48 = vector.load %arg14[%c0_22, %c0_23] : memref<1x512xf32, #tpu.memory_space<vmem>>, vector<1x512xf32>
      %cst_24 = arith.constant dense<0.000000e+00> : vector<512xf32>
      %49 = vector.multi_reduction <add>, %43, %cst_24 [0] : vector<256x512xf32> to vector<512xf32>
      %50 = vector.shape_cast %49 : vector<512xf32> to vector<1x512xf32>
      %51 = arith.addf %48, %50 : vector<1x512xf32>
      %c0_25 = arith.constant 0 : index
      %c0_26 = arith.constant 0 : index
      %52 = vector.load %arg14[%c0_25, %c0_26] : memref<1x512xf32, #tpu.memory_space<vmem>>, vector<1x512xf32>
      tpu.vector_store %arg14[%c0_25, %c0_26], %51 {strides = array<i32>} : memref<1x512xf32, #tpu.memory_space<vmem>>, vector<1x512xf32>,
    } else {
    }
    %c2_i32 = arith.constant 2 : i32
    %17 = arith.cmpi eq, %arg0, %c2_i32 : i32
    %c0_i32_5 = arith.constant 0 : i32
    %18 = arith.cmpi eq, %arg1, %c0_i32_5 : i32
    %19 = arith.andi %17, %18 : i1
    %20 = arith.extui %19 : i1 to i32
    %c0_i32_6 = arith.constant 0 : i32
    %21 = arith.cmpi ne, %20, %c0_i32_6 : i32
    scf.if %21 {
      %c0 = arith.constant 0 : index
      %c0_9 = arith.constant 0 : index
      %25 = vector.load %arg14[%c0, %c0_9] : memref<1x512xf32, #tpu.memory_space<vmem>>, vector<1x512xf32>
      %cst = arith.constant 0.00260416674 : f32
      %26 = vector.broadcast %cst : f32 to vector<1x512xf32>
      %27 = arith.mulf %25, %26 : vector<1x512xf32>
      %cst_10 = arith.constant 0.000000e+00 : f32
      %28 = vector.broadcast %cst_10 : f32 to vector<1x512xf32>
      %c0_i32_11 = arith.constant 0 : i32
      %c2_i32_12 = arith.constant 2 : i32
      %29 = arith.addi %c0_i32_11, %c2_i32_12 : i32
      %c1_i32_13 = arith.constant 1 : i32
      %30 = scf.for %arg17 = %c0_i32_11 to %29 step %c1_i32_13 iter_args(%arg18 = %28) -> (vector<1x512xf32>)  : i32 {
        %45 = arith.index_cast %arg17 : i32 to index
        %c0_28 = arith.constant 0 : index
        %c0_29 = arith.constant 0 : index
        %46 = vector.load %arg13[%45, %c0_28, %c0_29] : memref<2x256x512xf32, #tpu.memory_space<vmem>>, vector<1x256x512xf32>
        %47 = vector.shape_cast %46 : vector<1x256x512xf32> to vector<256x512xf32>
        %c256_i32_30 = arith.constant 256 : i32
        %48 = arith.muli %arg17, %c256_i32_30 : i32
        %49 = tpu.iota {dimensions = array<i32: 0>} : vector<256x1xi32>
        %50 = vector.broadcast %48 : i32 to vector<256x1xi32>
        %51 = arith.addi %50, %49 : vector<256x1xi32>
        %c384_i32_31 = arith.constant 384 : i32
        %52 = vector.broadcast %c384_i32_31 : i32 to vector<256x1xi32>
        %53 = arith.cmpi slt, %51, %52 : vector<256x1xi32>
        %54 = vector.broadcast %27 : vector<1x512xf32> to vector<256x512xf32>
        %55 = arith.subf %47, %54 : vector<256x512xf32>
        %cst_32 = arith.constant 0.000000e+00 : f32
        %56 = vector.shape_cast %53 : vector<256x1xi1> to vector<256x1xi1>
        %57 = vector.broadcast %56 : vector<256x1xi1> to vector<256x512xi1>
        %58 = vector.broadcast %cst_32 : f32 to vector<256x512xf32>
        %59 = arith.select %57, %55, %58 : vector<256x512xi1>, vector<256x512xf32>
        %60 = arith.mulf %59, %59 : vector<256x512xf32>
        %cst_33 = arith.constant dense<0.000000e+00> : vector<512xf32>
        %61 = vector.multi_reduction <add>, %60, %cst_33 [0] : vector<256x512xf32> to vector<512xf32>
        %62 = vector.shape_cast %61 : vector<512xf32> to vector<1x512xf32>
        %63 = arith.addf %arg18, %62 : vector<1x512xf32>
        scf.yield %63 : vector<1x512xf32>
      }
      %c2_i32_14 = arith.constant 2 : i32
      %cst_15 = arith.constant 0.00260416674 : f32
      %31 = vector.broadcast %cst_15 : f32 to vector<1x512xf32>
      %32 = arith.mulf %30, %31 : vector<1x512xf32>
      %c0_16 = arith.constant 0 : index
      %c0_17 = arith.constant 0 : index
      %33 = vector.load %arg8[%c0_16, %c0_17] : memref<1x512xf32, #tpu.memory_space<vmem>>, vector<1x512xf32>
      %cst_18 = arith.constant 9.99999974E-6 : f32
      %34 = vector.broadcast %cst_18 : f32 to vector<1x512xf32>
      %35 = arith.addf %32, %34 : vector<1x512xf32>
      %36 = math.rsqrt %35 : vector<1x512xf32>
      %37 = arith.mulf %33, %36 : vector<1x512xf32>
      %c0_19 = arith.constant 0 : index
      %c0_20 = arith.constant 0 : index
      %38 = vector.load %arg15[%c0_19, %c0_20] : memref<1x512xf32, #tpu.memory_space<vmem>>, vector<1x512xf32>
      tpu.vector_store %arg15[%c0_19, %c0_20], %37 {strides = array<i32>} : memref<1x512xf32, #tpu.memory_space<vmem>>, vector<1x512xf32>,
      %c0_21 = arith.constant 0 : index
      %c0_22 = arith.constant 0 : index
      %39 = vector.load %arg9[%c0_21, %c0_22] : memref<1x512xf32, #tpu.memory_space<vmem>>, vector<1x512xf32>
      %40 = arith.mulf %27, %37 : vector<1x512xf32>
      %41 = arith.subf %39, %40 : vector<1x512xf32>
      %c0_23 = arith.constant 0 : index
      %c0_24 = arith.constant 0 : index
      %42 = vector.load %arg16[%c0_23, %c0_24] : memref<1x512xf32, #tpu.memory_space<vmem>>, vector<1x512xf32>
      tpu.vector_store %arg16[%c0_23, %c0_24], %41 {strides = array<i32>} : memref<1x512xf32, #tpu.memory_space<vmem>>, vector<1x512xf32>,
      %cst_25 = arith.constant 0.000000e+00 : f32
      %43 = vector.broadcast %cst_25 : f32 to vector<1x512xf32>
      %c0_26 = arith.constant 0 : index
      %c0_27 = arith.constant 0 : index
      %44 = vector.load %arg14[%c0_26, %c0_27] : memref<1x512xf32, #tpu.memory_space<vmem>>, vector<1x512xf32>
      tpu.vector_store %arg14[%c0_26, %c0_27], %43 {strides = array<i32>} : memref<1x512xf32, #tpu.memory_space<vmem>>, vector<1x512xf32>,
    } else {
    }
    %c2_i32_7 = arith.constant 2 : i32
    %22 = arith.cmpi eq, %arg0, %c2_i32_7 : i32
    %23 = arith.extui %22 : i1 to i32
    %c0_i32_8 = arith.constant 0 : i32
    %24 = arith.cmpi ne, %23, %c0_i32_8 : i32
    scf.if %24 {
      %25 = arith.index_cast %arg1 : i32 to index
      %c0 = arith.constant 0 : index
      %c0_9 = arith.constant 0 : index
      %26 = vector.load %arg13[%25, %c0, %c0_9] : memref<2x256x512xf32, #tpu.memory_space<vmem>>, vector<1x256x512xf32>
      %27 = vector.shape_cast %26 : vector<1x256x512xf32> to vector<256x512xf32>
      %c0_10 = arith.constant 0 : index
      %c0_11 = arith.constant 0 : index
      %28 = vector.load %arg15[%c0_10, %c0_11] : memref<1x512xf32, #tpu.memory_space<vmem>>, vector<1x512xf32>
      %29 = vector.broadcast %28 : vector<1x512xf32> to vector<256x512xf32>
      %30 = arith.mulf %27, %29 : vector<256x512xf32>
      %c0_12 = arith.constant 0 : index
      %c0_13 = arith.constant 0 : index
      %31 = vector.load %arg16[%c0_12, %c0_13] : memref<1x512xf32, #tpu.memory_space<vmem>>, vector<1x512xf32>
      %32 = vector.broadcast %31 : vector<1x512xf32> to vector<256x512xf32>
      %33 = arith.addf %30, %32 : vector<256x512xf32>
      %cst = arith.constant 0.000000e+00 : f32
      %34 = vector.broadcast %cst : f32 to vector<256x512xf32>
      %35 = arith.maximumf %33, %34 : vector<256x512xf32>
      %36 = arith.truncf %35 : vector<256x512xf32> to vector<256x512xbf16>
      %c0_14 = arith.constant 0 : index
      %c0_15 = arith.constant 0 : index
      %37 = vector.load %arg5[%c0_14, %c0_15] : memref<512x512xbf16, #tpu.memory_space<vmem>>, vector<512x512xbf16>
      %cst_16 = arith.constant dense<0.000000e+00> : vector<256x512xf32>
      %38 = tpu.matmul %36, %37, %cst_16 {dimension_numbers = #tpu.dot_dimension_numbers<[1], [0], [0], [1], [0, 0, 1, 1], [], []>} : vector<256x512xbf16>, vector<512x512xbf16>, vector<256x512xf32> -> vector<256x512xf32>
      %c0_17 = arith.constant 0 : index
      %c0_18 = arith.constant 0 : index
      %39 = vector.load %arg10[%c0_17, %c0_18] : memref<1x512xf32, #tpu.memory_space<vmem>>, vector<1x512xf32>
      %40 = vector.broadcast %39 : vector<1x512xf32> to vector<256x512xf32>
      %41 = arith.addf %38, %40 : vector<256x512xf32>
      %c0_19 = arith.constant 0 : index
      %c0_20 = arith.constant 0 : index
      %42 = vector.load %arg12[%c0_19, %c0_20] : memref<256x512xf32, #tpu.memory_space<vmem>>, vector<256x512xf32>
      tpu.vector_store %arg12[%c0_19, %c0_20], %41 {strides = array<i32>} : memref<256x512xf32, #tpu.memory_space<vmem>>, vector<256x512xf32>,
    } else {
    }
    return
  }
  func.func @transform_0(%arg0: i32, %arg1: i32) -> (i32, i32) {
    %c0_i32 = arith.constant 0 : i32
    %0 = arith.cmpi eq, %arg0, %c0_i32 : i32
    %c1_i32 = arith.constant 1 : i32
    %1 = arith.select %0, %arg1, %c1_i32 : i32
    %c0_i32_0 = arith.constant 0 : i32
    %c0_i32_1 = arith.constant 0 : i32
    return %1, %c0_i32_0 : i32, i32
  }
  func.func @transform_1(%arg0: i32, %arg1: i32) -> (i32, i32) {
    %c0_i32 = arith.constant 0 : i32
    %c0_i32_0 = arith.constant 0 : i32
    %c0_i32_1 = arith.constant 0 : i32
    return %c0_i32, %c0_i32_0 : i32, i32
  }
  func.func @transform_2(%arg0: i32, %arg1: i32) -> (i32, i32) {
    %c0_i32 = arith.constant 0 : i32
    %c0_i32_0 = arith.constant 0 : i32
    %c0_i32_1 = arith.constant 0 : i32
    return %c0_i32, %c0_i32_0 : i32, i32
  }
  func.func @transform_3(%arg0: i32, %arg1: i32) -> (i32, i32) {
    %c0_i32 = arith.constant 0 : i32
    %c0_i32_0 = arith.constant 0 : i32
    %c0_i32_1 = arith.constant 0 : i32
    return %c0_i32, %c0_i32_0 : i32, i32
  }
  func.func @transform_4(%arg0: i32, %arg1: i32) -> (i32, i32) {
    %c0_i32 = arith.constant 0 : i32
    %c0_i32_0 = arith.constant 0 : i32
    %c0_i32_1 = arith.constant 0 : i32
    return %c0_i32, %c0_i32_0 : i32, i32
  }
  func.func @transform_5(%arg0: i32, %arg1: i32) -> (i32, i32) {
    %c0_i32 = arith.constant 0 : i32
    %c0_i32_0 = arith.constant 0 : i32
    %c0_i32_1 = arith.constant 0 : i32
    return %c0_i32, %c0_i32_0 : i32, i32
  }
  func.func @transform_6(%arg0: i32, %arg1: i32) -> (i32, i32) {
    %c0_i32 = arith.constant 0 : i32
    %c0_i32_0 = arith.constant 0 : i32
    %c0_i32_1 = arith.constant 0 : i32
    return %c0_i32, %c0_i32_0 : i32, i32
  }
  func.func @transform_7(%arg0: i32, %arg1: i32) -> (i32, i32) {
    %c0_i32 = arith.constant 0 : i32
    %c0_i32_0 = arith.constant 0 : i32
    %c0_i32_1 = arith.constant 0 : i32
    return %c0_i32, %c0_i32_0 : i32, i32
  }
  func.func @transform_8(%arg0: i32, %arg1: i32) -> (i32, i32) {
    %c0_i32 = arith.constant 0 : i32
    %c0_i32_0 = arith.constant 0 : i32
    %c0_i32_1 = arith.constant 0 : i32
    return %c0_i32, %c0_i32_0 : i32, i32
  }
  func.func @transform_9(%arg0: i32, %arg1: i32) -> (i32, i32) {
    %c0_i32 = arith.constant 0 : i32
    %0 = arith.cmpi eq, %arg0, %c0_i32 : i32
    %c1_i32 = arith.constant 1 : i32
    %1 = arith.cmpi eq, %arg0, %c1_i32 : i32
    %c1_i32_0 = arith.constant 1 : i32
    %2 = arith.select %1, %arg1, %c1_i32_0 : i32
    %c0_i32_1 = arith.constant 0 : i32
    %3 = arith.select %0, %c0_i32_1, %2 : i32
    %c0_i32_2 = arith.constant 0 : i32
    %c0_i32_3 = arith.constant 0 : i32
    return %3, %c0_i32_2 : i32, i32
  }
  func.func @transform_10(%arg0: i32, %arg1: i32) -> (i32, i32) {
    %c2_i32 = arith.constant 2 : i32
    %0 = arith.cmpi eq, %arg0, %c2_i32 : i32
    %c0_i32 = arith.constant 0 : i32
    %1 = arith.select %0, %arg1, %c0_i32 : i32
    %c0_i32_0 = arith.constant 0 : i32
    %c0_i32_1 = arith.constant 0 : i32
    return %1, %c0_i32_0 : i32, i32
  }
}

</mosaic_0001>

<bundles_post_ra>
// kernel: language_model_forward.1
= control target key start
LH: loop header
LB: loop body
LE: loop exit
PB: predicated region body
PF: predicated region fallthrough
CT: control target
= control target key end

     0   :  { %16 = vsyncpa [#allocation7], 0  ;;  %s10982_s13 = smov 0   ;;  %s10984_s14 = smov 0   ;;  %s18688_s0 = inlined_call_operand.vmem [shape: bf16[512,256], index: 0, kind: input, shape index: {}]   ;;  %s18689_s1 = inlined_call_operand.hbm [shape: bf16[256,512], index: 1, kind: input, shape index: {}]   ;;  %s18690_s2 = inlined_call_operand.vmem [shape: bf16[512,512], index: 2, kind: input, shape index: {}]   ;;  %s18691_s3 = inlined_call_operand.vmem [shape: bf16[512,512], index: 3, kind: input, shape index: {}]   ;;  %s18692_s4 = inlined_call_operand.vmem [shape: f32[1,512], index: 4, kind: input, shape index: {}]   ;;  %s18693_s5 = inlined_call_operand.vmem [shape: f32[1,512], index: 5, kind: input, shape index: {}]   ;;  %s18694_s6 = inlined_call_operand.vmem [shape: f32[1,512], index: 6, kind: input, shape index: {}]   ;;  %s18695_s7 = inlined_call_operand.vmem [shape: f32[1,512], index: 7, kind: input, shape index: {}]   ;;  %s18696_s8 = inlined_call_operand.vmem [shape: f32[1,512], index: 8, kind: input, shape index: {}]   ;;  %s18697_s9 = inlined_call_operand.vmem [shape: f32[512,512], index: 9, kind: output, shape index: {0}]   ;;  %s18698_s10 = inlined_call_operand.vmem [shape: f32[512,512], index: 10, kind: output, shape index: {1}]  }
   0x1   :  { %s10986_s15 = smov 0   ;;  %s10988_s16 = smov 0  }
   0x2   :  { %s10990_s17 = smov 0  }
   0x3 LB: > { %s8915_s18 = sadd.s32 4294967295, %s10875_s17   ;;  %s31_s19 = sadd.s32 1, %s10867_s15  ;;  %s10875_s17 = sphi %s10990_s17, %s22_s17   ;;  %s10871_s16 = sphi %s10988_s16, %s20499_s16   ;;  %s10867_s15 = sphi %s10986_s15, %s20498_s15   ;;  %s10863_s14 = sphi %s10984_s14, %s20497_s14   ;;  %s10859_s13 = sphi %s10982_s13, %s20496_s13  }
   0x4   : > { %p32_p0 = scmp.ge.s32.totalorder %s31_s19, 2  ;;  %s34_s20 = sadd.s32 1, %s10871_s16 }
   0x5   : > { %p8917_p1 = scmp.ge.s32.totalorder %s10875_s17, 1  ;;  %p301_p2 = scmp.lt.s32.totalorder %s10875_s17, 7 }
   0x6   : > { %s20501_s19 = smov (%p32_p0, %s31_s19), 0  ;;  %s20503_s20 = smov (!%p32_p0, %s34_s20), %s10871_s16 }
   0x7   : > { %p11015_p3 = pnand %p8917_p1, %p301_p2  ;;  %p36_p4 = scmp.ge.s32.totalorder %s20503_s20, 3 }
   0x8   : > { %p11019_p5 = scmp.eq.s32.totalorder %s8915_s18, 0  ;;  %s10917_s23 = smov [#allocation6]  }
   0x9   : > { %s19058_s21 = scalar_select %p11015_p3, 1, 0 }
   0xa   : > { %s19059_s22 = scalar_select %p11019_p5, 1, 0 }
   0xb   : > { %p10082_p6 = pneg %p11015_p3  ;;  %s20505_s20 = smov (%p36_p4, %s20503_s20), 0 }
   0xc   : > { %s313_s24 = sshll.u32 %s10917_s23, 4  ;;  %s10765_s28 = scalar_lea.hbm %s18689_s1, 8192  ;;  %s314_s24 = int_to_ptr.vmem [resolvable:$true] %s313_s24 }
   0xd   : > { %p11029_p7 = pnand %p11019_p5, %p10082_p6  ;;  %p10766_p8 = scmp.ne.s32.totalorder %s18689_s1, %s10765_s28 }
   0xe   : > { %p10772_p12 = scmp.lt.u32.totalorder %s10765_s28, %s18689_s1 }
   0xf   : > { %p10767_p9 = pneg %p11029_p7 }
  0x11   : > { %p10768_p10 = pnand %p10767_p9, %p10766_p8 }
  0x13   : > { %p10769_p11 = pneg %p10768_p10 }
  0x15   : > { %p10774_p13 = pnand %p10772_p12, %p10769_p11 }
  0x17   : > { %10777 = shalt.err (!%p10774_p13)
}
  0x18   : > { %s10778_s18 = scalar_lea.vmem %s314_s24, 8192  ;;  %p10786_p4 = scmp.lt.s32.totalorder %s314_s24, %s314_s24 }
  0x19   : > { %p10779_p0 = scmp.ne.s32.totalorder %s314_s24, %s10778_s18  ;;  %p10787_p6 = scmp.lt.s32.totalorder %s10778_s18, %s10778_s18 }
  0x1b   : > { %p10781_p1 = pnand %p10779_p0, %p10767_p9  ;;  %p10788_p5 = por %p10787_p6, %p10786_p4 }
  0x1d   : > { %p10782_p2 = pneg %p10781_p1 }
  0x1f   : > { %p10789_p3 = pnand %p10788_p5, %p10782_p2 }
  0x21   : > { %10792 = shalt.err (!%p10789_p3)
}
  0x22   : > { %s10918_s23 = smov 256   ;;  %s10919_s26 = smov 16  }
  0x23   : > { %10085 = dma.hbm_to_vmem [thread:$0]  (!%p11029_p7), %s18689_s1, 8192, %s314_s24, [#allocation7], %s10918_s23, %s10918_s23, %s10919_s26  }
  0x24   : > { %p19061_p8 = scmp.ne.s32.totalorder %s19058_s21, 0 }
  0x26   : > { %364 = sbr.rel (%p19061_p8) target bundleno = 2226 (0x8b2), region = 56 }
  0x2d   : > { %p19062_p10 = scmp.ne.s32.totalorder %s19059_s22, 0 }
  0x2f   : > { %10854 = dma.done.wait (%p19062_p10), [#allocation7], 8192  }
  0x30   : > { %10856 = vsyncadd (%p19062_p10), [#allocation7], 4294959104  ;;  %p418_p3 = scmp.eq.s32.totalorder %s10863_s14, 0  ;;  %p430_p5 = scmp.eq.s32.totalorder %s10863_s14, 1  ;;  %v18702_v0 = vlaneseq }
  0x31   : > { %s8931_s24 = sshll.u32 %s10859_s13, 8  ;;  %p444_p9 = scmp.eq.s32.totalorder %s10863_s14, 2 }
  0x32   : > { %s419_s21 = scalar_select %p418_p3, %s10859_s13, 1  ;;  %v11062_v1 = vshrl.u32 %v18702_v0, 7  ;;  %v11067_v2 = vstv %s8931_s24 }
  0x33   : > { %s431_s22 = scalar_select %p430_p5, %s10859_s13, 1 }
  0x34   : > { %19063 = vst [vmem:[#allocation9_spill] sm:$0xff] %v11062_v1  ;;  %s8922_s25 = sshll.u32 %s419_s21, 5  ;;  %v11070_v3 = vadd.s32 8, %v11062_v1  ;;  %v11073_v4 = vadd.s32 16, %v11062_v1  ;;  %v11076_v5 = vadd.s32 24, %v11062_v1  ;;  %v11079_v6 = vadd.s32 32, %v11062_v1 }
  0x35   : > { %p421_p7 = scmp.lt.s32.totalorder %s8922_s25, 63  ;;  %v11082_v7 = vadd.s32 40, %v11062_v1  ;;  %v11085_v8 = vadd.s32 48, %v11062_v1  ;;  %v11088_v9 = vadd.s32 56, %v11062_v1  ;;  %v11091_v10 = vadd.s32 64, %v11062_v1  ;;  %s20507_s22 = smov (%p418_p3, %s431_s22), 0 }
  0x36   : > { %19064 = vst [vmem:[#allocation10_spill] sm:$0xff] %v11070_v3  ;;  %19065 = vst [vmem:[#allocation11_spill] sm:$0xff] %v11073_v4  ;;  %v11096_v11 = vadd.s32 72, %v11062_v1  ;;  %v11099_v12 = vadd.s32 80, %v11062_v1  ;;  %v11102_v13 = vadd.s32 88, %v11062_v1  ;;  %v11105_v14 = vadd.s32 96, %v11062_v1 }
  0x37   : > { %19066 = vst [vmem:[#allocation12_spill] sm:$0xff] %v11076_v5  ;;  %19067 = vst [vmem:[#allocation13_spill] sm:$0xff] %v11079_v6  ;;  %s20509_s25 = smov (!%p421_p7, %s8922_s25), 63  ;;  %v11108_v15 = vadd.s32 104, %v11062_v1  ;;  %v11111_v16 = vadd.s32 112, %v11062_v1  ;;  %v11114_v17 = vadd.s32 120, %v11062_v1  ;;  %v11172_v34 = vadd.s32 %v11067_v2, %v11062_v1 }
  0x38   : > { %19068 = vst [vmem:[#allocation14_spill] sm:$0xff] %v11082_v7  ;;  %19069 = vst [vmem:[#allocation15_spill] sm:$0xff] %v11085_v8  ;;  %v11117_v18 = vadd.s32 128, %v11062_v1  ;;  %s8925_s28 = sshll.u32 %s20507_s22, 5  ;;  %v11121_v19 = vadd.s32 136, %v11062_v1  ;;  %v11124_v20 = vadd.s32 144, %v11062_v1  ;;  %v11179_v35 = vadd.s32 %v11067_v2, %v11070_v3 }
  0x39   : > { %19070 = vst [vmem:[#allocation16_spill] sm:$0xff] %v11088_v9  ;;  %19071 = vst [vmem:[#allocation17_spill] sm:$0xff] %v11091_v10  ;;  %v11127_v21 = vadd.s32 152, %v11062_v1  ;;  %v11130_v22 = vadd.s32 160, %v11062_v1  ;;  %s9686_s30 = sshll.u32 %s20509_s25, 3  ;;  %p434_p11 = scmp.lt.s32.totalorder %s8925_s28, 63  ;;  %v11183_v36 = vadd.s32 %v11067_v2, %v11073_v4  ;;  %v11187_v37 = vadd.s32 %v11067_v2, %v11076_v5 }
  0x3a   : > { %19072 = vst [vmem:[#allocation18_spill] sm:$0xff] %v11096_v11  ;;  %19073 = vst [vmem:[#allocation19_spill] sm:$0xff] %v11099_v12  ;;  %v11133_v23 = vadd.s32 168, %v11062_v1  ;;  %v11136_v24 = vadd.s32 176, %v11062_v1  ;;  %v11139_v25 = vadd.s32 184, %v11062_v1  ;;  %v11142_v26 = vadd.s32 192, %v11062_v1  ;;  %s11147_s18 = scalar_lea.vmem %s18688_s0, %s9686_s30 }
  0x3b   : > { %19074 = vst [vmem:[#allocation20_spill] sm:$0xff] %v11102_v13  ;;  %19075 = vst [vmem:[#allocation21_spill] sm:$0xff] %v11105_v14  ;;  %v11150_v27 = vadd.s32 200, %v11062_v1  ;;  %v11153_v28 = vadd.s32 208, %v11062_v1  ;;  %v11156_v29 = vadd.s32 216, %v11062_v1  ;;  %v11159_v30 = vadd.s32 224, %v11062_v1 }
  0x3c   : > { %19076 = vst [vmem:[#allocation22_spill] sm:$0xff] %v11108_v15  ;;  %19077 = vst [vmem:[#allocation23_spill] sm:$0xff] %v11111_v16  ;;  %s20511_s28 = smov (!%p434_p11, %s8925_s28), 63  ;;  %v11162_v31 = vadd.s32 232, %v11062_v1  ;;  %v11165_v32 = vadd.s32 240, %v11062_v1  ;;  %v11168_v33 = vadd.s32 248, %v11062_v1  ;;  %v11191_v38 = vadd.s32 %v11067_v2, %v11079_v6 }
  0x3d   : > { %19078 = vst [vmem:[#allocation24_spill] sm:$0xff] %v11114_v17  ;;  %19079 = vst [vmem:[#allocation25_spill] sm:$0xff] %v11117_v18  ;;  %s445_s23 = scalar_select %p444_p9, %s10859_s13, 0  ;;  %v11195_v39 = vadd.s32 %v11067_v2, %v11082_v7  ;;  %v11199_v40 = vadd.s32 %v11067_v2, %v11085_v8  ;;  %v11203_v41 = vadd.s32 %v11067_v2, %v11088_v9  ;;  %vm522_vm0 = vcmp.lt.s32.totalorder %v11172_v34, 384 }
  0x3e   : > { %19080 = vst [vmem:[#allocation26_spill] sm:$0xff] %v11121_v19  ;;  %19081 = vst [vmem:[#allocation27_spill] sm:$0xff] %v11124_v20  ;;  %s9687_s26 = sshll.u32 %s20511_s28, 5  ;;  %v11207_v42 = vadd.s32 %v11067_v2, %v11091_v10  ;;  %v11216_v43 = vadd.s32 %v11067_v2, %v11096_v11  ;;  %v11220_v44 = vadd.s32 %v11067_v2, %v11099_v12  ;;  %vm523_vm1 = vcmp.lt.s32.totalorder %v11179_v35, 384  ;;  %p8932_p13 = scmp.ne.s32.totalorder %s10863_s14, 0 }
  0x3f   : > { %19082 = vst [vmem:[#allocation28_spill] sm:$0xff] %v11127_v21  ;;  %19083 = vst [vmem:[#allocation29_spill] sm:$0xff] %v11130_v22  ;;  %s11212_s24 = scalar_lea.vmem %s18697_s9, %s9687_s26  ;;  %s8928_s21 = sshll.u32 %s445_s23, 5  ;;  %v11224_v45 = vadd.s32 %v11067_v2, %v11102_v13  ;;  %v11228_v46 = vadd.s32 %v11067_v2, %v11105_v14  ;;  %v11232_v47 = vadd.s32 %v11067_v2, %v11108_v15  ;;  %vm524_vm2 = vcmp.lt.s32.totalorder %v11183_v36, 384 }
  0x40   : > { %19084 = vst [vmem:[#allocation30_spill] sm:$0xff] %v11133_v23  ;;  %19085 = vst [vmem:[#allocation31_spill] sm:$0xff] %v11136_v24  ;;  %p447_p12 = scmp.lt.s32.totalorder %s8928_s21, 63  ;;  %v11236_v48 = vadd.s32 %v11067_v2, %v11111_v16  ;;  %v11240_v49 = vadd.s32 %v11067_v2, %v11114_v17  ;;  %v11244_v50 = vadd.s32 %v11067_v2, %v11117_v18  ;;  %p8933_p0 = scmp.ne.s32.totalorder (!%p8932_p13), %s10859_s13, 0 }
  0x41   : > { %19086 = vst [vmem:[#allocation32_spill] sm:$0xff] %v11139_v25  ;;  %19087 = vst [vmem:[#allocation33_spill] sm:$0xff] %v11142_v26  ;;  %v11248_v51 = vadd.s32 %v11067_v2, %v11121_v19  ;;  %v11252_v52 = vadd.s32 %v11067_v2, %v11124_v20  ;;  %v11256_v53 = vadd.s32 %v11067_v2, %v11127_v21 }
  0x42   : > { %19088 = vst [vmem:[#allocation34_spill] sm:$0xff] %v11150_v27  ;;  %19089 = vst [vmem:[#allocation35_spill] sm:$0xff] %v11153_v28  ;;  %v11260_v54 = vadd.s32 %v11067_v2, %v11130_v22  ;;  %s20513_s21 = smov (!%p447_p12, %s8928_s21), 63  ;;  %v11264_v55 = vadd.s32 %v11067_v2, %v11133_v23  ;;  %v11268_v56 = vadd.s32 %v11067_v2, %v11136_v24 }
  0x43   : > { %19090 = vst [vmem:[#allocation36_spill] sm:$0xff] %v11156_v29  ;;  %19091 = vst [vmem:[#allocation37_spill] sm:$0xff] %v11159_v30  ;;  %v11272_v57 = vadd.s32 %v11067_v2, %v11139_v25  ;;  %v11276_v58 = vadd.s32 %v11067_v2, %v11142_v26  ;;  %v11280_v59 = vadd.s32 %v11067_v2, %v11150_v27  ;;  %s9688_s22 = sshll.u32 %s20513_s21, 5 }
  0x44   : > { %19092 = vst [vmem:[#allocation38_spill] sm:$0xff] %v11162_v31  ;;  %19093 = vst [vmem:[#allocation39_spill] sm:$0xff] %v11165_v32  ;;  %v11284_v60 = vadd.s32 %v11067_v2, %v11153_v28  ;;  %v11288_v61 = vadd.s32 %v11067_v2, %v11156_v29  ;;  %v11292_v62 = vadd.s32 %v11067_v2, %v11159_v30  ;;  %s11310_s30 = scalar_lea.vmem %s18698_s10, %s9688_s22 }
  0x45   : > { %19094 = vst [vmem:[#allocation40_spill] sm:$0xff] %v11168_v33  ;;  %19095 = vst [vmem:[#allocation41_spill] sm:$0xff] %v11172_v34  ;;  %v11296_v63 = vadd.s32 %v11067_v2, %v11162_v31  ;;  %v11300_v0 = vadd.s32 %v11067_v2, %v11165_v32  ;;  %v11304_v28 = vadd.s32 %v11067_v2, %v11168_v33 }
  0x46   : > { %19096 = vst [vmem:[#allocation42_spill] sm:$0xff] %v11179_v35  ;;  %19097 = vst [vmem:[#allocation43_spill] sm:$0xff] %v11183_v36 }
  0x47   : > { %19098 = vst [vmem:[#allocation44_spill] sm:$0xff] %v11187_v37  ;;  %19099 = vst [vmem:[#allocation45_spill] sm:$0xff] %v11191_v38 }
  0x48   : > { %19100 = vst [vmem:[#allocation46_spill] sm:$0xff] %v11195_v39  ;;  %19101 = vst [vmem:[#allocation47_spill] sm:$0xff] %v11199_v40 }
  0x49   : > { %19102 = vst [vmem:[#allocation48_spill] sm:$0xff] %v11203_v41  ;;  %19103 = vst [vmem:[#allocation49_spill] sm:$0xff] %v11207_v42 }
  0x4a   : > { %19104 = vst [vmem:[#allocation50_spill] sm:$0xff] %v11216_v43  ;;  %19105 = vst [vmem:[#allocation51_spill] sm:$0xff] %v11220_v44 }
  0x4b   : > { %19106 = vst [vmem:[#allocation52_spill] sm:$0xff] %v11224_v45  ;;  %19107 = vst [vmem:[#allocation53_spill] sm:$0xff] %v11228_v46 }
  0x4c   : > { %19108 = vst [vmem:[#allocation54_spill] sm:$0xff] %v11232_v47  ;;  %19109 = vst [vmem:[#allocation55_spill] sm:$0xff] %v11236_v48 }
  0x4d   : > { %19110 = vst [vmem:[#allocation56_spill] sm:$0xff] %v11240_v49  ;;  %19111 = vst [vmem:[#allocation57_spill] sm:$0xff] %v11244_v50 }
  0x4e   : > { %19112 = vst [vmem:[#allocation58_spill] sm:$0xff] %v11248_v51  ;;  %19113 = vst [vmem:[#allocation59_spill] sm:$0xff] %v11252_v52 }
  0x4f   : > { %19114 = vst [vmem:[#allocation60_spill] sm:$0xff] %v11256_v53  ;;  %19115 = vst [vmem:[#allocation61_spill] sm:$0xff] %v11260_v54  ;;  %557 = sbr.rel (%p8932_p13) target bundleno = 518 (0x206), region = 64 }
  0x50   : > { %19116 = vst [vmem:[#allocation62_spill] sm:$0xff] %v11264_v55  ;;  %19117 = vst [vmem:[#allocation63_spill] sm:$0xff] %v11268_v56 }
  0x51   : > { %19118 = vst [vmem:[#allocation64_spill] sm:$0xff] %v11272_v57  ;;  %19119 = vst [vmem:[#allocation65_spill] sm:$0xff] %v11276_v58 }
  0x52   : > { %19120 = vst [vmem:[#allocation66_spill] sm:$0xff] %v11280_v59  ;;  %19121 = vst [vmem:[#allocation67_spill] sm:$0xff] %v11284_v60 }
  0x53   : > { %19122 = vst [vmem:[#allocation68_spill] sm:$0xff] %v11288_v61  ;;  %19123 = vst [vmem:[#allocation69_spill] sm:$0xff] %v11292_v62 }
  0x54   : > { %19124 = vst [vmem:[#allocation70_spill] sm:$0xff] %v11296_v63  ;;  %19125 = vst [vmem:[#allocation71_spill] sm:$0xff] %v11300_v0 }
  0x55   : > { %19126 = vst [vmem:[#allocation72_spill] sm:$0xff] %v11304_v28 }
  0x56   : > { %561 = sbr.rel (%p8933_p0) target bundleno = 93 (0x5d), region = 68  ;;  %v19127_v2 = vlaneseq (!%p8933_p0)  ;;  %v10920_v59 = vmov (!%p8933_p0), 0.0  }
  0x58   : > { %vm564_vm15 = vcmp.lt.s32.totalorder (!%p8933_p0), %v19127_v2, 512 }
  0x59   : > { %566 = vst.msk [vmem:[#allocation3] sm:$0xf] (!%p8933_p0), %vm564_vm15, %v10920_v59 }
  0x5d PF: > { %v10218_v61 = vld [vmem:[#allocation6 + $0x4] ss:$16 sps:$4 sm:$0xff]   ;;  %v10220_v60 = vld [vmem:[#allocation6 + $0xc] ss:$16 sps:$4 sm:$0xff]   ;;  %v10222_v62 = vld [vmem:[#allocation6] ss:$16 sps:$4 sm:$0xff]  }
  0x5e   : > { %1143 = vmatprep.subr.bf16.mxu0 %v10218_v61  ;;  %v10223_v63 = vld [vmem:[#allocation6 + $0x8] ss:$16 sps:$4 sm:$0xff]   ;;  %1336 = vmatprep.subr.bf16.mxu1 %v10220_v60  ;;  %v10224_v0 = vld [vmem:[#allocation6 + $0x24] ss:$16 sps:$4 sm:$0xff]   ;;  %v10226_v28 = vld [vmem:[#allocation6 + $0x2c] ss:$16 sps:$4 sm:$0xff]  }
  0x5f   : > { %1144 = vmatpush1.bf16.msra.mxu0 %v10222_v62  ;;  %1337 = vmatpush1.bf16.msra.mxu1 %v10223_v63  ;;  %v10228_v58 = vld [vmem:[#allocation6 + $0x20] ss:$16 sps:$4 sm:$0xff]   ;;  %v10229_v57 = vld [vmem:[#allocation6 + $0x28] ss:$16 sps:$4 sm:$0xff]   ;;  %v10230_v56 = vld [vmem:[#allocation6 + $0x44] ss:$16 sps:$4 sm:$0xff]  }
  0x60   : > { %1145 = vmatprep.subr.bf16.mxu0 %v10224_v0  ;;  %1338 = vmatprep.subr.bf16.mxu1 %v10226_v28  ;;  %v10232_v55 = vld [vmem:[#allocation6 + $0x4c] ss:$16 sps:$4 sm:$0xff]   ;;  %v10234_v2 = vld [vmem:[#allocation6 + $0x40] ss:$16 sps:$4 sm:$0xff]   ;;  %v10235_v54 = vld [vmem:[#allocation6 + $0x48] ss:$16 sps:$4 sm:$0xff]  }
  0x61   : > { %v10236_v59 = vld [vmem:[#allocation6 + $0x64] ss:$16 sps:$4 sm:$0xff]   ;;  %v10238_v61 = vld [vmem:[#allocation6 + $0x6c] ss:$16 sps:$4 sm:$0xff]   ;;  %v10240_v53 = vld [vmem:[#allocation6 + $0x60] ss:$16 sps:$4 sm:$0xff]  }
  0x62   : > { %v10241_v60 = vld [vmem:[#allocation6 + $0x68] ss:$16 sps:$4 sm:$0xff]   ;;  %v10242_v62 = vld [vmem:[#allocation6 + $0x84] ss:$16 sps:$4 sm:$0xff]   ;;  %v10244_v0 = vld [vmem:[#allocation6 + $0x8c] ss:$16 sps:$4 sm:$0xff]  }
  0x63   : > { %1146 = vmatpush1.bf16.msra.mxu0 %v10228_v58  ;;  %1339 = vmatpush1.bf16.msra.mxu1 %v10229_v57  ;;  %v10246_v63 = vld [vmem:[#allocation6 + $0x80] ss:$16 sps:$4 sm:$0xff]   ;;  %v10247_v28 = vld [vmem:[#allocation6 + $0x88] ss:$16 sps:$4 sm:$0xff]   ;;  %v10248_v52 = vld [vmem:[#allocation6 + $0xa4] ss:$16 sps:$4 sm:$0xff]  }
  0x64   : > { %1147 = vmatprep.subr.bf16.mxu0 %v10230_v56  ;;  %1340 = vmatprep.subr.bf16.mxu1 %v10232_v55  ;;  %v10250_v57 = vld [vmem:[#allocation6 + $0xac] ss:$16 sps:$4 sm:$0xff]   ;;  %v10252_v58 = vld [vmem:[#allocation6 + $0xa0] ss:$16 sps:$4 sm:$0xff]   ;;  %v10253_v55 = vld [vmem:[#allocation6 + $0xa8] ss:$16 sps:$4 sm:$0xff]  }
  0x65   : > { %v10254_v56 = vld [vmem:[#allocation6 + $0xc4] ss:$16 sps:$4 sm:$0xff]   ;;  %s9689_s11 = sshll.u32 %s10859_s13, 10 }
  0x66   : > { %s11379_s12 = scalar_lea.vmem [#allocation2], %s9689_s11 }
  0x67   : > { %1148 = vmatpush1.bf16.msra.mxu0 %v10234_v2  ;;  %1341 = vmatpush1.bf16.msra.mxu1 %v10235_v54  ;;  %v10256_v54 = vld [vmem:[#allocation6 + $0xcc] ss:$16 sps:$4 sm:$0xff]   ;;  %v10258_v2 = vld [vmem:[#allocation6 + $0xc0] ss:$16 sps:$4 sm:$0xff]  }
  0x68   : > { %1149 = vmatprep.subr.bf16.mxu0 %v10236_v59  ;;  %1342 = vmatprep.subr.bf16.mxu1 %v10238_v61  ;;  %v10259_v59 = vld [vmem:[#allocation6 + $0xc8] ss:$16 sps:$4 sm:$0xff]   ;;  %v10260_v61 = vld [vmem:[#allocation6 + $0xe4] ss:$16 sps:$4 sm:$0xff]  }
  0x6b   : > { %1150 = vmatpush1.bf16.msra.mxu0 %v10240_v53  ;;  %1343 = vmatpush1.bf16.msra.mxu1 %v10241_v60  ;;  %v10262_v53 = vld [vmem:[#allocation6 + $0xec] ss:$16 sps:$4 sm:$0xff]   ;;  %v10264_v60 = vld [vmem:[#allocation6 + $0xe0] ss:$16 sps:$4 sm:$0xff]  }
  0x6c   : > { %1151 = vmatprep.subr.bf16.mxu0 %v10242_v62  ;;  %1344 = vmatprep.subr.bf16.mxu1 %v10244_v0  ;;  %v10265_v62 = vld [vmem:[#allocation6 + $0xe8] ss:$16 sps:$4 sm:$0xff]   ;;  %v10266_v0 = vld [vmem:[#allocation6 + $0x104] ss:$16 sps:$4 sm:$0xff]  }
  0x6f   : > { %1152 = vmatpush1.bf16.msra.mxu0 %v10246_v63  ;;  %1345 = vmatpush1.bf16.msra.mxu1 %v10247_v28  ;;  %v10268_v63 = vld [vmem:[#allocation6 + $0x10c] ss:$16 sps:$4 sm:$0xff]   ;;  %v10270_v28 = vld [vmem:[#allocation6 + $0x100] ss:$16 sps:$4 sm:$0xff]  }
  0x70   : > { %1153 = vmatprep.subr.bf16.mxu0 %v10248_v52  ;;  %1346 = vmatprep.subr.bf16.mxu1 %v10250_v57  ;;  %v10271_v52 = vld [vmem:[#allocation6 + $0x108] ss:$16 sps:$4 sm:$0xff]   ;;  %v10272_v57 = vld [vmem:[#allocation6 + $0x124] ss:$16 sps:$4 sm:$0xff]  }
  0x73   : > { %1154 = vmatpush1.bf16.msra.mxu0 %v10252_v58  ;;  %1347 = vmatpush1.bf16.msra.mxu1 %v10253_v55  ;;  %v10274_v58 = vld [vmem:[#allocation6 + $0x12c] ss:$16 sps:$4 sm:$0xff]   ;;  %v10276_v55 = vld [vmem:[#allocation6 + $0x120] ss:$16 sps:$4 sm:$0xff]  }
  0x74   : > { %1155 = vmatprep.subr.bf16.mxu0 %v10254_v56  ;;  %1348 = vmatprep.subr.bf16.mxu1 %v10256_v54  ;;  %v10277_v56 = vld [vmem:[#allocation6 + $0x128] ss:$16 sps:$4 sm:$0xff]   ;;  %v10278_v54 = vld [vmem:[#allocation6 + $0x144] ss:$16 sps:$4 sm:$0xff]  }
  0x77   : > { %1156 = vmatpush1.bf16.msra.mxu0 %v10258_v2  ;;  %1349 = vmatpush1.bf16.msra.mxu1 %v10259_v59  ;;  %v10280_v2 = vld [vmem:[#allocation6 + $0x14c] ss:$16 sps:$4 sm:$0xff]   ;;  %v10282_v59 = vld [vmem:[#allocation6 + $0x140] ss:$16 sps:$4 sm:$0xff]  }
  0x78   : > { %1157 = vmatprep.subr.bf16.mxu0 %v10260_v61  ;;  %1350 = vmatprep.subr.bf16.mxu1 %v10262_v53  ;;  %v10283_v61 = vld [vmem:[#allocation6 + $0x148] ss:$16 sps:$4 sm:$0xff]   ;;  %v10284_v53 = vld [vmem:[#allocation6 + $0x164] ss:$16 sps:$4 sm:$0xff]  }
  0x7b   : > { %1158 = vmatpush1.bf16.msra.mxu0 %v10264_v60  ;;  %1351 = vmatpush1.bf16.msra.mxu1 %v10265_v62  ;;  %v10286_v60 = vld [vmem:[#allocation6 + $0x16c] ss:$16 sps:$4 sm:$0xff]   ;;  %v10288_v62 = vld [vmem:[#allocation6 + $0x160] ss:$16 sps:$4 sm:$0xff]  }
  0x7c   : > { %1159 = vmatprep.subr.bf16.mxu0 %v10266_v0  ;;  %1352 = vmatprep.subr.bf16.mxu1 %v10268_v63  ;;  %v10289_v0 = vld [vmem:[#allocation6 + $0x168] ss:$16 sps:$4 sm:$0xff]  }
  0x7d   : > { %v10316_v63 = vld [vmem:[%s11147_s18 + $0x4] ss:$8 sps:$4 sm:$0xff]  }
  0x7e   : > { %1175 = vmatprep.mubr.bf16.mxu0 %v10316_v63  ;;  %1368 = vmatprep.mubr.bf16.mxu1 %v10316_v63  ;;  %v10312_v63 = vld [vmem:[#allocation6 + $0x1e0] ss:$16 sps:$4 sm:$0xff]  }
  0x7f   : > { %1160 = vmatpush1.bf16.msra.mxu0 %v10270_v28  ;;  %1353 = vmatpush1.bf16.msra.mxu1 %v10271_v52  ;;  %v10290_v28 = vld [vmem:[#allocation6 + $0x184] ss:$16 sps:$4 sm:$0xff]   ;;  %v10292_v52 = vld [vmem:[#allocation6 + $0x18c] ss:$16 sps:$4 sm:$0xff]  }
  0x80   : > { %1161 = vmatprep.subr.bf16.mxu0 %v10272_v57  ;;  %1354 = vmatprep.subr.bf16.mxu1 %v10274_v58  ;;  %v10294_v57 = vld [vmem:[#allocation6 + $0x180] ss:$16 sps:$4 sm:$0xff]   ;;  %v10295_v58 = vld [vmem:[#allocation6 + $0x188] ss:$16 sps:$4 sm:$0xff]  }
  0x83   : > { %1162 = vmatpush1.bf16.msra.mxu0 %v10276_v55  ;;  %1355 = vmatpush1.bf16.msra.mxu1 %v10277_v56  ;;  %v10296_v55 = vld [vmem:[#allocation6 + $0x1a4] ss:$16 sps:$4 sm:$0xff]   ;;  %v10298_v56 = vld [vmem:[#allocation6 + $0x1ac] ss:$16 sps:$4 sm:$0xff]  }
  0x84   : > { %1163 = vmatprep.subr.bf16.mxu0 %v10278_v54  ;;  %1356 = vmatprep.subr.bf16.mxu1 %v10280_v2  ;;  %v10300_v54 = vld [vmem:[#allocation6 + $0x1a0] ss:$16 sps:$4 sm:$0xff]   ;;  %v10301_v2 = vld [vmem:[#allocation6 + $0x1a8] ss:$16 sps:$4 sm:$0xff]  }
  0x87   : > { %1164 = vmatpush1.bf16.msra.mxu0 %v10282_v59  ;;  %1357 = vmatpush1.bf16.msra.mxu1 %v10283_v61  ;;  %v10302_v59 = vld [vmem:[#allocation6 + $0x1c4] ss:$16 sps:$4 sm:$0xff]   ;;  %v10304_v61 = vld [vmem:[#allocation6 + $0x1cc] ss:$16 sps:$4 sm:$0xff]  }
  0x88   : > { %1165 = vmatprep.subr.bf16.mxu0 %v10284_v53  ;;  %1358 = vmatprep.subr.bf16.mxu1 %v10286_v60  ;;  %v10306_v53 = vld [vmem:[#allocation6 + $0x1c0] ss:$16 sps:$4 sm:$0xff]   ;;  %v10307_v60 = vld [vmem:[#allocation6 + $0x1c8] ss:$16 sps:$4 sm:$0xff]  }
  0x8b   : > { %1166 = vmatpush1.bf16.msra.mxu0 %v10288_v62  ;;  %1359 = vmatpush1.bf16.msra.mxu1 %v10289_v0  ;;  %v10308_v62 = vld [vmem:[#allocation6 + $0x1e4] ss:$16 sps:$4 sm:$0xff]   ;;  %v10310_v0 = vld [vmem:[#allocation6 + $0x1ec] ss:$16 sps:$4 sm:$0xff]  }
  0x8c   : > { %1167 = vmatprep.subr.bf16.mxu0 %v10290_v28  ;;  %1360 = vmatprep.subr.bf16.mxu1 %v10292_v52  ;;  %v10313_v28 = vld [vmem:[#allocation6 + $0x1e8] ss:$16 sps:$4 sm:$0xff]   ;;  %v10314_v52 = vld [vmem:[%s11147_s18] ss:$8 sps:$4 sm:$0xff]  }
  0x8f   : > { %1168 = vmatpush1.bf16.msra.mxu0 %v10294_v57  ;;  %1361 = vmatpush1.bf16.msra.mxu1 %v10295_v58  ;;  %v10317_v57 = vld [vmem:[%s11147_s18 + $0x14] ss:$8 sps:$4 sm:$0xff]   ;;  %v10319_v58 = vld [vmem:[%s11147_s18 + $0x10] ss:$8 sps:$4 sm:$0xff]  }
  0x90   : > { %1169 = vmatprep.subr.bf16.mxu0 %v10296_v55  ;;  %1362 = vmatprep.subr.bf16.mxu1 %v10298_v56  ;;  %v10320_v55 = vld [vmem:[%s11147_s18 + $0x24] ss:$8 sps:$4 sm:$0xff]   ;;  %v10322_v56 = vld [vmem:[%s11147_s18 + $0x20] ss:$8 sps:$4 sm:$0xff]  }
  0x93   : > { %1170 = vmatpush1.bf16.msra.mxu0 %v10300_v54  ;;  %1363 = vmatpush1.bf16.msra.mxu1 %v10301_v2  ;;  %v10323_v54 = vld [vmem:[%s11147_s18 + $0x34] ss:$8 sps:$4 sm:$0xff]   ;;  %v10325_v2 = vld [vmem:[%s11147_s18 + $0x30] ss:$8 sps:$4 sm:$0xff]  }
  0x94   : > { %1171 = vmatprep.subr.bf16.mxu0 %v10302_v59  ;;  %1364 = vmatprep.subr.bf16.mxu1 %v10304_v61  ;;  %v10326_v59 = vld [vmem:[%s11147_s18 + $0x44] ss:$8 sps:$4 sm:$0xff]   ;;  %v10328_v61 = vld [vmem:[%s11147_s18 + $0x40] ss:$8 sps:$4 sm:$0xff]  }
  0x97   : > { %1172 = vmatpush1.bf16.msra.mxu0 %v10306_v53  ;;  %1365 = vmatpush1.bf16.msra.mxu1 %v10307_v60  ;;  %v10329_v53 = vld [vmem:[%s11147_s18 + $0x54] ss:$8 sps:$4 sm:$0xff]   ;;  %v10331_v60 = vld [vmem:[%s11147_s18 + $0x50] ss:$8 sps:$4 sm:$0xff]  }
  0x98   : > { %1173 = vmatprep.subr.bf16.mxu0 %v10308_v62  ;;  %1366 = vmatprep.subr.bf16.mxu1 %v10310_v0  ;;  %v10332_v62 = vld [vmem:[%s11147_s18 + $0x64] ss:$8 sps:$4 sm:$0xff]   ;;  %v10334_v0 = vld [vmem:[%s11147_s18 + $0x60] ss:$8 sps:$4 sm:$0xff]  }
  0x9b   : > { %1174 = vmatpush1.bf16.msra.mxu0 %v10312_v63  ;;  %1367 = vmatpush1.bf16.msra.mxu1 %v10313_v28  ;;  %v10335_v63 = vld [vmem:[%s11147_s18 + $0x74] ss:$8 sps:$4 sm:$0xff]   ;;  %v10337_v28 = vld [vmem:[%s11147_s18 + $0x70] ss:$8 sps:$4 sm:$0xff]  }
  0x9e   : > { %1176 = vmatmul.mubr.bf16.vlgmr.msra.gmra.mrb[0].mxu0 %v10314_v52  ;;  %1369 = vmatmul.mubr.bf16.vlgmr.msra.gmra.mrb[0].mxu1 %v10314_v52  ;;  %v10338_v52 = vld [vmem:[%s11147_s18 + $0x84] ss:$8 sps:$4 sm:$0xff]  }
  0x9f   : > { %1185 = vmatprep.mubr.bf16.mxu0 %v10317_v57  ;;  %1378 = vmatprep.mubr.bf16.mxu1 %v10317_v57  ;;  %v10340_v57 = vld [vmem:[%s11147_s18 + $0x80] ss:$8 sps:$4 sm:$0xff]  }
  0xa6   : > { %1186 = vmatmul.mubr.bf16.gmra.mrb[4].mxu0 %v10319_v58  ;;  %1379 = vmatmul.mubr.bf16.gmra.mrb[4].mxu1 %v10319_v58  ;;  %v10341_v58 = vld [vmem:[%s11147_s18 + $0x94] ss:$8 sps:$4 sm:$0xff]  }
  0xa7   : > { %1195 = vmatprep.mubr.bf16.mxu0 %v10320_v55  ;;  %1388 = vmatprep.mubr.bf16.mxu1 %v10320_v55  ;;  %v10343_v55 = vld [vmem:[%s11147_s18 + $0x90] ss:$8 sps:$4 sm:$0xff]  }
  0xae   : > { %1196 = vmatmul.mubr.bf16.gmra.mrb[8].mxu0 %v10322_v56  ;;  %1389 = vmatmul.mubr.bf16.gmra.mrb[8].mxu1 %v10322_v56  ;;  %v10344_v56 = vld [vmem:[%s11147_s18 + $0xa4] ss:$8 sps:$4 sm:$0xff]  }
  0xaf   : > { %1205 = vmatprep.mubr.bf16.mxu0 %v10323_v54  ;;  %1398 = vmatprep.mubr.bf16.mxu1 %v10323_v54  ;;  %v10346_v54 = vld [vmem:[%s11147_s18 + $0xa0] ss:$8 sps:$4 sm:$0xff]  }
  0xb6   : > { %1206 = vmatmul.mubr.bf16.gmra.mrb[12].mxu0 %v10325_v2  ;;  %1399 = vmatmul.mubr.bf16.gmra.mrb[12].mxu1 %v10325_v2  ;;  %v10347_v2 = vld [vmem:[%s11147_s18 + $0xb4] ss:$8 sps:$4 sm:$0xff]  }
  0xb7   : > { %1215 = vmatprep.mubr.bf16.mxu0 %v10326_v59  ;;  %1408 = vmatprep.mubr.bf16.mxu1 %v10326_v59  ;;  %v10349_v59 = vld [vmem:[%s11147_s18 + $0xb0] ss:$8 sps:$4 sm:$0xff]  }
  0xbe   : > { %1216 = vmatmul.mubr.bf16.gmra.mrb[16].mxu0 %v10328_v61  ;;  %1409 = vmatmul.mubr.bf16.gmra.mrb[16].mxu1 %v10328_v61  ;;  %v10350_v61 = vld [vmem:[%s11147_s18 + $0xc4] ss:$8 sps:$4 sm:$0xff]  }
  0xbf   : > { %1225 = vmatprep.mubr.bf16.mxu0 %v10329_v53  ;;  %1418 = vmatprep.mubr.bf16.mxu1 %v10329_v53  ;;  %v10352_v53 = vld [vmem:[%s11147_s18 + $0xc0] ss:$8 sps:$4 sm:$0xff]  }
  0xc6   : > { %1226 = vmatmul.mubr.bf16.gmra.mrb[20].mxu0 %v10331_v60  ;;  %1419 = vmatmul.mubr.bf16.gmra.mrb[20].mxu1 %v10331_v60  ;;  %v10353_v60 = vld [vmem:[%s11147_s18 + $0xd4] ss:$8 sps:$4 sm:$0xff]  }
  0xc7   : > { %1235 = vmatprep.mubr.bf16.mxu0 %v10332_v62  ;;  %1428 = vmatprep.mubr.bf16.mxu1 %v10332_v62  ;;  %v10355_v62 = vld [vmem:[%s11147_s18 + $0xd0] ss:$8 sps:$4 sm:$0xff]  }
  0xce   : > { %1236 = vmatmul.mubr.bf16.gmra.mrb[24].mxu0 %v10334_v0  ;;  %1429 = vmatmul.mubr.bf16.gmra.mrb[24].mxu1 %v10334_v0  ;;  %v10356_v0 = vld [vmem:[%s11147_s18 + $0xe4] ss:$8 sps:$4 sm:$0xff]  }
  0xcf   : > { %1245 = vmatprep.mubr.bf16.mxu0 %v10335_v63  ;;  %1438 = vmatprep.mubr.bf16.mxu1 %v10335_v63  ;;  %v10358_v63 = vld [vmem:[%s11147_s18 + $0xe0] ss:$8 sps:$4 sm:$0xff]  }
  0xd6   : > { %1246 = vmatmul.mubr.bf16.gmra.mrb[28].mxu0 %v10337_v28  ;;  %1439 = vmatmul.mubr.bf16.gmra.mrb[28].mxu1 %v10337_v28  ;;  %v10359_v28 = vld [vmem:[%s11147_s18 + $0xf4] ss:$8 sps:$4 sm:$0xff]  }
  0xd7   : > { %1255 = vmatprep.mubr.bf16.mxu0 %v10338_v52  ;;  %1448 = vmatprep.mubr.bf16.mxu1 %v10338_v52  ;;  %v10361_v52 = vld [vmem:[%s11147_s18 + $0xf0] ss:$8 sps:$4 sm:$0xff]  }
  0xde   : > { %1256 = vmatmul.mubr.bf16.gmra.mrb[32].mxu0 %v10340_v57  ;;  %1449 = vmatmul.mubr.bf16.gmra.mrb[32].mxu1 %v10340_v57 }
  0xdf   : > { %1265 = vmatprep.mubr.bf16.mxu0 %v10341_v58  ;;  %1458 = vmatprep.mubr.bf16.mxu1 %v10341_v58 }
  0xe6   : > { %1266 = vmatmul.mubr.bf16.gmra.mrb[36].mxu0 %v10343_v55  ;;  %1459 = vmatmul.mubr.bf16.gmra.mrb[36].mxu1 %v10343_v55 }
  0xe7   : > { %1275 = vmatprep.mubr.bf16.mxu0 %v10344_v56  ;;  %1468 = vmatprep.mubr.bf16.mxu1 %v10344_v56 }
  0xee   : > { %1276 = vmatmul.mubr.bf16.gmra.mrb[40].mxu0 %v10346_v54  ;;  %1469 = vmatmul.mubr.bf16.gmra.mrb[40].mxu1 %v10346_v54 }
  0xef   : > { %1285 = vmatprep.mubr.bf16.mxu0 %v10347_v2  ;;  %1478 = vmatprep.mubr.bf16.mxu1 %v10347_v2 }
  0xf6   : > { %1286 = vmatmul.mubr.bf16.gmra.mrb[44].mxu0 %v10349_v59  ;;  %1479 = vmatmul.mubr.bf16.gmra.mrb[44].mxu1 %v10349_v59 }
  0xf7   : > { %1295 = vmatprep.mubr.bf16.mxu0 %v10350_v61  ;;  %1488 = vmatprep.mubr.bf16.mxu1 %v10350_v61 }
  0xfe   : > { %1296 = vmatmul.mubr.bf16.gmra.mrb[48].mxu0 %v10352_v53  ;;  %1489 = vmatmul.mubr.bf16.gmra.mrb[48].mxu1 %v10352_v53 }
  0xff   : > { %1305 = vmatprep.mubr.bf16.mxu0 %v10353_v60  ;;  %1498 = vmatprep.mubr.bf16.mxu1 %v10353_v60 }
 0x106   : > { %1306 = vmatmul.mubr.bf16.gmra.mrb[52].mxu0 %v10355_v62  ;;  %1499 = vmatmul.mubr.bf16.gmra.mrb[52].mxu1 %v10355_v62 }
 0x107   : > { %1315 = vmatprep.mubr.bf16.mxu0 %v10356_v0  ;;  %1508 = vmatprep.mubr.bf16.mxu1 %v10356_v0 }
 0x10e   : > { %1316 = vmatmul.mubr.bf16.gmra.mrb[56].mxu0 %v10358_v63  ;;  %1509 = vmatmul.mubr.bf16.gmra.mrb[56].mxu1 %v10358_v63 }
 0x10f   : > { %1325 = vmatprep.mubr.bf16.mxu0 %v10359_v28  ;;  %1518 = vmatprep.mubr.bf16.mxu1 %v10359_v28 }
 0x116   : > { %1326 = vmatmul.mubr.bf16.gmra.mrb[60].mxu0 %v10361_v52  ;;  %1519 = vmatmul.mubr.bf16.gmra.mrb[60].mxu1 %v10361_v52 }
 0x171   : > { %v1177_v57 = vpop.f32.mrb[0].mxu0  ;;  %v1370_v58 = vpop.f32.mrb[0].mxu1 }
 0x172   : > { %1532 = vst [vmem:[%s11379_s12] sm:$0xff] %v1177_v57  ;;  %1534 = vst [vmem:[%s11379_s12 + $0x10] sm:$0xff] %v1370_v58  ;;  %v1179_v55 = vpop.f32.mrb[1].mxu0  ;;  %v1372_v56 = vpop.f32.mrb[1].mxu1 }
 0x173   : > { %1533 = vst [vmem:[%s11379_s12 + $0x8] sm:$0xff] %v1179_v55  ;;  %1535 = vst [vmem:[%s11379_s12 + $0x18] sm:$0xff] %v1372_v56  ;;  %v1181_v54 = vpop.f32.mrb[2].mxu0  ;;  %v1374_v2 = vpop.f32.mrb[2].mxu1 }
 0x174   : > { %1536 = vst [vmem:[%s11379_s12 + $0x20] sm:$0xff] %v1181_v54  ;;  %v1661_v59 = vadd.f32 %v1181_v54, %v1177_v57  ;;  %1538 = vst [vmem:[%s11379_s12 + $0x30] sm:$0xff] %v1374_v2  ;;  %v1735_v61 = vadd.f32 %v1374_v2, %v1370_v58  ;;  %v1183_v53 = vpop.f32.mrb[3].mxu0  ;;  %v1376_v60 = vpop.f32.mrb[3].mxu1 }
 0x175   : > { %1537 = vst [vmem:[%s11379_s12 + $0x28] sm:$0xff] %v1183_v53  ;;  %v1698_v62 = vadd.f32 %v1183_v53, %v1179_v55  ;;  %1539 = vst [vmem:[%s11379_s12 + $0x38] sm:$0xff] %v1376_v60  ;;  %v1772_v0 = vadd.f32 %v1376_v60, %v1372_v56 }
 0x179   : > { %v1187_v63 = vpop.f32.mrb[4].mxu0  ;;  %v1380_v28 = vpop.f32.mrb[4].mxu1 }
 0x17a   : > { %1540 = vst [vmem:[%s11379_s12 + $0x40] sm:$0xff] %v1187_v63  ;;  %v1662_v52 = vadd.f32 %v1661_v59, %v1187_v63  ;;  %1542 = vst [vmem:[%s11379_s12 + $0x50] sm:$0xff] %v1380_v28  ;;  %v1736_v51 = vadd.f32 %v1735_v61, %v1380_v28  ;;  %v1189_v57 = vpop.f32.mrb[5].mxu0  ;;  %v1382_v54 = vpop.f32.mrb[5].mxu1 }
 0x17b   : > { %1541 = vst [vmem:[%s11379_s12 + $0x48] sm:$0xff] %v1189_v57  ;;  %v1699_v58 = vadd.f32 %v1698_v62, %v1189_v57  ;;  %1543 = vst [vmem:[%s11379_s12 + $0x58] sm:$0xff] %v1382_v54  ;;  %v1773_v2 = vadd.f32 %v1772_v0, %v1382_v54  ;;  %v1191_v55 = vpop.f32.mrb[6].mxu0  ;;  %v1384_v53 = vpop.f32.mrb[6].mxu1 }
 0x17c   : > { %1544 = vst [vmem:[%s11379_s12 + $0x60] sm:$0xff] %v1191_v55  ;;  %v1663_v56 = vadd.f32 %v1662_v52, %v1191_v55  ;;  %1546 = vst [vmem:[%s11379_s12 + $0x70] sm:$0xff] %v1384_v53  ;;  %v1737_v60 = vadd.f32 %v1736_v51, %v1384_v53  ;;  %v1193_v59 = vpop.f32.mrb[7].mxu0  ;;  %v1386_v63 = vpop.f32.mrb[7].mxu1 }
 0x17d   : > { %1545 = vst [vmem:[%s11379_s12 + $0x68] sm:$0xff] %v1193_v59  ;;  %v1700_v61 = vadd.f32 %v1699_v58, %v1193_v59  ;;  %1547 = vst [vmem:[%s11379_s12 + $0x78] sm:$0xff] %v1386_v63  ;;  %v1774_v28 = vadd.f32 %v1773_v2, %v1386_v63 }
 0x181   : > { %v1197_v62 = vpop.f32.mrb[8].mxu0  ;;  %v1390_v57 = vpop.f32.mrb[8].mxu1 }
 0x182   : > { %1548 = vst [vmem:[%s11379_s12 + $0x80] sm:$0xff] %v1197_v62  ;;  %v1664_v0 = vadd.f32 %v1663_v56, %v1197_v62  ;;  %1550 = vst [vmem:[%s11379_s12 + $0x90] sm:$0xff] %v1390_v57  ;;  %v1738_v54 = vadd.f32 %v1737_v60, %v1390_v57  ;;  %v1199_v52 = vpop.f32.mrb[9].mxu0  ;;  %v1392_v55 = vpop.f32.mrb[9].mxu1 }
 0x183   : > { %1549 = vst [vmem:[%s11379_s12 + $0x88] sm:$0xff] %v1199_v52  ;;  %v1701_v51 = vadd.f32 %v1700_v61, %v1199_v52  ;;  %1551 = vst [vmem:[%s11379_s12 + $0x98] sm:$0xff] %v1392_v55  ;;  %v1775_v53 = vadd.f32 %v1774_v28, %v1392_v55  ;;  %v1201_v58 = vpop.f32.mrb[10].mxu0  ;;  %v1394_v59 = vpop.f32.mrb[10].mxu1 }
 0x184   : > { %1552 = vst [vmem:[%s11379_s12 + $0xa0] sm:$0xff] %v1201_v58  ;;  %v1665_v2 = vadd.f32 %v1664_v0, %v1201_v58  ;;  %1554 = vst [vmem:[%s11379_s12 + $0xb0] sm:$0xff] %v1394_v59  ;;  %v1739_v63 = vadd.f32 %v1738_v54, %v1394_v59  ;;  %v1203_v56 = vpop.f32.mrb[11].mxu0  ;;  %v1396_v62 = vpop.f32.mrb[11].mxu1 }
 0x185   : > { %1553 = vst [vmem:[%s11379_s12 + $0xa8] sm:$0xff] %v1203_v56  ;;  %v1702_v60 = vadd.f32 %v1701_v51, %v1203_v56  ;;  %1555 = vst [vmem:[%s11379_s12 + $0xb8] sm:$0xff] %v1396_v62  ;;  %v1776_v57 = vadd.f32 %v1775_v53, %v1396_v62 }
 0x189   : > { %v1207_v61 = vpop.f32.mrb[12].mxu0  ;;  %v1400_v52 = vpop.f32.mrb[12].mxu1 }
 0x18a   : > { %1556 = vst [vmem:[%s11379_s12 + $0xc0] sm:$0xff] %v1207_v61  ;;  %v1666_v28 = vadd.f32 %v1665_v2, %v1207_v61  ;;  %1558 = vst [vmem:[%s11379_s12 + $0xd0] sm:$0xff] %v1400_v52  ;;  %v1740_v55 = vadd.f32 %v1739_v63, %v1400_v52  ;;  %v1209_v0 = vpop.f32.mrb[13].mxu0  ;;  %v1402_v58 = vpop.f32.mrb[13].mxu1 }
 0x18b   : > { %1557 = vst [vmem:[%s11379_s12 + $0xc8] sm:$0xff] %v1209_v0  ;;  %v1703_v54 = vadd.f32 %v1702_v60, %v1209_v0  ;;  %1559 = vst [vmem:[%s11379_s12 + $0xd8] sm:$0xff] %v1402_v58  ;;  %v1777_v59 = vadd.f32 %v1776_v57, %v1402_v58  ;;  %v1211_v51 = vpop.f32.mrb[14].mxu0  ;;  %v1404_v56 = vpop.f32.mrb[14].mxu1 }
 0x18c   : > { %1560 = vst [vmem:[%s11379_s12 + $0xe0] sm:$0xff] %v1211_v51  ;;  %v1667_v53 = vadd.f32 %v1666_v28, %v1211_v51  ;;  %1562 = vst [vmem:[%s11379_s12 + $0xf0] sm:$0xff] %v1404_v56  ;;  %v1741_v62 = vadd.f32 %v1740_v55, %v1404_v56  ;;  %v1213_v2 = vpop.f32.mrb[15].mxu0  ;;  %v1406_v61 = vpop.f32.mrb[15].mxu1 }
 0x18d   : > { %1561 = vst [vmem:[%s11379_s12 + $0xe8] sm:$0xff] %v1213_v2  ;;  %v1704_v63 = vadd.f32 %v1703_v54, %v1213_v2  ;;  %1563 = vst [vmem:[%s11379_s12 + $0xf8] sm:$0xff] %v1406_v61  ;;  %v1778_v52 = vadd.f32 %v1777_v59, %v1406_v61 }
 0x191   : > { %v1217_v60 = vpop.f32.mrb[16].mxu0  ;;  %v1410_v0 = vpop.f32.mrb[16].mxu1 }
 0x192   : > { %1564 = vst [vmem:[%s11379_s12 + $0x100] sm:$0xff] %v1217_v60  ;;  %v1668_v57 = vadd.f32 %v1667_v53, %v1217_v60  ;;  %1566 = vst [vmem:[%s11379_s12 + $0x110] sm:$0xff] %v1410_v0  ;;  %v1742_v58 = vadd.f32 %v1741_v62, %v1410_v0  ;;  %v1219_v28 = vpop.f32.mrb[17].mxu0  ;;  %v1412_v51 = vpop.f32.mrb[17].mxu1 }
 0x193   : > { %1565 = vst [vmem:[%s11379_s12 + $0x108] sm:$0xff] %v1219_v28  ;;  %v1705_v55 = vadd.f32 %v1704_v63, %v1219_v28  ;;  %1567 = vst [vmem:[%s11379_s12 + $0x118] sm:$0xff] %v1412_v51  ;;  %v1779_v56 = vadd.f32 %v1778_v52, %v1412_v51  ;;  %v1221_v54 = vpop.f32.mrb[18].mxu0  ;;  %v1414_v2 = vpop.f32.mrb[18].mxu1 }
 0x194   : > { %1568 = vst [vmem:[%s11379_s12 + $0x120] sm:$0xff] %v1221_v54  ;;  %v1669_v59 = vadd.f32 %v1668_v57, %v1221_v54  ;;  %1570 = vst [vmem:[%s11379_s12 + $0x130] sm:$0xff] %v1414_v2  ;;  %v1743_v61 = vadd.f32 %v1742_v58, %v1414_v2  ;;  %v1223_v53 = vpop.f32.mrb[19].mxu0  ;;  %v1416_v60 = vpop.f32.mrb[19].mxu1 }
 0x195   : > { %1569 = vst [vmem:[%s11379_s12 + $0x128] sm:$0xff] %v1223_v53  ;;  %v1706_v62 = vadd.f32 %v1705_v55, %v1223_v53  ;;  %1571 = vst [vmem:[%s11379_s12 + $0x138] sm:$0xff] %v1416_v60  ;;  %v1780_v0 = vadd.f32 %v1779_v56, %v1416_v60 }
 0x199   : > { %v1227_v63 = vpop.f32.mrb[20].mxu0  ;;  %v1420_v28 = vpop.f32.mrb[20].mxu1 }
 0x19a   : > { %1572 = vst [vmem:[%s11379_s12 + $0x140] sm:$0xff] %v1227_v63  ;;  %v1670_v52 = vadd.f32 %v1669_v59, %v1227_v63  ;;  %1574 = vst [vmem:[%s11379_s12 + $0x150] sm:$0xff] %v1420_v28  ;;  %v1744_v51 = vadd.f32 %v1743_v61, %v1420_v28  ;;  %v1229_v57 = vpop.f32.mrb[21].mxu0  ;;  %v1422_v54 = vpop.f32.mrb[21].mxu1 }
 0x19b   : > { %1573 = vst [vmem:[%s11379_s12 + $0x148] sm:$0xff] %v1229_v57  ;;  %v1707_v58 = vadd.f32 %v1706_v62, %v1229_v57  ;;  %1575 = vst [vmem:[%s11379_s12 + $0x158] sm:$0xff] %v1422_v54  ;;  %v1781_v2 = vadd.f32 %v1780_v0, %v1422_v54  ;;  %v1231_v55 = vpop.f32.mrb[22].mxu0  ;;  %v1424_v53 = vpop.f32.mrb[22].mxu1 }
 0x19c   : > { %1576 = vst [vmem:[%s11379_s12 + $0x160] sm:$0xff] %v1231_v55  ;;  %v1671_v56 = vadd.f32 %v1670_v52, %v1231_v55  ;;  %1578 = vst [vmem:[%s11379_s12 + $0x170] sm:$0xff] %v1424_v53  ;;  %v1745_v60 = vadd.f32 %v1744_v51, %v1424_v53  ;;  %v1233_v59 = vpop.f32.mrb[23].mxu0  ;;  %v1426_v63 = vpop.f32.mrb[23].mxu1 }
 0x19d   : > { %1577 = vst [vmem:[%s11379_s12 + $0x168] sm:$0xff] %v1233_v59  ;;  %v1708_v61 = vadd.f32 %v1707_v58, %v1233_v59  ;;  %1579 = vst [vmem:[%s11379_s12 + $0x178] sm:$0xff] %v1426_v63  ;;  %v1782_v28 = vadd.f32 %v1781_v2, %v1426_v63 }
 0x1a1   : > { %v1237_v62 = vpop.f32.mrb[24].mxu0  ;;  %v1430_v57 = vpop.f32.mrb[24].mxu1 }
 0x1a2   : > { %1580 = vst [vmem:[%s11379_s12 + $0x180] sm:$0xff] %v1237_v62  ;;  %v1672_v0 = vadd.f32 %v1671_v56, %v1237_v62  ;;  %1582 = vst [vmem:[%s11379_s12 + $0x190] sm:$0xff] %v1430_v57  ;;  %v1746_v54 = vadd.f32 %v1745_v60, %v1430_v57  ;;  %v1239_v52 = vpop.f32.mrb[25].mxu0  ;;  %v1432_v55 = vpop.f32.mrb[25].mxu1 }
 0x1a3   : > { %1581 = vst [vmem:[%s11379_s12 + $0x188] sm:$0xff] %v1239_v52  ;;  %v1709_v51 = vadd.f32 %v1708_v61, %v1239_v52  ;;  %1583 = vst [vmem:[%s11379_s12 + $0x198] sm:$0xff] %v1432_v55  ;;  %v1783_v53 = vadd.f32 %v1782_v28, %v1432_v55  ;;  %v1241_v58 = vpop.f32.mrb[26].mxu0  ;;  %v1434_v59 = vpop.f32.mrb[26].mxu1 }
 0x1a4   : > { %1584 = vst [vmem:[%s11379_s12 + $0x1a0] sm:$0xff] %v1241_v58  ;;  %v1673_v2 = vadd.f32 %v1672_v0, %v1241_v58  ;;  %1586 = vst [vmem:[%s11379_s12 + $0x1b0] sm:$0xff] %v1434_v59  ;;  %v1747_v63 = vadd.f32 %v1746_v54, %v1434_v59  ;;  %v1243_v56 = vpop.f32.mrb[27].mxu0  ;;  %v1436_v62 = vpop.f32.mrb[27].mxu1 }
 0x1a5   : > { %1585 = vst [vmem:[%s11379_s12 + $0x1a8] sm:$0xff] %v1243_v56  ;;  %v1710_v60 = vadd.f32 %v1709_v51, %v1243_v56  ;;  %1587 = vst [vmem:[%s11379_s12 + $0x1b8] sm:$0xff] %v1436_v62  ;;  %v1784_v57 = vadd.f32 %v1783_v53, %v1436_v62 }
 0x1a9   : > { %v1247_v61 = vpop.f32.mrb[28].mxu0  ;;  %v1440_v52 = vpop.f32.mrb[28].mxu1 }
 0x1aa   : > { %1588 = vst [vmem:[%s11379_s12 + $0x1c0] sm:$0xff] %v1247_v61  ;;  %v1674_v28 = vadd.f32 %v1673_v2, %v1247_v61  ;;  %1590 = vst [vmem:[%s11379_s12 + $0x1d0] sm:$0xff] %v1440_v52  ;;  %v1748_v55 = vadd.f32 %v1747_v63, %v1440_v52  ;;  %v1249_v0 = vpop.f32.mrb[29].mxu0  ;;  %v1442_v58 = vpop.f32.mrb[29].mxu1 }
 0x1ab   : > { %1589 = vst [vmem:[%s11379_s12 + $0x1c8] sm:$0xff] %v1249_v0  ;;  %v1711_v54 = vadd.f32 %v1710_v60, %v1249_v0  ;;  %1591 = vst [vmem:[%s11379_s12 + $0x1d8] sm:$0xff] %v1442_v58  ;;  %v1785_v59 = vadd.f32 %v1784_v57, %v1442_v58  ;;  %v1251_v51 = vpop.f32.mrb[30].mxu0  ;;  %v1444_v56 = vpop.f32.mrb[30].mxu1 }
 0x1ac   : > { %1592 = vst [vmem:[%s11379_s12 + $0x1e0] sm:$0xff] %v1251_v51  ;;  %v1675_v53 = vadd.f32 %v1674_v28, %v1251_v51  ;;  %1594 = vst [vmem:[%s11379_s12 + $0x1f0] sm:$0xff] %v1444_v56  ;;  %v1749_v62 = vadd.f32 %v1748_v55, %v1444_v56  ;;  %v1253_v2 = vpop.f32.mrb[31].mxu0  ;;  %v1446_v61 = vpop.f32.mrb[31].mxu1 }
 0x1ad   : > { %1593 = vst [vmem:[%s11379_s12 + $0x1e8] sm:$0xff] %v1253_v2  ;;  %v1712_v63 = vadd.f32 %v1711_v54, %v1253_v2  ;;  %1595 = vst [vmem:[%s11379_s12 + $0x1f8] sm:$0xff] %v1446_v61  ;;  %v1786_v52 = vadd.f32 %v1785_v59, %v1446_v61 }
 0x1b1   : > { %v1257_v60 = vpop.f32.mrb[32].mxu0  ;;  %v1450_v0 = vpop.f32.mrb[32].mxu1 }
 0x1b2   : > { %1596 = vst [vmem:[%s11379_s12 + $0x200] sm:$0xff] %v1257_v60  ;;  %v1676_v57 = vadd.f32 %v1675_v53, %v1257_v60  ;;  %1598 = vst [vmem:[%s11379_s12 + $0x210] sm:$0xff] %v1450_v0  ;;  %v1750_v58 = vadd.f32 %v1749_v62, %v1450_v0  ;;  %v1259_v28 = vpop.f32.mrb[33].mxu0  ;;  %v1452_v51 = vpop.f32.mrb[33].mxu1 }
 0x1b3   : > { %1597 = vst [vmem:[%s11379_s12 + $0x208] sm:$0xff] %v1259_v28  ;;  %v1713_v55 = vadd.f32 %v1712_v63, %v1259_v28  ;;  %1599 = vst [vmem:[%s11379_s12 + $0x218] sm:$0xff] %v1452_v51  ;;  %v1787_v56 = vadd.f32 %v1786_v52, %v1452_v51  ;;  %v1261_v54 = vpop.f32.mrb[34].mxu0  ;;  %v1454_v2 = vpop.f32.mrb[34].mxu1 }
 0x1b4   : > { %1600 = vst [vmem:[%s11379_s12 + $0x220] sm:$0xff] %v1261_v54  ;;  %v1677_v59 = vadd.f32 %v1676_v57, %v1261_v54  ;;  %1602 = vst [vmem:[%s11379_s12 + $0x230] sm:$0xff] %v1454_v2  ;;  %v1751_v61 = vadd.f32 %v1750_v58, %v1454_v2  ;;  %v1263_v53 = vpop.f32.mrb[35].mxu0  ;;  %v1456_v60 = vpop.f32.mrb[35].mxu1 }
 0x1b5   : > { %1601 = vst [vmem:[%s11379_s12 + $0x228] sm:$0xff] %v1263_v53  ;;  %v1714_v62 = vadd.f32 %v1713_v55, %v1263_v53  ;;  %1603 = vst [vmem:[%s11379_s12 + $0x238] sm:$0xff] %v1456_v60  ;;  %v1788_v0 = vadd.f32 %v1787_v56, %v1456_v60 }
 0x1b9   : > { %v1267_v63 = vpop.f32.mrb[36].mxu0  ;;  %v1460_v28 = vpop.f32.mrb[36].mxu1 }
 0x1ba   : > { %1604 = vst [vmem:[%s11379_s12 + $0x240] sm:$0xff] %v1267_v63  ;;  %v1678_v52 = vadd.f32 %v1677_v59, %v1267_v63  ;;  %1606 = vst [vmem:[%s11379_s12 + $0x250] sm:$0xff] %v1460_v28  ;;  %v1752_v51 = vadd.f32 %v1751_v61, %v1460_v28  ;;  %v1269_v57 = vpop.f32.mrb[37].mxu0  ;;  %v1462_v54 = vpop.f32.mrb[37].mxu1 }
 0x1bb   : > { %1605 = vst [vmem:[%s11379_s12 + $0x248] sm:$0xff] %v1269_v57  ;;  %v1715_v58 = vadd.f32 %v1714_v62, %v1269_v57  ;;  %1607 = vst [vmem:[%s11379_s12 + $0x258] sm:$0xff] %v1462_v54  ;;  %v1789_v2 = vadd.f32 %v1788_v0, %v1462_v54  ;;  %v1271_v55 = vpop.f32.mrb[38].mxu0  ;;  %v1464_v53 = vpop.f32.mrb[38].mxu1 }
 0x1bc   : > { %1608 = vst [vmem:[%s11379_s12 + $0x260] sm:$0xff] %v1271_v55  ;;  %v1679_v56 = vadd.f32 %v1678_v52, %v1271_v55  ;;  %1610 = vst [vmem:[%s11379_s12 + $0x270] sm:$0xff] %v1464_v53  ;;  %v1753_v60 = vadd.f32 %v1752_v51, %v1464_v53  ;;  %v1273_v59 = vpop.f32.mrb[39].mxu0  ;;  %v1466_v63 = vpop.f32.mrb[39].mxu1 }
 0x1bd   : > { %1609 = vst [vmem:[%s11379_s12 + $0x268] sm:$0xff] %v1273_v59  ;;  %v1716_v61 = vadd.f32 %v1715_v58, %v1273_v59  ;;  %1611 = vst [vmem:[%s11379_s12 + $0x278] sm:$0xff] %v1466_v63  ;;  %v1790_v28 = vadd.f32 %v1789_v2, %v1466_v63 }
 0x1c1   : > { %v1277_v62 = vpop.f32.mrb[40].mxu0  ;;  %v1470_v57 = vpop.f32.mrb[40].mxu1 }
 0x1c2   : > { %1612 = vst [vmem:[%s11379_s12 + $0x280] sm:$0xff] %v1277_v62  ;;  %v1680_v0 = vadd.f32 %v1679_v56, %v1277_v62  ;;  %1614 = vst [vmem:[%s11379_s12 + $0x290] sm:$0xff] %v1470_v57  ;;  %v1754_v54 = vadd.f32 %v1753_v60, %v1470_v57  ;;  %v1279_v52 = vpop.f32.mrb[41].mxu0  ;;  %v1472_v55 = vpop.f32.mrb[41].mxu1 }
 0x1c3   : > { %1613 = vst [vmem:[%s11379_s12 + $0x288] sm:$0xff] %v1279_v52  ;;  %v1717_v51 = vadd.f32 %v1716_v61, %v1279_v52  ;;  %1615 = vst [vmem:[%s11379_s12 + $0x298] sm:$0xff] %v1472_v55  ;;  %v1791_v53 = vadd.f32 %v1790_v28, %v1472_v55  ;;  %v1281_v58 = vpop.f32.mrb[42].mxu0  ;;  %v1474_v59 = vpop.f32.mrb[42].mxu1 }
 0x1c4   : > { %1616 = vst [vmem:[%s11379_s12 + $0x2a0] sm:$0xff] %v1281_v58  ;;  %v1681_v2 = vadd.f32 %v1680_v0, %v1281_v58  ;;  %1618 = vst [vmem:[%s11379_s12 + $0x2b0] sm:$0xff] %v1474_v59  ;;  %v1755_v63 = vadd.f32 %v1754_v54, %v1474_v59  ;;  %v1283_v56 = vpop.f32.mrb[43].mxu0  ;;  %v1476_v62 = vpop.f32.mrb[43].mxu1 }
 0x1c5   : > { %1617 = vst [vmem:[%s11379_s12 + $0x2a8] sm:$0xff] %v1283_v56  ;;  %v1718_v60 = vadd.f32 %v1717_v51, %v1283_v56  ;;  %1619 = vst [vmem:[%s11379_s12 + $0x2b8] sm:$0xff] %v1476_v62  ;;  %v1792_v57 = vadd.f32 %v1791_v53, %v1476_v62 }
 0x1c9   : > { %v1287_v61 = vpop.f32.mrb[44].mxu0  ;;  %v1480_v52 = vpop.f32.mrb[44].mxu1 }
 0x1ca   : > { %1620 = vst [vmem:[%s11379_s12 + $0x2c0] sm:$0xff] %v1287_v61  ;;  %v1682_v28 = vadd.f32 %v1681_v2, %v1287_v61  ;;  %1622 = vst [vmem:[%s11379_s12 + $0x2d0] sm:$0xff] %v1480_v52  ;;  %v1756_v55 = vadd.f32 %v1755_v63, %v1480_v52  ;;  %v1289_v0 = vpop.f32.mrb[45].mxu0  ;;  %v1482_v58 = vpop.f32.mrb[45].mxu1 }
 0x1cb   : > { %1621 = vst [vmem:[%s11379_s12 + $0x2c8] sm:$0xff] %v1289_v0  ;;  %v1719_v54 = vadd.f32 %v1718_v60, %v1289_v0  ;;  %1623 = vst [vmem:[%s11379_s12 + $0x2d8] sm:$0xff] %v1482_v58  ;;  %v1793_v59 = vadd.f32 %v1792_v57, %v1482_v58  ;;  %v1291_v51 = vpop.f32.mrb[46].mxu0  ;;  %v1484_v56 = vpop.f32.mrb[46].mxu1 }
 0x1cc   : > { %1624 = vst [vmem:[%s11379_s12 + $0x2e0] sm:$0xff] %v1291_v51  ;;  %v1683_v53 = vadd.f32 %v1682_v28, %v1291_v51  ;;  %1626 = vst [vmem:[%s11379_s12 + $0x2f0] sm:$0xff] %v1484_v56  ;;  %v1757_v62 = vadd.f32 %v1756_v55, %v1484_v56  ;;  %v1293_v2 = vpop.f32.mrb[47].mxu0  ;;  %v1486_v61 = vpop.f32.mrb[47].mxu1 }
 0x1cd   : > { %1625 = vst [vmem:[%s11379_s12 + $0x2e8] sm:$0xff] %v1293_v2  ;;  %v1720_v63 = vadd.f32 %v1719_v54, %v1293_v2  ;;  %1627 = vst [vmem:[%s11379_s12 + $0x2f8] sm:$0xff] %v1486_v61  ;;  %v1794_v52 = vadd.f32 %v1793_v59, %v1486_v61 }
 0x1d1   : > { %v1297_v60 = vpop.f32.mrb[48].mxu0  ;;  %v1490_v0 = vpop.f32.mrb[48].mxu1 }
 0x1d2   : > { %1628 = vst [vmem:[%s11379_s12 + $0x300] sm:$0xff] %v1297_v60  ;;  %v1684_v57 = vadd.f32 %v1683_v53, %v1297_v60  ;;  %1630 = vst [vmem:[%s11379_s12 + $0x310] sm:$0xff] %v1490_v0  ;;  %v1758_v58 = vadd.f32 %v1757_v62, %v1490_v0  ;;  %v1299_v28 = vpop.f32.mrb[49].mxu0  ;;  %v1492_v51 = vpop.f32.mrb[49].mxu1 }
 0x1d3   : > { %1629 = vst [vmem:[%s11379_s12 + $0x308] sm:$0xff] %v1299_v28  ;;  %v1721_v55 = vadd.f32 %v1720_v63, %v1299_v28  ;;  %1631 = vst [vmem:[%s11379_s12 + $0x318] sm:$0xff] %v1492_v51  ;;  %v1795_v56 = vadd.f32 %v1794_v52, %v1492_v51  ;;  %v1301_v54 = vpop.f32.mrb[50].mxu0  ;;  %v1494_v2 = vpop.f32.mrb[50].mxu1 }
 0x1d4   : > { %1632 = vst [vmem:[%s11379_s12 + $0x320] sm:$0xff] %v1301_v54  ;;  %v1685_v59 = vadd.f32 %v1684_v57, %v1301_v54  ;;  %1634 = vst [vmem:[%s11379_s12 + $0x330] sm:$0xff] %v1494_v2  ;;  %v1759_v61 = vadd.f32 %v1758_v58, %v1494_v2  ;;  %v1303_v53 = vpop.f32.mrb[51].mxu0  ;;  %v1496_v60 = vpop.f32.mrb[51].mxu1 }
 0x1d5   : > { %1633 = vst [vmem:[%s11379_s12 + $0x328] sm:$0xff] %v1303_v53  ;;  %v1722_v62 = vadd.f32 %v1721_v55, %v1303_v53  ;;  %1635 = vst [vmem:[%s11379_s12 + $0x338] sm:$0xff] %v1496_v60  ;;  %v1796_v0 = vadd.f32 %v1795_v56, %v1496_v60 }
 0x1d9   : > { %v1307_v63 = vpop.f32.mrb[52].mxu0  ;;  %v1500_v28 = vpop.f32.mrb[52].mxu1 }
 0x1da   : > { %1636 = vst [vmem:[%s11379_s12 + $0x340] sm:$0xff] %v1307_v63  ;;  %v1686_v52 = vadd.f32 %v1685_v59, %v1307_v63  ;;  %1638 = vst [vmem:[%s11379_s12 + $0x350] sm:$0xff] %v1500_v28  ;;  %v1760_v51 = vadd.f32 %v1759_v61, %v1500_v28  ;;  %v1309_v57 = vpop.f32.mrb[53].mxu0  ;;  %v1502_v54 = vpop.f32.mrb[53].mxu1 }
 0x1db   : > { %1637 = vst [vmem:[%s11379_s12 + $0x348] sm:$0xff] %v1309_v57  ;;  %v1723_v58 = vadd.f32 %v1722_v62, %v1309_v57  ;;  %1639 = vst [vmem:[%s11379_s12 + $0x358] sm:$0xff] %v1502_v54  ;;  %v1797_v2 = vadd.f32 %v1796_v0, %v1502_v54  ;;  %v1311_v55 = vpop.f32.mrb[54].mxu0  ;;  %v1504_v53 = vpop.f32.mrb[54].mxu1 }
 0x1dc   : > { %1640 = vst [vmem:[%s11379_s12 + $0x360] sm:$0xff] %v1311_v55  ;;  %v1687_v56 = vadd.f32 %v1686_v52, %v1311_v55  ;;  %1642 = vst [vmem:[%s11379_s12 + $0x370] sm:$0xff] %v1504_v53  ;;  %v1761_v60 = vadd.f32 %v1760_v51, %v1504_v53  ;;  %v1313_v59 = vpop.f32.mrb[55].mxu0  ;;  %v1506_v63 = vpop.f32.mrb[55].mxu1 }
 0x1dd   : > { %1641 = vst [vmem:[%s11379_s12 + $0x368] sm:$0xff] %v1313_v59  ;;  %v1724_v61 = vadd.f32 %v1723_v58, %v1313_v59  ;;  %1643 = vst [vmem:[%s11379_s12 + $0x378] sm:$0xff] %v1506_v63  ;;  %v1798_v28 = vadd.f32 %v1797_v2, %v1506_v63 }
 0x1e1   : > { %v1317_v62 = vpop.f32.mrb[56].mxu0  ;;  %v1510_v57 = vpop.f32.mrb[56].mxu1 }
 0x1e2   : > { %1644 = vst [vmem:[%s11379_s12 + $0x380] sm:$0xff] %v1317_v62  ;;  %v1688_v0 = vadd.f32 %v1687_v56, %v1317_v62  ;;  %1646 = vst [vmem:[%s11379_s12 + $0x390] sm:$0xff] %v1510_v57  ;;  %v1762_v54 = vadd.f32 %v1761_v60, %v1510_v57  ;;  %v1319_v52 = vpop.f32.mrb[57].mxu0  ;;  %v1512_v55 = vpop.f32.mrb[57].mxu1 }
 0x1e3   : > { %1645 = vst [vmem:[%s11379_s12 + $0x388] sm:$0xff] %v1319_v52  ;;  %v1725_v51 = vadd.f32 %v1724_v61, %v1319_v52  ;;  %1647 = vst [vmem:[%s11379_s12 + $0x398] sm:$0xff] %v1512_v55  ;;  %v1799_v53 = vadd.f32 %v1798_v28, %v1512_v55  ;;  %v1321_v58 = vpop.f32.mrb[58].mxu0  ;;  %v1514_v59 = vpop.f32.mrb[58].mxu1 }
 0x1e4   : > { %1648 = vst [vmem:[%s11379_s12 + $0x3a0] sm:$0xff] %v1321_v58  ;;  %v1689_v2 = vadd.f32 %v1688_v0, %v1321_v58  ;;  %1650 = vst [vmem:[%s11379_s12 + $0x3b0] sm:$0xff] %v1514_v59  ;;  %v1763_v63 = vadd.f32 %v1762_v54, %v1514_v59  ;;  %v1323_v56 = vpop.f32.mrb[59].mxu0  ;;  %v1516_v62 = vpop.f32.mrb[59].mxu1 }
 0x1e5   : > { %1649 = vst [vmem:[%s11379_s12 + $0x3a8] sm:$0xff] %v1323_v56  ;;  %v1726_v60 = vadd.f32 %v1725_v51, %v1323_v56  ;;  %1651 = vst [vmem:[%s11379_s12 + $0x3b8] sm:$0xff] %v1516_v62  ;;  %v1800_v57 = vadd.f32 %v1799_v53, %v1516_v62 }
 0x1e9   : > { %v1327_v61 = vpop.f32.mrb[60].mxu0  ;;  %v1520_v52 = vpop.f32.mrb[60].mxu1 }
 0x1ea   : > { %1652 = vst [vmem:[%s11379_s12 + $0x3c0] sm:$0xff] %v1327_v61  ;;  %v1690_v28 = vadd.f32 %v1689_v2, %v1327_v61  ;;  %1654 = vst [vmem:[%s11379_s12 + $0x3d0] sm:$0xff] %v1520_v52  ;;  %v1764_v55 = vadd.f32 %v1763_v63, %v1520_v52  ;;  %v1329_v0 = vpop.f32.mrb[61].mxu0  ;;  %v1522_v58 = vpop.f32.mrb[61].mxu1 }
 0x1eb   : > { %1653 = vst [vmem:[%s11379_s12 + $0x3c8] sm:$0xff] %v1329_v0  ;;  %v1727_v54 = vadd.f32 %v1726_v60, %v1329_v0  ;;  %1655 = vst [vmem:[%s11379_s12 + $0x3d8] sm:$0xff] %v1522_v58  ;;  %v1801_v59 = vadd.f32 %v1800_v57, %v1522_v58  ;;  %v1331_v50 = vpop.f32.mrb[62].mxu0  ;;  %v1524_v51 = vpop.f32.mrb[62].mxu1  ;;  %v10921_v57 = vmov 1966171168  }
 0x1ec   : > { %1656 = vst [vmem:[%s11379_s12 + $0x3e0] sm:$0xff] %v1331_v50  ;;  %v1691_v56 = vadd.f32 %v1690_v28, %v1331_v50  ;;  %1658 = vst [vmem:[%s11379_s12 + $0x3f0] sm:$0xff] %v1524_v51  ;;  %v1765_v53 = vadd.f32 %v1764_v55, %v1524_v51  ;;  %v1333_v62 = vpop.f32.mrb[63].mxu0  ;;  %v1526_v49 = vpop.f32.mrb[63].mxu1  ;;  %v1816_v58 = vunpack.c.l.s4 %v10921_v57 }
 0x1ed   : > { %1657 = vst [vmem:[%s11379_s12 + $0x3e8] sm:$0xff] %v1333_v62  ;;  %v1728_v2 = vadd.f32 %v1727_v54, %v1333_v62  ;;  %1659 = vst [vmem:[%s11379_s12 + $0x3f8] sm:$0xff] %v1526_v49  ;;  %v1802_v61 = vadd.f32 %v1801_v59, %v1526_v49 }
 0x1ee   : > { %v1692_v63 = vrot.slane %v1691_v56, 4  ;;  %v1766_v52 = vrot.slane %v1765_v53, 4  ;;  %v1817_v54 = vunpack.c.0.s8 %v1816_v58 }
 0x1ef   : > { %v1729_v48 = vrot.slane %v1728_v2, 4  ;;  %v1803_v47 = vrot.slane %v1802_v61, 4 }
 0x1f0   : > { %v1693_v46 = vadd.f32 %v1692_v63, %v1691_v56  ;;  %v1767_v60 = vadd.f32 %v1766_v52, %v1765_v53 }
 0x1f1   : > { %v1730_v0 = vadd.f32 %v1729_v48, %v1728_v2  ;;  %v1804_v45 = vadd.f32 %v1803_v47, %v1802_v61  ;;  %v1820_v48 = vsub.s32 %v1817_v54, %v11062_v1 }
 0x1f2   : > { %v1694_v44 = vrot.slane %v1693_v46, 2  ;;  %v1768_v50 = vrot.slane %v1767_v60, 2 }
 0x1f3   : > { %v1731_v28 = vrot.slane %v1730_v0, 2  ;;  %v1805_v55 = vrot.slane %v1804_v45, 2 }
 0x1f4   : > { %v1695_v51 = vadd.f32 %v1694_v44, %v1693_v46  ;;  %v1769_v43 = vadd.f32 %v1768_v50, %v1767_v60  ;;  %v1660_v44 = vld [vmem:[#allocation3] sm:$0xf]  ;;  %v19128_v60 = vlaneseq }
 0x1f5   : > { %v1732_v42 = vadd.f32 %v1731_v28, %v1730_v0  ;;  %v1806_v62 = vadd.f32 %v1805_v55, %v1804_v45 }
 0x1f6   : > { %v1696_v49 = vrot.slane %v1695_v51, 1  ;;  %v1770_v59 = vrot.slane %v1769_v43, 1  ;;  %vm1841_vm15 = vcmp.lt.s32.totalorder %v19128_v60, 512 }
 0x1f7   : > { %v1733_v41 = vrot.slane %v1732_v42, 1  ;;  %v1807_v40 = vrot.slane %v1806_v62, 1 }
 0x1f8   : > { %v1697_v39 = vadd.f32 %v1696_v49, %v1695_v51  ;;  %v1771_v56 = vadd.f32 %v1770_v59, %v1769_v43 }
 0x1f9   : > { %v1734_v53 = vadd.f32 %v1733_v41, %v1732_v42  ;;  %v1808_v2 = vadd.f32 %v1807_v40, %v1806_v62 }
 0x1fb   : > { %v1813_v47 = vcombine.low %v1697_v39, %v1734_v53  ;;  %v1814_v61 = vcombine.low %v1771_v56, %v1808_v2 }
 0x1fd   : > { %v1821_v63 = vrot.slane %v1813_v47, %v1820_v48  ;;  %v1828_v52 = vrot.slane %v1814_v61, %v1820_v48 }
 0x1ff   : > { %v1829_v57 = vcombine.low %v1821_v63, %v1828_v52 }
 0x201   : > { %v1836_v46 = vrot.slane %v1829_v57, %v1820_v48 }
 0x203   : > { %v1838_v45 = vadd.f32 %v1836_v46, %v1660_v44 }
 0x205   : > { %1843 = vst.msk [vmem:[#allocation3] sm:$0xf] %vm1841_vm15, %v1838_v45 }
 0x206 PF: > { %p1845_p1 = scmp.eq.s32.totalorder %s10859_s13, 0 }
 0x208   : > { %p1846_p2 = pnand %p1845_p1, %p430_p5 }
 0x20a   : > { %1849 = sbr.rel (%p1846_p2) target bundleno = 817 (0x331), region = 72 }
 0x211   : > { %v1850_v39 = vld [vmem:[#allocation3] sm:$0xf]  ;;  %v11518_v41 = vmov 0.0   ;;  %v11520_v42 = vmov 0.0   ;;  %v11522_v43 = vmov 0.0   ;;  %v11524_v0 = vmov 0.0  }
 0x212   : > { %v11516_v40 = vmul.f32 0.0026041667, %v1850_v39  ;;  %s11526_s18 = smov 0  }
 0x214   : > { %19129 = vst [vmem:[#allocation73_spill] sm:$0xff] %v11516_v40 }
 0x215 LB: >> { %v19130_v1 = vld [vmem:[#allocation9_spill] sm:$0xff]  ;;  %19132 = vst [vmem:[#allocation74_spill] sm:$0xff] %v10879_v41  ;;  %19133 = vst [vmem:[#allocation75_spill] sm:$0xff] %v10883_v42  ;;  %s9034_s23 = sshll.u32 %s10895_s18, 8  ;;  %s9690_s26 = sshll.u32 %s10895_s18, 10  ;;  %v19136_v3 = vld [vmem:[#allocation10_spill] sm:$0xff]  ;;  %v10883_v42 = vphi %v11520_v42, %v19680_v42   ;;  %v10879_v41 = vphi %v11518_v41, %v19679_v41   ;;  %s10895_s18 = sphi %s11526_s18, %s1857_s18   ;;  %v10891_v0 = vphi %v11524_v0, %v19682_v0   ;;  %v10887_v43 = vphi %v11522_v43, %v19681_v43  }
 0x216   : >> { %19134 = vst [vmem:[#allocation76_spill] sm:$0xff] %v10887_v43  ;;  %19135 = vst [vmem:[#allocation77_spill] sm:$0xff] %v10891_v0  ;;  %v1994_v58 = vstv %s9034_s23  ;;  %v2062_v50 = vsub.s32 0, %v19130_v1  ;;  %v2066_v28 = vsub.s32 1, %v19130_v1  ;;  %v2070_v55 = vsub.s32 2, %v19130_v1  ;;  %v19137_v4 = vld [vmem:[#allocation11_spill] sm:$0xff] }
 0x217   : >> { %v2074_v51 = vsub.s32 3, %v19130_v1  ;;  %v11550_v54 = vadd.s32 %v1994_v58, %v19130_v1  ;;  %v11553_v62 = vadd.s32 %v1994_v58, %v19136_v3  ;;  %v11556_v49 = vadd.s32 %v1994_v58, %v19137_v4  ;;  %v19138_v5 = vld [vmem:[#allocation12_spill] sm:$0xff]  ;;  %v19139_v6 = vld [vmem:[#allocation13_spill] sm:$0xff]  ;;  %v19140_v7 = vld [vmem:[#allocation14_spill] sm:$0xff]  ;;  %s11597_s27 = scalar_lea.vmem [#allocation2], %s9690_s26  ;;  %s1857_s18 = sadd.s32 1, %s10895_s18  }
 0x218   : >> { %v11559_v59 = vadd.s32 %v1994_v58, %v19138_v5  ;;  %v11562_v56 = vadd.s32 %v1994_v58, %v19139_v6  ;;  %v11565_v53 = vadd.s32 %v1994_v58, %v19140_v7  ;;  %v19141_v8 = vld [vmem:[#allocation15_spill] sm:$0xff]  ;;  %v19142_v9 = vld [vmem:[#allocation16_spill] sm:$0xff]  ;;  %v19143_v10 = vld [vmem:[#allocation17_spill] sm:$0xff]  ;;  %p1854_p4 = scmp.ge.s32.totalorder %s1857_s18, 2  }
 0x219   : >> { %v11568_v48 = vadd.s32 %v1994_v58, %v19141_v8  ;;  %v11571_v2 = vadd.s32 %v1994_v58, %v19142_v9  ;;  %v11574_v47 = vadd.s32 %v1994_v58, %v19143_v10  ;;  %v19144_v11 = vld [vmem:[#allocation18_spill] sm:$0xff]  ;;  %v19145_v12 = vld [vmem:[#allocation19_spill] sm:$0xff]  ;;  %v19146_v13 = vld [vmem:[#allocation20_spill] sm:$0xff]  ;;  %vm2027_vm15 = vcmp.lt.s32.totalorder %v11550_v54, 384 }
 0x21a   : >> { %v11577_v61 = vadd.s32 %v1994_v58, %v19144_v11  ;;  %v11580_v63 = vadd.s32 %v1994_v58, %v19145_v12  ;;  %v11583_v52 = vadd.s32 %v1994_v58, %v19146_v13  ;;  %v19147_v14 = vld [vmem:[#allocation21_spill] sm:$0xff]  ;;  %v19148_v15 = vld [vmem:[#allocation22_spill] sm:$0xff]  ;;  %v19149_v16 = vld [vmem:[#allocation23_spill] sm:$0xff]  ;;  %vm2028_vm11 = vcmp.lt.s32.totalorder %v11553_v62, 384 }
 0x21b   : >> { %v19131_v40 = vld [vmem:[#allocation73_spill] sm:$0xff]  ;;  %v11586_v57 = vadd.s32 %v1994_v58, %v19147_v14  ;;  %v11589_v44 = vadd.s32 %v1994_v58, %v19148_v15  ;;  %v11592_v46 = vadd.s32 %v1994_v58, %v19149_v16  ;;  %v19150_v17 = vld [vmem:[#allocation24_spill] sm:$0xff]  ;;  %v19154_v19 = vld [vmem:[#allocation26_spill] sm:$0xff]  ;;  %vm2029_vm10 = vcmp.lt.s32.totalorder %v11556_v49, 384 }
 0x21c   : >> { %v11595_v60 = vadd.s32 %v1994_v58, %v19150_v17  ;;  %v11600_v45 = vld [vmem:[%s11597_s27] sm:$0xff]  ;;  %v11603_v39 = vld [vmem:[%s11597_s27 + $0x8] sm:$0xff]  ;;  %v11606_v16 = vld [vmem:[%s11597_s27 + $0x10] sm:$0xff]  ;;  %v11615_v14 = vadd.s32 %v1994_v58, %v19154_v19  ;;  %v11636_v19 = vrot.slane %v19131_v40, %v2062_v50  ;;  %v11645_v8 = vrot.slane %v19131_v40, %v2074_v51 }
 0x21d   : >> { %v11609_v17 = vld [vmem:[%s11597_s27 + $0x18] sm:$0xff]  ;;  %v19152_v18 = vld [vmem:[#allocation25_spill] sm:$0xff]  ;;  %v19158_v21 = vld [vmem:[#allocation28_spill] sm:$0xff]  ;;  %vm2030_vm9 = vcmp.lt.s32.totalorder %v11559_v59, 384  ;;  %vm2031_vm8 = vcmp.lt.s32.totalorder %v11562_v56, 384  ;;  %vm2032_vm7 = vcmp.lt.s32.totalorder %v11565_v53, 384 }
 0x21e   : >> { %19151 = vst [vmem:[#allocation78_spill] sm:$0xff] %v11595_v60  ;;  %v11612_v15 = vadd.s32 %v1994_v58, %v19152_v18  ;;  %19155 = vst [vmem:[#allocation80_spill] sm:$0xff] %v11615_v14  ;;  %v19156_v20 = vld [vmem:[#allocation27_spill] sm:$0xff]  ;;  %v11621_v12 = vadd.s32 %v1994_v58, %v19158_v21  ;;  %v11627_v10 = vld [vmem:[%s11597_s27 + $0x28] sm:$0xff]  ;;  %v11642_v21 = vrot.slane %v19131_v40, %v2070_v55  ;;  %vm2033_vm6 = vcmp.lt.s32.totalorder %v11568_v48, 384 }
 0x21f   : >> { %v11618_v13 = vadd.s32 %v1994_v58, %v19156_v20  ;;  %v11624_v11 = vld [vmem:[%s11597_s27 + $0x20] sm:$0xff]  ;;  %v11630_v9 = vld [vmem:[%s11597_s27 + $0x30] sm:$0xff]  ;;  %v11633_v18 = vld [vmem:[%s11597_s27 + $0x38] sm:$0xff]  ;;  %v11639_v20 = vrot.slane %v19131_v40, %v2066_v28  ;;  %vm2034_vm14 = vcmp.lt.s32.totalorder %v11571_v2, 384  ;;  %vm2035_vm13 = vcmp.lt.s32.totalorder %v11574_v47, 384 }
 0x220   : >> { %19153 = vst [vmem:[#allocation79_spill] sm:$0xff] %v11612_v15  ;;  %19159 = vst [vmem:[#allocation82_spill] sm:$0xff] %v11621_v12  ;;  %v11648_v7 = vld [vmem:[%s11597_s27 + $0x40] sm:$0xff]  ;;  %v11651_v6 = vld [vmem:[%s11597_s27 + $0x48] sm:$0xff]  ;;  %vm2036_vm12 = vcmp.lt.s32.totalorder %v11577_v61, 384  ;;  %vm2037_vm5 = vcmp.lt.s32.totalorder %v11580_v63, 384 }
 0x221   : >> { %19157 = vst [vmem:[#allocation81_spill] sm:$0xff] %v11618_v13  ;;  %v11654_v5 = vld [vmem:[%s11597_s27 + $0x50] sm:$0xff]  ;;  %v11657_v50 = vld [vmem:[%s11597_s27 + $0x58] sm:$0xff]  ;;  %v19166_v25 = vld [vmem:[#allocation32_spill] sm:$0xff]  ;;  %vm2038_vm4 = vcmp.lt.s32.totalorder %v11583_v52, 384  ;;  %vm2039_vm3 = vcmp.lt.s32.totalorder %v11586_v57, 384 }
 0x222   : >> { %v19160_v22 = vld [vmem:[#allocation29_spill] sm:$0xff]  ;;  %v19162_v23 = vld [vmem:[#allocation30_spill] sm:$0xff]  ;;  %v19164_v24 = vld [vmem:[#allocation31_spill] sm:$0xff]  ;;  %v11669_v4 = vadd.s32 %v1994_v58, %v19166_v25 }
 0x223   : >> { %v11660_v28 = vadd.s32 %v1994_v58, %v19160_v22  ;;  %v11663_v55 = vadd.s32 %v1994_v58, %v19162_v23  ;;  %v11666_v51 = vadd.s32 %v1994_v58, %v19164_v24  ;;  %v11672_v3 = vld [vmem:[%s11597_s27 + $0x60] sm:$0xff]  ;;  %v11675_v38 = vld [vmem:[%s11597_s27 + $0x68] sm:$0xff]  ;;  %v11678_v37 = vld [vmem:[%s11597_s27 + $0x70] sm:$0xff] }
 0x224   : >> { %19167 = vst [vmem:[#allocation86_spill] sm:$0xff] %v11669_v4  ;;  %19168 = vst [vmem:[#allocation87_spill] sm:$0xff] %v11675_v38  ;;  %v11681_v22 = vld [vmem:[%s11597_s27 + $0x78] sm:$0xff]  ;;  %v19171_v26 = vld [vmem:[#allocation33_spill] sm:$0xff] }
 0x225   : >> { %19161 = vst [vmem:[#allocation83_spill] sm:$0xff] %v11660_v28  ;;  %19163 = vst [vmem:[#allocation84_spill] sm:$0xff] %v11663_v55  ;;  %v11684_v23 = vadd.s32 %v1994_v58, %v19171_v26  ;;  %v19173_v27 = vld [vmem:[#allocation34_spill] sm:$0xff]  ;;  %v19175_v25 = vld [vmem:[#allocation35_spill] sm:$0xff] }
 0x226   : >> { %19165 = vst [vmem:[#allocation85_spill] sm:$0xff] %v11666_v51  ;;  %19169 = vst [vmem:[#allocation88_spill] sm:$0xff] %v11678_v37  ;;  %v11687_v24 = vadd.s32 %v1994_v58, %v19173_v27  ;;  %v11690_v36 = vadd.s32 %v1994_v58, %v19175_v25  ;;  %v19177_v29 = vld [vmem:[#allocation36_spill] sm:$0xff]  ;;  %v11702_v1 = vld [vmem:[%s11597_s27 + $0x90] sm:$0xff] }
 0x227   : >> { %19170 = vst [vmem:[#allocation89_spill] sm:$0xff] %v11681_v22  ;;  %19172 = vst [vmem:[#allocation90_spill] sm:$0xff] %v11684_v23  ;;  %v11693_v35 = vadd.s32 %v1994_v58, %v19177_v29  ;;  %v11696_v34 = vld [vmem:[%s11597_s27 + $0x80] sm:$0xff]  ;;  %v11699_v40 = vld [vmem:[%s11597_s27 + $0x88] sm:$0xff] }
 0x228   : >> { %19174 = vst [vmem:[#allocation91_spill] sm:$0xff] %v11687_v24  ;;  %19176 = vst [vmem:[#allocation92_spill] sm:$0xff] %v11690_v36  ;;  %v11705_v26 = vld [vmem:[%s11597_s27 + $0x98] sm:$0xff]  ;;  %v19183_v30 = vld [vmem:[#allocation37_spill] sm:$0xff] }
 0x229   : >> { %19178 = vst [vmem:[#allocation93_spill] sm:$0xff] %v11693_v35  ;;  %19179 = vst [vmem:[#allocation94_spill] sm:$0xff] %v11696_v34  ;;  %v11708_v27 = vadd.s32 %v1994_v58, %v19183_v30  ;;  %v19185_v31 = vld [vmem:[#allocation38_spill] sm:$0xff]  ;;  %v19187_v32 = vld [vmem:[#allocation39_spill] sm:$0xff] }
 0x22a   : >> { %19180 = vst [vmem:[#allocation95_spill] sm:$0xff] %v11699_v40  ;;  %19181 = vst [vmem:[#allocation96_spill] sm:$0xff] %v11702_v1  ;;  %v11711_v25 = vadd.s32 %v1994_v58, %v19185_v31  ;;  %v11714_v29 = vadd.s32 %v1994_v58, %v19187_v32  ;;  %v19189_v33 = vld [vmem:[#allocation40_spill] sm:$0xff]  ;;  %v11726_v0 = vld [vmem:[%s11597_s27 + $0xb0] sm:$0xff]  ;;  %v19275_v31 = vsub.f32 %v11606_v16, %v11642_v21 }
 0x22b   : >> { %19182 = vst [vmem:[#allocation97_spill] sm:$0xff] %v11705_v26  ;;  %19184 = vst [vmem:[#allocation98_spill] sm:$0xff] %v11708_v27  ;;  %v11717_v41 = vadd.s32 %v1994_v58, %v19189_v33  ;;  %v11720_v42 = vld [vmem:[%s11597_s27 + $0xa0] sm:$0xff]  ;;  %v11723_v43 = vld [vmem:[%s11597_s27 + $0xa8] sm:$0xff]  ;;  %v19274_v58 = vsub.f32 %v11603_v39, %v11639_v20  ;;  %v19277_v39 = vsub.f32 %v11624_v11, %v11636_v19 }
 0x22c   : >> { %19186 = vst [vmem:[#allocation99_spill] sm:$0xff] %v11711_v25  ;;  %19188 = vst [vmem:[#allocation100_spill] sm:$0xff] %v11714_v29  ;;  %v11729_v30 = vld [vmem:[%s11597_s27 + $0xb8] sm:$0xff]  ;;  %v11743_v29 = vld [vmem:[%s11597_s27 + $0xc8] sm:$0xff]  ;;  %v12330_v32 = vsel %vm2027_vm15, %v19275_v31, 0.0  ;;  %v19278_v16 = vsub.f32 %v11627_v10, %v11639_v20  ;;  %v19280_v11 = vsub.f32 %v11633_v18, %v11645_v8  ;;  %v19281_v10 = vsub.f32 %v11648_v7, %v11636_v19 }
 0x22d   : >> { %19190 = vst [vmem:[#allocation101_spill] sm:$0xff] %v11717_v41  ;;  %19191 = vst [vmem:[#allocation102_spill] sm:$0xff] %v11720_v42  ;;  %v11740_v41 = vld [vmem:[%s11597_s27 + $0xc0] sm:$0xff]  ;;  %v11746_v25 = vld [vmem:[%s11597_s27 + $0xd0] sm:$0xff]  ;;  %v12323_v33 = vsel %vm2027_vm15, %v19274_v58, 0.0  ;;  %v12345_v58 = vsel %vm2028_vm11, %v19277_v39, 0.0  ;;  %v19283_v18 = vsub.f32 %v11654_v5, %v11642_v21  ;;  %v19284_v7 = vsub.f32 %v11657_v50, %v11645_v8 }
 0x22e   : >> { %19192 = vst [vmem:[#allocation103_spill] sm:$0xff] %v11723_v43  ;;  %19193 = vst [vmem:[#allocation104_spill] sm:$0xff] %v11726_v0  ;;  %v11749_v27 = vld [vmem:[%s11597_s27 + $0xd8] sm:$0xff]  ;;  %v11760_v35 = vld [vmem:[%s11597_s27 + $0xe0] sm:$0xff]  ;;  %v12352_v31 = vsel %vm2028_vm11, %v19278_v16, 0.0  ;;  %v12374_v39 = vsel %vm2029_vm10, %v19281_v10, 0.0 }
 0x22f   : >> { %19194 = vst [vmem:[#allocation105_spill] sm:$0xff] %v11729_v30  ;;  %19195 = vst [vmem:[#allocation106_spill] sm:$0xff] %v11740_v41  ;;  %v11763_v36 = vld [vmem:[%s11597_s27 + $0xe8] sm:$0xff]  ;;  %v11766_v24 = vld [vmem:[%s11597_s27 + $0xf0] sm:$0xff]  ;;  %v12388_v62 = vsel %vm2029_vm10, %v19283_v18, 0.0 }
 0x230   : >> { %19196 = vst [vmem:[#allocation107_spill] sm:$0xff] %v11743_v29  ;;  %19197 = vst [vmem:[#allocation108_spill] sm:$0xff] %v11746_v25  ;;  %v11769_v23 = vld [vmem:[%s11597_s27 + $0xf8] sm:$0xff]  ;;  %v11780_v4 = vld [vmem:[%s11597_s27 + $0x100] sm:$0xff] }
 0x231   : >> { %19198 = vst [vmem:[#allocation109_spill] sm:$0xff] %v11749_v27  ;;  %19199 = vst [vmem:[#allocation110_spill] sm:$0xff] %v11760_v35  ;;  %v11783_v51 = vld [vmem:[%s11597_s27 + $0x108] sm:$0xff]  ;;  %v11786_v55 = vld [vmem:[%s11597_s27 + $0x110] sm:$0xff] }
 0x232   : >> { %19200 = vst [vmem:[#allocation111_spill] sm:$0xff] %v11763_v36  ;;  %19201 = vst [vmem:[#allocation112_spill] sm:$0xff] %v11766_v24  ;;  %v11789_v28 = vld [vmem:[%s11597_s27 + $0x118] sm:$0xff]  ;;  %v11800_v12 = vld [vmem:[%s11597_s27 + $0x120] sm:$0xff] }
 0x233   : >> { %19202 = vst [vmem:[#allocation113_spill] sm:$0xff] %v11769_v23  ;;  %19203 = vst [vmem:[#allocation114_spill] sm:$0xff] %v11780_v4  ;;  %v11803_v13 = vld [vmem:[%s11597_s27 + $0x128] sm:$0xff]  ;;  %v11806_v14 = vld [vmem:[%s11597_s27 + $0x130] sm:$0xff] }
 0x234   : >> { %19204 = vst [vmem:[#allocation115_spill] sm:$0xff] %v11783_v51  ;;  %19205 = vst [vmem:[#allocation116_spill] sm:$0xff] %v11786_v55  ;;  %v11809_v15 = vld [vmem:[%s11597_s27 + $0x138] sm:$0xff]  ;;  %v11820_v60 = vld [vmem:[%s11597_s27 + $0x140] sm:$0xff] }
 0x235   : >> { %19206 = vst [vmem:[#allocation117_spill] sm:$0xff] %v11789_v28  ;;  %19207 = vst [vmem:[#allocation118_spill] sm:$0xff] %v11800_v12  ;;  %v11823_v22 = vld [vmem:[%s11597_s27 + $0x148] sm:$0xff]  ;;  %v11826_v37 = vld [vmem:[%s11597_s27 + $0x150] sm:$0xff] }
 0x236   : >> { %19208 = vst [vmem:[#allocation119_spill] sm:$0xff] %v11803_v13  ;;  %19209 = vst [vmem:[#allocation120_spill] sm:$0xff] %v11806_v14  ;;  %v11829_v38 = vld [vmem:[%s11597_s27 + $0x158] sm:$0xff]  ;;  %v11840_v26 = vld [vmem:[%s11597_s27 + $0x160] sm:$0xff] }
 0x237   : >> { %19210 = vst [vmem:[#allocation121_spill] sm:$0xff] %v11809_v15  ;;  %19211 = vst [vmem:[#allocation122_spill] sm:$0xff] %v11820_v60  ;;  %v11843_v1 = vld [vmem:[%s11597_s27 + $0x168] sm:$0xff]  ;;  %v11846_v40 = vld [vmem:[%s11597_s27 + $0x170] sm:$0xff] }
 0x238   : >> { %19212 = vst [vmem:[#allocation123_spill] sm:$0xff] %v11823_v22  ;;  %19213 = vst [vmem:[#allocation124_spill] sm:$0xff] %v11826_v37  ;;  %v11849_v34 = vld [vmem:[%s11597_s27 + $0x178] sm:$0xff]  ;;  %v11860_v30 = vld [vmem:[%s11597_s27 + $0x180] sm:$0xff] }
 0x239   : >> { %19214 = vst [vmem:[#allocation125_spill] sm:$0xff] %v11829_v38  ;;  %19215 = vst [vmem:[#allocation126_spill] sm:$0xff] %v11840_v26  ;;  %v11863_v0 = vld [vmem:[%s11597_s27 + $0x188] sm:$0xff]  ;;  %v11866_v43 = vld [vmem:[%s11597_s27 + $0x190] sm:$0xff] }
 0x23a   : >> { %19216 = vst [vmem:[#allocation127_spill] sm:$0xff] %v11843_v1  ;;  %19217 = vst [vmem:[#allocation128_spill] sm:$0xff] %v11846_v40  ;;  %v11869_v42 = vld [vmem:[%s11597_s27 + $0x198] sm:$0xff]  ;;  %v11880_v27 = vld [vmem:[%s11597_s27 + $0x1a0] sm:$0xff] }
 0x23b   : >> { %19218 = vst [vmem:[#allocation129_spill] sm:$0xff] %v11849_v34  ;;  %19219 = vst [vmem:[#allocation130_spill] sm:$0xff] %v11860_v30  ;;  %v11883_v25 = vld [vmem:[%s11597_s27 + $0x1a8] sm:$0xff]  ;;  %v11886_v29 = vld [vmem:[%s11597_s27 + $0x1b0] sm:$0xff] }
 0x23c   : >> { %19220 = vst [vmem:[#allocation131_spill] sm:$0xff] %v11863_v0  ;;  %19221 = vst [vmem:[#allocation132_spill] sm:$0xff] %v11866_v43  ;;  %v11889_v41 = vld [vmem:[%s11597_s27 + $0x1b8] sm:$0xff]  ;;  %v11900_v23 = vld [vmem:[%s11597_s27 + $0x1c0] sm:$0xff] }
 0x23d   : >> { %19222 = vst [vmem:[#allocation133_spill] sm:$0xff] %v11869_v42  ;;  %19223 = vst [vmem:[#allocation134_spill] sm:$0xff] %v11880_v27  ;;  %v11903_v24 = vld [vmem:[%s11597_s27 + $0x1c8] sm:$0xff]  ;;  %v11906_v36 = vld [vmem:[%s11597_s27 + $0x1d0] sm:$0xff] }
 0x23e   : >> { %19224 = vst [vmem:[#allocation135_spill] sm:$0xff] %v11883_v25  ;;  %19225 = vst [vmem:[#allocation136_spill] sm:$0xff] %v11886_v29  ;;  %v11909_v35 = vld [vmem:[%s11597_s27 + $0x1d8] sm:$0xff]  ;;  %v11920_v28 = vld [vmem:[%s11597_s27 + $0x1e0] sm:$0xff] }
 0x23f   : >> { %19226 = vst [vmem:[#allocation137_spill] sm:$0xff] %v11889_v41  ;;  %19227 = vst [vmem:[#allocation138_spill] sm:$0xff] %v11900_v23  ;;  %v11923_v55 = vld [vmem:[%s11597_s27 + $0x1e8] sm:$0xff]  ;;  %v11926_v51 = vld [vmem:[%s11597_s27 + $0x1f0] sm:$0xff] }
 0x240   : >> { %19228 = vst [vmem:[#allocation139_spill] sm:$0xff] %v11903_v24  ;;  %19229 = vst [vmem:[#allocation140_spill] sm:$0xff] %v11906_v36  ;;  %v11929_v4 = vld [vmem:[%s11597_s27 + $0x1f8] sm:$0xff]  ;;  %v11940_v15 = vld [vmem:[%s11597_s27 + $0x200] sm:$0xff] }
 0x241   : >> { %19230 = vst [vmem:[#allocation141_spill] sm:$0xff] %v11909_v35  ;;  %19231 = vst [vmem:[#allocation142_spill] sm:$0xff] %v11920_v28  ;;  %v11943_v14 = vld [vmem:[%s11597_s27 + $0x208] sm:$0xff]  ;;  %v11946_v13 = vld [vmem:[%s11597_s27 + $0x210] sm:$0xff] }
 0x242   : >> { %19232 = vst [vmem:[#allocation143_spill] sm:$0xff] %v11923_v55  ;;  %19233 = vst [vmem:[#allocation144_spill] sm:$0xff] %v11926_v51  ;;  %v11949_v12 = vld [vmem:[%s11597_s27 + $0x218] sm:$0xff]  ;;  %v11960_v38 = vld [vmem:[%s11597_s27 + $0x220] sm:$0xff] }
 0x243   : >> { %19234 = vst [vmem:[#allocation145_spill] sm:$0xff] %v11929_v4  ;;  %19235 = vst [vmem:[#allocation146_spill] sm:$0xff] %v11940_v15  ;;  %v11963_v37 = vld [vmem:[%s11597_s27 + $0x228] sm:$0xff]  ;;  %v11966_v22 = vld [vmem:[%s11597_s27 + $0x230] sm:$0xff] }
 0x244   : >> { %19236 = vst [vmem:[#allocation147_spill] sm:$0xff] %v11943_v14  ;;  %19237 = vst [vmem:[#allocation148_spill] sm:$0xff] %v11946_v13  ;;  %v11969_v60 = vld [vmem:[%s11597_s27 + $0x238] sm:$0xff]  ;;  %v11980_v34 = vld [vmem:[%s11597_s27 + $0x240] sm:$0xff] }
 0x245   : >> { %19238 = vst [vmem:[#allocation149_spill] sm:$0xff] %v11949_v12  ;;  %19239 = vst [vmem:[#allocation150_spill] sm:$0xff] %v11960_v38  ;;  %v11983_v40 = vld [vmem:[%s11597_s27 + $0x248] sm:$0xff]  ;;  %v11986_v1 = vld [vmem:[%s11597_s27 + $0x250] sm:$0xff] }
 0x246   : >> { %19240 = vst [vmem:[#allocation151_spill] sm:$0xff] %v11963_v37  ;;  %19241 = vst [vmem:[#allocation152_spill] sm:$0xff] %v11966_v22  ;;  %v11989_v26 = vld [vmem:[%s11597_s27 + $0x258] sm:$0xff]  ;;  %v12000_v42 = vld [vmem:[%s11597_s27 + $0x260] sm:$0xff] }
 0x247   : >> { %19242 = vst [vmem:[#allocation153_spill] sm:$0xff] %v11969_v60  ;;  %19243 = vst [vmem:[#allocation154_spill] sm:$0xff] %v11980_v34  ;;  %v12003_v43 = vld [vmem:[%s11597_s27 + $0x268] sm:$0xff]  ;;  %v12006_v0 = vld [vmem:[%s11597_s27 + $0x270] sm:$0xff] }
 0x248   : >> { %19244 = vst [vmem:[#allocation155_spill] sm:$0xff] %v11983_v40  ;;  %19245 = vst [vmem:[#allocation156_spill] sm:$0xff] %v11986_v1  ;;  %v12009_v30 = vld [vmem:[%s11597_s27 + $0x278] sm:$0xff]  ;;  %v12020_v41 = vld [vmem:[%s11597_s27 + $0x280] sm:$0xff] }
 0x249   : >> { %19246 = vst [vmem:[#allocation157_spill] sm:$0xff] %v11989_v26  ;;  %19247 = vst [vmem:[#allocation158_spill] sm:$0xff] %v12003_v43  ;;  %v12023_v29 = vld [vmem:[%s11597_s27 + $0x288] sm:$0xff]  ;;  %v12026_v25 = vld [vmem:[%s11597_s27 + $0x290] sm:$0xff] }
 0x24a   : >> { %19248 = vst [vmem:[#allocation159_spill] sm:$0xff] %v12006_v0  ;;  %19249 = vst [vmem:[#allocation160_spill] sm:$0xff] %v12009_v30  ;;  %v12029_v27 = vld [vmem:[%s11597_s27 + $0x298] sm:$0xff]  ;;  %v12040_v35 = vld [vmem:[%s11597_s27 + $0x2a0] sm:$0xff] }
 0x24b   : >> { %19250 = vst [vmem:[#allocation161_spill] sm:$0xff] %v12023_v29  ;;  %19251 = vst [vmem:[#allocation162_spill] sm:$0xff] %v12026_v25  ;;  %v12043_v36 = vld [vmem:[%s11597_s27 + $0x2a8] sm:$0xff]  ;;  %v12046_v24 = vld [vmem:[%s11597_s27 + $0x2b0] sm:$0xff] }
 0x24c   : >> { %19252 = vst [vmem:[#allocation163_spill] sm:$0xff] %v12029_v27  ;;  %19253 = vst [vmem:[#allocation164_spill] sm:$0xff] %v12043_v36  ;;  %v12049_v23 = vld [vmem:[%s11597_s27 + $0x2b8] sm:$0xff]  ;;  %v12060_v4 = vld [vmem:[%s11597_s27 + $0x2c0] sm:$0xff] }
 0x24d   : >> { %19254 = vst [vmem:[#allocation165_spill] sm:$0xff] %v12046_v24  ;;  %19255 = vst [vmem:[#allocation166_spill] sm:$0xff] %v12049_v23  ;;  %v12063_v51 = vld [vmem:[%s11597_s27 + $0x2c8] sm:$0xff]  ;;  %v12066_v55 = vld [vmem:[%s11597_s27 + $0x2d0] sm:$0xff] }
 0x24e   : >> { %19256 = vst [vmem:[#allocation167_spill] sm:$0xff] %v12063_v51  ;;  %19257 = vst [vmem:[#allocation168_spill] sm:$0xff] %v12066_v55  ;;  %v12069_v28 = vld [vmem:[%s11597_s27 + $0x2d8] sm:$0xff]  ;;  %v12080_v12 = vld [vmem:[%s11597_s27 + $0x2e0] sm:$0xff] }
 0x24f   : >> { %19258 = vst [vmem:[#allocation169_spill] sm:$0xff] %v12069_v28  ;;  %v12083_v13 = vld [vmem:[%s11597_s27 + $0x2e8] sm:$0xff]  ;;  %v12086_v14 = vld [vmem:[%s11597_s27 + $0x2f0] sm:$0xff]  ;;  %v12089_v15 = vld [vmem:[%s11597_s27 + $0x2f8] sm:$0xff] }
 0x250   : >> { %19259 = vst [vmem:[#allocation170_spill] sm:$0xff] %v12083_v13  ;;  %19260 = vst [vmem:[#allocation171_spill] sm:$0xff] %v12086_v14  ;;  %v12100_v60 = vld [vmem:[%s11597_s27 + $0x300] sm:$0xff]  ;;  %v12103_v22 = vld [vmem:[%s11597_s27 + $0x308] sm:$0xff] }
 0x251   : >> { %19261 = vst [vmem:[#allocation172_spill] sm:$0xff] %v12089_v15  ;;  %19262 = vst [vmem:[#allocation173_spill] sm:$0xff] %v12103_v22  ;;  %v12106_v37 = vld [vmem:[%s11597_s27 + $0x310] sm:$0xff]  ;;  %v12109_v38 = vld [vmem:[%s11597_s27 + $0x318] sm:$0xff] }
 0x252   : >> { %19263 = vst [vmem:[#allocation174_spill] sm:$0xff] %v12106_v37  ;;  %19264 = vst [vmem:[#allocation175_spill] sm:$0xff] %v12109_v38  ;;  %v12120_v26 = vld [vmem:[%s11597_s27 + $0x320] sm:$0xff]  ;;  %v12123_v1 = vld [vmem:[%s11597_s27 + $0x328] sm:$0xff] }
 0x253   : >> { %19265 = vst [vmem:[#allocation176_spill] sm:$0xff] %v12123_v1  ;;  %v12126_v40 = vld [vmem:[%s11597_s27 + $0x330] sm:$0xff]  ;;  %v12129_v34 = vld [vmem:[%s11597_s27 + $0x338] sm:$0xff]  ;;  %v12140_v30 = vld [vmem:[%s11597_s27 + $0x340] sm:$0xff] }
 0x254   : >> { %19266 = vst [vmem:[#allocation177_spill] sm:$0xff] %v12126_v40  ;;  %19267 = vst [vmem:[#allocation178_spill] sm:$0xff] %v12129_v34  ;;  %v12143_v0 = vld [vmem:[%s11597_s27 + $0x348] sm:$0xff]  ;;  %v12146_v43 = vld [vmem:[%s11597_s27 + $0x350] sm:$0xff] }
 0x255   : >> { %19268 = vst [vmem:[#allocation179_spill] sm:$0xff] %v12143_v0  ;;  %19269 = vst [vmem:[#allocation180_spill] sm:$0xff] %v12146_v43  ;;  %v12158_v27 = vld [vmem:[%s11597_s27 + $0x358] sm:$0xff]  ;;  %v12161_v25 = vld [vmem:[%s11597_s27 + $0x360] sm:$0xff] }
 0x256   : >> { %19270 = vst [vmem:[#allocation181_spill] sm:$0xff] %v12158_v27  ;;  %v12164_v29 = vld [vmem:[%s11597_s27 + $0x368] sm:$0xff]  ;;  %v12176_v23 = vld [vmem:[%s11597_s27 + $0x370] sm:$0xff]  ;;  %v12179_v24 = vld [vmem:[%s11597_s27 + $0x378] sm:$0xff] }
 0x257   : >> { %19271 = vst [vmem:[#allocation182_spill] sm:$0xff] %v12176_v23  ;;  %19272 = vst [vmem:[#allocation183_spill] sm:$0xff] %v12179_v24  ;;  %v12182_v36 = vld [vmem:[%s11597_s27 + $0x380] sm:$0xff]  ;;  %v12194_v28 = vld [vmem:[%s11597_s27 + $0x388] sm:$0xff]  ;;  %v19273_v24 = vsub.f32 %v11600_v45, %v11636_v19  ;;  %v19276_v45 = vsub.f32 %v11609_v17, %v11645_v8  ;;  %v19279_v17 = vsub.f32 %v11630_v9, %v11642_v21 }
 0x258   : >> { %v12197_v55 = vld [vmem:[%s11597_s27 + $0x390] sm:$0xff]  ;;  %v12200_v51 = vld [vmem:[%s11597_s27 + $0x398] sm:$0xff]  ;;  %v12212_v15 = vld [vmem:[%s11597_s27 + $0x3a0] sm:$0xff]  ;;  %v19282_v9 = vsub.f32 %v11651_v6, %v11639_v20  ;;  %v19285_v6 = vsub.f32 %v11672_v3, %v11636_v19 }
 0x259   : >> { %v12215_v14 = vld [vmem:[%s11597_s27 + $0x3a8] sm:$0xff]  ;;  %v12218_v13 = vld [vmem:[%s11597_s27 + $0x3b0] sm:$0xff]  ;;  %v12230_v38 = vld [vmem:[%s11597_s27 + $0x3b8] sm:$0xff]  ;;  %v12316_v23 = vsel %vm2027_vm15, %v19273_v24, 0.0  ;;  %v12337_v24 = vsel %vm2027_vm15, %v19276_v45, 0.0  ;;  %v12359_v54 = vsel %vm2028_vm11, %v19279_v17, 0.0 }
 0x25a   : >> { %v12233_v37 = vld [vmem:[%s11597_s27 + $0x3c0] sm:$0xff]  ;;  %v12236_v22 = vld [vmem:[%s11597_s27 + $0x3c8] sm:$0xff]  ;;  %v12248_v34 = vld [vmem:[%s11597_s27 + $0x3d0] sm:$0xff]  ;;  %v12366_v45 = vsel %vm2028_vm11, %v19280_v11, 0.0  ;;  %vm2040_vm15 = vcmp.lt.s32.totalorder %v11589_v44, 384  ;;  %v12381_v16 = vsel %vm2029_vm10, %v19282_v9, 0.0 }
 0x25b   : >> { %v12251_v40 = vld [vmem:[%s11597_s27 + $0x3d8] sm:$0xff]  ;;  %v12254_v1 = vld [vmem:[%s11597_s27 + $0x3e0] sm:$0xff]  ;;  %v12266_v27 = vld [vmem:[%s11597_s27 + $0x3e8] sm:$0xff]  ;;  %v12395_v17 = vsel %vm2029_vm10, %v19284_v7, 0.0  ;;  %vm2041_vm11 = vcmp.lt.s32.totalorder %v11592_v46, 384  ;;  %v12403_v11 = vsel %vm2030_vm9, %v19285_v6, 0.0 }
 0x25c   : >> { %v12269_v43 = vld [vmem:[%s11597_s27 + $0x3f0] sm:$0xff]  ;;  %v12272_v0 = vld [vmem:[%s11597_s27 + $0x3f8] sm:$0xff]  ;;  %19286 = vst [vmem:[#allocation184_spill] sm:$0xff] %v12403_v11  ;;  %v19290_v50 = vld [vmem:[#allocation88_spill] sm:$0xff] }
 0x25d   : >> { %v19287_v5 = vld [vmem:[#allocation87_spill] sm:$0xff]  ;;  %v19291_v49 = vsub.f32 %v19290_v50, %v11642_v21  ;;  %v19293_v7 = vld [vmem:[#allocation89_spill] sm:$0xff]  ;;  %v19296_v11 = vld [vmem:[#allocation78_spill] sm:$0xff] }
 0x25e   : >> { %v19288_v10 = vsub.f32 %v19287_v5, %v11639_v20  ;;  %v19294_v3 = vsub.f32 %v19293_v7, %v11645_v8  ;;  %vm2042_vm10 = vcmp.lt.s32.totalorder %v19296_v11, 384  ;;  %v19297_v5 = vld [vmem:[#allocation94_spill] sm:$0xff]  ;;  %v19300_v50 = vld [vmem:[#allocation95_spill] sm:$0xff]  ;;  %v19303_v7 = vld [vmem:[#allocation96_spill] sm:$0xff] }
 0x25f   : >> { %v12417_v18 = vsel %vm2030_vm9, %v19291_v49, 0.0  ;;  %v19301_v49 = vsub.f32 %v19300_v50, %v11639_v20  ;;  %v19304_v59 = vsub.f32 %v19303_v7, %v11642_v21  ;;  %v19310_v50 = vld [vmem:[#allocation102_spill] sm:$0xff]  ;;  %v19313_v7 = vld [vmem:[#allocation103_spill] sm:$0xff] }
 0x260   : >> { %v12410_v9 = vsel %vm2030_vm9, %v19288_v10, 0.0  ;;  %19292 = vst [vmem:[#allocation88_spill] sm:$0xff] %v12417_v18  ;;  %v12424_v6 = vsel %vm2030_vm9, %v19294_v3, 0.0  ;;  %v19298_v10 = vsub.f32 %v19297_v5, %v11636_v19 }
 0x261   : >> { %19289 = vst [vmem:[#allocation87_spill] sm:$0xff] %v12410_v9  ;;  %19295 = vst [vmem:[#allocation89_spill] sm:$0xff] %v12424_v6  ;;  %v12439_v18 = vsel %vm2031_vm8, %v19301_v49, 0.0  ;;  %v12446_v3 = vsel %vm2031_vm8, %v19304_v59, 0.0  ;;  %v19306_v6 = vld [vmem:[#allocation97_spill] sm:$0xff]  ;;  %v19311_v49 = vsub.f32 %v19310_v50, %v11636_v19  ;;  %v19314_v59 = vsub.f32 %v19313_v7, %v11639_v20  ;;  %v19323_v7 = vld [vmem:[#allocation106_spill] sm:$0xff] }
 0x262   : >> { %v12432_v9 = vsel %vm2031_vm8, %v19298_v10, 0.0  ;;  %19302 = vst [vmem:[#allocation94_spill] sm:$0xff] %v12439_v18  ;;  %19305 = vst [vmem:[#allocation95_spill] sm:$0xff] %v12446_v3  ;;  %v19307_v5 = vsub.f32 %v19306_v6, %v11645_v8  ;;  %v19316_v6 = vld [vmem:[#allocation104_spill] sm:$0xff] }
 0x263   : >> { %19299 = vst [vmem:[#allocation78_spill] sm:$0xff] %v12432_v9  ;;  %v19309_v9 = vld [vmem:[#allocation79_spill] sm:$0xff]  ;;  %v12461_v18 = vsel %vm2032_vm7, %v19311_v49, 0.0  ;;  %v12468_v3 = vsel %vm2032_vm7, %v19314_v59, 0.0  ;;  %v19317_v56 = vsub.f32 %v19316_v6, %v11642_v21  ;;  %v19324_v59 = vsub.f32 %v19323_v7, %v11636_v19 }
 0x264   : >> { %v12453_v10 = vsel %vm2031_vm8, %v19307_v5, 0.0  ;;  %vm2043_vm9 = vcmp.lt.s32.totalorder %v19309_v9, 384  ;;  %19312 = vst [vmem:[#allocation97_spill] sm:$0xff] %v12461_v18  ;;  %19315 = vst [vmem:[#allocation79_spill] sm:$0xff] %v12468_v3  ;;  %v19322_v18 = vld [vmem:[#allocation80_spill] sm:$0xff]  ;;  %v19326_v6 = vld [vmem:[#allocation107_spill] sm:$0xff] }
 0x265   : >> { %19308 = vst [vmem:[#allocation96_spill] sm:$0xff] %v12453_v10  ;;  %v12475_v5 = vsel %vm2032_vm7, %v19317_v56, 0.0  ;;  %v19319_v10 = vld [vmem:[#allocation105_spill] sm:$0xff]  ;;  %vm2044_vm8 = vcmp.lt.s32.totalorder %v19322_v18, 384  ;;  %v12490_v3 = vsel %vm2033_vm6, %v19324_v59, 0.0  ;;  %v19327_v56 = vsub.f32 %v19326_v6, %v11639_v20  ;;  %v19336_v6 = vld [vmem:[#allocation110_spill] sm:$0xff] }
 0x266   : >> { %19318 = vst [vmem:[#allocation102_spill] sm:$0xff] %v12475_v5  ;;  %v19320_v50 = vsub.f32 %v19319_v10, %v11645_v8  ;;  %19325 = vst [vmem:[#allocation104_spill] sm:$0xff] %v12490_v3  ;;  %v19329_v10 = vld [vmem:[#allocation108_spill] sm:$0xff]  ;;  %v19335_v3 = vld [vmem:[#allocation81_spill] sm:$0xff] }
 0x267   : >> { %v12497_v5 = vsel %vm2033_vm6, %v19327_v56, 0.0  ;;  %v19330_v53 = vsub.f32 %v19329_v10, %v11642_v21  ;;  %v19337_v56 = vsub.f32 %v19336_v6, %v11636_v19  ;;  %v19339_v10 = vld [vmem:[#allocation111_spill] sm:$0xff] }
 0x268   : >> { %v12482_v49 = vsel %vm2032_vm7, %v19320_v50, 0.0  ;;  %19328 = vst [vmem:[#allocation105_spill] sm:$0xff] %v12497_v5  ;;  %vm2045_vm7 = vcmp.lt.s32.totalorder %v19335_v3, 384 }
 0x269   : >> { %19321 = vst [vmem:[#allocation103_spill] sm:$0xff] %v12482_v49  ;;  %v12504_v50 = vsel %vm2033_vm6, %v19330_v53, 0.0  ;;  %v19332_v49 = vld [vmem:[#allocation109_spill] sm:$0xff]  ;;  %v12519_v5 = vsel %vm2034_vm14, %v19337_v56, 0.0  ;;  %v19340_v53 = vsub.f32 %v19339_v10, %v11639_v20  ;;  %v19349_v10 = vld [vmem:[#allocation114_spill] sm:$0xff] }
 0x26a   : >> { %19331 = vst [vmem:[#allocation80_spill] sm:$0xff] %v12504_v50  ;;  %v19333_v7 = vsub.f32 %v19332_v49, %v11645_v8  ;;  %19338 = vst [vmem:[#allocation107_spill] sm:$0xff] %v12519_v5  ;;  %v19342_v49 = vld [vmem:[#allocation112_spill] sm:$0xff]  ;;  %v19348_v5 = vld [vmem:[#allocation82_spill] sm:$0xff] }
 0x26b   : >> { %v12526_v50 = vsel %vm2034_vm14, %v19340_v53, 0.0  ;;  %v19343_v48 = vsub.f32 %v19342_v49, %v11642_v21  ;;  %v19350_v53 = vsub.f32 %v19349_v10, %v11636_v19  ;;  %v19352_v49 = vld [vmem:[#allocation115_spill] sm:$0xff] }
 0x26c   : >> { %v12511_v59 = vsel %vm2033_vm6, %v19333_v7, 0.0  ;;  %19341 = vst [vmem:[#allocation108_spill] sm:$0xff] %v12526_v50  ;;  %vm2046_vm6 = vcmp.lt.s32.totalorder %v19348_v5, 384 }
 0x26d   : >> { %19334 = vst [vmem:[#allocation106_spill] sm:$0xff] %v12511_v59  ;;  %v12533_v7 = vsel %vm2034_vm14, %v19343_v48, 0.0  ;;  %v19345_v59 = vld [vmem:[#allocation113_spill] sm:$0xff]  ;;  %v12548_v50 = vsel %vm2035_vm13, %v19350_v53, 0.0  ;;  %v19353_v48 = vsub.f32 %v19352_v49, %v11639_v20  ;;  %v19362_v49 = vld [vmem:[#allocation118_spill] sm:$0xff] }
 0x26e   : >> { %19344 = vst [vmem:[#allocation109_spill] sm:$0xff] %v12533_v7  ;;  %v19346_v6 = vsub.f32 %v19345_v59, %v11645_v8  ;;  %19351 = vst [vmem:[#allocation110_spill] sm:$0xff] %v12548_v50  ;;  %v19355_v59 = vld [vmem:[#allocation116_spill] sm:$0xff]  ;;  %v19361_v50 = vld [vmem:[#allocation83_spill] sm:$0xff] }
 0x26f   : >> { %v12555_v7 = vsel %vm2035_vm13, %v19353_v48, 0.0  ;;  %v19356_v2 = vsub.f32 %v19355_v59, %v11642_v21  ;;  %v19363_v48 = vsub.f32 %v19362_v49, %v11636_v19  ;;  %v19365_v59 = vld [vmem:[#allocation119_spill] sm:$0xff] }
 0x270   : >> { %v12540_v56 = vsel %vm2034_vm14, %v19346_v6, 0.0  ;;  %19354 = vst [vmem:[#allocation111_spill] sm:$0xff] %v12555_v7  ;;  %vm2047_vm14 = vcmp.lt.s32.totalorder %v19361_v50, 384 }
 0x271   : >> { %19347 = vst [vmem:[#allocation81_spill] sm:$0xff] %v12540_v56  ;;  %v12562_v6 = vsel %vm2035_vm13, %v19356_v2, 0.0  ;;  %v19358_v56 = vld [vmem:[#allocation117_spill] sm:$0xff]  ;;  %v12577_v7 = vsel %vm2036_vm12, %v19363_v48, 0.0  ;;  %v19366_v2 = vsub.f32 %v19365_v59, %v11639_v20  ;;  %v19375_v59 = vld [vmem:[#allocation122_spill] sm:$0xff] }
 0x272   : >> { %19357 = vst [vmem:[#allocation112_spill] sm:$0xff] %v12562_v6  ;;  %v19359_v10 = vsub.f32 %v19358_v56, %v11645_v8  ;;  %19364 = vst [vmem:[#allocation82_spill] sm:$0xff] %v12577_v7  ;;  %v19368_v56 = vld [vmem:[#allocation120_spill] sm:$0xff] }
 0x273   : >> { %v12584_v6 = vsel %vm2036_vm12, %v19366_v2, 0.0  ;;  %v19369_v47 = vsub.f32 %v19368_v56, %v11642_v21  ;;  %v19374_v7 = vld [vmem:[#allocation84_spill] sm:$0xff]  ;;  %v19376_v2 = vsub.f32 %v19375_v59, %v11636_v19  ;;  %v19378_v56 = vld [vmem:[#allocation123_spill] sm:$0xff] }
 0x274   : >> { %v12569_v53 = vsel %vm2035_vm13, %v19359_v10, 0.0  ;;  %19367 = vst [vmem:[#allocation114_spill] sm:$0xff] %v12584_v6  ;;  %vm2048_vm13 = vcmp.lt.s32.totalorder %v19374_v7, 384 }
 0x275   : >> { %19360 = vst [vmem:[#allocation113_spill] sm:$0xff] %v12569_v53  ;;  %v12591_v10 = vsel %vm2036_vm12, %v19369_v47, 0.0  ;;  %v19371_v53 = vld [vmem:[#allocation121_spill] sm:$0xff]  ;;  %v12606_v6 = vsel %vm2037_vm5, %v19376_v2, 0.0  ;;  %v19379_v47 = vsub.f32 %v19378_v56, %v11639_v20  ;;  %v19388_v56 = vld [vmem:[#allocation126_spill] sm:$0xff] }
 0x276   : >> { %19370 = vst [vmem:[#allocation115_spill] sm:$0xff] %v12591_v10  ;;  %v19372_v49 = vsub.f32 %v19371_v53, %v11645_v8  ;;  %19377 = vst [vmem:[#allocation117_spill] sm:$0xff] %v12606_v6  ;;  %v19381_v53 = vld [vmem:[#allocation124_spill] sm:$0xff]  ;;  %v19387_v6 = vld [vmem:[#allocation85_spill] sm:$0xff] }
 0x277   : >> { %v12613_v10 = vsel %vm2037_vm5, %v19379_v47, 0.0  ;;  %v19382_v61 = vsub.f32 %v19381_v53, %v11642_v21  ;;  %v19389_v47 = vsub.f32 %v19388_v56, %v11636_v19  ;;  %v19391_v53 = vld [vmem:[#allocation127_spill] sm:$0xff] }
 0x278   : >> { %v12598_v48 = vsel %vm2036_vm12, %v19372_v49, 0.0  ;;  %19380 = vst [vmem:[#allocation83_spill] sm:$0xff] %v12613_v10  ;;  %vm2049_vm12 = vcmp.lt.s32.totalorder %v19387_v6, 384 }
 0x279   : >> { %19373 = vst [vmem:[#allocation116_spill] sm:$0xff] %v12598_v48  ;;  %v12620_v49 = vsel %vm2037_vm5, %v19382_v61, 0.0  ;;  %v19384_v48 = vld [vmem:[#allocation125_spill] sm:$0xff]  ;;  %v12635_v10 = vsel %vm2038_vm4, %v19389_v47, 0.0  ;;  %v19392_v61 = vsub.f32 %v19391_v53, %v11639_v20  ;;  %v19401_v53 = vld [vmem:[#allocation130_spill] sm:$0xff] }
 0x27a   : >> { %19383 = vst [vmem:[#allocation118_spill] sm:$0xff] %v12620_v49  ;;  %v19385_v59 = vsub.f32 %v19384_v48, %v11645_v8  ;;  %19390 = vst [vmem:[#allocation120_spill] sm:$0xff] %v12635_v10  ;;  %v19394_v48 = vld [vmem:[#allocation128_spill] sm:$0xff]  ;;  %v19400_v10 = vld [vmem:[#allocation86_spill] sm:$0xff] }
 0x27b   : >> { %v12642_v49 = vsel %vm2038_vm4, %v19392_v61, 0.0  ;;  %v19395_v63 = vsub.f32 %v19394_v48, %v11642_v21  ;;  %v19402_v61 = vsub.f32 %v19401_v53, %v11636_v19  ;;  %v19404_v48 = vld [vmem:[#allocation131_spill] sm:$0xff] }
 0x27c   : >> { %v12627_v2 = vsel %vm2037_vm5, %v19385_v59, 0.0  ;;  %19393 = vst [vmem:[#allocation121_spill] sm:$0xff] %v12642_v49  ;;  %vm2050_vm5 = vcmp.lt.s32.totalorder %v19400_v10, 384 }
 0x27d   : >> { %19386 = vst [vmem:[#allocation119_spill] sm:$0xff] %v12627_v2  ;;  %v12649_v59 = vsel %vm2038_vm4, %v19395_v63, 0.0  ;;  %v19397_v2 = vld [vmem:[#allocation129_spill] sm:$0xff]  ;;  %v12664_v49 = vsel %vm2039_vm3, %v19402_v61, 0.0  ;;  %v19405_v63 = vsub.f32 %v19404_v48, %v11639_v20  ;;  %v19414_v48 = vld [vmem:[#allocation134_spill] sm:$0xff] }
 0x27e   : >> { %19396 = vst [vmem:[#allocation84_spill] sm:$0xff] %v12649_v59  ;;  %v19398_v56 = vsub.f32 %v19397_v2, %v11645_v8  ;;  %19403 = vst [vmem:[#allocation123_spill] sm:$0xff] %v12664_v49  ;;  %v19407_v2 = vld [vmem:[#allocation132_spill] sm:$0xff]  ;;  %v19413_v49 = vld [vmem:[#allocation90_spill] sm:$0xff] }
 0x27f   : >> { %v12671_v59 = vsel %vm2039_vm3, %v19405_v63, 0.0  ;;  %v19408_v52 = vsub.f32 %v19407_v2, %v11642_v21  ;;  %v19415_v63 = vsub.f32 %v19414_v48, %v11636_v19  ;;  %v19417_v2 = vld [vmem:[#allocation135_spill] sm:$0xff] }
 0x280   : >> { %v12656_v47 = vsel %vm2038_vm4, %v19398_v56, 0.0  ;;  %19406 = vst [vmem:[#allocation124_spill] sm:$0xff] %v12671_v59  ;;  %vm2051_vm4 = vcmp.lt.s32.totalorder %v19413_v49, 384 }
 0x281   : >> { %19399 = vst [vmem:[#allocation122_spill] sm:$0xff] %v12656_v47  ;;  %v12678_v56 = vsel %vm2039_vm3, %v19408_v52, 0.0  ;;  %v19410_v47 = vld [vmem:[#allocation133_spill] sm:$0xff]  ;;  %v12693_v59 = vsel %vm2040_vm15, %v19415_v63, 0.0  ;;  %v19418_v52 = vsub.f32 %v19417_v2, %v11639_v20  ;;  %v19427_v2 = vld [vmem:[#allocation138_spill] sm:$0xff] }
 0x282   : >> { %19409 = vst [vmem:[#allocation125_spill] sm:$0xff] %v12678_v56  ;;  %v19411_v53 = vsub.f32 %v19410_v47, %v11645_v8  ;;  %19416 = vst [vmem:[#allocation126_spill] sm:$0xff] %v12693_v59  ;;  %v19420_v47 = vld [vmem:[#allocation136_spill] sm:$0xff]  ;;  %v19426_v59 = vld [vmem:[#allocation91_spill] sm:$0xff] }
 0x283   : >> { %v12700_v56 = vsel %vm2040_vm15, %v19418_v52, 0.0  ;;  %v19421_v57 = vsub.f32 %v19420_v47, %v11642_v21  ;;  %v19428_v52 = vsub.f32 %v19427_v2, %v11636_v19  ;;  %v19430_v47 = vld [vmem:[#allocation139_spill] sm:$0xff] }
 0x284   : >> { %v12685_v61 = vsel %vm2039_vm3, %v19411_v53, 0.0  ;;  %19419 = vst [vmem:[#allocation127_spill] sm:$0xff] %v12700_v56  ;;  %vm2052_vm3 = vcmp.lt.s32.totalorder %v19426_v59, 384 }
 0x285   : >> { %19412 = vst [vmem:[#allocation85_spill] sm:$0xff] %v12685_v61  ;;  %v12707_v53 = vsel %vm2040_vm15, %v19421_v57, 0.0  ;;  %v19423_v61 = vld [vmem:[#allocation137_spill] sm:$0xff]  ;;  %v12722_v56 = vsel %vm2041_vm11, %v19428_v52, 0.0  ;;  %v19431_v57 = vsub.f32 %v19430_v47, %v11639_v20  ;;  %v19440_v47 = vld [vmem:[#allocation142_spill] sm:$0xff] }
 0x286   : >> { %19422 = vst [vmem:[#allocation128_spill] sm:$0xff] %v12707_v53  ;;  %v19424_v48 = vsub.f32 %v19423_v61, %v11645_v8  ;;  %19429 = vst [vmem:[#allocation86_spill] sm:$0xff] %v12722_v56  ;;  %v19433_v61 = vld [vmem:[#allocation140_spill] sm:$0xff] }
 0x287   : >> { %v12729_v53 = vsel %vm2041_vm11, %v19431_v57, 0.0  ;;  %v19434_v44 = vsub.f32 %v19433_v61, %v11642_v21  ;;  %v19439_v56 = vld [vmem:[#allocation92_spill] sm:$0xff]  ;;  %v19441_v57 = vsub.f32 %v19440_v47, %v11636_v19  ;;  %v19443_v61 = vld [vmem:[#allocation143_spill] sm:$0xff] }
 0x288   : >> { %v12714_v63 = vsel %vm2040_vm15, %v19424_v48, 0.0  ;;  %19432 = vst [vmem:[#allocation130_spill] sm:$0xff] %v12729_v53  ;;  %vm2053_vm15 = vcmp.lt.s32.totalorder %v19439_v56, 384 }
 0x289   : >> { %19425 = vst [vmem:[#allocation129_spill] sm:$0xff] %v12714_v63  ;;  %v12736_v48 = vsel %vm2041_vm11, %v19434_v44, 0.0  ;;  %v19436_v63 = vld [vmem:[#allocation141_spill] sm:$0xff]  ;;  %v12751_v53 = vsel %vm2042_vm10, %v19441_v57, 0.0  ;;  %v19444_v44 = vsub.f32 %v19443_v61, %v11639_v20  ;;  %v19453_v61 = vld [vmem:[#allocation146_spill] sm:$0xff] }
 0x28a   : >> { %19435 = vst [vmem:[#allocation131_spill] sm:$0xff] %v12736_v48  ;;  %v19437_v2 = vsub.f32 %v19436_v63, %v11645_v8  ;;  %19442 = vst [vmem:[#allocation133_spill] sm:$0xff] %v12751_v53  ;;  %v19446_v63 = vld [vmem:[#allocation144_spill] sm:$0xff]  ;;  %v19452_v53 = vld [vmem:[#allocation93_spill] sm:$0xff] }
 0x28b   : >> { %v12758_v48 = vsel %vm2042_vm10, %v19444_v44, 0.0  ;;  %v19447_v46 = vsub.f32 %v19446_v63, %v11642_v21  ;;  %v19454_v44 = vsub.f32 %v19453_v61, %v11636_v19  ;;  %v19456_v63 = vld [vmem:[#allocation147_spill] sm:$0xff] }
 0x28c   : >> { %v12743_v52 = vsel %vm2041_vm11, %v19437_v2, 0.0  ;;  %19445 = vst [vmem:[#allocation90_spill] sm:$0xff] %v12758_v48  ;;  %vm2054_vm11 = vcmp.lt.s32.totalorder %v19452_v53, 384 }
 0x28d   : >> { %19438 = vst [vmem:[#allocation132_spill] sm:$0xff] %v12743_v52  ;;  %v12765_v2 = vsel %vm2042_vm10, %v19447_v46, 0.0  ;;  %v19449_v52 = vld [vmem:[#allocation145_spill] sm:$0xff]  ;;  %v12780_v48 = vsel %vm2043_vm9, %v19454_v44, 0.0  ;;  %v19457_v46 = vsub.f32 %v19456_v63, %v11639_v20  ;;  %v19466_v63 = vld [vmem:[#allocation150_spill] sm:$0xff] }
 0x28e   : >> { %19448 = vst [vmem:[#allocation134_spill] sm:$0xff] %v12765_v2  ;;  %v19450_v47 = vsub.f32 %v19449_v52, %v11645_v8  ;;  %19455 = vst [vmem:[#allocation136_spill] sm:$0xff] %v12780_v48  ;;  %v19459_v52 = vld [vmem:[#allocation148_spill] sm:$0xff]  ;;  %v19465_v48 = vld [vmem:[#allocation98_spill] sm:$0xff] }
 0x28f   : >> { %v12787_v2 = vsel %vm2043_vm9, %v19457_v46, 0.0  ;;  %v19460_v11 = vsub.f32 %v19459_v52, %v11642_v21  ;;  %v19467_v46 = vsub.f32 %v19466_v63, %v11636_v19  ;;  %v19469_v52 = vld [vmem:[#allocation151_spill] sm:$0xff] }
 0x290   : >> { %v12772_v57 = vsel %vm2042_vm10, %v19450_v47, 0.0  ;;  %19458 = vst [vmem:[#allocation137_spill] sm:$0xff] %v12787_v2  ;;  %vm2055_vm10 = vcmp.lt.s32.totalorder %v19465_v48, 384 }
 0x291   : >> { %19451 = vst [vmem:[#allocation135_spill] sm:$0xff] %v12772_v57  ;;  %v12794_v47 = vsel %vm2043_vm9, %v19460_v11, 0.0  ;;  %v19462_v57 = vld [vmem:[#allocation149_spill] sm:$0xff]  ;;  %v12809_v2 = vsel %vm2044_vm8, %v19467_v46, 0.0  ;;  %v19470_v11 = vsub.f32 %v19469_v52, %v11639_v20  ;;  %v19479_v52 = vld [vmem:[#allocation154_spill] sm:$0xff] }
 0x292   : >> { %19461 = vst [vmem:[#allocation91_spill] sm:$0xff] %v12794_v47  ;;  %v19463_v61 = vsub.f32 %v19462_v57, %v11645_v8  ;;  %19468 = vst [vmem:[#allocation139_spill] sm:$0xff] %v12809_v2  ;;  %v19472_v57 = vld [vmem:[#allocation152_spill] sm:$0xff]  ;;  %v19478_v2 = vld [vmem:[#allocation99_spill] sm:$0xff] }
 0x293   : >> { %v12816_v47 = vsel %vm2044_vm8, %v19470_v11, 0.0  ;;  %v19473_v9 = vsub.f32 %v19472_v57, %v11642_v21  ;;  %v19480_v11 = vsub.f32 %v19479_v52, %v11636_v19  ;;  %v19482_v57 = vld [vmem:[#allocation155_spill] sm:$0xff] }
 0x294   : >> { %v12801_v44 = vsel %vm2043_vm9, %v19463_v61, 0.0  ;;  %19471 = vst [vmem:[#allocation140_spill] sm:$0xff] %v12816_v47  ;;  %vm2056_vm9 = vcmp.lt.s32.totalorder %v19478_v2, 384 }
 0x295   : >> { %19464 = vst [vmem:[#allocation138_spill] sm:$0xff] %v12801_v44  ;;  %v12823_v61 = vsel %vm2044_vm8, %v19473_v9, 0.0  ;;  %v19475_v44 = vld [vmem:[#allocation153_spill] sm:$0xff]  ;;  %v12838_v47 = vsel %vm2045_vm7, %v19480_v11, 0.0  ;;  %v19483_v9 = vsub.f32 %v19482_v57, %v11639_v20  ;;  %v19491_v57 = vsub.f32 %v12000_v42, %v11636_v19 }
 0x296   : >> { %19474 = vst [vmem:[#allocation141_spill] sm:$0xff] %v12823_v61  ;;  %v19476_v63 = vsub.f32 %v19475_v44, %v11645_v8  ;;  %19481 = vst [vmem:[#allocation142_spill] sm:$0xff] %v12838_v47  ;;  %v19484_v44 = vld [vmem:[#allocation156_spill] sm:$0xff] }
 0x297   : >> { %v12845_v61 = vsel %vm2045_vm7, %v19483_v9, 0.0  ;;  %v19485_v18 = vsub.f32 %v19484_v44, %v11642_v21  ;;  %v19490_v47 = vld [vmem:[#allocation100_spill] sm:$0xff]  ;;  %v12867_v9 = vsel %vm2046_vm6, %v19491_v57, 0.0  ;;  %v19492_v44 = vld [vmem:[#allocation158_spill] sm:$0xff] }
 0x298   : >> { %v12830_v46 = vsel %vm2044_vm8, %v19476_v63, 0.0  ;;  %vm2057_vm8 = vcmp.lt.s32.totalorder %v19490_v47, 384  ;;  %v2406_v47 = vmul.f32 %v12359_v54, %v12359_v54 }
 0x299   : >> { %19477 = vst [vmem:[#allocation92_spill] sm:$0xff] %v12830_v46  ;;  %v12852_v63 = vsel %vm2045_vm7, %v19485_v18, 0.0  ;;  %v19487_v46 = vld [vmem:[#allocation157_spill] sm:$0xff]  ;;  %v19493_v18 = vsub.f32 %v19492_v44, %v11639_v20  ;;  %v19500_v44 = vsub.f32 %v12020_v41, %v11636_v19 }
 0x29a   : >> { %19486 = vst [vmem:[#allocation143_spill] sm:$0xff] %v12852_v63  ;;  %v19488_v52 = vsub.f32 %v19487_v46, %v11645_v8  ;;  %v19495_v46 = vld [vmem:[#allocation159_spill] sm:$0xff] }
 0x29b   : >> { %v12874_v63 = vsel %vm2046_vm6, %v19493_v18, 0.0  ;;  %v19496_v3 = vsub.f32 %v19495_v46, %v11642_v21  ;;  %v12895_v18 = vsel %vm2047_vm14, %v19500_v44, 0.0 }
 0x29c   : >> { %v12859_v11 = vsel %vm2045_vm7, %v19488_v52, 0.0  ;;  %19494 = vst [vmem:[#allocation145_spill] sm:$0xff] %v12874_v63  ;;  %v19501_v63 = vld [vmem:[#allocation161_spill] sm:$0xff] }
 0x29d   : >> { %19489 = vst [vmem:[#allocation144_spill] sm:$0xff] %v12859_v11  ;;  %v12881_v52 = vsel %vm2046_vm6, %v19496_v3, 0.0  ;;  %v19498_v11 = vld [vmem:[#allocation160_spill] sm:$0xff]  ;;  %v19502_v46 = vsub.f32 %v19501_v63, %v11639_v20  ;;  %v19509_v63 = vsub.f32 %v12040_v35, %v11636_v19 }
 0x29e   : >> { %19497 = vst [vmem:[#allocation93_spill] sm:$0xff] %v12881_v52  ;;  %v19499_v42 = vsub.f32 %v19498_v11, %v11645_v8  ;;  %v19504_v52 = vld [vmem:[#allocation162_spill] sm:$0xff] }
 0x29f   : >> { %v12902_v3 = vsel %vm2047_vm14, %v19502_v46, 0.0  ;;  %v19505_v11 = vsub.f32 %v19504_v52, %v11642_v21  ;;  %v12923_v46 = vsel %vm2048_vm13, %v19509_v63, 0.0 }
 0x2a0   : >> { %v12888_v57 = vsel %vm2046_vm6, %v19499_v42, 0.0  ;;  %19503 = vst [vmem:[#allocation146_spill] sm:$0xff] %v12902_v3  ;;  %v19507_v42 = vld [vmem:[#allocation163_spill] sm:$0xff]  ;;  %19510 = vst [vmem:[#allocation148_spill] sm:$0xff] %v12923_v46  ;;  %v19511_v3 = vld [vmem:[#allocation164_spill] sm:$0xff] }
 0x2a1   : >> { %v12909_v5 = vsel %vm2047_vm14, %v19505_v11, 0.0  ;;  %v19508_v41 = vsub.f32 %v19507_v42, %v11645_v8  ;;  %v19512_v52 = vsub.f32 %v19511_v3, %v11639_v20  ;;  %v19519_v46 = vld [vmem:[#allocation101_spill] sm:$0xff]  ;;  %v19520_v3 = vsub.f32 %v12060_v4, %v11636_v19 }
 0x2a2   : >> { %19506 = vst [vmem:[#allocation147_spill] sm:$0xff] %v12909_v5  ;;  %v19513_v5 = vld [vmem:[#allocation165_spill] sm:$0xff]  ;;  %vm2058_vm7 = vcmp.lt.s32.totalorder %v19519_v46, 384  ;;  %v19593_v46 = vld [vmem:[#allocation88_spill] sm:$0xff] }
 0x2a3   : >> { %v12916_v44 = vsel %vm2047_vm14, %v19508_v41, 0.0  ;;  %v12930_v11 = vsel %vm2048_vm13, %v19512_v52, 0.0  ;;  %v19514_v42 = vsub.f32 %v19513_v5, %v11642_v21  ;;  %v19516_v41 = vld [vmem:[#allocation166_spill] sm:$0xff]  ;;  %v12952_v52 = vsel %vm2049_vm12, %v19520_v3, 0.0  ;;  %v19521_v5 = vld [vmem:[#allocation167_spill] sm:$0xff] }
 0x2a4   : >> { %v19517_v35 = vsub.f32 %v19516_v41, %v11645_v8  ;;  %v19524_v41 = vld [vmem:[#allocation168_spill] sm:$0xff] }
 0x2a5   : >> { %v12937_v50 = vsel %vm2048_vm13, %v19514_v42, 0.0  ;;  %v19522_v42 = vsub.f32 %v19521_v5, %v11639_v20  ;;  %v19525_v7 = vsub.f32 %v19524_v41, %v11642_v21  ;;  %v19529_v5 = vsub.f32 %v12080_v12, %v11636_v19 }
 0x2a6   : >> { %19515 = vst [vmem:[#allocation149_spill] sm:$0xff] %v12937_v50  ;;  %v12944_v63 = vsel %vm2048_vm13, %v19517_v35, 0.0 }
 0x2a7   : >> { %19518 = vst [vmem:[#allocation98_spill] sm:$0xff] %v12944_v63  ;;  %v12959_v50 = vsel %vm2049_vm12, %v19522_v42, 0.0  ;;  %v12966_v35 = vsel %vm2049_vm12, %v19525_v7, 0.0  ;;  %v19527_v63 = vld [vmem:[#allocation169_spill] sm:$0xff]  ;;  %v12980_v42 = vsel %vm2050_vm5, %v19529_v5, 0.0 }
 0x2a8   : >> { %19523 = vst [vmem:[#allocation150_spill] sm:$0xff] %v12959_v50  ;;  %19526 = vst [vmem:[#allocation151_spill] sm:$0xff] %v12966_v35  ;;  %v19528_v4 = vsub.f32 %v19527_v63, %v11645_v8  ;;  %v19530_v50 = vld [vmem:[#allocation170_spill] sm:$0xff]  ;;  %v19533_v35 = vld [vmem:[#allocation171_spill] sm:$0xff] }
 0x2a9   : >> { %v19531_v41 = vsub.f32 %v19530_v50, %v11639_v20  ;;  %v19534_v63 = vsub.f32 %v19533_v35, %v11642_v21  ;;  %v19538_v50 = vsub.f32 %v12100_v60, %v11636_v19 }
 0x2aa   : >> { %v12973_v3 = vsel %vm2049_vm12, %v19528_v4, 0.0  ;;  %v19536_v4 = vld [vmem:[#allocation172_spill] sm:$0xff] }
 0x2ab   : >> { %v12987_v7 = vsel %vm2050_vm5, %v19531_v41, 0.0  ;;  %v12994_v6 = vsel %vm2050_vm5, %v19534_v63, 0.0  ;;  %v19537_v12 = vsub.f32 %v19536_v4, %v11645_v8  ;;  %v13008_v41 = vsel %vm2051_vm4, %v19538_v50, 0.0 }
 0x2ac   : >> { %19532 = vst [vmem:[#allocation152_spill] sm:$0xff] %v12987_v7  ;;  %19535 = vst [vmem:[#allocation153_spill] sm:$0xff] %v12994_v6  ;;  %v19539_v7 = vld [vmem:[#allocation173_spill] sm:$0xff]  ;;  %v19542_v6 = vld [vmem:[#allocation174_spill] sm:$0xff] }
 0x2ad   : >> { %v13001_v5 = vsel %vm2050_vm5, %v19537_v12, 0.0  ;;  %v19540_v35 = vsub.f32 %v19539_v7, %v11639_v20  ;;  %v19543_v4 = vsub.f32 %v19542_v6, %v11642_v21  ;;  %v19545_v12 = vld [vmem:[#allocation175_spill] sm:$0xff]  ;;  %v19547_v7 = vsub.f32 %v12120_v26, %v11636_v19 }
 0x2ae   : >> { %v19546_v60 = vsub.f32 %v19545_v12, %v11645_v8 }
 0x2af   : >> { %v13015_v63 = vsel %vm2051_vm4, %v19540_v35, 0.0  ;;  %v13022_v10 = vsel %vm2051_vm4, %v19543_v4, 0.0  ;;  %v13036_v35 = vsel %vm2052_vm3, %v19547_v7, 0.0 }
 0x2b0   : >> { %19541 = vst [vmem:[#allocation99_spill] sm:$0xff] %v13015_v63  ;;  %19544 = vst [vmem:[#allocation154_spill] sm:$0xff] %v13022_v10  ;;  %v13029_v50 = vsel %vm2051_vm4, %v19546_v60, 0.0  ;;  %v19548_v63 = vld [vmem:[#allocation176_spill] sm:$0xff]  ;;  %v19551_v10 = vld [vmem:[#allocation177_spill] sm:$0xff] }
 0x2b1   : >> { %v19549_v6 = vsub.f32 %v19548_v63, %v11639_v20  ;;  %v19552_v12 = vsub.f32 %v19551_v10, %v11642_v21  ;;  %v19554_v60 = vld [vmem:[#allocation178_spill] sm:$0xff]  ;;  %v19556_v63 = vsub.f32 %v12140_v30, %v11636_v19 }
 0x2b2   : >> { %v19555_v26 = vsub.f32 %v19554_v60, %v11645_v8 }
 0x2b3   : >> { %v13043_v4 = vsel %vm2052_vm3, %v19549_v6, 0.0  ;;  %v13050_v49 = vsel %vm2052_vm3, %v19552_v12, 0.0  ;;  %v13064_v6 = vsel %vm2053_vm15, %v19556_v63, 0.0 }
 0x2b4   : >> { %19550 = vst [vmem:[#allocation155_spill] sm:$0xff] %v13043_v4  ;;  %19553 = vst [vmem:[#allocation156_spill] sm:$0xff] %v13050_v49  ;;  %v13057_v7 = vsel %vm2052_vm3, %v19555_v26, 0.0  ;;  %v19557_v4 = vld [vmem:[#allocation179_spill] sm:$0xff]  ;;  %v19559_v49 = vld [vmem:[#allocation180_spill] sm:$0xff] }
 0x2b5   : >> { %v19558_v10 = vsub.f32 %v19557_v4, %v11639_v20  ;;  %v19560_v60 = vsub.f32 %v19559_v49, %v11642_v21  ;;  %v19562_v26 = vld [vmem:[#allocation181_spill] sm:$0xff]  ;;  %v19564_v4 = vsub.f32 %v12161_v25, %v11636_v19  ;;  %v19565_v49 = vsub.f32 %v12164_v29, %v11639_v20 }
 0x2b6   : >> { %v19563_v30 = vsub.f32 %v19562_v26, %v11645_v8  ;;  %v19570_v29 = vsub.f32 %v12182_v36, %v11636_v19  ;;  %v19573_v36 = vsub.f32 %v12200_v51, %v11645_v8  ;;  %v19576_v51 = vsub.f32 %v12218_v13, %v11642_v21 }
 0x2b7   : >> { %v13071_v12 = vsel %vm2053_vm15, %v19558_v10, 0.0  ;;  %v13078_v59 = vsel %vm2053_vm15, %v19560_v60, 0.0  ;;  %v13092_v10 = vsel %vm2054_vm11, %v19564_v4, 0.0  ;;  %v13099_v60 = vsel %vm2054_vm11, %v19565_v49, 0.0 }
 0x2b8   : >> { %19561 = vst [vmem:[#allocation157_spill] sm:$0xff] %v13078_v59  ;;  %v13085_v63 = vsel %vm2053_vm15, %v19563_v30, 0.0  ;;  %v19566_v59 = vld [vmem:[#allocation182_spill] sm:$0xff]  ;;  %v19568_v30 = vld [vmem:[#allocation183_spill] sm:$0xff]  ;;  %v13120_v49 = vsel %vm2055_vm10, %v19570_v29, 0.0  ;;  %v13162_v48 = vsel %vm2056_vm9, %v19576_v51, 0.0  ;;  %v19579_v13 = vsub.f32 %v12236_v22, %v11639_v20 }
 0x2b9   : >> { %v19567_v26 = vsub.f32 %v19566_v59, %v11642_v21  ;;  %v19569_v25 = vsub.f32 %v19568_v30, %v11645_v8  ;;  %v19571_v59 = vsub.f32 %v12194_v28, %v11639_v20  ;;  %v19572_v30 = vsub.f32 %v12197_v55, %v11642_v21 }
 0x2ba   : >> { %v19574_v28 = vsub.f32 %v12212_v15, %v11636_v19  ;;  %v19575_v55 = vsub.f32 %v12215_v14, %v11639_v20  ;;  %v19577_v15 = vsub.f32 %v12230_v38, %v11645_v8  ;;  %v19578_v14 = vsub.f32 %v12233_v37, %v11636_v19 }
 0x2bb   : >> { %v13106_v56 = vsel %vm2054_vm11, %v19567_v26, 0.0  ;;  %v13113_v4 = vsel %vm2054_vm11, %v19569_v25, 0.0  ;;  %v13127_v26 = vsel %vm2055_vm10, %v19571_v59, 0.0  ;;  %v13134_v53 = vsel %vm2055_vm10, %v19572_v30, 0.0 }
 0x2bc   : >> { %v13141_v25 = vsel %vm2055_vm10, %v19573_v36, 0.0  ;;  %v13148_v29 = vsel %vm2056_vm9, %v19574_v28, 0.0  ;;  %v13155_v59 = vsel %vm2056_vm9, %v19575_v55, 0.0  ;;  %v13169_v30 = vsel %vm2056_vm9, %v19577_v15, 0.0 }
 0x2bd   : >> { %v13176_v36 = vsel %vm2057_vm8, %v19578_v14, 0.0  ;;  %v13183_v28 = vsel %vm2057_vm8, %v19579_v13, 0.0  ;;  %v19580_v38 = vsub.f32 %v12248_v34, %v11642_v21  ;;  %v19581_v37 = vsub.f32 %v12251_v40, %v11645_v8 }
 0x2be   : >> { %v2400_v22 = vmul.f32 %v12316_v23, %v12316_v23  ;;  %v2401_v51 = vmul.f32 %v12323_v33, %v12323_v33  ;;  %v2402_v34 = vmul.f32 %v12330_v32, %v12330_v32  ;;  %v2403_v15 = vmul.f32 %v12337_v24, %v12337_v24 }
 0x2bf   : >> { %v13190_v2 = vsel %vm2057_vm8, %v19580_v38, 0.0  ;;  %v13197_v55 = vsel %vm2057_vm8, %v19581_v37, 0.0  ;;  %v2404_v14 = vmul.f32 %v12345_v58, %v12345_v58  ;;  %v2405_v40 = vmul.f32 %v12352_v31, %v12352_v31  ;;  %v19594_v37 = vld [vmem:[#allocation89_spill] sm:$0xff] }
 0x2c0   : >> { %19582 = vst [vmem:[#allocation100_spill] sm:$0xff] %v13197_v55  ;;  %v2407_v23 = vmul.f32 %v12366_v45, %v12366_v45  ;;  %v19583_v33 = vsub.f32 %v12254_v1, %v11636_v19  ;;  %v19585_v24 = vsub.f32 %v12266_v27, %v11639_v20  ;;  %v19587_v31 = vsub.f32 %v12269_v43, %v11642_v21  ;;  %v19591_v45 = vld [vmem:[#allocation184_spill] sm:$0xff] }
 0x2c1   : >> { %v19589_v1 = vsub.f32 %v12272_v0, %v11645_v8  ;;  %v2408_v20 = vmul.f32 %v12374_v39, %v12374_v39  ;;  %v2409_v27 = vmul.f32 %v12381_v16, %v12381_v16  ;;  %v2410_v21 = vmul.f32 %v12388_v62, %v12388_v62  ;;  %v19592_v8 = vld [vmem:[#allocation87_spill] sm:$0xff]  ;;  %v19595_v62 = vld [vmem:[#allocation78_spill] sm:$0xff] }
 0x2c2   : >> { %v13220_v32 = vsel %vm2058_vm7, %v19583_v33, 0.0  ;;  %v13227_v58 = vsel %vm2058_vm7, %v19585_v24, 0.0  ;;  %v13234_v54 = vsel %vm2058_vm7, %v19587_v31, 0.0  ;;  %v2411_v43 = vmul.f32 %v12395_v17, %v12395_v17  ;;  %v19596_v17 = vld [vmem:[#allocation94_spill] sm:$0xff] }
 0x2c3   : >> { %19584 = vst [vmem:[#allocation158_spill] sm:$0xff] %v13220_v32  ;;  %19586 = vst [vmem:[#allocation159_spill] sm:$0xff] %v13227_v58  ;;  %v13241_v19 = vsel %vm2058_vm7, %v19589_v1, 0.0  ;;  %v2412_v13 = vmul.f32 %v19591_v45, %v19591_v45  ;;  %v2413_v0 = vmul.f32 %v19592_v8, %v19592_v8  ;;  %v2414_v38 = vmul.f32 %v19593_v46, %v19593_v46  ;;  %v19597_v45 = vld [vmem:[#allocation95_spill] sm:$0xff]  ;;  %v19598_v8 = vld [vmem:[#allocation96_spill] sm:$0xff] }
 0x2c4   : >> { %19588 = vst [vmem:[#allocation160_spill] sm:$0xff] %v13234_v54  ;;  %19590 = vst [vmem:[#allocation161_spill] sm:$0xff] %v13241_v19  ;;  %v2415_v39 = vmul.f32 %v19594_v37, %v19594_v37  ;;  %v2528_v33 = vadd.f32 %v2404_v14, %v2400_v22  ;;  %v2565_v16 = vadd.f32 %v2405_v40, %v2401_v51  ;;  %v19599_v22 = vld [vmem:[#allocation97_spill] sm:$0xff]  ;;  %v19601_v14 = vld [vmem:[#allocation102_spill] sm:$0xff] }
 0x2c5   : >> { %v2602_v24 = vadd.f32 %v2406_v47, %v2402_v34  ;;  %v2639_v31 = vadd.f32 %v2407_v23, %v2403_v15  ;;  %v2416_v1 = vmul.f32 %v19595_v62, %v19595_v62  ;;  %v2417_v19 = vmul.f32 %v19596_v17, %v19596_v17  ;;  %v19600_v34 = vld [vmem:[#allocation79_spill] sm:$0xff] }
 0x2c6   : >> { %v2418_v54 = vmul.f32 %v19597_v45, %v19597_v45  ;;  %v2419_v58 = vmul.f32 %v19598_v8, %v19598_v8  ;;  %v2529_v46 = vadd.f32 %v2528_v33, %v2408_v20  ;;  %v2566_v32 = vadd.f32 %v2565_v16, %v2409_v27  ;;  %v19602_v47 = vld [vmem:[#allocation103_spill] sm:$0xff]  ;;  %v19603_v20 = vld [vmem:[#allocation104_spill] sm:$0xff] }
 0x2c7   : >> { %v2603_v55 = vadd.f32 %v2602_v24, %v2410_v21  ;;  %v2640_v37 = vadd.f32 %v2639_v31, %v2411_v43  ;;  %v2420_v51 = vmul.f32 %v19599_v22, %v19599_v22  ;;  %v2421_v15 = vmul.f32 %v19600_v34, %v19600_v34  ;;  %v19604_v21 = vld [vmem:[#allocation105_spill] sm:$0xff]  ;;  %v19605_v33 = vld [vmem:[#allocation80_spill] sm:$0xff]  ;;  %v19606_v24 = vld [vmem:[#allocation106_spill] sm:$0xff] }
 0x2c8   : >> { %v2422_v40 = vmul.f32 %v19601_v14, %v19601_v14  ;;  %v2423_v23 = vmul.f32 %v19602_v47, %v19602_v47  ;;  %v2530_v62 = vadd.f32 %v2529_v46, %v2412_v13  ;;  %v2567_v17 = vadd.f32 %v2566_v32, %v2413_v0  ;;  %v19607_v13 = vld [vmem:[#allocation107_spill] sm:$0xff]  ;;  %v19608_v32 = vld [vmem:[#allocation108_spill] sm:$0xff]  ;;  %v19610_v46 = vld [vmem:[#allocation81_spill] sm:$0xff] }
 0x2c9   : >> { %v2604_v45 = vadd.f32 %v2603_v55, %v2414_v38  ;;  %v2641_v8 = vadd.f32 %v2640_v37, %v2415_v39  ;;  %v2424_v27 = vmul.f32 %v19603_v20, %v19603_v20  ;;  %v2425_v43 = vmul.f32 %v19604_v21, %v19604_v21  ;;  %v19609_v38 = vld [vmem:[#allocation109_spill] sm:$0xff] }
 0x2ca   : >> { %v2426_v16 = vmul.f32 %v19605_v33, %v19605_v33  ;;  %v2427_v31 = vmul.f32 %v19606_v24, %v19606_v24  ;;  %v2531_v22 = vadd.f32 %v2530_v62, %v2416_v1  ;;  %v2568_v34 = vadd.f32 %v2567_v17, %v2417_v19  ;;  %v19611_v1 = vld [vmem:[#allocation110_spill] sm:$0xff]  ;;  %v19613_v62 = vld [vmem:[#allocation112_spill] sm:$0xff] }
 0x2cb   : >> { %v2605_v14 = vadd.f32 %v2604_v45, %v2418_v54  ;;  %v2642_v47 = vadd.f32 %v2641_v8, %v2419_v58  ;;  %v2428_v55 = vmul.f32 %v19607_v13, %v19607_v13  ;;  %v2429_v0 = vmul.f32 %v19608_v32, %v19608_v32  ;;  %v19612_v58 = vld [vmem:[#allocation111_spill] sm:$0xff]  ;;  %v19614_v45 = vld [vmem:[#allocation113_spill] sm:$0xff] }
 0x2cc   : >> { %v2430_v39 = vmul.f32 %v19609_v38, %v19609_v38  ;;  %v2431_v37 = vmul.f32 %v19610_v46, %v19610_v46  ;;  %v2532_v20 = vadd.f32 %v2531_v22, %v2420_v51  ;;  %v2569_v21 = vadd.f32 %v2568_v34, %v2421_v15  ;;  %v19615_v51 = vld [vmem:[#allocation82_spill] sm:$0xff]  ;;  %v19617_v22 = vld [vmem:[#allocation115_spill] sm:$0xff] }
 0x2cd   : >> { %v2606_v33 = vadd.f32 %v2605_v14, %v2422_v40  ;;  %v2643_v24 = vadd.f32 %v2642_v47, %v2423_v23  ;;  %v2432_v54 = vmul.f32 %v19611_v1, %v19611_v1  ;;  %v2433_v19 = vmul.f32 %v19612_v58, %v19612_v58  ;;  %v19616_v40 = vld [vmem:[#allocation114_spill] sm:$0xff]  ;;  %v19618_v14 = vld [vmem:[#allocation116_spill] sm:$0xff] }
 0x2ce   : >> { %v2434_v17 = vmul.f32 %v19613_v62, %v19613_v62  ;;  %v2435_v8 = vmul.f32 %v19614_v45, %v19614_v45  ;;  %v2533_v13 = vadd.f32 %v2532_v20, %v2424_v27  ;;  %v2570_v32 = vadd.f32 %v2569_v21, %v2425_v43  ;;  %v19619_v27 = vld [vmem:[#allocation117_spill] sm:$0xff]  ;;  %v19621_v20 = vld [vmem:[#allocation118_spill] sm:$0xff] }
 0x2cf   : >> { %v2607_v38 = vadd.f32 %v2606_v33, %v2426_v16  ;;  %v2644_v46 = vadd.f32 %v2643_v24, %v2427_v31  ;;  %v2436_v15 = vmul.f32 %v19615_v51, %v19615_v51  ;;  %v2437_v23 = vmul.f32 %v19616_v40, %v19616_v40  ;;  %v19620_v16 = vld [vmem:[#allocation83_spill] sm:$0xff] }
 0x2d0   : >> { %v2438_v34 = vmul.f32 %v19617_v22, %v19617_v22  ;;  %v2439_v47 = vmul.f32 %v19618_v14, %v19618_v14  ;;  %v2534_v1 = vadd.f32 %v2533_v13, %v2428_v55  ;;  %v2571_v58 = vadd.f32 %v2570_v32, %v2429_v0  ;;  %v19622_v33 = vld [vmem:[#allocation119_spill] sm:$0xff]  ;;  %v19623_v55 = vld [vmem:[#allocation120_spill] sm:$0xff] }
 0x2d1   : >> { %v2608_v62 = vadd.f32 %v2607_v38, %v2430_v39  ;;  %v2645_v45 = vadd.f32 %v2644_v46, %v2431_v37  ;;  %v2440_v43 = vmul.f32 %v19619_v27, %v19619_v27  ;;  %v2441_v31 = vmul.f32 %v19620_v16, %v19620_v16  ;;  %v19624_v39 = vld [vmem:[#allocation121_spill] sm:$0xff]  ;;  %v19625_v13 = vld [vmem:[#allocation84_spill] sm:$0xff]  ;;  %v19626_v38 = vld [vmem:[#allocation122_spill] sm:$0xff] }
 0x2d2   : >> { %v2442_v21 = vmul.f32 %v19621_v20, %v19621_v20  ;;  %v2443_v24 = vmul.f32 %v19622_v33, %v19622_v33  ;;  %v2535_v51 = vadd.f32 %v2534_v1, %v2432_v54  ;;  %v2572_v40 = vadd.f32 %v2571_v58, %v2433_v19  ;;  %v19627_v54 = vld [vmem:[#allocation123_spill] sm:$0xff]  ;;  %v19629_v1 = vld [vmem:[#allocation125_spill] sm:$0xff] }
 0x2d3   : >> { %v2609_v22 = vadd.f32 %v2608_v62, %v2434_v17  ;;  %v2646_v14 = vadd.f32 %v2645_v45, %v2435_v8  ;;  %v2444_v0 = vmul.f32 %v19623_v55, %v19623_v55  ;;  %v2445_v37 = vmul.f32 %v19624_v39, %v19624_v39  ;;  %v19628_v17 = vld [vmem:[#allocation124_spill] sm:$0xff]  ;;  %v19630_v62 = vld [vmem:[#allocation85_spill] sm:$0xff] }
 0x2d4   : >> { %v2446_v32 = vmul.f32 %v19625_v13, %v19625_v13  ;;  %v2447_v46 = vmul.f32 %v19626_v38, %v19626_v38  ;;  %v2536_v27 = vadd.f32 %v2535_v51, %v2436_v15  ;;  %v2573_v16 = vadd.f32 %v2572_v40, %v2437_v23  ;;  %v19631_v15 = vld [vmem:[#allocation126_spill] sm:$0xff]  ;;  %v19633_v51 = vld [vmem:[#allocation128_spill] sm:$0xff] }
 0x2d5   : >> { %v2610_v20 = vadd.f32 %v2609_v22, %v2438_v34  ;;  %v2647_v33 = vadd.f32 %v2646_v14, %v2439_v47  ;;  %v2448_v19 = vmul.f32 %v19627_v54, %v19627_v54  ;;  %v2449_v8 = vmul.f32 %v19628_v17, %v19628_v17  ;;  %v19632_v34 = vld [vmem:[#allocation127_spill] sm:$0xff]  ;;  %v19634_v22 = vld [vmem:[#allocation129_spill] sm:$0xff] }
 0x2d6   : >> { %v2450_v58 = vmul.f32 %v19629_v1, %v19629_v1  ;;  %v2451_v45 = vmul.f32 %v19630_v62, %v19630_v62  ;;  %v2537_v55 = vadd.f32 %v2536_v27, %v2440_v43  ;;  %v2574_v39 = vadd.f32 %v2573_v16, %v2441_v31  ;;  %v19635_v43 = vld [vmem:[#allocation86_spill] sm:$0xff]  ;;  %v19637_v27 = vld [vmem:[#allocation131_spill] sm:$0xff] }
 0x2d7   : >> { %v2611_v13 = vadd.f32 %v2610_v20, %v2442_v21  ;;  %v2648_v38 = vadd.f32 %v2647_v33, %v2443_v24  ;;  %v2452_v23 = vmul.f32 %v19631_v15, %v19631_v15  ;;  %v2453_v47 = vmul.f32 %v19632_v34, %v19632_v34  ;;  %v19636_v21 = vld [vmem:[#allocation130_spill] sm:$0xff]  ;;  %v19638_v20 = vld [vmem:[#allocation132_spill] sm:$0xff] }
 0x2d8   : >> { %v2454_v40 = vmul.f32 %v19633_v51, %v19633_v51  ;;  %v2455_v14 = vmul.f32 %v19634_v22, %v19634_v22  ;;  %v2538_v54 = vadd.f32 %v2537_v55, %v2444_v0  ;;  %v2575_v17 = vadd.f32 %v2574_v39, %v2445_v37  ;;  %v19639_v0 = vld [vmem:[#allocation133_spill] sm:$0xff]  ;;  %v19641_v55 = vld [vmem:[#allocation134_spill] sm:$0xff] }
 0x2d9   : >> { %v2612_v1 = vadd.f32 %v2611_v13, %v2446_v32  ;;  %v2649_v62 = vadd.f32 %v2648_v38, %v2447_v46  ;;  %v2456_v31 = vmul.f32 %v19635_v43, %v19635_v43  ;;  %v2457_v24 = vmul.f32 %v19636_v21, %v19636_v21  ;;  %v19640_v32 = vld [vmem:[#allocation90_spill] sm:$0xff]  ;;  %v19642_v13 = vld [vmem:[#allocation135_spill] sm:$0xff] }
 0x2da   : >> { %v2458_v16 = vmul.f32 %v19637_v27, %v19637_v27  ;;  %v2459_v33 = vmul.f32 %v19638_v20, %v19638_v20  ;;  %v2539_v15 = vadd.f32 %v2538_v54, %v2448_v19  ;;  %v2576_v34 = vadd.f32 %v2575_v17, %v2449_v8  ;;  %v19643_v19 = vld [vmem:[#allocation136_spill] sm:$0xff]  ;;  %v19645_v54 = vld [vmem:[#allocation91_spill] sm:$0xff] }
 0x2db   : >> { %v2613_v51 = vadd.f32 %v2612_v1, %v2450_v58  ;;  %v2650_v22 = vadd.f32 %v2649_v62, %v2451_v45  ;;  %v2460_v37 = vmul.f32 %v19639_v0, %v19639_v0  ;;  %v2461_v46 = vmul.f32 %v19640_v32, %v19640_v32  ;;  %v19644_v58 = vld [vmem:[#allocation137_spill] sm:$0xff]  ;;  %v19646_v1 = vld [vmem:[#allocation138_spill] sm:$0xff] }
 0x2dc   : >> { %v2462_v39 = vmul.f32 %v19641_v55, %v19641_v55  ;;  %v2463_v38 = vmul.f32 %v19642_v13, %v19642_v13  ;;  %v2540_v43 = vadd.f32 %v2539_v15, %v2452_v23  ;;  %v2577_v21 = vadd.f32 %v2576_v34, %v2453_v47  ;;  %v19647_v23 = vld [vmem:[#allocation139_spill] sm:$0xff]  ;;  %v19649_v15 = vld [vmem:[#allocation141_spill] sm:$0xff] }
 0x2dd   : >> { %v2614_v27 = vadd.f32 %v2613_v51, %v2454_v40  ;;  %v2651_v20 = vadd.f32 %v2650_v22, %v2455_v14  ;;  %v2464_v8 = vmul.f32 %v19643_v19, %v19643_v19  ;;  %v2465_v45 = vmul.f32 %v19644_v58, %v19644_v58  ;;  %v19648_v40 = vld [vmem:[#allocation140_spill] sm:$0xff] }
 0x2de   : >> { %v2466_v17 = vmul.f32 %v19645_v54, %v19645_v54  ;;  %v2467_v62 = vmul.f32 %v19646_v1, %v19646_v1  ;;  %v2541_v0 = vadd.f32 %v2540_v43, %v2456_v31  ;;  %v2578_v32 = vadd.f32 %v2577_v21, %v2457_v24  ;;  %v19650_v51 = vld [vmem:[#allocation92_spill] sm:$0xff]  ;;  %v19651_v31 = vld [vmem:[#allocation142_spill] sm:$0xff] }
 0x2df   : >> { %v2615_v55 = vadd.f32 %v2614_v27, %v2458_v16  ;;  %v2652_v13 = vadd.f32 %v2651_v20, %v2459_v33  ;;  %v2468_v47 = vmul.f32 %v19647_v23, %v19647_v23  ;;  %v2469_v14 = vmul.f32 %v19648_v40, %v19648_v40  ;;  %v19652_v33 = vld [vmem:[#allocation143_spill] sm:$0xff]  ;;  %v19653_v21 = vld [vmem:[#allocation144_spill] sm:$0xff] }
 0x2e0   : >> { %v2470_v34 = vmul.f32 %v19649_v15, %v19649_v15  ;;  %v2471_v22 = vmul.f32 %v19650_v51, %v19650_v51  ;;  %v2542_v19 = vadd.f32 %v2541_v0, %v2460_v37  ;;  %v2579_v58 = vadd.f32 %v2578_v32, %v2461_v46  ;;  %v19654_v46 = vld [vmem:[#allocation145_spill] sm:$0xff] }
 0x2e1   : >> { %v2616_v54 = vadd.f32 %v2615_v55, %v2462_v39  ;;  %v2653_v1 = vadd.f32 %v2652_v13, %v2463_v38  ;;  %v2472_v24 = vmul.f32 %v19651_v31, %v19651_v31  ;;  %v2473_v16 = vmul.f32 %v12845_v61, %v12845_v61  ;;  %v19655_v38 = vld [vmem:[#allocation93_spill] sm:$0xff]  ;;  %v19660_v31 = vld [vmem:[#allocation98_spill] sm:$0xff] }
 0x2e2   : >> { %v2474_v43 = vmul.f32 %v19652_v33, %v19652_v33  ;;  %v2475_v27 = vmul.f32 %v19653_v21, %v19653_v21  ;;  %v2543_v20 = vadd.f32 %v2542_v19, %v2464_v8  ;;  %v2580_v23 = vadd.f32 %v2579_v58, %v2465_v45  ;;  %v19656_v45 = vld [vmem:[#allocation146_spill] sm:$0xff] }
 0x2e3   : >> { %v2617_v40 = vadd.f32 %v2616_v54, %v2466_v17  ;;  %v2654_v15 = vadd.f32 %v2653_v1, %v2467_v62  ;;  %v2476_v37 = vmul.f32 %v12867_v9, %v12867_v9  ;;  %v2477_v39 = vmul.f32 %v19654_v46, %v19654_v46  ;;  %v19657_v9 = vld [vmem:[#allocation147_spill] sm:$0xff] }
 0x2e4   : >> { %v2478_v0 = vmul.f32 %v19655_v38, %v19655_v38  ;;  %v2479_v61 = vmul.f32 %v12888_v57, %v12888_v57  ;;  %v2544_v32 = vadd.f32 %v2543_v20, %v2468_v47  ;;  %v2581_v55 = vadd.f32 %v2580_v23, %v2469_v14  ;;  %v19658_v47 = vld [vmem:[#allocation148_spill] sm:$0xff] }
 0x2e5   : >> { %v2618_v13 = vadd.f32 %v2617_v40, %v2470_v34  ;;  %v2655_v51 = vadd.f32 %v2654_v15, %v2471_v22  ;;  %v2480_v8 = vmul.f32 %v12895_v18, %v12895_v18  ;;  %v2481_v17 = vmul.f32 %v19656_v45, %v19656_v45  ;;  %v19659_v18 = vld [vmem:[#allocation149_spill] sm:$0xff] }
 0x2e6   : >> { %v2482_v62 = vmul.f32 %v19657_v9, %v19657_v9  ;;  %v2483_v19 = vmul.f32 %v12916_v44, %v12916_v44  ;;  %v2545_v58 = vadd.f32 %v2544_v32, %v2472_v24  ;;  %v2582_v54 = vadd.f32 %v2581_v55, %v2473_v16  ;;  %v19661_v16 = vld [vmem:[#allocation150_spill] sm:$0xff] }
 0x2e7   : >> { %v2619_v1 = vadd.f32 %v2618_v13, %v2474_v43  ;;  %v2656_v57 = vadd.f32 %v2655_v51, %v2475_v27  ;;  %v2484_v14 = vmul.f32 %v19658_v47, %v19658_v47  ;;  %v2485_v34 = vmul.f32 %v12930_v11, %v12930_v11  ;;  %v19662_v27 = vld [vmem:[#allocation151_spill] sm:$0xff] }
 0x2e8   : >> { %v2486_v22 = vmul.f32 %v19659_v18, %v19659_v18  ;;  %v2487_v33 = vmul.f32 %v19660_v31, %v19660_v31  ;;  %v2546_v21 = vadd.f32 %v2545_v58, %v2476_v37  ;;  %v2583_v20 = vadd.f32 %v2582_v54, %v2477_v39  ;;  %v19663_v39 = vld [vmem:[#allocation152_spill] sm:$0xff]  ;;  %v19667_v47 = vld [vmem:[#allocation155_spill] sm:$0xff] }
 0x2e9   : >> { %v2620_v23 = vadd.f32 %v2619_v1, %v2478_v0  ;;  %v2657_v44 = vadd.f32 %v2656_v57, %v2479_v61  ;;  %v2488_v24 = vmul.f32 %v12952_v52, %v12952_v52  ;;  %v2489_v43 = vmul.f32 %v19661_v16, %v19661_v16  ;;  %v19664_v52 = vld [vmem:[#allocation153_spill] sm:$0xff] }
 0x2ea   : >> { %v2490_v40 = vmul.f32 %v19662_v27, %v19662_v27  ;;  %v2491_v11 = vmul.f32 %v12973_v3, %v12973_v3  ;;  %v2547_v15 = vadd.f32 %v2546_v21, %v2480_v8  ;;  %v2584_v46 = vadd.f32 %v2583_v20, %v2481_v17  ;;  %v19665_v17 = vld [vmem:[#allocation99_spill] sm:$0xff] }
 0x2eb   : >> { %v2621_v38 = vadd.f32 %v2620_v23, %v2482_v62  ;;  %v2658_v32 = vadd.f32 %v2657_v44, %v2483_v19  ;;  %v2492_v37 = vmul.f32 %v12980_v42, %v12980_v42  ;;  %v2493_v0 = vmul.f32 %v19663_v39, %v19663_v39  ;;  %v19666_v42 = vld [vmem:[#allocation154_spill] sm:$0xff] }
 0x2ec   : >> { %v2494_v61 = vmul.f32 %v19664_v52, %v19664_v52  ;;  %v2495_v55 = vmul.f32 %v13001_v5, %v13001_v5  ;;  %v2548_v13 = vadd.f32 %v2547_v15, %v2484_v14  ;;  %v2585_v51 = vadd.f32 %v2584_v46, %v2485_v34 }
 0x2ed   : >> { %v2622_v45 = vadd.f32 %v2621_v38, %v2486_v22  ;;  %v2659_v3 = vadd.f32 %v2658_v32, %v2487_v33  ;;  %v2496_v8 = vmul.f32 %v13008_v41, %v13008_v41  ;;  %v2497_v9 = vmul.f32 %v19665_v17, %v19665_v17  ;;  %v19668_v41 = vld [vmem:[#allocation156_spill] sm:$0xff]  ;;  %v19671_v17 = vld [vmem:[#allocation158_spill] sm:$0xff] }
 0x2ee   : >> { %v2498_v62 = vmul.f32 %v19666_v42, %v19666_v42  ;;  %v2499_v19 = vmul.f32 %v13029_v50, %v13029_v50  ;;  %v2549_v58 = vadd.f32 %v2548_v13, %v2488_v24  ;;  %v2586_v54 = vadd.f32 %v2585_v51, %v2489_v43  ;;  %v19672_v42 = vld [vmem:[#allocation159_spill] sm:$0xff] }
 0x2ef   : >> { %v2623_v1 = vadd.f32 %v2622_v45, %v2490_v40  ;;  %v2660_v5 = vadd.f32 %v2659_v3, %v2491_v11  ;;  %v2500_v57 = vmul.f32 %v13036_v35, %v13036_v35  ;;  %v2501_v14 = vmul.f32 %v19667_v47, %v19667_v47  ;;  %v19669_v35 = vld [vmem:[#allocation157_spill] sm:$0xff] }
 0x2f0   : >> { %v2502_v34 = vmul.f32 %v19668_v41, %v19668_v41  ;;  %v2503_v18 = vmul.f32 %v13057_v7, %v13057_v7  ;;  %v2550_v22 = vadd.f32 %v2549_v58, %v2492_v37  ;;  %v2587_v31 = vadd.f32 %v2586_v54, %v2493_v0 }
 0x2f1   : >> { %v2624_v33 = vadd.f32 %v2623_v1, %v2494_v61  ;;  %v2661_v50 = vadd.f32 %v2660_v5, %v2495_v55  ;;  %v2504_v21 = vmul.f32 %v13064_v6, %v13064_v6  ;;  %v2505_v20 = vmul.f32 %v13071_v12, %v13071_v12 }
 0x2f2   : >> { %v2506_v23 = vmul.f32 %v19669_v35, %v19669_v35  ;;  %v2507_v44 = vmul.f32 %v13085_v63, %v13085_v63  ;;  %v2551_v24 = vadd.f32 %v2550_v22, %v2496_v8  ;;  %v2588_v16 = vadd.f32 %v2587_v31, %v2497_v9 }
 0x2f3   : >> { %v2625_v43 = vadd.f32 %v2624_v33, %v2498_v62  ;;  %v2662_v7 = vadd.f32 %v2661_v50, %v2499_v19  ;;  %v2508_v27 = vmul.f32 %v13092_v10, %v13092_v10  ;;  %v2509_v40 = vmul.f32 %v13099_v60, %v13099_v60 }
 0x2f4   : >> { %v2510_v6 = vmul.f32 %v13106_v56, %v13106_v56  ;;  %v2511_v12 = vmul.f32 %v13113_v4, %v13113_v4  ;;  %v2552_v11 = vadd.f32 %v2551_v24, %v2500_v57  ;;  %v2589_v15 = vadd.f32 %v2588_v16, %v2501_v14 }
 0x2f5   : >> { %v2626_v46 = vadd.f32 %v2625_v43, %v2502_v34  ;;  %v2663_v63 = vadd.f32 %v2662_v7, %v2503_v18  ;;  %v2512_v38 = vmul.f32 %v13120_v49, %v13120_v49  ;;  %v2513_v32 = vmul.f32 %v13127_v26, %v13127_v26 }
 0x2f6   : >> { %v2514_v10 = vmul.f32 %v13134_v53, %v13134_v53  ;;  %v2515_v60 = vmul.f32 %v13141_v25, %v13141_v25  ;;  %v2553_v56 = vadd.f32 %v2552_v11, %v2504_v21  ;;  %v2590_v37 = vadd.f32 %v2589_v15, %v2505_v20 }
 0x2f7   : >> { %v2627_v39 = vadd.f32 %v2626_v46, %v2506_v23  ;;  %v2664_v4 = vadd.f32 %v2663_v63, %v2507_v44  ;;  %v2516_v0 = vmul.f32 %v13148_v29, %v13148_v29  ;;  %v2517_v52 = vmul.f32 %v13155_v59, %v13155_v59  ;;  %v19670_v59 = vld [vmem:[#allocation100_spill] sm:$0xff] }
 0x2f8   : >> { %v2518_v49 = vmul.f32 %v13162_v48, %v13162_v48  ;;  %v2519_v26 = vmul.f32 %v13169_v30, %v13169_v30  ;;  %v2554_v53 = vadd.f32 %v2553_v56, %v2508_v27  ;;  %v2591_v61 = vadd.f32 %v2590_v37, %v2509_v40  ;;  %v19675_v37 = vld [vmem:[#allocation77_spill] sm:$0xff] }
 0x2f9   : >> { %v2628_v55 = vadd.f32 %v2627_v39, %v2510_v6  ;;  %v2665_v25 = vadd.f32 %v2664_v4, %v2511_v12  ;;  %v2520_v13 = vmul.f32 %v13176_v36, %v13176_v36  ;;  %v2521_v51 = vmul.f32 %v13183_v28, %v13183_v28  ;;  %v19673_v36 = vld [vmem:[#allocation160_spill] sm:$0xff]  ;;  %v19674_v28 = vld [vmem:[#allocation161_spill] sm:$0xff] }
 0x2fa   : >> { %v2522_v29 = vmul.f32 %v13190_v2, %v13190_v2  ;;  %v2523_v45 = vmul.f32 %v19670_v59, %v19670_v59  ;;  %v2555_v48 = vadd.f32 %v2554_v53, %v2512_v38  ;;  %v2592_v3 = vadd.f32 %v2591_v61, %v2513_v32  ;;  %v19676_v4 = vld [vmem:[#allocation76_spill] sm:$0xff] }
 0x2fb   : >> { %v2629_v8 = vadd.f32 %v2628_v55, %v2514_v10  ;;  %v2666_v30 = vadd.f32 %v2665_v25, %v2515_v60  ;;  %v2524_v9 = vmul.f32 %v19671_v17, %v19671_v17  ;;  %v2525_v62 = vmul.f32 %v19672_v42, %v19672_v42 }
 0x2fc   : >> { %v2526_v19 = vmul.f32 %v19673_v36, %v19673_v36  ;;  %v2527_v58 = vmul.f32 %v19674_v28, %v19674_v28  ;;  %v2556_v2 = vadd.f32 %v2555_v48, %v2516_v0  ;;  %v2593_v54 = vadd.f32 %v2592_v3, %v2517_v52  ;;  %v19677_v0 = vld [vmem:[#allocation75_spill] sm:$0xff] }
 0x2fd   : >> { %v2630_v1 = vadd.f32 %v2629_v8, %v2518_v49  ;;  %v2667_v5 = vadd.f32 %v2666_v30, %v2519_v26  ;;  %v19678_v26 = vld [vmem:[#allocation74_spill] sm:$0xff]  ;;  %v19683_v48 = vlaneseq (%p1854_p4)  ;;  %v10922_v8 = vmov (%p1854_p4), 0.0  }
 0x2fe   : >> { %v2557_v57 = vadd.f32 %v2556_v2, %v2520_v13  ;;  %v2594_v47 = vadd.f32 %v2593_v54, %v2521_v51  ;;  %v10923_v30 = vmov (%p1854_p4), 1966171168  }
 0x2ff   : >> { %v2631_v14 = vadd.f32 %v2630_v1, %v2522_v29  ;;  %v2668_v41 = vadd.f32 %v2667_v5, %v2523_v45  ;;  %vm13499_vm6 = vcmp.lt.s32.totalorder (%p1854_p4), %v19683_v48, 512  ;;  %v2700_v17 = vunpack.c.l.s4 (%p1854_p4), %v10923_v30 }
 0x300   : >> { %v2558_v34 = vadd.f32 %v2557_v57, %v2524_v9  ;;  %v2595_v18 = vadd.f32 %v2594_v47, %v2525_v62  ;;  %2732 = vst.msk [vmem:[#allocation3] sm:$0xf] (%p1854_p4), %vm13499_vm6, %v10922_v8  ;;  %v19686_v62 = vld [vmem:[#allocation9_spill] sm:$0xff] (%p1854_p4)  ;;  %v2684_v47 = vld [vmem:[%s18692_s4] sm:$0xf] (%p1854_p4) }
 0x301   : >> { %v2632_v22 = vadd.f32 %v2631_v14, %v2526_v19  ;;  %v2669_v31 = vadd.f32 %v2668_v41, %v2527_v58  ;;  %v2701_v9 = vunpack.c.0.s8 (%p1854_p4), %v2700_v17 }
 0x302   : >> { %v2559_v33 = vrot.slane %v2558_v34, 4  ;;  %v2596_v50 = vrot.slane %v2595_v18, 4 }
 0x303   : >> { %v2633_v21 = vrot.slane %v2632_v22, 4  ;;  %v2670_v20 = vrot.slane %v2669_v31, 4  ;;  %v2704_v36 = vsub.s32 (%p1854_p4), %v2701_v9, %v19686_v62 }
 0x304   : >> { %v2560_v35 = vadd.f32 %v2559_v33, %v2558_v34  ;;  %v2597_v23 = vadd.f32 %v2596_v50, %v2595_v18  ;;  %v2728_v34 = vld [vmem:[%s18693_s5] sm:$0xf] (%p1854_p4)  ;;  %v19687_v18 = vld [vmem:[#allocation73_spill] sm:$0xff] (%p1854_p4) }
 0x305   : >> { %v2634_v44 = vadd.f32 %v2633_v21, %v2632_v22  ;;  %v2671_v24 = vadd.f32 %v2670_v20, %v2669_v31 }
 0x306   : >> { %v2561_v16 = vrot.slane %v2560_v35, 2  ;;  %v2598_v43 = vrot.slane %v2597_v23, 2 }
 0x307   : >> { %v2635_v7 = vrot.slane %v2634_v44, 2  ;;  %v2672_v27 = vrot.slane %v2671_v24, 2 }
 0x308   : >> { %v2562_v40 = vadd.f32 %v2561_v16, %v2560_v35  ;;  %v2599_v6 = vadd.f32 %v2598_v43, %v2597_v23 }
 0x309   : >> { %v2636_v12 = vadd.f32 %v2635_v7, %v2634_v44  ;;  %v2673_v11 = vadd.f32 %v2672_v27, %v2671_v24 }
 0x30a   : >> { %v2563_v15 = vrot.slane %v2562_v40, 1  ;;  %v2600_v46 = vrot.slane %v2599_v6, 1 }
 0x30b   : >> { %v2637_v63 = vrot.slane %v2636_v12, 1  ;;  %v2674_v38 = vrot.slane %v2673_v11, 1  ;;  %1856 = sbr.rel (!%p1854_p4) target bundleno = 533 (0x215), region = 146 }
 0x30c   : >> { %v2564_v32 = vadd.f32 %v2563_v15, %v2562_v40  ;;  %v2601_v10 = vadd.f32 %v2600_v46, %v2599_v6 }
 0x30d   : >> { %v2638_v60 = vadd.f32 %v2637_v63, %v2636_v12  ;;  %v2675_v56 = vadd.f32 %v2674_v38, %v2673_v11 }
 0x30e   : >> { %v2676_v39 = vadd.f32 %v19675_v37, %v2564_v32   ;;  %v2677_v52 = vadd.f32 %v19676_v4, %v2601_v10  }
 0x30f   : >> { %v2678_v49 = vadd.f32 %v19677_v0, %v2638_v60   ;;  %v2679_v53 = vadd.f32 %v19678_v26, %v2675_v56  }
 0x310   : >> { %v19681_v43 = vmov %v2677_v52  ;;  %v19682_v0 = vmov %v2676_v39  ;;  %v2680_v61 = vmul.f32 (%p1854_p4), 0.0026041667, %v2676_v39  ;;  %v2681_v55 = vmul.f32 (%p1854_p4), 0.0026041667, %v2677_v52 }
 0x311   : >> { %v19679_v41 = vmov %v2679_v53  ;;  %v19680_v42 = vmov %v2678_v49  ;;  %v2682_v25 = vmul.f32 (%p1854_p4), 0.0026041667, %v2678_v49  ;;  %v2683_v13 = vmul.f32 (%p1854_p4), 0.0026041667, %v2679_v53 }
 0x312   : > { %v2685_v51 = vadd.f32 1e-05, %v2680_v61  ;;  %v2686_v29 = vadd.f32 1e-05, %v2681_v55 }
 0x313   : > { %v2687_v59 = vadd.f32 1e-05, %v2682_v25  ;;  %v2688_v45 = vadd.f32 1e-05, %v2683_v13 }
 0x314   : > { %10362 = vrsqrt.f32 %v2685_v51 }
 0x315   : > { %10364 = vrsqrt.f32 %v2686_v29 }
 0x316   : > { %10366 = vrsqrt.f32 %v2687_v59 }
 0x317   : > { %10368 = vrsqrt.f32 %v2688_v45 }
 0x31e   : > { %v10363_v42 = vpop.eup %10362 }
 0x31f   : > { %v10365_v19 = vpop.eup %10364 }
 0x320   : > { %v10367_v28 = vpop.eup %10366  ;;  %v2697_v58 = vcombine.low %v10363_v42, %v10365_v19 }
 0x321   : > { %v10369_v2 = vpop.eup %10368 }
 0x322   : > { %v2698_v54 = vcombine.low %v10367_v28, %v10369_v2  ;;  %v2705_v1 = vrot.slane %v2697_v58, %v2704_v36 }
 0x324   : > { %v2712_v5 = vrot.slane %v2698_v54, %v2704_v36 }
 0x326   : > { %v2713_v57 = vcombine.low %v2705_v1, %v2712_v5 }
 0x328   : > { %v2720_v14 = vrot.slane %v2713_v57, %v2704_v36 }
 0x32a   : > { %v2722_v41 = vmul.f32 %v2720_v14, %v2684_v47 }
 0x32c   : > { %2727 = vst.msk [vmem:[#allocation4] sm:$0xf] %vm13499_vm6, %v2722_v41  ;;  %v2729_v22 = vmul.f32 %v2722_v41, %v19687_v18 }
 0x32e   : > { %v2730_v31 = vsub.f32 %v2728_v34, %v2729_v22 }
 0x330   : > { %2731 = vst.msk [vmem:[#allocation5] sm:$0xf] %vm13499_vm6, %v2730_v31 }
 0x331 PF: > { %p9035_p6 = scmp.ne.s32.totalorder %s10863_s14, 1 }
 0x333   : > { %2735 = sbr.rel (%p9035_p6) target bundleno = 1397 (0x575), region = 83 }
 0x33a   : > { %v10370_v33 = vld [vmem:[%s18690_s2 + $0x4] ss:$16 sps:$4 sm:$0xff]   ;;  %v10372_v50 = vld [vmem:[%s18690_s2 + $0xc] ss:$16 sps:$4 sm:$0xff]   ;;  %v10374_v21 = vld [vmem:[%s18690_s2] ss:$16 sps:$4 sm:$0xff]  }
 0x33b   : > { %4447 = vmatprep.subr.bf16.mxu0 %v10370_v33  ;;  %v10375_v20 = vld [vmem:[%s18690_s2 + $0x8] ss:$16 sps:$4 sm:$0xff]   ;;  %4833 = vmatprep.subr.bf16.mxu1 %v10372_v50  ;;  %v10376_v35 = vld [vmem:[%s18690_s2 + $0x24] ss:$16 sps:$4 sm:$0xff]   ;;  %v10378_v23 = vld [vmem:[%s18690_s2 + $0x2c] ss:$16 sps:$4 sm:$0xff]  }
 0x33c   : > { %4448 = vmatpush1.bf16.msra.mxu0 %v10374_v21  ;;  %4834 = vmatpush1.bf16.msra.mxu1 %v10375_v20  ;;  %v10380_v44 = vld [vmem:[%s18690_s2 + $0x20] ss:$16 sps:$4 sm:$0xff]   ;;  %v10381_v24 = vld [vmem:[%s18690_s2 + $0x28] ss:$16 sps:$4 sm:$0xff]   ;;  %v10382_v16 = vld [vmem:[%s18690_s2 + $0x44] ss:$16 sps:$4 sm:$0xff]  }
 0x33d   : > { %4449 = vmatprep.subr.bf16.mxu0 %v10376_v35  ;;  %4835 = vmatprep.subr.bf16.mxu1 %v10378_v23  ;;  %v10384_v43 = vld [vmem:[%s18690_s2 + $0x4c] ss:$16 sps:$4 sm:$0xff]   ;;  %v10386_v7 = vld [vmem:[%s18690_s2 + $0x40] ss:$16 sps:$4 sm:$0xff]   ;;  %v10387_v27 = vld [vmem:[%s18690_s2 + $0x48] ss:$16 sps:$4 sm:$0xff]  }
 0x33e   : > { %v10388_v40 = vld [vmem:[%s18690_s2 + $0x64] ss:$16 sps:$4 sm:$0xff]   ;;  %v10390_v6 = vld [vmem:[%s18690_s2 + $0x6c] ss:$16 sps:$4 sm:$0xff]   ;;  %v10392_v12 = vld [vmem:[%s18690_s2 + $0x60] ss:$16 sps:$4 sm:$0xff]  }
 0x33f   : > { %v10393_v11 = vld [vmem:[%s18690_s2 + $0x68] ss:$16 sps:$4 sm:$0xff]   ;;  %v10394_v15 = vld [vmem:[%s18690_s2 + $0x84] ss:$16 sps:$4 sm:$0xff]   ;;  %v10396_v46 = vld [vmem:[%s18690_s2 + $0x8c] ss:$16 sps:$4 sm:$0xff]  }
 0x340   : > { %4450 = vmatpush1.bf16.msra.mxu0 %v10380_v44  ;;  %4836 = vmatpush1.bf16.msra.mxu1 %v10381_v24  ;;  %v10398_v63 = vld [vmem:[%s18690_s2 + $0x80] ss:$16 sps:$4 sm:$0xff]   ;;  %v10399_v38 = vld [vmem:[%s18690_s2 + $0x88] ss:$16 sps:$4 sm:$0xff]   ;;  %v10400_v32 = vld [vmem:[%s18690_s2 + $0xa4] ss:$16 sps:$4 sm:$0xff]  }
 0x341   : > { %4451 = vmatprep.subr.bf16.mxu0 %v10382_v16  ;;  %4837 = vmatprep.subr.bf16.mxu1 %v10384_v43  ;;  %v10402_v10 = vld [vmem:[%s18690_s2 + $0xac] ss:$16 sps:$4 sm:$0xff]   ;;  %v10404_v60 = vld [vmem:[%s18690_s2 + $0xa0] ss:$16 sps:$4 sm:$0xff]   ;;  %v10405_v56 = vld [vmem:[%s18690_s2 + $0xa8] ss:$16 sps:$4 sm:$0xff]  }
 0x342   : > { %v10406_v37 = vld [vmem:[%s18690_s2 + $0xc4] ss:$16 sps:$4 sm:$0xff]   ;;  %v10408_v39 = vld [vmem:[%s18690_s2 + $0xcc] ss:$16 sps:$4 sm:$0xff]   ;;  %v10410_v4 = vld [vmem:[%s18690_s2 + $0xc0] ss:$16 sps:$4 sm:$0xff]  }
 0x343   : > { %v10411_v52 = vld [vmem:[%s18690_s2 + $0xc8] ss:$16 sps:$4 sm:$0xff]   ;;  %v10412_v0 = vld [vmem:[%s18690_s2 + $0xe4] ss:$16 sps:$4 sm:$0xff]   ;;  %v10414_v49 = vld [vmem:[%s18690_s2 + $0xec] ss:$16 sps:$4 sm:$0xff]  }
 0x344   : > { %4452 = vmatpush1.bf16.msra.mxu0 %v10386_v7  ;;  %4838 = vmatpush1.bf16.msra.mxu1 %v10387_v27  ;;  %v10416_v26 = vld [vmem:[%s18690_s2 + $0xe0] ss:$16 sps:$4 sm:$0xff]   ;;  %v10417_v53 = vld [vmem:[%s18690_s2 + $0xe8] ss:$16 sps:$4 sm:$0xff]   ;;  %v10418_v61 = vld [vmem:[%s18690_s2 + $0x104] ss:$16 sps:$4 sm:$0xff]  }
 0x345   : > { %4453 = vmatprep.subr.bf16.mxu0 %v10388_v40  ;;  %4839 = vmatprep.subr.bf16.mxu1 %v10390_v6  ;;  %v10420_v55 = vld [vmem:[%s18690_s2 + $0x10c] ss:$16 sps:$4 sm:$0xff]   ;;  %v10422_v25 = vld [vmem:[%s18690_s2 + $0x100] ss:$16 sps:$4 sm:$0xff]   ;;  %v10423_v13 = vld [vmem:[%s18690_s2 + $0x108] ss:$16 sps:$4 sm:$0xff]  }
 0x346   : > { %v10424_v51 = vld [vmem:[%s18690_s2 + $0x124] ss:$16 sps:$4 sm:$0xff]   ;;  %v10426_v29 = vld [vmem:[%s18690_s2 + $0x12c] ss:$16 sps:$4 sm:$0xff]   ;;  %v10428_v59 = vld [vmem:[%s18690_s2 + $0x120] ss:$16 sps:$4 sm:$0xff]  }
 0x347   : > { %v10429_v45 = vld [vmem:[%s18690_s2 + $0x128] ss:$16 sps:$4 sm:$0xff]   ;;  %v10430_v48 = vld [vmem:[%s18690_s2 + $0x144] ss:$16 sps:$4 sm:$0xff]   ;;  %s9691_s26 = sshll.u32 %s10859_s13, 10  ;;  %v19688_v9 = vld [vmem:[#allocation9_spill] sm:$0xff] }
 0x348   : > { %4454 = vmatpush1.bf16.msra.mxu0 %v10392_v12  ;;  %4840 = vmatpush1.bf16.msra.mxu1 %v10393_v11  ;;  %v10432_v3 = vld [vmem:[%s18690_s2 + $0x14c] ss:$16 sps:$4 sm:$0xff]   ;;  %v10434_v8 = vld [vmem:[%s18690_s2 + $0x140] ss:$16 sps:$4 sm:$0xff]   ;;  %v10435_v30 = vld [vmem:[%s18690_s2 + $0x148] ss:$16 sps:$4 sm:$0xff]  }
 0x349   : > { %4455 = vmatprep.subr.bf16.mxu0 %v10394_v15  ;;  %4841 = vmatprep.subr.bf16.mxu1 %v10396_v46  ;;  %v10436_v17 = vld [vmem:[%s18690_s2 + $0x164] ss:$16 sps:$4 sm:$0xff]   ;;  %v2875_v42 = vsub.s32 1, %v19688_v9  ;;  %v10438_v62 = vld [vmem:[%s18690_s2 + $0x16c] ss:$16 sps:$4 sm:$0xff]   ;;  %v2871_v36 = vsub.s32 0, %v19688_v9  ;;  %vm13734_vm14 = vmpackc.low %vm523_vm1, %vm522_vm0 }
 0x34a   : > { %v10440_v19 = vld [vmem:[%s18690_s2 + $0x160] ss:$16 sps:$4 sm:$0xff]   ;;  %v10441_v28 = vld [vmem:[%s18690_s2 + $0x168] ss:$16 sps:$4 sm:$0xff]   ;;  %s13665_s25 = scalar_lea.vmem [#allocation2], %s9691_s26  ;;  %v2879_v1 = vsub.s32 2, %v19688_v9 }
 0x34b   : > { %v2740_v58 = vld [vmem:[%s13665_s25 + $0x8] sm:$0xff]  ;;  %v13669_v54 = vld [vmem:[#allocation4] sm:$0xf]  ;;  %v10446_v33 = vld [vmem:[%s18690_s2 + $0x180] ss:$16 sps:$4 sm:$0xff]  }
 0x34c   : > { %4456 = vmatpush1.bf16.msra.mxu0 %v10398_v63  ;;  %4842 = vmatpush1.bf16.msra.mxu1 %v10399_v38  ;;  %v2744_v2 = vld [vmem:[%s13665_s25 + $0x28] sm:$0xff]  ;;  %v10442_v57 = vld [vmem:[%s18690_s2 + $0x184] ss:$16 sps:$4 sm:$0xff]   ;;  %v13676_v47 = vrot.slane %v13669_v54, %v2875_v42  ;;  %v13686_v22 = vrot.slane %v13669_v54, %v2871_v36  ;;  %v13702_v23 = vrot.slane %v13669_v54, %v2879_v1  ;;  %v10452_v38 = vld [vmem:[%s18690_s2 + $0x1a0] ss:$16 sps:$4 sm:$0xff]  }
 0x34d   : > { %4457 = vmatprep.subr.bf16.mxu0 %v10400_v32  ;;  %4843 = vmatprep.subr.bf16.mxu1 %v10402_v10  ;;  %v3017_v5 = vld [vmem:[#allocation5] sm:$0xf]  ;;  %v2739_v41 = vld [vmem:[%s13665_s25] sm:$0xff]  ;;  %v10444_v18 = vld [vmem:[%s18690_s2 + $0x18c] ss:$16 sps:$4 sm:$0xff]  }
 0x34e   : > { %v13678_v14 = vrot.slane %v3017_v5, %v2875_v42  ;;  %v2743_v34 = vld [vmem:[%s13665_s25 + $0x20] sm:$0xff]  ;;  %v13688_v31 = vrot.slane %v3017_v5, %v2871_v36  ;;  %v2890_v50 = vmul.f32 %v13676_v47, %v2740_v58  ;;  %v2894_v21 = vmul.f32 %v13676_v47, %v2744_v2  ;;  %v10447_v20 = vld [vmem:[%s18690_s2 + $0x188] ss:$16 sps:$4 sm:$0xff]   ;;  %v10450_v43 = vld [vmem:[%s18690_s2 + $0x1ac] ss:$16 sps:$4 sm:$0xff]  }
 0x34f   : > { %v10448_v35 = vld [vmem:[%s18690_s2 + $0x1a4] ss:$16 sps:$4 sm:$0xff]   ;;  %v2889_v44 = vmul.f32 %v13686_v22, %v2739_v41  ;;  %v2893_v24 = vmul.f32 %v13686_v22, %v2743_v34  ;;  %v2748_v16 = vld [vmem:[%s13665_s25 + $0x48] sm:$0xff] }
 0x350   : > { %4458 = vmatpush1.bf16.msra.mxu0 %v10404_v60  ;;  %4844 = vmatpush1.bf16.msra.mxu1 %v10405_v56  ;;  %v3040_v7 = vadd.f32 %v13678_v14, %v2890_v50  ;;  %v3044_v27 = vadd.f32 %v13678_v14, %v2894_v21  ;;  %v2752_v40 = vld [vmem:[%s13665_s25 + $0x68] sm:$0xff]  ;;  %v2898_v6 = vmul.f32 %v13676_v47, %v2748_v16  ;;  %v2747_v12 = vld [vmem:[%s13665_s25 + $0x40] sm:$0xff] }
 0x351   : > { %4459 = vmatprep.subr.bf16.mxu0 %v10406_v37  ;;  %4845 = vmatprep.subr.bf16.mxu1 %v10408_v39  ;;  %v3039_v11 = vadd.f32 %v13688_v31, %v2889_v44  ;;  %v3043_v15 = vadd.f32 %v13688_v31, %v2893_v24  ;;  %v2902_v46 = vmul.f32 %v13676_v47, %v2752_v40  ;;  %v2751_v63 = vld [vmem:[%s13665_s25 + $0x60] sm:$0xff]  ;;  %v10453_v32 = vld [vmem:[%s18690_s2 + $0x1a8] ss:$16 sps:$4 sm:$0xff]   ;;  %v10462_v50 = vld [vmem:[%s18690_s2 + $0x1ec] ss:$16 sps:$4 sm:$0xff]  }
 0x352   : > { %v3168_v10 = vmax.f32 %v3040_v7, 0.0  ;;  %v3172_v60 = vmax.f32 %v3044_v27, 0.0  ;;  %v3048_v56 = vadd.f32 %v13678_v14, %v2898_v6  ;;  %v2897_v37 = vmul.f32 %v13686_v22, %v2747_v12  ;;  %v10454_v39 = vld [vmem:[%s18690_s2 + $0x1c4] ss:$16 sps:$4 sm:$0xff]   ;;  %v2764_v7 = vld [vmem:[%s13665_s25 + $0xc8] sm:$0xff] }
 0x353   : > { %v2759_v42 = vld [vmem:[%s13665_s25 + $0xa0] sm:$0xff]  ;;  %v2768_v27 = vld [vmem:[%s13665_s25 + $0xe8] sm:$0xff] }
 0x354   : > { %4460 = vmatpush1.bf16.msra.mxu0 %v10410_v4  ;;  %4846 = vmatpush1.bf16.msra.mxu1 %v10411_v52  ;;  %v2909_v44 = vmul.f32 %v13686_v22, %v2759_v42  ;;  %v2763_v40 = vld [vmem:[%s13665_s25 + $0xc0] sm:$0xff] }
 0x355   : > { %4461 = vmatprep.subr.bf16.mxu0 %v10412_v0  ;;  %4847 = vmatprep.subr.bf16.mxu1 %v10414_v49  ;;  %v19691_v0 = vmov 0  ;;  %v3167_v49 = vmax.f32 %v3039_v11, 0.0 }
 0x356   : > { %v19692_v0 = vsel %vm13734_vm14, 4294967295, %v19691_v0 }
 0x357   : > { %19693 = vst [vmem:[#allocation185_spill] sm:$0xff] %v19692_v0  ;;  %v2827_v0 = vld [vmem:[%s13665_s25 + $0x2c0] sm:$0xff] }
 0x358   : > { %4462 = vmatpush1.bf16.msra.mxu0 %v10416_v26  ;;  %4848 = vmatpush1.bf16.msra.mxu1 %v10417_v53  ;;  %v3171_v26 = vmax.f32 %v3043_v15, 0.0  ;;  %v3052_v53 = vadd.f32 %v13678_v14, %v2902_v46  ;;  %v2767_v46 = vld [vmem:[%s13665_s25 + $0xe0] sm:$0xff] }
 0x359   : > { %4463 = vmatprep.subr.bf16.mxu0 %v10418_v61  ;;  %4849 = vmatprep.subr.bf16.mxu1 %v10420_v55  ;;  %v2901_v61 = vmul.f32 %v13686_v22, %v2751_v63  ;;  %v10456_v55 = vld [vmem:[%s18690_s2 + $0x1cc] ss:$16 sps:$4 sm:$0xff]   ;;  %v10464_v63 = vld [vmem:[%s18690_s2 + $0x1e0] ss:$16 sps:$4 sm:$0xff]  }
 0x35b   : > { %v3051_v58 = vadd.f32 %v13688_v31, %v2901_v61  ;;  %v2917_v61 = vmul.f32 %v13686_v22, %v2767_v46  ;;  %v19710_v46 = vld [vmem:[#allocation48_spill] sm:$0xff] }
 0x35c   : > { %4464 = vmatpush1.bf16.msra.mxu0 %v10422_v25  ;;  %4850 = vmatpush1.bf16.msra.mxu1 %v10423_v13  ;;  %v3360_v25 = vsel %vm522_vm0, %v3168_v10, 0.0  ;;  %v3364_v13 = vsel %vm523_vm1, %v3172_v60, 0.0  ;;  %vm19711_vm8 = vcmp.lt.s32.totalorder %v19710_v46, 384 }
 0x35d   : > { %4465 = vmatprep.subr.bf16.mxu0 %v10424_v51  ;;  %4851 = vmatprep.subr.bf16.mxu1 %v10426_v29  ;;  %v9167_v51 = vpack.c.bf16 %v3172_v60, %v3168_v10  ;;  %v3176_v29 = vmax.f32 %v3048_v56, 0.0  ;;  %3488 = vst [vmem:[%s11212_s24 + $0x8] sm:$0xff] %v3360_v25  ;;  %3492 = vst [vmem:[%s11212_s24 + $0x28] sm:$0xff] %v3364_v13  ;;  %v3059_v10 = vadd.f32 %v13688_v31, %v2909_v44  ;;  %v19700_v25 = vld [vmem:[#allocation46_spill] sm:$0xff]  ;;  %v2775_v44 = vld [vmem:[%s13665_s25 + $0x120] sm:$0xff] }
 0x35e   : > { %v2914_v56 = vmul.f32 %v13676_v47, %v2764_v7  ;;  %vm19701_vm4 = vcmp.lt.s32.totalorder %v19700_v25, 384  ;;  %v3067_v42 = vadd.f32 %v13688_v31, %v2917_v61  ;;  %v19705_v7 = vmov 0  ;;  %vm19713_vm6 = vmmov %vm19711_vm8  ;;  %v2779_v61 = vld [vmem:[%s13665_s25 + $0x140] sm:$0xff] }
 0x35f   : > { %9168 = vmatprep.mubr.msk.bf16.mxu0 %vm13734_vm14, %v9167_v51  ;;  %9360 = vmatprep.mubr.msk.bf16.mxu1 %vm13734_vm14, %v9167_v51  ;;  %vm19703_vm15 = vmmov %vm19701_vm4 }
 0x360   : > { %4466 = vmatpush1.bf16.msra.mxu0 %v10428_v59  ;;  %4852 = vmatpush1.bf16.msra.mxu1 %v10429_v45  ;;  %v2756_v59 = vld [vmem:[%s13665_s25 + $0x88] sm:$0xff]  ;;  %v13748_v45 = vrot.slane %v3017_v5, %v2879_v1  ;;  %v13776_v5 = vpack.c.bf16 %v3171_v26, %v3167_v49 }
 0x361   : > { %4467 = vmatprep.subr.bf16.mxu0 %v10430_v48  ;;  %4853 = vmatprep.subr.bf16.mxu1 %v10432_v3  ;;  %v3359_v48 = vsel %vm522_vm0, %v3167_v49, 0.0  ;;  %v3363_v3 = vsel %vm523_vm1, %v3171_v26, 0.0  ;;  %v2906_v2 = vmul.f32 %v13676_v47, %v2756_v59  ;;  %v10459_v1 = vld [vmem:[%s18690_s2 + $0x1c8] ss:$16 sps:$4 sm:$0xff]   ;;  %v2918_v26 = vmul.f32 %v13676_v47, %v2768_v27  ;;  %v10472_v27 = vld [vmem:[%s18690_s2 + $0x220] ss:$16 sps:$4 sm:$0xff]  }
 0x362   : > { %3487 = vst [vmem:[%s11212_s24] sm:$0xff] %v3359_v48  ;;  %3491 = vst [vmem:[%s11212_s24 + $0x20] sm:$0xff] %v3363_v3  ;;  %v2772_v48 = vld [vmem:[%s13665_s25 + $0x108] sm:$0xff]  ;;  %v10466_v3 = vld [vmem:[%s18690_s2 + $0x200] ss:$16 sps:$4 sm:$0xff]  }
 0x364   : > { %4468 = vmatpush1.bf16.msra.mxu0 %v10434_v8  ;;  %4854 = vmatpush1.bf16.msra.mxu1 %v10435_v30  ;;  %v3180_v8 = vmax.f32 %v3052_v53, 0.0  ;;  %v2760_v30 = vld [vmem:[%s13665_s25 + $0xa8] sm:$0xff]  ;;  %v2913_v53 = vmul.f32 %v13686_v22, %v2763_v40 }
 0x365   : > { %4469 = vmatprep.subr.bf16.mxu0 %v10436_v17  ;;  %4855 = vmatprep.subr.bf16.mxu1 %v10438_v62  ;;  %v2755_v17 = vld [vmem:[%s13665_s25 + $0x80] sm:$0xff]  ;;  %v2910_v34 = vmul.f32 %v13676_v47, %v2760_v30  ;;  %v3068_v30 = vadd.f32 %v13678_v14, %v2918_v26  ;;  %v10475_v40 = vld [vmem:[%s18690_s2 + $0x228] ss:$16 sps:$4 sm:$0xff]  }
 0x366   : > { %v10458_v62 = vld [vmem:[%s18690_s2 + $0x1c0] ss:$16 sps:$4 sm:$0xff]   ;;  %v13792_v24 = vpack.c.bf16 %v3180_v8, %v3176_v29 }
 0x367   : > { %v3060_v16 = vadd.f32 %v13678_v14, %v2910_v34  ;;  %v10474_v34 = vld [vmem:[%s18690_s2 + $0x224] ss:$16 sps:$4 sm:$0xff]  }
 0x368   : > { %4470 = vmatpush1.bf16.msra.mxu0 %v10440_v19  ;;  %4856 = vmatpush1.bf16.msra.mxu1 %v10441_v28  ;;  %v3368_v19 = vsel %vm524_vm2, %v3176_v29, 0.0  ;;  %v3047_v28 = vadd.f32 %v13688_v31, %v2897_v37  ;;  %v10468_v37 = vld [vmem:[%s18690_s2 + $0x204] ss:$16 sps:$4 sm:$0xff]   ;;  %v3187_v29 = vmax.f32 %v3059_v10, 0.0  ;;  %v2780_v10 = vld [vmem:[%s13665_s25 + $0x148] sm:$0xff] }
 0x369   : > { %4471 = vmatprep.subr.bf16.mxu0 %v10442_v57  ;;  %4857 = vmatprep.subr.bf16.mxu1 %v10444_v18  ;;  %v19695_v57 = vld [vmem:[#allocation44_spill] sm:$0xff]  ;;  %3496 = vst [vmem:[%s11212_s24 + $0x48] sm:$0xff] %v3368_v19  ;;  %v2905_v18 = vmul.f32 %v13686_v22, %v2755_v17  ;;  %v3063_v17 = vadd.f32 %v13688_v31, %v2913_v53 }
 0x36a   : > { %vm19696_vm13 = vcmp.lt.s32.totalorder %v19695_v57, 384  ;;  %v3175_v21 = vmax.f32 %v3047_v28, 0.0  ;;  %v2771_v19 = vld [vmem:[%s13665_s25 + $0x100] sm:$0xff]  ;;  %v10469_v28 = vld [vmem:[%s18690_s2 + $0x208] ss:$16 sps:$4 sm:$0xff]  }
 0x36b   : > { %v3372_v41 = vsel %vm19696_vm13, %v3180_v8, 0.0  ;;  %vm19697_vm12 = vmmov %vm19696_vm13  ;;  %v3064_v8 = vadd.f32 %v13678_v14, %v2914_v56  ;;  %v2784_v53 = vld [vmem:[%s13665_s25 + $0x168] sm:$0xff] }
 0x36c   : > { %4472 = vmatpush1.bf16.msra.mxu0 %v10446_v33  ;;  %4858 = vmatpush1.bf16.msra.mxu1 %v10447_v20  ;;  %v10460_v33 = vld [vmem:[%s18690_s2 + $0x1e4] ss:$16 sps:$4 sm:$0xff]   ;;  %3500 = vst [vmem:[%s11212_s24 + $0x68] sm:$0xff] %v3372_v41  ;;  %v3179_v20 = vmax.f32 %v3051_v58, 0.0  ;;  %v3367_v6 = vsel %vm524_vm2, %v3175_v21, 0.0  ;;  %v3379_v58 = vsel %vm19703_vm15, %v3187_v29, 0.0  ;;  %vm19704_vm11 = vmmov %vm19697_vm12 }
 0x36d   : > { %4473 = vmatprep.subr.bf16.mxu0 %v10448_v35  ;;  %4859 = vmatprep.subr.bf16.mxu1 %v10450_v43  ;;  %v3056_v35 = vadd.f32 %v13678_v14, %v2906_v2  ;;  %v3055_v43 = vadd.f32 %v13688_v31, %v2905_v18  ;;  %3495 = vst [vmem:[%s11212_s24 + $0x40] sm:$0xff] %v3367_v6  ;;  %3507 = vst [vmem:[%s11212_s24 + $0xa0] sm:$0xff] %v3379_v58  ;;  %v3192_v18 = vmax.f32 %v3064_v8, 0.0  ;;  %v10477_v6 = vld [vmem:[%s18690_s2 + $0x22c] ss:$16 sps:$4 sm:$0xff]   ;;  %v19716_v8 = vld [vmem:[#allocation50_spill] sm:$0xff] }
 0x36e   : > { %v3371_v12 = vsel %vm19697_vm12, %v3179_v20, 0.0  ;;  %v13803_v11 = vpack.c.bf16 %v3179_v20, %v3175_v21  ;;  %v3195_v21 = vmax.f32 %v3067_v42, 0.0  ;;  %vm13868_vm10 = vmpackc.low %vm19704_vm11, %vm524_vm2  ;;  %vm19717_vm12 = vcmp.lt.s32.totalorder %v19716_v8, 384 }
 0x36f   : > { %v3184_v15 = vmax.f32 %v3056_v35, 0.0  ;;  %3499 = vst [vmem:[%s11212_s24 + $0x60] sm:$0xff] %v3371_v12  ;;  %v3183_v60 = vmax.f32 %v3055_v43, 0.0  ;;  %v18910_v43 = vsub.s32 3, %v19688_v9  ;;  %v19706_v7 = vsel %vm13868_vm10, 4294967295, %v19705_v7  ;;  %v19708_v12 = vld [vmem:[#allocation47_spill] sm:$0xff]  ;;  %vm19723_vm11 = vmmov %vm19717_vm12 }
 0x370   : > { %4474 = vmatpush1.bf16.msra.mxu0 %v10452_v38  ;;  %4860 = vmatpush1.bf16.msra.mxu1 %v10453_v32  ;;  %v10465_v38 = vld [vmem:[%s18690_s2 + $0x1e8] ss:$16 sps:$4 sm:$0xff]   ;;  %v3188_v32 = vmax.f32 %v3060_v16, 0.0  ;;  %v2921_v16 = vmul.f32 %v13686_v22, %v2771_v19  ;;  %19707 = vst [vmem:[#allocation186_spill] sm:$0xff] %v19706_v7  ;;  %vm19709_vm9 = vcmp.lt.s32.totalorder %v19708_v12, 384  ;;  %v3387_v56 = vsel %vm19713_vm6, %v3195_v21, 0.0 }
 0x371   : > { %4475 = vmatprep.subr.bf16.mxu0 %v10454_v39  ;;  %4861 = vmatprep.subr.bf16.mxu1 %v10456_v55  ;;  %v19698_v39 = vld [vmem:[#allocation45_spill] sm:$0xff]  ;;  %v13851_v2 = vpack.c.bf16 %v3187_v29, %v3183_v60  ;;  %vm19712_vm7 = vmmov %vm19709_vm9  ;;  %3515 = vst [vmem:[%s11212_s24 + $0xe0] sm:$0xff] %v3387_v56  ;;  %v2783_v29 = vld [vmem:[%s13665_s25 + $0x160] sm:$0xff]  ;;  %v2934_v42 = vmul.f32 %v13676_v47, %v2784_v53 }
 0x372   : > { %vm19699_vm5 = vcmp.lt.s32.totalorder %v19698_v39, 384  ;;  %v10471_v55 = vld [vmem:[%s18690_s2 + $0x20c] ss:$16 sps:$4 sm:$0xff]   ;;  %v3380_v13 = vsel %vm19701_vm4, %v3188_v32, 0.0  ;;  %v13830_v51 = vpack.c.bf16 %v3188_v32, %v3184_v15  ;;  %v2929_v58 = vmul.f32 %v13686_v22, %v2779_v61 }
 0x373   : > { %v3376_v49 = vsel %vm19699_vm5, %v3184_v15, 0.0  ;;  %vm19702_vm3 = vmmov %vm19699_vm5  ;;  %3508 = vst [vmem:[%s11212_s24 + $0xa8] sm:$0xff] %v3380_v13  ;;  %v3384_v15 = vsel %vm19709_vm9, %v3192_v18, 0.0  ;;  %v2930_v13 = vmul.f32 %v13676_v47, %v2780_v10  ;;  %v2791_v10 = vld [vmem:[%s13665_s25 + $0x1a0] sm:$0xff]  ;;  %v10489_v56 = vld [vmem:[%s18690_s2 + $0x26c] ss:$16 sps:$4 sm:$0xff]  }
 0x374   : > { %4476 = vmatpush1.bf16.msra.mxu0 %v10458_v62  ;;  %4862 = vmatpush1.bf16.msra.mxu1 %v10459_v1  ;;  %3504 = vst [vmem:[%s11212_s24 + $0x88] sm:$0xff] %v3376_v49  ;;  %v3375_v59 = vsel %vm19702_vm3, %v3183_v60, 0.0  ;;  %v2776_v62 = vld [vmem:[%s13665_s25 + $0x128] sm:$0xff]  ;;  %v2922_v1 = vmul.f32 %v13676_v47, %v2772_v48  ;;  %v10480_v60 = vld [vmem:[%s18690_s2 + $0x244] ss:$16 sps:$4 sm:$0xff]   ;;  %3512 = vst [vmem:[%s11212_s24 + $0xc8] sm:$0xff] %v3384_v15  ;;  %v3079_v15 = vadd.f32 %v13688_v31, %v2929_v58 }
 0x375   : > { %4477 = vmatprep.subr.bf16.mxu0 %v10460_v33  ;;  %4863 = vmatprep.subr.bf16.mxu1 %v10462_v50  ;;  %3503 = vst [vmem:[%s11212_s24 + $0x80] sm:$0xff] %v3375_v59  ;;  %v2926_v41 = vmul.f32 %v13676_v47, %v2776_v62  ;;  %v3196_v33 = vmax.f32 %v3068_v30, 0.0  ;;  %v3191_v50 = vmax.f32 %v3063_v17, 0.0  ;;  %v10483_v59 = vld [vmem:[%s18690_s2 + $0x24c] ss:$16 sps:$4 sm:$0xff]   ;;  %vm19718_vm5 = vmmov %vm19702_vm3  ;;  %v2941_v58 = vmul.f32 %v13686_v22, %v2791_v10 }
 0x376   : > { %v3072_v20 = vadd.f32 %v13678_v14, %v2922_v1  ;;  %v19714_v48 = vld [vmem:[#allocation49_spill] sm:$0xff]  ;;  %vm13933_vm3 = vmpackc.low %vm19701_vm4, %vm19718_vm5  ;;  %v3207_v61 = vmax.f32 %v3079_v15, 0.0  ;;  %vm19734_vm5 = vcmp.lt.s32.totalorder %v19708_v12, 384  ;;  %vm19735_vm4 = vcmp.lt.s32.totalorder %v19710_v46, 384 }
 0x377   : > { %v3076_v35 = vadd.f32 %v13678_v14, %v2926_v41  ;;  %v3383_v32 = vsel %vm19712_vm7, %v3191_v50, 0.0  ;;  %vm19715_vm13 = vcmp.lt.s32.totalorder %v19714_v48, 384  ;;  %v2788_v1 = vld [vmem:[%s13665_s25 + $0x188] sm:$0xff]  ;;  %v10478_v41 = vld [vmem:[%s18690_s2 + $0x240] ss:$16 sps:$4 sm:$0xff]   ;;  %v3091_v15 = vadd.f32 %v13688_v31, %v2941_v58 }
 0x378   : > { %4478 = vmatpush1.bf16.msra.mxu0 %v10464_v63  ;;  %4864 = vmatpush1.bf16.msra.mxu1 %v10465_v38  ;;  %v3388_v63 = vsel %vm19711_vm8, %v3196_v33, 0.0  ;;  %v13885_v38 = vpack.c.bf16 %v3196_v33, %v3192_v18  ;;  %3511 = vst [vmem:[%s11212_s24 + $0xc0] sm:$0xff] %v3383_v32  ;;  %v3200_v49 = vmax.f32 %v3072_v20, 0.0  ;;  %v3084_v18 = vadd.f32 %v13678_v14, %v2934_v42  ;;  %vm19722_vm15 = vmmov %vm19715_vm13  ;;  %v2787_v32 = vld [vmem:[%s13665_s25 + $0x180] sm:$0xff]  ;;  %v2800_v42 = vld [vmem:[%s13665_s25 + $0x1e8] sm:$0xff] }
 0x379   : > { %4640 = vmatprep.subr.bf16.mxu0 %v10468_v37  ;;  %5026 = vmatprep.subr.bf16.mxu1 %v10471_v55  ;;  %3516 = vst [vmem:[%s11212_s24 + $0xe8] sm:$0xff] %v3388_v63  ;;  %v13904_v37 = vpack.c.bf16 %v3195_v21, %v3191_v50  ;;  %v3204_v26 = vmax.f32 %v3076_v35, 0.0  ;;  %v3071_v55 = vadd.f32 %v13688_v31, %v2921_v16  ;;  %v2792_v50 = vld [vmem:[%s13665_s25 + $0x1a8] sm:$0xff]  ;;  %v10486_v35 = vld [vmem:[%s18690_s2 + $0x264] ss:$16 sps:$4 sm:$0xff]  }
 0x37a   : > { %v2933_v33 = vmul.f32 %v13686_v22, %v2783_v29  ;;  %v2938_v21 = vmul.f32 %v13676_v47, %v2788_v1  ;;  %v13956_v20 = vrot.slane %v13669_v54, %v18910_v43  ;;  %v3212_v54 = vmax.f32 %v3084_v18, 0.0  ;;  %v19726_v29 = vld [vmem:[#allocation52_spill] sm:$0xff] }
 0x37b   : > { %9171 = vmatmul.mubr.msk.bf16.vlgmr.msra.gmra.mrb[0].mxu0 %vm13734_vm14, %v13776_v5  ;;  %9363 = vmatmul.mubr.msk.bf16.vlgmr.msra.gmra.mrb[0].mxu1 %vm13734_vm14, %v13776_v5  ;;  %v2925_v5 = vmul.f32 %v13686_v22, %v2775_v44  ;;  %v3396_v30 = vsel %vm19717_vm12, %v3204_v26, 0.0  ;;  %v13926_v17 = vpack.c.bf16 %v3204_v26, %v3200_v49  ;;  %v3199_v19 = vmax.f32 %v3071_v55, 0.0  ;;  %v19724_v26 = vld [vmem:[#allocation51_spill] sm:$0xff]  ;;  %v10492_v18 = vld [vmem:[%s18690_s2 + $0x284] ss:$16 sps:$4 sm:$0xff]  }
 0x37c   : > { %4641 = vmatpush1.bf16.msra.mxu0 %v10466_v3  ;;  %5027 = vmatpush1.bf16.msra.mxu1 %v10469_v28  ;;  %v3392_v3 = vsel %vm19715_vm13, %v3200_v49, 0.0  ;;  %3524 = vst [vmem:[%s11212_s24 + $0x128] sm:$0xff] %v3396_v30  ;;  %v3080_v28 = vadd.f32 %v13678_v14, %v2930_v13  ;;  %v3088_v63 = vadd.f32 %v13678_v14, %v2938_v21  ;;  %vm19725_vm9 = vcmp.lt.s32.totalorder %v19724_v26, 384  ;;  %v10484_v55 = vld [vmem:[%s18690_s2 + $0x260] ss:$16 sps:$4 sm:$0xff]  }
 0x37d   : > { %9174 = vmatprep.mubr.msk.bf16.mxu0 %vm13868_vm10, %v13792_v24  ;;  %9366 = vmatprep.mubr.msk.bf16.mxu1 %vm13868_vm10, %v13792_v24  ;;  %v19719_v24 = vmov 0  ;;  %3520 = vst [vmem:[%s11212_s24 + $0x108] sm:$0xff] %v3392_v3  ;;  %v3075_v62 = vadd.f32 %v13688_v31, %v2925_v5  ;;  %v3391_v16 = vsel %vm19722_vm15, %v3199_v19, 0.0  ;;  %v2796_v5 = vld [vmem:[%s13665_s25 + $0x1c8] sm:$0xff]  ;;  %vm19727_vm8 = vcmp.lt.s32.totalorder %v19726_v29, 384  ;;  %vm19728_vm7 = vmmov %vm19725_vm9  ;;  %v2795_v1 = vld [vmem:[%s13665_s25 + $0x1c0] sm:$0xff] }
 0x37e   : > { %4642 = vmatprep.subr.bf16.mxu0 %v10474_v34  ;;  %5028 = vmatprep.subr.bf16.mxu1 %v10477_v6  ;;  %v19720_v24 = vsel %vm13933_vm3, 4294967295, %v19719_v24  ;;  %v10481_v34 = vld [vmem:[%s18690_s2 + $0x248] ss:$16 sps:$4 sm:$0xff]   ;;  %v3208_v6 = vmax.f32 %v3080_v28, 0.0  ;;  %3519 = vst [vmem:[%s11212_s24 + $0x100] sm:$0xff] %v3391_v16  ;;  %v2937_v28 = vmul.f32 %v13686_v22, %v2787_v32  ;;  %vm19729_vm6 = vmmov %vm19727_vm8  ;;  %v2946_v21 = vmul.f32 %v13676_v47, %v2796_v5 }
 0x37f   : > { %19721 = vst [vmem:[#allocation187_spill] sm:$0xff] %v19720_v24  ;;  %v3203_v44 = vmax.f32 %v3075_v62, 0.0  ;;  %v10487_v13 = vld [vmem:[%s18690_s2 + $0x268] ss:$16 sps:$4 sm:$0xff]   ;;  %v3399_v62 = vsel %vm19728_vm7, %v3207_v61, 0.0  ;;  %vm14050_vm15 = vmpackc.low %vm19735_vm4, %vm19734_vm5 }
 0x380   : > { %4643 = vmatpush1.bf16.msra.mxu0 %v10472_v27  ;;  %5029 = vmatpush1.bf16.msra.mxu1 %v10475_v40  ;;  %v3083_v27 = vadd.f32 %v13688_v31, %v2933_v33  ;;  %v2942_v40 = vmul.f32 %v13676_v47, %v2792_v50  ;;  %v3400_v53 = vsel %vm19725_vm9, %v3208_v6, 0.0  ;;  %v13996_v3 = vpack.c.bf16 %v3212_v54, %v3208_v6  ;;  %v10498_v5 = vld [vmem:[%s18690_s2 + $0x2a4] ss:$16 sps:$4 sm:$0xff]  }
 0x381   : > { %4644 = vmatprep.subr.bf16.mxu0 %v10480_v60  ;;  %5030 = vmatprep.subr.bf16.mxu1 %v10483_v59  ;;  %v3395_v60 = vsel %vm19723_vm11, %v3203_v44, 0.0  ;;  %v13975_v49 = vpack.c.bf16 %v3203_v44, %v3199_v19  ;;  %v3404_v59 = vsel %vm19727_vm8, %v3212_v54, 0.0  ;;  %3528 = vst [vmem:[%s11212_s24 + $0x148] sm:$0xff] %v3400_v53  ;;  %v3216_v19 = vmax.f32 %v3088_v63, 0.0  ;;  %3527 = vst [vmem:[%s11212_s24 + $0x140] sm:$0xff] %v3399_v62  ;;  %v2799_v44 = vld [vmem:[%s13665_s25 + $0x1e0] sm:$0xff] }
 0x382   : > { %3523 = vst [vmem:[%s11212_s24 + $0x120] sm:$0xff] %v3395_v60  ;;  %v3211_v30 = vmax.f32 %v3083_v27, 0.0  ;;  %3532 = vst [vmem:[%s11212_s24 + $0x168] sm:$0xff] %v3404_v59  ;;  %v3087_v6 = vadd.f32 %v13688_v31, %v2937_v28  ;;  %v2950_v54 = vmul.f32 %v13676_v47, %v2800_v42  ;;  %v10493_v27 = vld [vmem:[%s18690_s2 + $0x288] ss:$16 sps:$4 sm:$0xff]   ;;  %v3096_v10 = vadd.f32 %v13678_v14, %v2946_v21 }
 0x383   : > { %9177 = vmatmul.mubr.msk.bf16.gmra.mrb[4].mxu0 %vm13868_vm10, %v13803_v11  ;;  %9369 = vmatmul.mubr.msk.bf16.gmra.mrb[4].mxu1 %vm13868_vm10, %v13803_v11  ;;  %v3092_v11 = vadd.f32 %v13678_v14, %v2942_v40  ;;  %v19732_v40 = vld [vmem:[#allocation54_spill] sm:$0xff]  ;;  %v2804_v60 = vld [vmem:[%s13665_s25 + $0x208] sm:$0xff]  ;;  %v2949_v42 = vmul.f32 %v13686_v22, %v2799_v44  ;;  %v2807_v44 = vld [vmem:[%s13665_s25 + $0x220] sm:$0xff] }
 0x384   : > { %9180 = vmatprep.mubr.msk.bf16.mxu0 %vm13933_vm3, %v13830_v51  ;;  %9372 = vmatprep.mubr.msk.bf16.mxu1 %vm13933_vm3, %v13830_v51  ;;  %v3403_v51 = vsel %vm19729_vm6, %v3211_v30, 0.0  ;;  %v14018_v33 = vpack.c.bf16 %v3211_v30, %v3207_v61  ;;  %vm19733_vm12 = vcmp.lt.s32.totalorder %v19732_v40, 384  ;;  %v2808_v53 = vld [vmem:[%s13665_s25 + $0x228] sm:$0xff]  ;;  %v19736_v61 = vmov 0 }
 0x385   : > { %4645 = vmatpush1.bf16.msra.mxu0 %v10478_v41  ;;  %5031 = vmatpush1.bf16.msra.mxu1 %v10481_v34  ;;  %v3220_v50 = vmax.f32 %v3092_v11, 0.0  ;;  %v10495_v41 = vld [vmem:[%s18690_s2 + $0x28c] ss:$16 sps:$4 sm:$0xff]   ;;  %3531 = vst [vmem:[%s11212_s24 + $0x160] sm:$0xff] %v3403_v51  ;;  %v19737_v61 = vsel %vm14050_vm15, 4294967295, %v19736_v61  ;;  %v3215_v59 = vmax.f32 %v3087_v6, 0.0  ;;  %v3100_v11 = vadd.f32 %v13678_v14, %v2950_v54  ;;  %vm19740_vm9 = vmmov %vm19733_vm12 }
 0x386   : > { %4646 = vmatprep.subr.bf16.mxu0 %v10486_v35  ;;  %5032 = vmatprep.subr.bf16.mxu1 %v10489_v56  ;;  %v19730_v34 = vld [vmem:[#allocation53_spill] sm:$0xff]  ;;  %v2945_v56 = vmul.f32 %v13686_v22, %v2795_v1  ;;  %19738 = vst [vmem:[#allocation188_spill] sm:$0xff] %v19737_v61  ;;  %v3219_v30 = vmax.f32 %v3091_v15, 0.0  ;;  %v2954_v58 = vmul.f32 %v13676_v47, %v2804_v60  ;;  %v2803_v51 = vld [vmem:[%s13665_s25 + $0x200] sm:$0xff] }
 0x387   : > { %vm19731_vm13 = vcmp.lt.s32.totalorder %v19730_v34, 384  ;;  %v10490_v35 = vld [vmem:[%s18690_s2 + $0x280] ss:$16 sps:$4 sm:$0xff]   ;;  %v3412_v63 = vsel %vm19733_vm12, %v3220_v50, 0.0  ;;  %v14040_v32 = vpack.c.bf16 %v3220_v50, %v3216_v19  ;;  %v10501_v62 = vld [vmem:[%s18690_s2 + $0x2ac] ss:$16 sps:$4 sm:$0xff]   ;;  %v2958_v1 = vmul.f32 %v13676_v47, %v2808_v53 }
 0x388   : > { %v3408_v16 = vsel %vm19731_vm13, %v3216_v19, 0.0  ;;  %3540 = vst [vmem:[%s11212_s24 + $0x1a8] sm:$0xff] %v3412_v63  ;;  %v3224_v19 = vmax.f32 %v3096_v10, 0.0  ;;  %v3095_v28 = vadd.f32 %v13688_v31, %v2945_v56  ;;  %vm19739_vm11 = vmmov %vm19731_vm13  ;;  %v14071_v50 = vpack.c.bf16 %v3219_v30, %v3215_v59  ;;  %v2812_v63 = vld [vmem:[%s13665_s25 + $0x248] sm:$0xff]  ;;  %v10504_v10 = vld [vmem:[%s18690_s2 + $0x2c4] ss:$16 sps:$4 sm:$0xff]  }
 0x389   : > { %3536 = vst [vmem:[%s11212_s24 + $0x188] sm:$0xff] %v3408_v16  ;;  %4647 = vmatpush1.bf16.msra.mxu0 %v10484_v55  ;;  %5033 = vmatpush1.bf16.msra.mxu1 %v10487_v13  ;;  %v3407_v55 = vsel %vm19739_vm11, %v3215_v59, 0.0  ;;  %v3411_v13 = vsel %vm19740_vm9, %v3219_v30, 0.0  ;;  %v3228_v21 = vmax.f32 %v3100_v11, 0.0  ;;  %v19741_v16 = vld [vmem:[#allocation55_spill] sm:$0xff]  ;;  %v3099_v15 = vadd.f32 %v13688_v31, %v2949_v42  ;;  %v19743_v60 = vld [vmem:[#allocation56_spill] sm:$0xff] }
 0x38a   : > { %4648 = vmatprep.subr.bf16.mxu0 %v10492_v18  ;;  %5034 = vmatprep.subr.bf16.mxu1 %v10495_v41  ;;  %v10496_v18 = vld [vmem:[%s18690_s2 + $0x2a0] ss:$16 sps:$4 sm:$0xff]   ;;  %v10499_v41 = vld [vmem:[%s18690_s2 + $0x2a8] ss:$16 sps:$4 sm:$0xff]   ;;  %3535 = vst [vmem:[%s11212_s24 + $0x180] sm:$0xff] %v3407_v55  ;;  %3539 = vst [vmem:[%s11212_s24 + $0x1a0] sm:$0xff] %v3411_v13  ;;  %v3108_v30 = vadd.f32 %v13678_v14, %v2958_v1  ;;  %v2953_v11 = vmul.f32 %v13686_v22, %v2803_v51 }
 0x38b   : > { %9183 = vmatmul.mubr.msk.bf16.gmra.mrb[8].mxu0 %vm13933_vm3, %v13851_v2  ;;  %9375 = vmatmul.mubr.msk.bf16.gmra.mrb[8].mxu1 %vm13933_vm3, %v13851_v2  ;;  %vm19742_vm8 = vcmp.lt.s32.totalorder %v19741_v16, 384  ;;  %v3223_v54 = vmax.f32 %v3095_v28, 0.0  ;;  %v3104_v2 = vadd.f32 %v13678_v14, %v2954_v58  ;;  %v10507_v56 = vld [vmem:[%s18690_s2 + $0x2cc] ss:$16 sps:$4 sm:$0xff]   ;;  %vm19744_vm7 = vcmp.lt.s32.totalorder %v19743_v60, 384  ;;  %v2815_v13 = vld [vmem:[%s13665_s25 + $0x260] sm:$0xff] }
 0x38c   : > { %v3416_v6 = vsel %vm19742_vm8, %v3224_v19, 0.0  ;;  %9186 = vmatprep.mubr.msk.bf16.mxu0 %vm14050_vm15, %v13885_v38  ;;  %9378 = vmatprep.mubr.msk.bf16.mxu1 %vm14050_vm15, %v13885_v38  ;;  %v3420_v53 = vsel %vm19744_vm7, %v3228_v21, 0.0  ;;  %v14108_v59 = vpack.c.bf16 %v3228_v21, %v3224_v19  ;;  %v2816_v38 = vld [vmem:[%s13665_s25 + $0x268] sm:$0xff]  ;;  %v3227_v42 = vmax.f32 %v3099_v15, 0.0  ;;  %vm19745_vm6 = vmmov %vm19742_vm8 }
 0x38d   : > { %3544 = vst [vmem:[%s11212_s24 + $0x1c8] sm:$0xff] %v3416_v6  ;;  %4649 = vmatpush1.bf16.msra.mxu0 %v10490_v35  ;;  %5035 = vmatpush1.bf16.msra.mxu1 %v10493_v27  ;;  %3548 = vst [vmem:[%s11212_s24 + $0x1e8] sm:$0xff] %v3420_v53  ;;  %v3415_v28 = vsel %vm19745_vm6, %v3223_v54, 0.0  ;;  %v3232_v58 = vmax.f32 %v3104_v2, 0.0  ;;  %v2957_v55 = vmul.f32 %v13686_v22, %v2807_v44  ;;  %v3236_v19 = vmax.f32 %v3108_v30, 0.0  ;;  %v2811_v27 = vld [vmem:[%s13665_s25 + $0x240] sm:$0xff] }
 0x38e   : > { %4650 = vmatprep.subr.bf16.mxu0 %v10498_v5  ;;  %5036 = vmatprep.subr.bf16.mxu1 %v10501_v62  ;;  %3543 = vst [vmem:[%s11212_s24 + $0x1c0] sm:$0xff] %v3415_v28  ;;  %v3103_v1 = vadd.f32 %v13688_v31, %v2953_v11  ;;  %v2962_v51 = vmul.f32 %v13676_v47, %v2812_v63  ;;  %vm19746_vm13 = vcmp.lt.s32.totalorder %v19714_v48, 384  ;;  %vm19747_vm12 = vcmp.lt.s32.totalorder %v19716_v8, 384  ;;  %v10502_v62 = vld [vmem:[%s18690_s2 + $0x2c0] ss:$16 sps:$4 sm:$0xff]   ;;  %vm19751_vm4 = vmmov %vm19744_vm7  ;;  %v19754_v53 = vld [vmem:[#allocation58_spill] sm:$0xff] }
 0x38f   : > { %v2966_v35 = vmul.f32 %v13676_v47, %v2816_v38  ;;  %vm14127_vm5 = vmpackc.low %vm19747_vm12, %vm19746_vm13  ;;  %v19748_v5 = vmov 0  ;;  %v3419_v21 = vsel %vm19751_vm4, %v3227_v42, 0.0  ;;  %v14136_v44 = vpack.c.bf16 %v3227_v42, %v3223_v54  ;;  %v19752_v6 = vld [vmem:[#allocation57_spill] sm:$0xff]  ;;  %v10505_v63 = vld [vmem:[%s18690_s2 + $0x2c8] ss:$16 sps:$4 sm:$0xff]  }
 0x390   : > { %v19749_v5 = vsel %vm14127_vm5, 4294967295, %v19748_v5  ;;  %vm19753_vm11 = vcmp.lt.s32.totalorder %v19752_v6, 384  ;;  %v3107_v2 = vadd.f32 %v13688_v31, %v2957_v55  ;;  %3547 = vst [vmem:[%s11212_s24 + $0x1e0] sm:$0xff] %v3419_v21  ;;  %vm19755_vm9 = vcmp.lt.s32.totalorder %v19754_v53, 384  ;;  %v2820_v42 = vld [vmem:[%s13665_s25 + $0x288] sm:$0xff] }
 0x391   : > { %19750 = vst [vmem:[#allocation189_spill] sm:$0xff] %v19749_v5  ;;  %v3424_v15 = vsel %vm19753_vm11, %v3232_v58, 0.0  ;;  %v3428_v30 = vsel %vm19755_vm9, %v3236_v19, 0.0  ;;  %v14148_v11 = vpack.c.bf16 %v3236_v19, %v3232_v58  ;;  %v3231_v38 = vmax.f32 %v3103_v1, 0.0  ;;  %v2824_v28 = vld [vmem:[%s13665_s25 + $0x2a8] sm:$0xff]  ;;  %4651 = vmatpush1.bf16.msra.mxu0 %v10496_v18  ;;  %5037 = vmatpush1.bf16.msra.mxu1 %v10499_v41  ;;  %vm19756_vm8 = vmmov %vm19753_vm11 }
 0x392   : > { %3552 = vst [vmem:[%s11212_s24 + $0x208] sm:$0xff] %v3424_v15  ;;  %v3112_v54 = vadd.f32 %v13678_v14, %v2962_v51  ;;  %v10510_v55 = vld [vmem:[%s18690_s2 + $0x2e4] ss:$16 sps:$4 sm:$0xff]   ;;  %3556 = vst [vmem:[%s11212_s24 + $0x228] sm:$0xff] %v3428_v30  ;;  %v3235_v21 = vmax.f32 %v3107_v2, 0.0  ;;  %v3116_v43 = vadd.f32 %v13678_v14, %v2966_v35  ;;  %v2961_v58 = vmul.f32 %v13686_v22, %v2811_v27  ;;  %v2848_v8 = vld [vmem:[%s13665_s25 + $0x368] sm:$0xff] }
 0x393   : > { %v2965_v19 = vmul.f32 %v13686_v22, %v2815_v13  ;;  %4652 = vmatprep.subr.bf16.mxu0 %v10504_v10  ;;  %5038 = vmatprep.subr.bf16.mxu1 %v10507_v56  ;;  %v10513_v18 = vld [vmem:[%s18690_s2 + $0x2ec] ss:$16 sps:$4 sm:$0xff]   ;;  %v3423_v41 = vsel %vm19756_vm8, %v3231_v38, 0.0  ;;  %v2970_v51 = vmul.f32 %v13676_v47, %v2820_v42  ;;  %v2974_v35 = vmul.f32 %v13676_v47, %v2824_v28  ;;  %v2819_v15 = vld [vmem:[%s13665_s25 + $0x280] sm:$0xff]  ;;  %v10511_v56 = vld [vmem:[%s18690_s2 + $0x2e8] ss:$16 sps:$4 sm:$0xff]  }
 0x394   : > { %v3240_v1 = vmax.f32 %v3112_v54, 0.0  ;;  %9189 = vmatmul.mubr.msk.bf16.gmra.mrb[12].mxu0 %vm14050_vm15, %v13904_v37  ;;  %9381 = vmatmul.mubr.msk.bf16.gmra.mrb[12].mxu1 %vm14050_vm15, %v13904_v37  ;;  %v10508_v10 = vld [vmem:[%s18690_s2 + $0x2e0] ss:$16 sps:$4 sm:$0xff]   ;;  %vm19757_vm7 = vmmov %vm19755_vm9  ;;  %3551 = vst [vmem:[%s11212_s24 + $0x200] sm:$0xff] %v3423_v41  ;;  %v14183_v13 = vpack.c.bf16 %v3235_v21, %v3231_v38  ;;  %v3244_v2 = vmax.f32 %v3116_v43, 0.0  ;;  %v3111_v30 = vadd.f32 %v13688_v31, %v2961_v58  ;;  %v2828_v58 = vld [vmem:[%s13665_s25 + $0x2c8] sm:$0xff] }
 0x395   : > { %v3427_v27 = vsel %vm19757_vm7, %v3235_v21, 0.0  ;;  %v2823_v37 = vld [vmem:[%s13665_s25 + $0x2a0] sm:$0xff]  ;;  %9192 = vmatprep.mubr.msk.bf16.mxu0 %vm14127_vm5, %v13926_v17  ;;  %9384 = vmatprep.mubr.msk.bf16.mxu1 %vm14127_vm5, %v13926_v17  ;;  %v3115_v42 = vadd.f32 %v13688_v31, %v2965_v19  ;;  %v3120_v28 = vadd.f32 %v13678_v14, %v2970_v51  ;;  %v3124_v21 = vadd.f32 %v13678_v14, %v2974_v35  ;;  %v2832_v41 = vld [vmem:[%s13665_s25 + $0x2e8] sm:$0xff] }
 0x396   : > { %3555 = vst [vmem:[%s11212_s24 + $0x220] sm:$0xff] %v3427_v27  ;;  %v10516_v54 = vld [vmem:[%s18690_s2 + $0x304] ss:$16 sps:$4 sm:$0xff]   ;;  %v19758_v38 = vld [vmem:[#allocation59_spill] sm:$0xff]  ;;  %4653 = vmatpush1.bf16.msra.mxu0 %v10502_v62  ;;  %5039 = vmatpush1.bf16.msra.mxu1 %v10505_v63  ;;  %v14210_v24 = vpack.c.bf16 %v3244_v2, %v3240_v1  ;;  %v3239_v19 = vmax.f32 %v3111_v30, 0.0  ;;  %v2969_v51 = vmul.f32 %v13686_v22, %v2819_v15  ;;  %vm19763_vm4 = vcmp.lt.s32.totalorder %v19724_v26, 384 }
 0x397   : > { %vm19759_vm6 = vcmp.lt.s32.totalorder %v19758_v38, 384  ;;  %v10519_v17 = vld [vmem:[%s18690_s2 + $0x30c] ss:$16 sps:$4 sm:$0xff]   ;;  %v19760_v27 = vld [vmem:[#allocation60_spill] sm:$0xff]  ;;  %4654 = vmatprep.subr.bf16.mxu0 %v10510_v55  ;;  %5040 = vmatprep.subr.bf16.mxu1 %v10513_v18  ;;  %v3243_v62 = vmax.f32 %v3115_v42, 0.0  ;;  %v3248_v63 = vmax.f32 %v3120_v28, 0.0  ;;  %v2973_v7 = vmul.f32 %v13686_v22, %v2823_v37 }
 0x398   : > { %v3432_v43 = vsel %vm19759_vm6, %v3240_v1, 0.0  ;;  %vm19761_vm13 = vcmp.lt.s32.totalorder %v19760_v27, 384  ;;  %v3252_v35 = vmax.f32 %v3124_v21, 0.0  ;;  %vm19762_vm12 = vmmov %vm19759_vm6  ;;  %v3119_v1 = vadd.f32 %v13688_v31, %v2969_v51  ;;  %v10514_v15 = vld [vmem:[%s18690_s2 + $0x300] ss:$16 sps:$4 sm:$0xff]   ;;  %v19771_v21 = vld [vmem:[#allocation62_spill] sm:$0xff] }
 0x399   : > { %v3436_v61 = vsel %vm19761_vm13, %v3244_v2, 0.0  ;;  %3560 = vst [vmem:[%s11212_s24 + $0x248] sm:$0xff] %v3432_v43  ;;  %v3431_v43 = vsel %vm19762_vm12, %v3239_v19, 0.0  ;;  %v2978_v2 = vmul.f32 %v13676_v47, %v2828_v58  ;;  %v2982_v55 = vmul.f32 %v13676_v47, %v2832_v41  ;;  %vm19768_vm8 = vmmov %vm19761_vm13  ;;  %v19769_v42 = vld [vmem:[#allocation61_spill] sm:$0xff]  ;;  %v10517_v51 = vld [vmem:[%s18690_s2 + $0x308] ss:$16 sps:$4 sm:$0xff]  }
 0x39a   : > { %3564 = vst [vmem:[%s11212_s24 + $0x268] sm:$0xff] %v3436_v61  ;;  %v2831_v61 = vld [vmem:[%s13665_s25 + $0x2e0] sm:$0xff]  ;;  %vm19764_vm11 = vcmp.lt.s32.totalorder %v19726_v29, 384  ;;  %v19765_v18 = vmov 0  ;;  %v3435_v30 = vsel %vm19768_vm8, %v3243_v62, 0.0  ;;  %3559 = vst [vmem:[%s11212_s24 + $0x240] sm:$0xff] %v3431_v43  ;;  %v14236_v37 = vpack.c.bf16 %v3243_v62, %v3239_v19  ;;  %4655 = vmatpush1.bf16.msra.mxu0 %v10508_v10  ;;  %5041 = vmatpush1.bf16.msra.mxu1 %v10511_v56 }
 0x39b   : > { %vm14226_vm9 = vmpackc.low %vm19764_vm11, %vm19763_vm4  ;;  %vm19770_vm7 = vcmp.lt.s32.totalorder %v19769_v42, 384  ;;  %vm19772_vm6 = vcmp.lt.s32.totalorder %v19771_v21, 384  ;;  %v2836_v41 = vld [vmem:[%s13665_s25 + $0x308] sm:$0xff]  ;;  %3563 = vst [vmem:[%s11212_s24 + $0x260] sm:$0xff] %v3435_v30  ;;  %v10522_v43 = vld [vmem:[%s18690_s2 + $0x324] ss:$16 sps:$4 sm:$0xff]   ;;  %v14252_v19 = vpack.c.bf16 %v3252_v35, %v3248_v63  ;;  %v3123_v62 = vadd.f32 %v13688_v31, %v2973_v7  ;;  %4656 = vmatprep.subr.bf16.mxu0 %v10516_v54  ;;  %5042 = vmatprep.subr.bf16.mxu1 %v10519_v17 }
 0x39c   : > { %v19766_v18 = vsel %vm14226_vm9, 4294967295, %v19765_v18  ;;  %v3440_v28 = vsel %vm19770_vm7, %v3248_v63, 0.0  ;;  %v3444_v58 = vsel %vm19772_vm6, %v3252_v35, 0.0  ;;  %v3247_v29 = vmax.f32 %v3119_v1, 0.0  ;;  %v2840_v10 = vld [vmem:[%s13665_s25 + $0x328] sm:$0xff]  ;;  %9195 = vmatmul.mubr.msk.bf16.gmra.mrb[16].mxu0 %vm14127_vm5, %v13975_v49  ;;  %9387 = vmatmul.mubr.msk.bf16.gmra.mrb[16].mxu1 %vm14127_vm5, %v13975_v49  ;;  %vm19773_vm13 = vmmov %vm19770_vm7 }
 0x39d   : > { %19767 = vst [vmem:[#allocation190_spill] sm:$0xff] %v19766_v18  ;;  %3568 = vst [vmem:[%s11212_s24 + $0x288] sm:$0xff] %v3440_v28  ;;  %v3128_v26 = vadd.f32 %v13678_v14, %v2978_v2  ;;  %v10525_v56 = vld [vmem:[%s18690_s2 + $0x32c] ss:$16 sps:$4 sm:$0xff]   ;;  %v3132_v30 = vadd.f32 %v13678_v14, %v2982_v55  ;;  %v2977_v28 = vmul.f32 %v13686_v22, %v2827_v0  ;;  %v10520_v7 = vld [vmem:[%s18690_s2 + $0x320] ss:$16 sps:$4 sm:$0xff]   ;;  %9198 = vmatprep.mubr.msk.bf16.mxu0 %vm14226_vm9, %v13996_v3 }
 0x39e   : > { %3572 = vst [vmem:[%s11212_s24 + $0x2a8] sm:$0xff] %v3444_v58  ;;  %v2981_v63 = vmul.f32 %v13686_v22, %v2831_v61  ;;  %v10523_v0 = vld [vmem:[%s18690_s2 + $0x328] ss:$16 sps:$4 sm:$0xff]   ;;  %v3251_v54 = vmax.f32 %v3123_v62, 0.0  ;;  %v3439_v17 = vsel %vm19773_vm13, %v3247_v29, 0.0  ;;  %v2986_v1 = vmul.f32 %v13676_v47, %v2836_v41  ;;  %9390 = vmatprep.mubr.msk.bf16.mxu1 %vm14226_vm9, %v13996_v3  ;;  %v2835_v61 = vld [vmem:[%s13665_s25 + $0x300] sm:$0xff]  ;;  %4657 = vmatpush1.bf16.msra.mxu0 %v10514_v15  ;;  %vm19774_vm12 = vmmov %vm19772_vm6 }
 0x39f   : > { %v3256_v35 = vmax.f32 %v3128_v26, 0.0  ;;  %3567 = vst [vmem:[%s11212_s24 + $0x280] sm:$0xff] %v3439_v17  ;;  %v3260_v49 = vmax.f32 %v3132_v30, 0.0  ;;  %v3127_v2 = vadd.f32 %v13688_v31, %v2977_v28  ;;  %v2990_v26 = vmul.f32 %v13676_v47, %v2840_v10  ;;  %v2839_v58 = vld [vmem:[%s13665_s25 + $0x320] sm:$0xff]  ;;  %5043 = vmatpush1.bf16.msra.mxu1 %v10517_v51  ;;  %4658 = vmatprep.subr.bf16.mxu0 %v10522_v43 }
 0x3a0   : > { %v3131_v55 = vadd.f32 %v13688_v31, %v2981_v63  ;;  %v3443_v41 = vsel %vm19774_vm12, %v3251_v54, 0.0  ;;  %v14292_v62 = vpack.c.bf16 %v3251_v54, %v3247_v29  ;;  %v10528_v3 = vld [vmem:[%s18690_s2 + $0x344] ss:$16 sps:$4 sm:$0xff]   ;;  %v19776_v30 = vld [vmem:[#allocation63_spill] sm:$0xff]  ;;  %v3136_v10 = vadd.f32 %v13678_v14, %v2986_v1  ;;  %v2844_v63 = vld [vmem:[%s13665_s25 + $0x348] sm:$0xff]  ;;  %5044 = vmatprep.subr.bf16.mxu1 %v10525_v56 }
 0x3a1   : > { %vm19777_vm4 = vcmp.lt.s32.totalorder %v19776_v30, 384  ;;  %3571 = vst [vmem:[%s11212_s24 + $0x2a0] sm:$0xff] %v3443_v41  ;;  %v10531_v29 = vld [vmem:[%s18690_s2 + $0x34c] ss:$16 sps:$4 sm:$0xff]   ;;  %v19778_v15 = vld [vmem:[#allocation64_spill] sm:$0xff]  ;;  %v14308_v54 = vpack.c.bf16 %v3260_v49, %v3256_v35  ;;  %v3255_v17 = vmax.f32 %v3127_v2, 0.0  ;;  %v3140_v43 = vadd.f32 %v13678_v14, %v2990_v26 }
 0x3a2   : > { %19775 = vst [vmem:[#allocation191_spill] sm:$0xff] %v14292_v62  ;;  %v3448_v28 = vsel %vm19777_vm4, %v3256_v35, 0.0  ;;  %vm19779_vm11 = vcmp.lt.s32.totalorder %v19778_v15, 384  ;;  %v3259_v5 = vmax.f32 %v3131_v55, 0.0  ;;  %v10526_v1 = vld [vmem:[%s18690_s2 + $0x340] ss:$16 sps:$4 sm:$0xff]   ;;  %v2985_v41 = vmul.f32 %v13686_v22, %v2835_v61  ;;  %vm19780_vm8 = vmmov %vm19777_vm4  ;;  %4659 = vmatpush1.bf16.msra.mxu0 %v10520_v7 }
 0x3a3   : > { %v3452_v51 = vsel %vm19779_vm11, %v3260_v49, 0.0  ;;  %3576 = vst [vmem:[%s11212_s24 + $0x2c8] sm:$0xff] %v3448_v28  ;;  %v3264_v56 = vmax.f32 %v3136_v10, 0.0  ;;  %v2989_v62 = vmul.f32 %v13686_v22, %v2839_v58  ;;  %v2843_v28 = vld [vmem:[%s13665_s25 + $0x340] sm:$0xff]  ;;  %v10529_v35 = vld [vmem:[%s18690_s2 + $0x348] ss:$16 sps:$4 sm:$0xff]   ;;  %vm19781_vm7 = vmmov %vm19779_vm11  ;;  %v2994_v26 = vmul.f32 %v13676_v47, %v2844_v63  ;;  %5045 = vmatpush1.bf16.msra.mxu1 %v10523_v0  ;;  %4660 = vmatprep.subr.bf16.mxu0 %v10528_v3 }
 0x3a4   : > { %3580 = vst [vmem:[%s11212_s24 + $0x2e8] sm:$0xff] %v3452_v51  ;;  %v3447_v49 = vsel %vm19780_vm8, %v3255_v17, 0.0  ;;  %v3451_v2 = vsel %vm19781_vm7, %v3259_v5, 0.0  ;;  %v14326_v55 = vpack.c.bf16 %v3259_v5, %v3255_v17  ;;  %vm19783_vm6 = vcmp.lt.s32.totalorder %v19730_v34, 384  ;;  %v10534_v5 = vld [vmem:[%s18690_s2 + $0x364] ss:$16 sps:$4 sm:$0xff]   ;;  %5046 = vmatprep.subr.bf16.mxu1 %v10531_v29  ;;  %9201 = vmatmul.mubr.msk.bf16.gmra.mrb[20].mxu0 %vm14226_vm9, %v14018_v33 }
 0x3a5   : > { %vm19784_vm13 = vcmp.lt.s32.totalorder %v19732_v40, 384  ;;  %v19785_v61 = vmov 0  ;;  %3575 = vst [vmem:[%s11212_s24 + $0x2c0] sm:$0xff] %v3447_v49  ;;  %3579 = vst [vmem:[%s11212_s24 + $0x2e0] sm:$0xff] %v3451_v2  ;;  %v3268_v58 = vmax.f32 %v3140_v43, 0.0  ;;  %v19788_v10 = vld [vmem:[#allocation65_spill] sm:$0xff]  ;;  %v3135_v51 = vadd.f32 %v13688_v31, %v2985_v41  ;;  %9393 = vmatmul.mubr.msk.bf16.gmra.mrb[20].mxu1 %vm14226_vm9, %v14018_v33 }
 0x3a6   : > { %19782 = vst [vmem:[#allocation192_spill] sm:$0xff] %v14326_v55  ;;  %vm14333_vm12 = vmpackc.low %vm19784_vm13, %vm19783_vm6  ;;  %vm19789_vm4 = vcmp.lt.s32.totalorder %v19788_v10, 384  ;;  %v3139_v17 = vadd.f32 %v13688_v31, %v2989_v62  ;;  %v2847_v55 = vld [vmem:[%s13665_s25 + $0x360] sm:$0xff]  ;;  %v10537_v7 = vld [vmem:[%s18690_s2 + $0x36c] ss:$16 sps:$4 sm:$0xff]   ;;  %v2998_v0 = vmul.f32 %v13676_v47, %v2848_v8  ;;  %v3144_v43 = vadd.f32 %v13678_v14, %v2994_v26  ;;  %4661 = vmatpush1.bf16.msra.mxu0 %v10526_v1 }
 0x3a7   : > { %v19786_v61 = vsel %vm14333_vm12, 4294967295, %v19785_v61  ;;  %v3456_v63 = vsel %vm19789_vm4, %v3264_v56, 0.0  ;;  %v2993_v49 = vmul.f32 %v13686_v22, %v2843_v28  ;;  %v2852_v41 = vld [vmem:[%s13665_s25 + $0x388] sm:$0xff]  ;;  %v10532_v62 = vld [vmem:[%s18690_s2 + $0x360] ss:$16 sps:$4 sm:$0xff]   ;;  %v19790_v3 = vld [vmem:[#allocation66_spill] sm:$0xff]  ;;  %v14366_v29 = vpack.c.bf16 %v3268_v58, %v3264_v56  ;;  %9204 = vmatprep.mubr.msk.bf16.mxu0 %vm14333_vm12, %v14040_v32  ;;  %9396 = vmatprep.mubr.msk.bf16.mxu1 %vm14333_vm12, %v14040_v32 }
 0x3a8   : > { %19787 = vst [vmem:[#allocation193_spill] sm:$0xff] %v19786_v61  ;;  %3584 = vst [vmem:[%s11212_s24 + $0x308] sm:$0xff] %v3456_v63  ;;  %vm19791_vm11 = vcmp.lt.s32.totalorder %v19790_v3, 384  ;;  %v3263_v28 = vmax.f32 %v3135_v51, 0.0  ;;  %v3267_v2 = vmax.f32 %v3139_v17, 0.0  ;;  %v2856_v26 = vld [vmem:[%s13665_s25 + $0x3a8] sm:$0xff]  ;;  %v3148_v33 = vadd.f32 %v13678_v14, %v2998_v0  ;;  %5047 = vmatpush1.bf16.msra.mxu1 %v10529_v35  ;;  %4662 = vmatprep.subr.bf16.mxu0 %v10534_v5 }
 0x3a9   : > { %v3460_v8 = vsel %vm19791_vm11, %v3268_v58, 0.0  ;;  %19792 = vst [vmem:[#allocation194_spill] sm:$0xff] %v14366_v29  ;;  %v2851_v63 = vld [vmem:[%s13665_s25 + $0x380] sm:$0xff]  ;;  %v3272_v18 = vmax.f32 %v3144_v43, 0.0  ;;  %v2997_v56 = vmul.f32 %v13686_v22, %v2847_v55  ;;  %v3143_v58 = vadd.f32 %v13688_v31, %v2993_v49  ;;  %v10535_v17 = vld [vmem:[%s18690_s2 + $0x368] ss:$16 sps:$4 sm:$0xff]   ;;  %vm19793_vm8 = vmmov %vm19789_vm4  ;;  %5048 = vmatprep.subr.bf16.mxu1 %v10537_v7 }
 0x3aa   : > { %3588 = vst [vmem:[%s11212_s24 + $0x328] sm:$0xff] %v3460_v8  ;;  %v2855_v51 = vld [vmem:[%s13665_s25 + $0x3a0] sm:$0xff]  ;;  %v3455_v32 = vsel %vm19793_vm8, %v3263_v28, 0.0  ;;  %vm19794_vm7 = vmmov %vm19791_vm11  ;;  %v14388_v43 = vpack.c.bf16 %v3267_v2, %v3263_v28  ;;  %v3002_v1 = vmul.f32 %v13676_v47, %v2852_v41  ;;  %v10543_v35 = vld [vmem:[%s18690_s2 + $0x38c] ss:$16 sps:$4 sm:$0xff]   ;;  %v3276_v49 = vmax.f32 %v3148_v33, 0.0  ;;  %4663 = vmatpush1.bf16.msra.mxu0 %v10532_v62 }
 0x3ab   : > { %v3459_v0 = vsel %vm19794_vm7, %v3267_v2, 0.0  ;;  %v10540_v55 = vld [vmem:[%s18690_s2 + $0x384] ss:$16 sps:$4 sm:$0xff]   ;;  %3583 = vst [vmem:[%s11212_s24 + $0x300] sm:$0xff] %v3455_v32  ;;  %v19796_v8 = vld [vmem:[#allocation67_spill] sm:$0xff]  ;;  %v3147_v2 = vadd.f32 %v13688_v31, %v2997_v56  ;;  %v2860_v29 = vld [vmem:[%s13665_s25 + $0x3c8] sm:$0xff]  ;;  %v3006_v5 = vmul.f32 %v13676_v47, %v2856_v26  ;;  %v3001_v41 = vmul.f32 %v13686_v22, %v2851_v63 }
 0x3ac   : > { %19795 = vst [vmem:[#allocation195_spill] sm:$0xff] %v14388_v43  ;;  %3587 = vst [vmem:[%s11212_s24 + $0x320] sm:$0xff] %v3459_v0  ;;  %vm19797_vm6 = vcmp.lt.s32.totalorder %v19796_v8, 384  ;;  %v3271_v43 = vmax.f32 %v3143_v58, 0.0  ;;  %v3152_v7 = vadd.f32 %v13678_v14, %v3002_v1  ;;  %v3005_v32 = vmul.f32 %v13686_v22, %v2855_v51  ;;  %v2864_v0 = vld [vmem:[%s13665_s25 + $0x3e8] sm:$0xff]  ;;  %5049 = vmatpush1.bf16.msra.mxu1 %v10535_v17  ;;  %v2750_v61 = vld [vmem:[%s13665_s25 + $0x58] sm:$0xff] }
 0x3ad   : > { %v3464_v28 = vsel %vm19797_vm6, %v3272_v18, 0.0  ;;  %vm19798_vm13 = vcmp.lt.s32.totalorder %v19741_v16, 384  ;;  %vm19799_vm4 = vcmp.lt.s32.totalorder %v19743_v60, 384  ;;  %v19800_v33 = vmov 0  ;;  %v10538_v26 = vld [vmem:[%s18690_s2 + $0x380] ss:$16 sps:$4 sm:$0xff]   ;;  %vm19805_vm7 = vmmov %vm19797_vm6  ;;  %4664 = vmatprep.subr.bf16.mxu0 %v10540_v55  ;;  %5050 = vmatprep.subr.bf16.mxu1 %v10543_v35 }
 0x3ae   : > { %3592 = vst [vmem:[%s11212_s24 + $0x348] sm:$0xff] %v3464_v28  ;;  %vm14413_vm11 = vmpackc.low %vm19799_vm4, %vm19798_vm13  ;;  %v19803_v56 = vld [vmem:[#allocation68_spill] sm:$0xff]  ;;  %v14422_v63 = vpack.c.bf16 %v3276_v49, %v3272_v18  ;;  %v3275_v51 = vmax.f32 %v3147_v2, 0.0  ;;  %v3463_v1 = vsel %vm19805_vm7, %v3271_v43, 0.0  ;;  %v3156_v60 = vadd.f32 %v13678_v14, %v3006_v5  ;;  %v10549_v5 = vld [vmem:[%s18690_s2 + $0x3ac] ss:$16 sps:$4 sm:$0xff]   ;;  %9207 = vmatmul.mubr.msk.bf16.gmra.mrb[24].mxu0 %vm14333_vm12, %v14071_v50  ;;  %9399 = vmatmul.mubr.msk.bf16.gmra.mrb[24].mxu1 %vm14333_vm12, %v14071_v50 }
 0x3af   : > { %v19801_v33 = vsel %vm14413_vm11, 4294967295, %v19800_v33  ;;  %vm19804_vm8 = vcmp.lt.s32.totalorder %v19803_v56, 384  ;;  %v10541_v28 = vld [vmem:[%s18690_s2 + $0x388] ss:$16 sps:$4 sm:$0xff]   ;;  %3591 = vst [vmem:[%s11212_s24 + $0x340] sm:$0xff] %v3463_v1  ;;  %v3280_v16 = vmax.f32 %v3152_v7, 0.0  ;;  %v3151_v40 = vadd.f32 %v13688_v31, %v3001_v41  ;;  %9210 = vmatprep.mubr.msk.bf16.mxu0 %vm14413_vm11, %v14108_v59  ;;  %9402 = vmatprep.mubr.msk.bf16.mxu1 %vm14413_vm11, %v14108_v59 }
 0x3b0   : > { %19802 = vst [vmem:[#allocation196_spill] sm:$0xff] %v19801_v33  ;;  %v3468_v58 = vsel %vm19804_vm8, %v3276_v49, 0.0  ;;  %v3155_v18 = vadd.f32 %v13688_v31, %v3005_v32  ;;  %v2859_v49 = vld [vmem:[%s13665_s25 + $0x3c0] sm:$0xff]  ;;  %vm19806_vm6 = vmmov %vm19804_vm8  ;;  %v14437_v17 = vpack.c.bf16 %v3275_v51, %v3271_v43  ;;  %v3010_v7 = vmul.f32 %v13676_v47, %v2860_v29  ;;  %v19807_v41 = vld [vmem:[#allocation69_spill] sm:$0xff]  ;;  %4665 = vmatpush1.bf16.msra.mxu0 %v10538_v26 }
 0x3b1   : > { %3596 = vst [vmem:[%s11212_s24 + $0x368] sm:$0xff] %v3468_v58  ;;  %v3467_v62 = vsel %vm19806_vm6, %v3275_v51, 0.0  ;;  %v10546_v2 = vld [vmem:[%s18690_s2 + $0x3a4] ss:$16 sps:$4 sm:$0xff]   ;;  %v3014_v55 = vmul.f32 %v13676_v47, %v2864_v0  ;;  %v10544_v43 = vld [vmem:[%s18690_s2 + $0x3a0] ss:$16 sps:$4 sm:$0xff]   ;;  %v3009_v58 = vmul.f32 %v13686_v22, %v2859_v49  ;;  %5051 = vmatpush1.bf16.msra.mxu1 %v10541_v28 }
 0x3b2   : > { %3595 = vst [vmem:[%s11212_s24 + $0x360] sm:$0xff] %v3467_v62  ;;  %v3284_v35 = vmax.f32 %v3156_v60, 0.0  ;;  %vm19808_vm13 = vcmp.lt.s32.totalorder %v19807_v41, 384  ;;  %v3279_v47 = vmax.f32 %v3151_v40, 0.0  ;;  %v3283_v32 = vmax.f32 %v3155_v18, 0.0  ;;  %v2863_v0 = vld [vmem:[%s13665_s25 + $0x3e0] sm:$0xff]  ;;  %4666 = vmatprep.subr.bf16.mxu0 %v10546_v2  ;;  %5052 = vmatprep.subr.bf16.mxu1 %v10549_v5 }
 0x3b3   : > { %v3472_v29 = vsel %vm19808_vm13, %v3280_v16, 0.0  ;;  %v10547_v50 = vld [vmem:[%s18690_s2 + $0x3a8] ss:$16 sps:$4 sm:$0xff]   ;;  %v3160_v60 = vadd.f32 %v13678_v14, %v3010_v7  ;;  %v3164_v40 = vadd.f32 %v13678_v14, %v3014_v55  ;;  %vm19811_vm8 = vmmov %vm19808_vm13  ;;  %v10552_v14 = vld [vmem:[%s18690_s2 + $0x3c4] ss:$16 sps:$4 sm:$0xff]   ;;  %v3013_v55 = vmul.f32 %v13686_v22, %v2863_v0 }
 0x3b4   : > { %3600 = vst [vmem:[%s11212_s24 + $0x388] sm:$0xff] %v3472_v29  ;;  %v2742_v51 = vld [vmem:[%s13665_s25 + $0x18] sm:$0xff]  ;;  %v14477_v62 = vpack.c.bf16 %v3284_v35, %v3280_v16  ;;  %v3471_v29 = vsel %vm19811_vm8, %v3279_v47, 0.0  ;;  %v14489_v16 = vpack.c.bf16 %v3283_v32, %v3279_v47  ;;  %v3159_v2 = vadd.f32 %v13688_v31, %v3009_v58  ;;  %v19817_v0 = vld [vmem:[#allocation72_spill] sm:$0xff]  ;;  %4667 = vmatpush1.bf16.msra.mxu0 %v10544_v43 }
 0x3b5   : > { %v2746_v1 = vld [vmem:[%s13665_s25 + $0x38] sm:$0xff]  ;;  %3599 = vst [vmem:[%s11212_s24 + $0x380] sm:$0xff] %v3471_v29  ;;  %v3288_v28 = vmax.f32 %v3160_v60, 0.0  ;;  %v3292_v49 = vmax.f32 %v3164_v40, 0.0  ;;  %v2892_v5 = vmul.f32 %v13956_v20, %v2742_v51  ;;  %v10562_v29 = vld [vmem:[#allocation5] sm:$0xf]  ;;  %v3163_v51 = vadd.f32 %v13688_v31, %v3013_v55  ;;  %5053 = vmatpush1.bf16.msra.mxu1 %v10547_v50  ;;  %4668 = vmatprep.subr.bf16.mxu0 %v10552_v14 }
 0x3b6   : > { %v19809_v18 = vld [vmem:[#allocation70_spill] sm:$0xff]  ;;  %19813 = vst [vmem:[#allocation197_spill] sm:$0xff] %v14489_v16  ;;  %v10555_v26 = vld [vmem:[%s18690_s2 + $0x3cc] ss:$16 sps:$4 sm:$0xff]   ;;  %v19814_v47 = vsub.s32 3, %v19688_v9  ;;  %vm19818_vm13 = vcmp.lt.s32.totalorder %v19817_v0, 384  ;;  %9213 = vmatmul.mubr.msk.bf16.gmra.mrb[28].mxu0 %vm14413_vm11, %v14136_v44  ;;  %9405 = vmatmul.mubr.msk.bf16.gmra.mrb[28].mxu1 %vm14413_vm11, %v14136_v44 }
 0x3b7   : > { %vm19810_vm4 = vcmp.lt.s32.totalorder %v19809_v18, 384  ;;  %v2754_v60 = vld [vmem:[%s13665_s25 + $0x78] sm:$0xff]  ;;  %v3484_v58 = vsel %vm19818_vm13, %v3292_v49, 0.0  ;;  %v14510_v16 = vpack.c.bf16 %v3292_v49, %v3288_v28  ;;  %vm19820_vm8 = vcmp.lt.s32.totalorder %v19754_v53, 384  ;;  %5054 = vmatprep.subr.bf16.mxu1 %v10555_v26  ;;  %v10558_v50 = vld [vmem:[%s18690_s2 + $0x3e4] ss:$16 sps:$4 sm:$0xff]  }
 0x3b8   : > { %v3476_v59 = vsel %vm19810_vm4, %v3284_v35, 0.0  ;;  %vm19812_vm7 = vmmov %vm19810_vm4  ;;  %v2741_v35 = vld [vmem:[%s13665_s25 + $0x10] sm:$0xff]  ;;  %v19815_v40 = vld [vmem:[#allocation71_spill] sm:$0xff]  ;;  %vm19819_vm4 = vcmp.lt.s32.totalorder %v19752_v6, 384  ;;  %3612 = vst [vmem:[%s11212_s24 + $0x3e8] sm:$0xff] %v3484_v58  ;;  %v3287_v31 = vmax.f32 %v3159_v2, 0.0 }
 0x3b9   : > { %v3475_v7 = vsel %vm19812_vm7, %v3283_v32, 0.0  ;;  %3604 = vst [vmem:[%s11212_s24 + $0x3a8] sm:$0xff] %v3476_v59  ;;  %v2896_v59 = vmul.f32 %v13956_v20, %v2746_v1  ;;  %v14501_v32 = vrot.slane %v10562_v29, %v19814_v47  ;;  %vm19816_vm6 = vcmp.lt.s32.totalorder %v19815_v40, 384  ;;  %vm14517_vm7 = vmpackc.low %vm19820_vm8, %vm19819_vm4  ;;  %v10550_v29 = vld [vmem:[%s18690_s2 + $0x3c0] ss:$16 sps:$4 sm:$0xff]   ;;  %v2762_v9 = vld [vmem:[%s13665_s25 + $0xb8] sm:$0xff] }
 0x3ba   : > { %3603 = vst [vmem:[%s11212_s24 + $0x3a0] sm:$0xff] %v3475_v7  ;;  %v2745_v7 = vld [vmem:[%s13665_s25 + $0x30] sm:$0xff]  ;;  %v3480_v22 = vsel %vm19816_vm6, %v3288_v28, 0.0  ;;  %v10553_v28 = vld [vmem:[%s18690_s2 + $0x3c8] ss:$16 sps:$4 sm:$0xff]   ;;  %v2891_v47 = vmul.f32 %v13702_v23, %v2741_v35  ;;  %v3291_v43 = vmax.f32 %v3163_v51, 0.0  ;;  %9216 = vmatprep.mubr.msk.bf16.mxu0 %vm14517_vm7, %v14148_v11  ;;  %9408 = vmatprep.mubr.msk.bf16.mxu1 %vm14517_vm7, %v14148_v11 }
 0x3bb   : > { %3608 = vst [vmem:[%s11212_s24 + $0x3c8] sm:$0xff] %v3480_v22  ;;  %v3042_v49 = vadd.f32 %v14501_v32, %v2892_v5  ;;  %v3046_v55 = vadd.f32 %v14501_v32, %v2896_v59  ;;  %v10561_v22 = vld [vmem:[%s18690_s2 + $0x3ec] ss:$16 sps:$4 sm:$0xff]   ;;  %v2895_v2 = vmul.f32 %v13702_v23, %v2745_v7  ;;  %v2900_v5 = vmul.f32 %v13956_v20, %v2750_v61  ;;  %v10556_v61 = vld [vmem:[%s18690_s2 + $0x3e0] ss:$16 sps:$4 sm:$0xff]  }
 0x3bc   : > { %v2904_v59 = vmul.f32 %v13956_v20, %v2754_v60  ;;  %v3479_v14 = vsel %vm19816_vm6, %v3287_v31, 0.0  ;;  %v3041_v7 = vadd.f32 %v13748_v45, %v2891_v47  ;;  %v2749_v60 = vld [vmem:[%s13665_s25 + $0x50] sm:$0xff]  ;;  %v3483_v44 = vsel %vm19818_vm13, %v3291_v43, 0.0  ;;  %v2758_v47 = vld [vmem:[%s13665_s25 + $0x98] sm:$0xff]  ;;  %4669 = vmatpush1.bf16.msra.mxu0 %v10550_v29  ;;  %5055 = vmatpush1.bf16.msra.mxu1 %v10553_v28 }
 0x3bd   : > { %v3170_v26 = vmax.f32 %v3042_v49, 0.0  ;;  %v3174_v35 = vmax.f32 %v3046_v55, 0.0  ;;  %3607 = vst [vmem:[%s11212_s24 + $0x3c0] sm:$0xff] %v3479_v14  ;;  %v14563_v58 = vpack.c.bf16 %v3291_v43, %v3287_v31  ;;  %v3045_v51 = vadd.f32 %v13748_v45, %v2895_v2  ;;  %v2753_v55 = vld [vmem:[%s13665_s25 + $0x70] sm:$0xff]  ;;  %3611 = vst [vmem:[%s11212_s24 + $0x3e0] sm:$0xff] %v3483_v44  ;;  %4670 = vmatprep.subr.bf16.mxu0 %v10558_v50 }
 0x3be   : > { %v3050_v49 = vadd.f32 %v14501_v32, %v2900_v5  ;;  %v10559_v11 = vld [vmem:[%s18690_s2 + $0x3e8] ss:$16 sps:$4 sm:$0xff]   ;;  %v3169_v5 = vmax.f32 %v3041_v7, 0.0  ;;  %5056 = vmatprep.subr.bf16.mxu1 %v10561_v22  ;;  %v3054_v28 = vadd.f32 %v14501_v32, %v2904_v59  ;;  %v2899_v44 = vmul.f32 %v13702_v23, %v2749_v60  ;;  %v2757_v22 = vld [vmem:[%s13665_s25 + $0x90] sm:$0xff]  ;;  %9219 = vmatmul.mubr.msk.bf16.gmra.mrb[32].mxu0 %vm14517_vm7, %v14183_v13 }
 0x3bf   : > { %v3362_v31 = vsel %vm522_vm0, %v3170_v26, 0.0  ;;  %v3366_v43 = vsel %vm523_vm1, %v3174_v35, 0.0  ;;  %v14578_v2 = vpack.c.bf16 %v3174_v35, %v3170_v26  ;;  %v3173_v29 = vmax.f32 %v3045_v51, 0.0  ;;  %v2761_v51 = vld [vmem:[%s13665_s25 + $0xb0] sm:$0xff]  ;;  %9411 = vmatmul.mubr.msk.bf16.gmra.mrb[32].mxu1 %vm14517_vm7, %v14183_v13 }
 0x3c0   : > { %3490 = vst [vmem:[%s11212_s24 + $0x18] sm:$0xff] %v3362_v31  ;;  %3494 = vst [vmem:[%s11212_s24 + $0x38] sm:$0xff] %v3366_v43  ;;  %v3178_v14 = vmax.f32 %v3050_v49, 0.0  ;;  %v3361_v33 = vsel %vm522_vm0, %v3169_v5, 0.0  ;;  %v2903_v26 = vmul.f32 %v13702_v23, %v2753_v55  ;;  %v2908_v35 = vmul.f32 %v13956_v20, %v2758_v47  ;;  %4671 = vmatpush1.bf16.msra.mxu0 %v10556_v61  ;;  %v2766_v55 = vld [vmem:[%s13665_s25 + $0xd8] sm:$0xff] }
 0x3c1   : > { %v2912_v50 = vmul.f32 %v13956_v20, %v2762_v9  ;;  %v3365_v59 = vsel %vm523_vm1, %v3173_v29, 0.0  ;;  %3489 = vst [vmem:[%s11212_s24 + $0x10] sm:$0xff] %v3361_v33  ;;  %v14593_v7 = vpack.c.bf16 %v3173_v29, %v3169_v5  ;;  %v3182_v60 = vmax.f32 %v3054_v28, 0.0  ;;  %5057 = vmatpush1.bf16.msra.mxu1 %v10559_v11  ;;  %v2770_v47 = vld [vmem:[%s13665_s25 + $0xf8] sm:$0xff] }
 0x3c2   : > { %v3370_v4 = vsel %vm524_vm2, %v3178_v14, 0.0  ;;  %vm19823_vm0 = vcmp.lt.s32.totalorder %v19758_v38, 384  ;;  %vm19824_vm4 = vcmp.lt.s32.totalorder %v19760_v27, 384  ;;  %3493 = vst [vmem:[%s11212_s24 + $0x30] sm:$0xff] %v3365_v59  ;;  %v3049_v52 = vadd.f32 %v13748_v45, %v2899_v44 }
 0x3c3   : > { %vm14602_vm8 = vmpackc.low %vm19824_vm4, %vm19823_vm0  ;;  %3498 = vst [vmem:[%s11212_s24 + $0x58] sm:$0xff] %v3370_v4  ;;  %v3053_v33 = vadd.f32 %v13748_v45, %v2903_v26  ;;  %v3058_v49 = vadd.f32 %v14501_v32, %v2908_v35  ;;  %vm19827_vm1 = vcmp.lt.s32.totalorder %v19695_v57, 384  ;;  %v14615_v43 = vpack.c.bf16 %v3182_v60, %v3178_v14 }
 0x3c4   : > { %v3374_v31 = vsel %vm19827_vm1, %v3182_v60, 0.0  ;;  %v3062_v5 = vadd.f32 %v14501_v32, %v2912_v50  ;;  %v2907_v61 = vmul.f32 %v13702_v23, %v2757_v22  ;;  %v3177_v11 = vmax.f32 %v3049_v52, 0.0  ;;  %9222 = vmatprep.mubr.msk.bf16.mxu0 %vm14602_vm8, %v14210_v24  ;;  %9414 = vmatprep.mubr.msk.bf16.mxu1 %vm14602_vm8, %v14210_v24  ;;  %v2765_v50 = vld [vmem:[%s13665_s25 + $0xd0] sm:$0xff]  ;;  %vm19828_vm6 = vmmov %vm19827_vm1  ;;  %v2778_v52 = vld [vmem:[%s13665_s25 + $0x138] sm:$0xff] }
 0x3c5   : > { %3502 = vst [vmem:[%s11212_s24 + $0x78] sm:$0xff] %v3374_v31  ;;  %v3181_v29 = vmax.f32 %v3053_v33, 0.0  ;;  %v3186_v28 = vmax.f32 %v3058_v49, 0.0  ;;  %v2911_v14 = vmul.f32 %v13702_v23, %v2761_v51  ;;  %v2916_v26 = vmul.f32 %v13956_v20, %v2766_v55  ;;  %v2769_v22 = vld [vmem:[%s13665_s25 + $0xf0] sm:$0xff]  ;;  %v2774_v51 = vld [vmem:[%s13665_s25 + $0x118] sm:$0xff] }
 0x3c6   : > { %v3190_v13 = vmax.f32 %v3062_v5, 0.0  ;;  %v3057_v44 = vadd.f32 %v13748_v45, %v2907_v61  ;;  %v2920_v35 = vmul.f32 %v13956_v20, %v2770_v47  ;;  %v3369_v59 = vsel %vm524_vm2, %v3177_v11, 0.0  ;;  %9225 = vmatmul.mubr.msk.bf16.gmra.mrb[36].mxu0 %vm14602_vm8, %v14236_v37 }
 0x3c7   : > { %v3373_v60 = vsel %vm19828_vm6, %v3181_v29, 0.0  ;;  %v14642_v4 = vpack.c.bf16 %v3181_v29, %v3177_v11  ;;  %vm19829_vm13 = vcmp.lt.s32.totalorder %v19698_v39, 384  ;;  %3497 = vst [vmem:[%s11212_s24 + $0x50] sm:$0xff] %v3369_v59  ;;  %vm19830_vm0 = vcmp.lt.s32.totalorder %v19700_v25, 384  ;;  %9417 = vmatmul.mubr.msk.bf16.gmra.mrb[36].mxu1 %vm14602_vm8, %v14236_v37 }
 0x3c8   : > { %v3378_v24 = vsel %vm19829_vm13, %v3186_v28, 0.0  ;;  %3501 = vst [vmem:[%s11212_s24 + $0x70] sm:$0xff] %v3373_v60  ;;  %v3382_v33 = vsel %vm19830_vm0, %v3190_v13, 0.0  ;;  %v14653_v49 = vpack.c.bf16 %v3190_v13, %v3186_v28  ;;  %v3061_v36 = vadd.f32 %v13748_v45, %v2911_v14  ;;  %vm19831_vm2 = vmmov %vm19829_vm13 }
 0x3c9   : > { %3506 = vst [vmem:[%s11212_s24 + $0x98] sm:$0xff] %v3378_v24  ;;  %v3185_v57 = vmax.f32 %v3057_v44, 0.0  ;;  %3510 = vst [vmem:[%s11212_s24 + $0xb8] sm:$0xff] %v3382_v33  ;;  %v3066_v55 = vadd.f32 %v14501_v32, %v2916_v26  ;;  %v3070_v47 = vadd.f32 %v14501_v32, %v2920_v35  ;;  %v2915_v31 = vmul.f32 %v13702_v23, %v2765_v50  ;;  %v2773_v35 = vld [vmem:[%s13665_s25 + $0x110] sm:$0xff] }
 0x3ca   : > { %v2919_v5 = vmul.f32 %v13702_v23, %v2769_v22  ;;  %v3189_v61 = vmax.f32 %v3061_v36, 0.0  ;;  %v2924_v29 = vmul.f32 %v13956_v20, %v2774_v51  ;;  %v2928_v28 = vmul.f32 %v13956_v20, %v2778_v52  ;;  %vm19837_vm13 = vmmov %vm19830_vm0  ;;  %v2777_v24 = vld [vmem:[%s13665_s25 + $0x130] sm:$0xff]  ;;  %v2782_v51 = vld [vmem:[%s13665_s25 + $0x158] sm:$0xff] }
 0x3cb   : > { %v3377_v11 = vsel %vm19831_vm2, %v3185_v57, 0.0  ;;  %vm19832_vm4 = vcmp.lt.s32.totalorder %v19769_v42, 384  ;;  %vm19833_vm1 = vcmp.lt.s32.totalorder %v19771_v21, 384  ;;  %v19834_v14 = vmov 0  ;;  %v2786_v52 = vld [vmem:[%s13665_s25 + $0x178] sm:$0xff] }
 0x3cc   : > { %vm14669_vm6 = vmpackc.low %vm19833_vm1, %vm19832_vm4  ;;  %3505 = vst [vmem:[%s11212_s24 + $0x90] sm:$0xff] %v3377_v11  ;;  %v3194_v13 = vmax.f32 %v3066_v55, 0.0  ;;  %v3198_v44 = vmax.f32 %v3070_v47, 0.0  ;;  %v3065_v39 = vadd.f32 %v13748_v45, %v2915_v31  ;;  %v3069_v26 = vadd.f32 %v13748_v45, %v2919_v5 }
 0x3cd   : > { %v19835_v14 = vsel %vm14669_vm6, 4294967295, %v19834_v14  ;;  %v3381_v50 = vsel %vm19837_vm13, %v3189_v61, 0.0  ;;  %v14679_v22 = vpack.c.bf16 %v3189_v61, %v3185_v57  ;;  %v3074_v59 = vadd.f32 %v14501_v32, %v2924_v29  ;;  %9228 = vmatprep.mubr.msk.bf16.mxu0 %vm14669_vm6, %v14252_v19  ;;  %9420 = vmatprep.mubr.msk.bf16.mxu1 %vm14669_vm6, %v14252_v19  ;;  %v2781_v29 = vld [vmem:[%s13665_s25 + $0x150] sm:$0xff] }
 0x3ce   : > { %19836 = vst [vmem:[#allocation198_spill] sm:$0xff] %v19835_v14  ;;  %v3078_v60 = vadd.f32 %v14501_v32, %v2928_v28  ;;  %3509 = vst [vmem:[%s11212_s24 + $0xb0] sm:$0xff] %v3381_v50  ;;  %vm19838_vm0 = vcmp.lt.s32.totalorder %v19708_v12, 384  ;;  %vm19839_vm2 = vcmp.lt.s32.totalorder %v19710_v46, 384  ;;  %v14697_v36 = vpack.c.bf16 %v3198_v44, %v3194_v13  ;;  %v2785_v28 = vld [vmem:[%s13665_s25 + $0x170] sm:$0xff]  ;;  %v2794_v50 = vld [vmem:[%s13665_s25 + $0x1b8] sm:$0xff] }
 0x3cf   : > { %v3386_v25 = vsel %vm19838_vm0, %v3194_v13, 0.0  ;;  %v3390_v33 = vsel %vm19839_vm2, %v3198_v44, 0.0  ;;  %v3193_v57 = vmax.f32 %v3065_v39, 0.0  ;;  %v3197_v37 = vmax.f32 %v3069_v26, 0.0  ;;  %vm19840_vm4 = vmmov %vm19838_vm0  ;;  %v2790_v13 = vld [vmem:[%s13665_s25 + $0x198] sm:$0xff]  ;;  %v19864_v14 = vld [vmem:[#allocation192_spill] sm:$0xff] }
 0x3d0   : > { %3514 = vst [vmem:[%s11212_s24 + $0xd8] sm:$0xff] %v3386_v25  ;;  %3518 = vst [vmem:[%s11212_s24 + $0xf8] sm:$0xff] %v3390_v33  ;;  %v3202_v55 = vmax.f32 %v3074_v59, 0.0  ;;  %v3206_v47 = vmax.f32 %v3078_v60, 0.0  ;;  %v2923_v31 = vmul.f32 %v13702_v23, %v2773_v35  ;;  %v2927_v61 = vmul.f32 %v13702_v23, %v2777_v24  ;;  %v19843_v26 = vld [vmem:[#allocation50_spill] sm:$0xff] }
 0x3d1   : > { %v3385_v5 = vsel %vm19840_vm4, %v3193_v57, 0.0  ;;  %v2932_v11 = vmul.f32 %v13956_v20, %v2782_v51  ;;  %v2936_v19 = vmul.f32 %v13956_v20, %v2786_v52  ;;  %vm19841_vm1 = vmmov %vm19839_vm2  ;;  %v14719_v39 = vpack.c.bf16 %v3197_v37, %v3193_v57 }
 0x3d2   : > { %v3389_v44 = vsel %vm19841_vm1, %v3197_v37, 0.0  ;;  %3513 = vst [vmem:[%s11212_s24 + $0xd0] sm:$0xff] %v3385_v5  ;;  %vm19842_vm13 = vcmp.lt.s32.totalorder %v19714_v48, 384  ;;  %vm19844_vm0 = vcmp.lt.s32.totalorder %v19843_v26, 384  ;;  %v14729_v59 = vpack.c.bf16 %v3206_v47, %v3202_v55  ;;  %v19853_v48 = vld [vmem:[#allocation52_spill] sm:$0xff] }
 0x3d3   : > { %v3394_v12 = vsel %vm19842_vm13, %v3202_v55, 0.0  ;;  %v3398_v35 = vsel %vm19844_vm0, %v3206_v47, 0.0  ;;  %3517 = vst [vmem:[%s11212_s24 + $0xf0] sm:$0xff] %v3389_v44  ;;  %v3073_v60 = vadd.f32 %v13748_v45, %v2923_v31  ;;  %v3077_v46 = vadd.f32 %v13748_v45, %v2927_v61 }
 0x3d4   : > { %3522 = vst [vmem:[%s11212_s24 + $0x118] sm:$0xff] %v3394_v12  ;;  %3526 = vst [vmem:[%s11212_s24 + $0x138] sm:$0xff] %v3398_v35  ;;  %v3082_v24 = vadd.f32 %v14501_v32, %v2932_v11  ;;  %v3086_v51 = vadd.f32 %v14501_v32, %v2936_v19  ;;  %v2931_v52 = vmul.f32 %v13702_v23, %v2781_v29  ;;  %vm19845_vm2 = vcmp.lt.s32.totalorder %v19776_v30, 384  ;;  %v2789_v29 = vld [vmem:[%s13665_s25 + $0x190] sm:$0xff] }
 0x3d5   : > { %v2935_v25 = vmul.f32 %v13702_v23, %v2785_v28  ;;  %v2940_v33 = vmul.f32 %v13956_v20, %v2790_v13  ;;  %vm19846_vm4 = vcmp.lt.s32.totalorder %v19778_v15, 384  ;;  %v19847_v57 = vmov 0  ;;  %v2793_v28 = vld [vmem:[%s13665_s25 + $0x1b0] sm:$0xff]  ;;  %v19850_v13 = vld [vmem:[#allocation191_spill] sm:$0xff] }
 0x3d6   : > { %vm14742_vm1 = vmpackc.low %vm19846_vm4, %vm19845_vm2  ;;  %v3201_v37 = vmax.f32 %v3073_v60, 0.0  ;;  %v3205_v55 = vmax.f32 %v3077_v46, 0.0  ;;  %v3210_v47 = vmax.f32 %v3082_v24, 0.0  ;;  %v2944_v31 = vmul.f32 %v13956_v20, %v2794_v50  ;;  %9231 = vmatmul.mubr.msk.bf16.gmra.mrb[40].mxu0 %vm14669_vm6, %v19850_v13  ;;  %9423 = vmatmul.mubr.msk.bf16.gmra.mrb[40].mxu1 %vm14669_vm6, %v19850_v13  ;;  %v19851_v50 = vld [vmem:[#allocation51_spill] sm:$0xff]  ;;  %v2797_v13 = vld [vmem:[%s13665_s25 + $0x1d0] sm:$0xff] }
 0x3d7   : > { %v19848_v57 = vsel %vm14742_vm1, 4294967295, %v19847_v57  ;;  %v3214_v5 = vmax.f32 %v3086_v51, 0.0  ;;  %v3081_v61 = vadd.f32 %v13748_v45, %v2931_v52  ;;  %v3085_v11 = vadd.f32 %v13748_v45, %v2935_v25  ;;  %v2798_v46 = vld [vmem:[%s13665_s25 + $0x1d8] sm:$0xff]  ;;  %9234 = vmatprep.mubr.msk.bf16.mxu0 %vm14742_vm1, %v14308_v54  ;;  %9426 = vmatprep.mubr.msk.bf16.mxu1 %vm14742_vm1, %v14308_v54 }
 0x3d8   : > { %19849 = vst [vmem:[#allocation199_spill] sm:$0xff] %v19848_v57  ;;  %v3090_v19 = vadd.f32 %v14501_v32, %v2940_v33  ;;  %v3393_v44 = vsel %vm19842_vm13, %v3201_v37, 0.0  ;;  %v3397_v12 = vsel %vm19844_vm0, %v3205_v55, 0.0  ;;  %v14762_v35 = vpack.c.bf16 %v3205_v55, %v3201_v37  ;;  %v2802_v55 = vld [vmem:[%s13665_s25 + $0x1f8] sm:$0xff] }
 0x3d9   : > { %vm19852_vm2 = vcmp.lt.s32.totalorder %v19851_v50, 384  ;;  %3521 = vst [vmem:[%s11212_s24 + $0x110] sm:$0xff] %v3393_v44  ;;  %3525 = vst [vmem:[%s11212_s24 + $0x130] sm:$0xff] %v3397_v12  ;;  %vm19854_vm4 = vcmp.lt.s32.totalorder %v19853_v48, 384  ;;  %v14778_v24 = vpack.c.bf16 %v3214_v5, %v3210_v47  ;;  %v3209_v51 = vmax.f32 %v3081_v61, 0.0  ;;  %v2801_v44 = vld [vmem:[%s13665_s25 + $0x1f0] sm:$0xff] }
 0x3da   : > { %v3402_v60 = vsel %vm19852_vm2, %v3210_v47, 0.0  ;;  %v3406_v26 = vsel %vm19854_vm4, %v3214_v5, 0.0  ;;  %v3213_v52 = vmax.f32 %v3085_v11, 0.0  ;;  %v3094_v25 = vadd.f32 %v14501_v32, %v2944_v31  ;;  %vm19855_vm13 = vmmov %vm19852_vm2  ;;  %v2806_v48 = vld [vmem:[%s13665_s25 + $0x218] sm:$0xff] }
 0x3db   : > { %3530 = vst [vmem:[%s11212_s24 + $0x158] sm:$0xff] %v3402_v60  ;;  %3534 = vst [vmem:[%s11212_s24 + $0x178] sm:$0xff] %v3406_v26  ;;  %v3218_v33 = vmax.f32 %v3090_v19, 0.0  ;;  %v2939_v37 = vmul.f32 %v13702_v23, %v2789_v29  ;;  %v2943_v54 = vmul.f32 %v13702_v23, %v2793_v28  ;;  %v3401_v47 = vsel %vm19855_vm13, %v3209_v51, 0.0 }
 0x3dc   : > { %vm19856_vm0 = vmmov %vm19854_vm4  ;;  %v14791_v61 = vpack.c.bf16 %v3213_v52, %v3209_v51  ;;  %v2948_v31 = vmul.f32 %v13956_v20, %v2798_v46  ;;  %3529 = vst [vmem:[%s11212_s24 + $0x150] sm:$0xff] %v3401_v47  ;;  %v3222_v11 = vmax.f32 %v3094_v25, 0.0  ;;  %vm19857_vm2 = vcmp.lt.s32.totalorder %v19730_v34, 384  ;;  %v19862_v51 = vld [vmem:[#allocation54_spill] sm:$0xff] }
 0x3dd   : > { %v3405_v5 = vsel %vm19856_vm0, %v3213_v52, 0.0  ;;  %v3410_v19 = vsel %vm19857_vm2, %v3218_v33, 0.0  ;;  %v3089_v29 = vadd.f32 %v13748_v45, %v2939_v37  ;;  %v3093_v28 = vadd.f32 %v13748_v45, %v2943_v54 }
 0x3de   : > { %3533 = vst [vmem:[%s11212_s24 + $0x170] sm:$0xff] %v3405_v5  ;;  %3538 = vst [vmem:[%s11212_s24 + $0x198] sm:$0xff] %v3410_v19  ;;  %v2952_v12 = vmul.f32 %v13956_v20, %v2802_v55  ;;  %v3098_v50 = vadd.f32 %v14501_v32, %v2948_v31  ;;  %v2947_v60 = vmul.f32 %v13702_v23, %v2797_v13  ;;  %vm19858_vm4 = vcmp.lt.s32.totalorder %v19788_v10, 384  ;;  %v2810_v5 = vld [vmem:[%s13665_s25 + $0x238] sm:$0xff]  ;;  %v2805_v31 = vld [vmem:[%s13665_s25 + $0x210] sm:$0xff] }
 0x3df   : > { %v2951_v46 = vmul.f32 %v13702_v23, %v2801_v44  ;;  %vm19859_vm13 = vcmp.lt.s32.totalorder %v19790_v3, 384  ;;  %v19860_v26 = vmov 0  ;;  %vm19863_vm2 = vcmp.lt.s32.totalorder %v19862_v51, 384  ;;  %v2809_v19 = vld [vmem:[%s13665_s25 + $0x230] sm:$0xff]  ;;  %9237 = vmatmul.mubr.msk.bf16.gmra.mrb[44].mxu0 %vm14742_vm1, %v19864_v14  ;;  %9429 = vmatmul.mubr.msk.bf16.gmra.mrb[44].mxu1 %vm14742_vm1, %v19864_v14  ;;  %v19868_v14 = vld [vmem:[#allocation55_spill] sm:$0xff] }
 0x3e0   : > { %vm14810_vm0 = vmpackc.low %vm19859_vm13, %vm19858_vm4  ;;  %v3414_v52 = vsel %vm19863_vm2, %v3222_v11, 0.0  ;;  %v14816_v25 = vpack.c.bf16 %v3222_v11, %v3218_v33  ;;  %v3217_v37 = vmax.f32 %v3089_v29, 0.0  ;;  %v3221_v54 = vmax.f32 %v3093_v28, 0.0  ;;  %v19929_v1 = vld [vmem:[#allocation199_spill] sm:$0xff] }
 0x3e1   : > { %v19861_v26 = vsel %vm14810_vm0, 4294967295, %v19860_v26  ;;  %3542 = vst [vmem:[%s11212_s24 + $0x1b8] sm:$0xff] %v3414_v52  ;;  %v3102_v55 = vadd.f32 %v14501_v32, %v2952_v12  ;;  %v3226_v13 = vmax.f32 %v3098_v50, 0.0  ;;  %v3097_v44 = vadd.f32 %v13748_v45, %v2947_v60  ;;  %vm19866_vm13 = vmmov %vm19863_vm2  ;;  %v19867_v12 = vld [vmem:[#allocation194_spill] sm:$0xff] }
 0x3e2   : > { %v3101_v47 = vadd.f32 %v13748_v45, %v2951_v46  ;;  %vm19865_vm4 = vcmp.lt.s32.totalorder %v19730_v34, 384  ;;  %v3413_v11 = vsel %vm19866_vm13, %v3221_v54, 0.0  ;;  %v14835_v29 = vpack.c.bf16 %v3221_v54, %v3217_v37  ;;  %9240 = vmatprep.mubr.msk.bf16.mxu0 %vm14810_vm0, %v19867_v12  ;;  %9432 = vmatprep.mubr.msk.bf16.mxu1 %vm14810_vm0, %v19867_v12  ;;  %v2814_v54 = vld [vmem:[%s13665_s25 + $0x258] sm:$0xff] }
 0x3e3   : > { %v3409_v33 = vsel %vm19865_vm4, %v3217_v37, 0.0  ;;  %v2956_v28 = vmul.f32 %v13956_v20, %v2806_v48  ;;  %3541 = vst [vmem:[%s11212_s24 + $0x1b0] sm:$0xff] %v3413_v11  ;;  %v3230_v34 = vmax.f32 %v3102_v55, 0.0  ;;  %vm19869_vm2 = vcmp.lt.s32.totalorder %v19868_v14, 384  ;;  %v2818_v55 = vld [vmem:[%s13665_s25 + $0x278] sm:$0xff]  ;;  %v19870_v11 = vld [vmem:[#allocation56_spill] sm:$0xff] }
 0x3e4   : > { %3537 = vst [vmem:[%s11212_s24 + $0x190] sm:$0xff] %v3409_v33  ;;  %v3418_v50 = vsel %vm19869_vm2, %v3226_v13, 0.0  ;;  %v3225_v60 = vmax.f32 %v3097_v44, 0.0  ;;  %v3229_v46 = vmax.f32 %v3101_v47, 0.0  ;;  %v2960_v48 = vmul.f32 %v13956_v20, %v2810_v5  ;;  %v2813_v33 = vld [vmem:[%s13665_s25 + $0x250] sm:$0xff]  ;;  %vm19872_vm13 = vmmov %vm19869_vm2 }
 0x3e5   : > { %3546 = vst [vmem:[%s11212_s24 + $0x1d8] sm:$0xff] %v3418_v50  ;;  %v3106_v51 = vadd.f32 %v14501_v32, %v2956_v28  ;;  %v2955_v52 = vmul.f32 %v13702_v23, %v2805_v31  ;;  %v2959_v37 = vmul.f32 %v13702_v23, %v2809_v19  ;;  %vm19871_vm4 = vcmp.lt.s32.totalorder %v19870_v11, 384  ;;  %v2817_v5 = vld [vmem:[%s13665_s25 + $0x270] sm:$0xff] }
 0x3e6   : > { %v3422_v12 = vsel %vm19871_vm4, %v3230_v34, 0.0  ;;  %v14858_v57 = vpack.c.bf16 %v3230_v34, %v3226_v13  ;;  %v3417_v44 = vsel %vm19872_vm13, %v3225_v60, 0.0  ;;  %vm19873_vm2 = vmmov %vm19871_vm4  ;;  %v14868_v31 = vpack.c.bf16 %v3229_v46, %v3225_v60 }
 0x3e7   : > { %v3421_v47 = vsel %vm19873_vm2, %v3229_v46, 0.0  ;;  %3550 = vst [vmem:[%s11212_s24 + $0x1f8] sm:$0xff] %v3422_v12  ;;  %3545 = vst [vmem:[%s11212_s24 + $0x1d0] sm:$0xff] %v3417_v44  ;;  %v3110_v19 = vadd.f32 %v14501_v32, %v2960_v48  ;;  %v3234_v28 = vmax.f32 %v3106_v51, 0.0  ;;  %v3105_v13 = vadd.f32 %v13748_v45, %v2955_v52  ;;  %v2822_v12 = vld [vmem:[%s13665_s25 + $0x298] sm:$0xff] }
 0x3e8   : > { %3549 = vst [vmem:[%s11212_s24 + $0x1f0] sm:$0xff] %v3421_v47  ;;  %v3109_v34 = vadd.f32 %v13748_v45, %v2959_v37  ;;  %v2964_v14 = vmul.f32 %v13956_v20, %v2814_v54  ;;  %v2968_v50 = vmul.f32 %v13956_v20, %v2818_v55  ;;  %v2963_v11 = vmul.f32 %v13702_v23, %v2813_v33  ;;  %v2826_v44 = vld [vmem:[%s13665_s25 + $0x2b8] sm:$0xff] }
 0x3e9   : > { %vm19874_vm4 = vcmp.lt.s32.totalorder %v19796_v8, 384  ;;  %vm19875_vm13 = vcmp.lt.s32.totalorder %v19803_v56, 384  ;;  %v19876_v60 = vmov 0  ;;  %v3238_v46 = vmax.f32 %v3110_v19, 0.0  ;;  %v19879_v47 = vld [vmem:[#allocation195_spill] sm:$0xff] }
 0x3ea   : > { %vm14880_vm2 = vmpackc.low %vm19875_vm13, %vm19874_vm4  ;;  %vm19878_vm1 = vcmp.lt.s32.totalorder %v19752_v6, 384  ;;  %v3233_v51 = vmax.f32 %v3105_v13, 0.0  ;;  %v2967_v52 = vmul.f32 %v13702_v23, %v2817_v5  ;;  %v3237_v37 = vmax.f32 %v3109_v34, 0.0  ;;  %9243 = vmatmul.mubr.msk.bf16.gmra.mrb[48].mxu0 %vm14810_vm0, %v19879_v47  ;;  %9435 = vmatmul.mubr.msk.bf16.gmra.mrb[48].mxu1 %vm14810_vm0, %v19879_v47  ;;  %v2830_v47 = vld [vmem:[%s13665_s25 + $0x2d8] sm:$0xff] }
 0x3eb   : > { %v19877_v60 = vsel %vm14880_vm2, 4294967295, %v19876_v60  ;;  %v3426_v48 = vsel %vm19878_vm1, %v3234_v28, 0.0  ;;  %v3114_v54 = vadd.f32 %v14501_v32, %v2964_v14  ;;  %v3118_v55 = vadd.f32 %v14501_v32, %v2968_v50  ;;  %v2821_v14 = vld [vmem:[%s13665_s25 + $0x290] sm:$0xff]  ;;  %9246 = vmatprep.mubr.msk.bf16.mxu0 %vm14880_vm2, %v14422_v63  ;;  %9438 = vmatprep.mubr.msk.bf16.mxu1 %vm14880_vm2, %v14422_v63 }
 0x3ec   : > { %3554 = vst [vmem:[%s11212_s24 + $0x218] sm:$0xff] %v3426_v48  ;;  %v3113_v33 = vadd.f32 %v13748_v45, %v2963_v11  ;;  %vm19880_vm1 = vcmp.lt.s32.totalorder %v19754_v53, 384  ;;  %v14901_v19 = vpack.c.bf16 %v3238_v46, %v3234_v28  ;;  %vm19881_vm4 = vcmp.lt.s32.totalorder %v19752_v6, 384  ;;  %v2825_v53 = vld [vmem:[%s13665_s25 + $0x2b0] sm:$0xff] }
 0x3ed   : > { %v3430_v5 = vsel %vm19880_vm1, %v3238_v46, 0.0  ;;  %v3425_v13 = vsel %vm19881_vm4, %v3233_v51, 0.0  ;;  %v3117_v34 = vadd.f32 %v13748_v45, %v2967_v52  ;;  %vm19882_vm13 = vmmov %vm19880_vm1  ;;  %v14917_v6 = vpack.c.bf16 %v3237_v37, %v3233_v51 }
 0x3ee   : > { %3558 = vst [vmem:[%s11212_s24 + $0x238] sm:$0xff] %v3430_v5  ;;  %v3429_v28 = vsel %vm19882_vm13, %v3237_v37, 0.0  ;;  %3553 = vst [vmem:[%s11212_s24 + $0x210] sm:$0xff] %v3425_v13  ;;  %v3242_v50 = vmax.f32 %v3114_v54, 0.0  ;;  %v3246_v11 = vmax.f32 %v3118_v55, 0.0  ;;  %v3241_v46 = vmax.f32 %v3113_v33, 0.0 }
 0x3ef   : > { %3557 = vst [vmem:[%s11212_s24 + $0x230] sm:$0xff] %v3429_v28  ;;  %v3245_v48 = vmax.f32 %v3117_v34, 0.0  ;;  %v2972_v52 = vmul.f32 %v13956_v20, %v2822_v12  ;;  %v2976_v63 = vmul.f32 %v13956_v20, %v2826_v44  ;;  %vm19883_vm1 = vcmp.lt.s32.totalorder %v19758_v38, 384  ;;  %v2834_v33 = vld [vmem:[%s13665_s25 + $0x2f8] sm:$0xff]  ;;  %v2829_v5 = vld [vmem:[%s13665_s25 + $0x2d0] sm:$0xff] }
 0x3f0   : > { %v3434_v51 = vsel %vm19883_vm1, %v3242_v50, 0.0  ;;  %vm19884_vm4 = vcmp.lt.s32.totalorder %v19760_v27, 384  ;;  %v14928_v54 = vpack.c.bf16 %v3246_v11, %v3242_v50  ;;  %v2971_v55 = vmul.f32 %v13702_v23, %v2821_v14  ;;  %v2833_v13 = vld [vmem:[%s13665_s25 + $0x2f0] sm:$0xff]  ;;  %vm19885_vm13 = vmmov %vm19883_vm1 }
 0x3f1   : > { %v3438_v37 = vsel %vm19884_vm4, %v3246_v11, 0.0  ;;  %3562 = vst [vmem:[%s11212_s24 + $0x258] sm:$0xff] %v3434_v51  ;;  %v3433_v12 = vsel %vm19885_vm13, %v3241_v46, 0.0  ;;  %vm19886_vm0 = vmmov %vm19884_vm4  ;;  %v14940_v34 = vpack.c.bf16 %v3245_v48, %v3241_v46  ;;  %v3122_v28 = vadd.f32 %v14501_v32, %v2972_v52 }
 0x3f2   : > { %3566 = vst [vmem:[%s11212_s24 + $0x278] sm:$0xff] %v3438_v37  ;;  %v3437_v44 = vsel %vm19886_vm0, %v3245_v48, 0.0  ;;  %3561 = vst [vmem:[%s11212_s24 + $0x250] sm:$0xff] %v3433_v12  ;;  %v3126_v50 = vadd.f32 %v14501_v32, %v2976_v63  ;;  %v2975_v14 = vmul.f32 %v13702_v23, %v2825_v53  ;;  %v3121_v11 = vadd.f32 %v13748_v45, %v2971_v55  ;;  %v2838_v12 = vld [vmem:[%s13665_s25 + $0x318] sm:$0xff] }
 0x3f3   : > { %3565 = vst [vmem:[%s11212_s24 + $0x270] sm:$0xff] %v3437_v44  ;;  %v2980_v51 = vmul.f32 %v13956_v20, %v2830_v47  ;;  %vm19887_vm1 = vcmp.lt.s32.totalorder %v19807_v41, 384  ;;  %vm19888_vm4 = vcmp.lt.s32.totalorder %v19809_v18, 384  ;;  %v19889_v38 = vmov 0  ;;  %9249 = vmatmul.mubr.msk.bf16.gmra.mrb[52].mxu0 %vm14880_vm2, %v14437_v17  ;;  %9441 = vmatmul.mubr.msk.bf16.gmra.mrb[52].mxu1 %vm14880_vm2, %v14437_v17  ;;  %v2842_v44 = vld [vmem:[%s13665_s25 + $0x338] sm:$0xff] }
 0x3f4   : > { %vm14953_vm0 = vmpackc.low %vm19888_vm4, %vm19887_vm1  ;;  %v3250_v27 = vmax.f32 %v3122_v28, 0.0  ;;  %v2984_v46 = vmul.f32 %v13956_v20, %v2834_v33  ;;  %v2979_v48 = vmul.f32 %v13702_v23, %v2829_v5  ;;  %v2983_v52 = vmul.f32 %v13702_v23, %v2833_v13 }
 0x3f5   : > { %v19890_v38 = vsel %vm14953_vm0, 4294967295, %v19889_v38  ;;  %v3254_v63 = vmax.f32 %v3126_v50, 0.0  ;;  %v3125_v53 = vadd.f32 %v13748_v45, %v2975_v14  ;;  %v3249_v47 = vmax.f32 %v3121_v11, 0.0  ;;  %9252 = vmatprep.mubr.msk.bf16.mxu0 %vm14953_vm0, %v14477_v62  ;;  %9444 = vmatprep.mubr.msk.bf16.mxu1 %vm14953_vm0, %v14477_v62 }
 0x3f6   : > { %v3130_v37 = vadd.f32 %v14501_v32, %v2980_v51  ;;  %vm19891_vm13 = vcmp.lt.s32.totalorder %v19769_v42, 384  ;;  %v3134_v33 = vadd.f32 %v14501_v32, %v2984_v46  ;;  %v3129_v5 = vadd.f32 %v13748_v45, %v2979_v48  ;;  %v2837_v48 = vld [vmem:[%s13665_s25 + $0x310] sm:$0xff] }
 0x3f7   : > { %v3442_v55 = vsel %vm19891_vm13, %v3250_v27, 0.0  ;;  %v3133_v13 = vadd.f32 %v13748_v45, %v2983_v52  ;;  %vm19892_vm1 = vcmp.lt.s32.totalorder %v19771_v21, 384  ;;  %v14984_v28 = vpack.c.bf16 %v3254_v63, %v3250_v27  ;;  %vm19893_vm4 = vmmov %vm19891_vm13 }
 0x3f8   : > { %v3446_v17 = vsel %vm19892_vm1, %v3254_v63, 0.0  ;;  %3570 = vst [vmem:[%s11212_s24 + $0x298] sm:$0xff] %v3442_v55  ;;  %v3253_v50 = vmax.f32 %v3125_v53, 0.0  ;;  %v3441_v14 = vsel %vm19893_vm4, %v3249_v47, 0.0  ;;  %v3258_v11 = vmax.f32 %v3130_v37, 0.0  ;;  %vm19894_vm13 = vmmov %vm19892_vm1  ;;  %v2841_v53 = vld [vmem:[%s13665_s25 + $0x330] sm:$0xff] }
 0x3f9   : > { %3574 = vst [vmem:[%s11212_s24 + $0x2b8] sm:$0xff] %v3446_v17  ;;  %3569 = vst [vmem:[%s11212_s24 + $0x290] sm:$0xff] %v3441_v14  ;;  %v3262_v51 = vmax.f32 %v3134_v33, 0.0  ;;  %v3257_v62 = vmax.f32 %v3129_v5, 0.0  ;;  %v3261_v46 = vmax.f32 %v3133_v13, 0.0  ;;  %v2988_v42 = vmul.f32 %v13956_v20, %v2838_v12  ;;  %v2846_v37 = vld [vmem:[%s13665_s25 + $0x358] sm:$0xff] }
 0x3fa   : > { %v3445_v27 = vsel %vm19894_vm13, %v3253_v50, 0.0  ;;  %v14993_v52 = vpack.c.bf16 %v3253_v50, %v3249_v47  ;;  %v2992_v63 = vmul.f32 %v13956_v20, %v2842_v44  ;;  %v2850_v55 = vld [vmem:[%s13665_s25 + $0x378] sm:$0xff]  ;;  %vm19895_vm1 = vcmp.lt.s32.totalorder %v19776_v30, 384  ;;  %v2845_v13 = vld [vmem:[%s13665_s25 + $0x350] sm:$0xff] }
 0x3fb   : > { %3573 = vst [vmem:[%s11212_s24 + $0x2b0] sm:$0xff] %v3445_v27  ;;  %v3450_v33 = vsel %vm19895_vm1, %v3258_v11, 0.0  ;;  %vm19896_vm4 = vcmp.lt.s32.totalorder %v19778_v15, 384  ;;  %v15005_v5 = vpack.c.bf16 %v3262_v51, %v3258_v11  ;;  %vm19897_vm13 = vmmov %vm19895_vm1  ;;  %v2849_v12 = vld [vmem:[%s13665_s25 + $0x370] sm:$0xff]  ;;  %v15016_v17 = vpack.c.bf16 %v3261_v46, %v3257_v62 }
 0x3fc   : > { %v3454_v21 = vsel %vm19896_vm4, %v3262_v51, 0.0  ;;  %v3449_v47 = vsel %vm19897_vm13, %v3257_v62, 0.0  ;;  %3578 = vst [vmem:[%s11212_s24 + $0x2d8] sm:$0xff] %v3450_v33  ;;  %vm19898_vm2 = vmmov %vm19896_vm4  ;;  %v3138_v50 = vadd.f32 %v14501_v32, %v2988_v42  ;;  %v3142_v14 = vadd.f32 %v14501_v32, %v2992_v63  ;;  %v19903_v33 = vld [vmem:[#allocation197_spill] sm:$0xff] }
 0x3fd   : > { %3582 = vst [vmem:[%s11212_s24 + $0x2f8] sm:$0xff] %v3454_v21  ;;  %v3453_v44 = vsel %vm19898_vm2, %v3261_v46, 0.0  ;;  %3577 = vst [vmem:[%s11212_s24 + $0x2d0] sm:$0xff] %v3449_v47  ;;  %vm19899_vm1 = vcmp.lt.s32.totalorder %v19815_v40, 384  ;;  %vm19900_vm4 = vcmp.lt.s32.totalorder %v19817_v0, 384  ;;  %v2987_v15 = vmul.f32 %v13702_v23, %v2837_v48  ;;  %9255 = vmatmul.mubr.msk.bf16.gmra.mrb[56].mxu0 %vm14953_vm0, %v19903_v33  ;;  %9447 = vmatmul.mubr.msk.bf16.gmra.mrb[56].mxu1 %vm14953_vm0, %v19903_v33  ;;  %v2858_v21 = vld [vmem:[%s13665_s25 + $0x3b8] sm:$0xff] }
 0x3fe   : > { %vm15024_vm13 = vmpackc.low %vm19900_vm4, %vm19899_vm1  ;;  %3581 = vst [vmem:[%s11212_s24 + $0x2f0] sm:$0xff] %v3453_v44  ;;  %v2991_v11 = vmul.f32 %v13702_v23, %v2841_v53  ;;  %v2996_v51 = vmul.f32 %v13956_v20, %v2846_v37  ;;  %v3000_v62 = vmul.f32 %v13956_v20, %v2850_v55  ;;  %v3266_v46 = vmax.f32 %v3138_v50, 0.0  ;;  %v2854_v55 = vld [vmem:[%s13665_s25 + $0x398] sm:$0xff] }
 0x3ff   : > { %v3270_v27 = vmax.f32 %v3142_v14, 0.0  ;;  %v2995_v42 = vmul.f32 %v13702_v23, %v2845_v13  ;;  %v2999_v63 = vmul.f32 %v13702_v23, %v2849_v12  ;;  %v3137_v48 = vadd.f32 %v13748_v45, %v2987_v15  ;;  %9258 = vmatprep.mubr.msk.bf16.mxu0 %vm15024_vm13, %v14510_v16  ;;  %9450 = vmatprep.mubr.msk.bf16.mxu1 %vm15024_vm13, %v14510_v16 }
 0x400   : > { %v3141_v53 = vadd.f32 %v13748_v45, %v2991_v11  ;;  %v3146_v37 = vadd.f32 %v14501_v32, %v2996_v51  ;;  %vm19904_vm2 = vcmp.lt.s32.totalorder %v19788_v10, 384  ;;  %vm19905_vm1 = vcmp.lt.s32.totalorder %v19790_v3, 384 }
 0x401   : > { %v3458_v47 = vsel %vm19904_vm2, %v3266_v46, 0.0  ;;  %v3462_v13 = vsel %vm19905_vm1, %v3270_v27, 0.0  ;;  %v15056_v12 = vpack.c.bf16 %v3270_v27, %v3266_v46  ;;  %v3150_v44 = vadd.f32 %v14501_v32, %v3000_v62  ;;  %v2853_v62 = vld [vmem:[%s13665_s25 + $0x390] sm:$0xff]  ;;  %vm19906_vm4 = vmmov %vm19904_vm2 }
 0x402   : > { %3586 = vst [vmem:[%s11212_s24 + $0x318] sm:$0xff] %v3458_v47  ;;  %3590 = vst [vmem:[%s11212_s24 + $0x338] sm:$0xff] %v3462_v13  ;;  %v3265_v50 = vmax.f32 %v3137_v48, 0.0  ;;  %v3269_v14 = vmax.f32 %v3141_v53, 0.0  ;;  %v3274_v15 = vmax.f32 %v3146_v37, 0.0  ;;  %v3145_v16 = vadd.f32 %v13748_v45, %v2995_v42  ;;  %v2857_v27 = vld [vmem:[%s13665_s25 + $0x3b0] sm:$0xff] }
 0x403   : > { %v3278_v11 = vmax.f32 %v3150_v44, 0.0  ;;  %v3149_v51 = vadd.f32 %v13748_v45, %v2999_v63  ;;  %v3004_v33 = vmul.f32 %v13956_v20, %v2854_v55  ;;  %v3008_v46 = vmul.f32 %v13956_v20, %v2858_v21  ;;  %vm19907_vm2 = vmmov %vm19905_vm1  ;;  %v2862_v63 = vld [vmem:[%s13665_s25 + $0x3d8] sm:$0xff] }
 0x404   : > { %v3457_v47 = vsel %vm19906_vm4, %v3265_v50, 0.0  ;;  %v3461_v48 = vsel %vm19907_vm2, %v3269_v14, 0.0  ;;  %v15071_v53 = vpack.c.bf16 %v3269_v14, %v3265_v50  ;;  %vm19908_vm1 = vcmp.lt.s32.totalorder %v19796_v8, 384  ;;  %v2866_v14 = vld [vmem:[%s13665_s25 + $0x3f8] sm:$0xff] }
 0x405   : > { %v3466_v42 = vsel %vm19908_vm1, %v3274_v15, 0.0  ;;  %3585 = vst [vmem:[%s11212_s24 + $0x310] sm:$0xff] %v3457_v47  ;;  %3589 = vst [vmem:[%s11212_s24 + $0x330] sm:$0xff] %v3461_v48  ;;  %vm19909_vm0 = vcmp.lt.s32.totalorder %v19803_v56, 384  ;;  %v15081_v55 = vpack.c.bf16 %v3278_v11, %v3274_v15  ;;  %v3273_v10 = vmax.f32 %v3145_v16, 0.0  ;;  %v2861_v47 = vld [vmem:[%s13665_s25 + $0x3d0] sm:$0xff]  ;;  %9261 = vmatmul.mubr.msk.bf16.gmra.mrb[60].mxu0 %vm15024_vm13, %v14563_v58  ;;  %9453 = vmatmul.mubr.msk.bf16.gmra.mrb[60].mxu1 %vm15024_vm13, %v14563_v58 }
 0x406   : > { %v3470_v37 = vsel %vm19909_vm0, %v3278_v11, 0.0  ;;  %3594 = vst [vmem:[%s11212_s24 + $0x358] sm:$0xff] %v3466_v42  ;;  %v3277_v3 = vmax.f32 %v3149_v51, 0.0  ;;  %v3154_v21 = vadd.f32 %v14501_v32, %v3004_v33  ;;  %v3158_v13 = vadd.f32 %v14501_v32, %v3008_v46  ;;  %vm19910_vm0 = vmmov %vm19908_vm1  ;;  %9264 = vmatprep.mubr.msk.bf16.mxu0 %vm13734_vm14, %v14578_v2  ;;  %9456 = vmatprep.mubr.msk.bf16.mxu1 %vm13734_vm14, %v14578_v2 }
 0x407   : > { %3598 = vst [vmem:[%s11212_s24 + $0x378] sm:$0xff] %v3470_v37  ;;  %v3003_v44 = vmul.f32 %v13702_v23, %v2853_v62  ;;  %v3007_v50 = vmul.f32 %v13702_v23, %v2857_v27  ;;  %v3465_v15 = vsel %vm19910_vm0, %v3273_v10, 0.0  ;;  %vm19911_vm4 = vcmp.lt.s32.totalorder %v19803_v56, 384  ;;  %v2865_v62 = vld [vmem:[%s13665_s25 + $0x3f0] sm:$0xff] }
 0x408   : > { %v3469_v16 = vsel %vm19911_vm4, %v3277_v3, 0.0  ;;  %v15094_v11 = vpack.c.bf16 %v3277_v3, %v3273_v10  ;;  %v3012_v51 = vmul.f32 %v13956_v20, %v2862_v63  ;;  %3593 = vst [vmem:[%s11212_s24 + $0x350] sm:$0xff] %v3465_v15  ;;  %v3282_v8 = vmax.f32 %v3154_v21, 0.0 }
 0x409   : > { %3597 = vst [vmem:[%s11212_s24 + $0x370] sm:$0xff] %v3469_v16  ;;  %v3286_v33 = vmax.f32 %v3158_v13, 0.0  ;;  %v3153_v56 = vadd.f32 %v13748_v45, %v3003_v44  ;;  %v3157_v46 = vadd.f32 %v13748_v45, %v3007_v50  ;;  %v3016_v58 = vmul.f32 %v13956_v20, %v2866_v14 }
 0x40a   : > { %v3162_v48 = vadd.f32 %v14501_v32, %v3012_v51  ;;  %v3011_v42 = vmul.f32 %v13702_v23, %v2861_v47  ;;  %vm19913_vm2 = vcmp.lt.s32.totalorder %v19807_v41, 384  ;;  %vm19914_vm1 = vcmp.lt.s32.totalorder %v19809_v18, 384 }
 0x40b   : > { %v3474_v63 = vsel %vm19913_vm2, %v3282_v8, 0.0  ;;  %v3478_v37 = vsel %vm19914_vm1, %v3286_v33, 0.0  ;;  %v15121_v10 = vpack.c.bf16 %v3286_v33, %v3282_v8  ;;  %v3281_v3 = vmax.f32 %v3153_v56, 0.0  ;;  %vm19915_vm0 = vmmov %vm19913_vm2 }
 0x40c   : > { %3602 = vst [vmem:[%s11212_s24 + $0x398] sm:$0xff] %v3474_v63  ;;  %3606 = vst [vmem:[%s11212_s24 + $0x3b8] sm:$0xff] %v3478_v37  ;;  %v3285_v2 = vmax.f32 %v3157_v46, 0.0  ;;  %v3166_v20 = vadd.f32 %v14501_v32, %v3016_v58  ;;  %v3290_v21 = vmax.f32 %v3162_v48, 0.0  ;;  %v3015_v13 = vmul.f32 %v13702_v23, %v2865_v62 }
 0x40d   : > { %v3473_v44 = vsel %vm19915_vm0, %v3281_v3, 0.0  ;;  %v3161_v50 = vadd.f32 %v13748_v45, %v3011_v42  ;;  %vm19916_vm4 = vmmov %vm19914_vm1  ;;  %vm19917_vm2 = vcmp.lt.s32.totalorder %v19815_v40, 384  ;;  %vm19918_vm1 = vcmp.lt.s32.totalorder %v19817_v0, 384  ;;  %9267 = vmatmul.mubr.msk.bf16.vlgmr.msra.gmra.mrb[0].mxu0 %vm13734_vm14, %v14593_v7  ;;  %9459 = vmatmul.mubr.msk.bf16.vlgmr.msra.gmra.mrb[0].mxu1 %vm13734_vm14, %v14593_v7 }
 0x40e   : > { %v3477_v14 = vsel %vm19916_vm4, %v3285_v2, 0.0  ;;  %3601 = vst [vmem:[%s11212_s24 + $0x390] sm:$0xff] %v3473_v44  ;;  %v15133_v47 = vpack.c.bf16 %v3285_v2, %v3281_v3  ;;  %v3294_v15 = vmax.f32 %v3166_v20, 0.0  ;;  %v3482_v32 = vsel %vm19917_vm2, %v3290_v21, 0.0  ;;  %vm19919_vm0 = vmmov %vm19917_vm2  ;;  %9270 = vmatprep.mubr.msk.bf16.mxu0 %vm13868_vm10, %v14615_v43  ;;  %9462 = vmatprep.mubr.msk.bf16.mxu1 %vm13868_vm10, %v14615_v43 }
 0x40f   : > { %3605 = vst [vmem:[%s11212_s24 + $0x3b0] sm:$0xff] %v3477_v14  ;;  %3610 = vst [vmem:[%s11212_s24 + $0x3d8] sm:$0xff] %v3482_v32  ;;  %v3165_v23 = vadd.f32 %v13748_v45, %v3015_v13  ;;  %v3289_v41 = vmax.f32 %v3161_v50, 0.0  ;;  %vm19930_vm14 = vnez %v19929_v1 }
 0x410   : > { %v3486_v16 = vsel %vm19918_vm1, %v3294_v15, 0.0  ;;  %v15142_v51 = vpack.c.bf16 %v3294_v15, %v3290_v21  ;;  %vm19921_vm4 = vmmov %vm19918_vm1 }
 0x411   : > { %3614 = vst [vmem:[%s11212_s24 + $0x3f8] sm:$0xff] %v3486_v16  ;;  %v3293_v18 = vmax.f32 %v3165_v23, 0.0  ;;  %v3481_v8 = vsel %vm19919_vm0, %v3289_v41, 0.0 }
 0x412   : > { %3609 = vst [vmem:[%s11212_s24 + $0x3d0] sm:$0xff] %v3481_v8 }
 0x413   : > { %v3485_v33 = vsel %vm19921_vm4, %v3293_v18, 0.0  ;;  %v9356_v56 = vpack.c.bf16 %v3293_v18, %v3289_v41 }
 0x414   : > { %3613 = vst [vmem:[%s11212_s24 + $0x3f0] sm:$0xff] %v3485_v33 }
 0x415   : > { %9273 = vmatmul.mubr.msk.bf16.gmra.mrb[4].mxu0 %vm13868_vm10, %v14642_v4  ;;  %9465 = vmatmul.mubr.msk.bf16.gmra.mrb[4].mxu1 %vm13868_vm10, %v14642_v4  ;;  %vm19931_vm10 = vnez %v19861_v26 }
 0x416   : > { %9276 = vmatprep.mubr.msk.bf16.mxu0 %vm13933_vm3, %v14653_v49  ;;  %9468 = vmatprep.mubr.msk.bf16.mxu1 %vm13933_vm3, %v14653_v49 }
 0x41d   : > { %9279 = vmatmul.mubr.msk.bf16.gmra.mrb[8].mxu0 %vm13933_vm3, %v14679_v22  ;;  %9471 = vmatmul.mubr.msk.bf16.gmra.mrb[8].mxu1 %vm13933_vm3, %v14679_v22  ;;  %vm19932_vm3 = vnez %v19877_v60 }
 0x41e   : > { %9282 = vmatprep.mubr.msk.bf16.mxu0 %vm14050_vm15, %v14697_v36  ;;  %9474 = vmatprep.mubr.msk.bf16.mxu1 %vm14050_vm15, %v14697_v36 }
 0x425   : > { %9285 = vmatmul.mubr.msk.bf16.gmra.mrb[12].mxu0 %vm14050_vm15, %v14719_v39  ;;  %9477 = vmatmul.mubr.msk.bf16.gmra.mrb[12].mxu1 %vm14050_vm15, %v14719_v39  ;;  %vm19933_vm15 = vnez %v19890_v38 }
 0x426   : > { %9288 = vmatprep.mubr.msk.bf16.mxu0 %vm14127_vm5, %v14729_v59  ;;  %9480 = vmatprep.mubr.msk.bf16.mxu1 %vm14127_vm5, %v14729_v59 }
 0x42d   : > { %9291 = vmatmul.mubr.msk.bf16.gmra.mrb[16].mxu0 %vm14127_vm5, %v14762_v35  ;;  %9483 = vmatmul.mubr.msk.bf16.gmra.mrb[16].mxu1 %vm14127_vm5, %v14762_v35 }
 0x42e   : > { %9294 = vmatprep.mubr.msk.bf16.mxu0 %vm14226_vm9, %v14778_v24  ;;  %9486 = vmatprep.mubr.msk.bf16.mxu1 %vm14226_vm9, %v14778_v24 }
 0x435   : > { %9297 = vmatmul.mubr.msk.bf16.gmra.mrb[20].mxu0 %vm14226_vm9, %v14791_v61  ;;  %9489 = vmatmul.mubr.msk.bf16.gmra.mrb[20].mxu1 %vm14226_vm9, %v14791_v61 }
 0x436   : > { %9300 = vmatprep.mubr.msk.bf16.mxu0 %vm14333_vm12, %v14816_v25  ;;  %9492 = vmatprep.mubr.msk.bf16.mxu1 %vm14333_vm12, %v14816_v25 }
 0x43d   : > { %9303 = vmatmul.mubr.msk.bf16.gmra.mrb[24].mxu0 %vm14333_vm12, %v14835_v29  ;;  %9495 = vmatmul.mubr.msk.bf16.gmra.mrb[24].mxu1 %vm14333_vm12, %v14835_v29 }
 0x43e   : > { %9306 = vmatprep.mubr.msk.bf16.mxu0 %vm14413_vm11, %v14858_v57  ;;  %9498 = vmatprep.mubr.msk.bf16.mxu1 %vm14413_vm11, %v14858_v57 }
 0x445   : > { %9309 = vmatmul.mubr.msk.bf16.gmra.mrb[28].mxu0 %vm14413_vm11, %v14868_v31  ;;  %9501 = vmatmul.mubr.msk.bf16.gmra.mrb[28].mxu1 %vm14413_vm11, %v14868_v31 }
 0x446   : > { %9312 = vmatprep.mubr.msk.bf16.mxu0 %vm14517_vm7, %v14901_v19  ;;  %9504 = vmatprep.mubr.msk.bf16.mxu1 %vm14517_vm7, %v14901_v19 }
 0x44d   : > { %9315 = vmatmul.mubr.msk.bf16.gmra.mrb[32].mxu0 %vm14517_vm7, %v14917_v6  ;;  %9507 = vmatmul.mubr.msk.bf16.gmra.mrb[32].mxu1 %vm14517_vm7, %v14917_v6 }
 0x44e   : > { %9318 = vmatprep.mubr.msk.bf16.mxu0 %vm14602_vm8, %v14928_v54  ;;  %9510 = vmatprep.mubr.msk.bf16.mxu1 %vm14602_vm8, %v14928_v54 }
 0x455   : > { %9321 = vmatmul.mubr.msk.bf16.gmra.mrb[36].mxu0 %vm14602_vm8, %v14940_v34  ;;  %9513 = vmatmul.mubr.msk.bf16.gmra.mrb[36].mxu1 %vm14602_vm8, %v14940_v34 }
 0x456   : > { %9324 = vmatprep.mubr.msk.bf16.mxu0 %vm14669_vm6, %v14984_v28  ;;  %9516 = vmatprep.mubr.msk.bf16.mxu1 %vm14669_vm6, %v14984_v28 }
 0x45d   : > { %9327 = vmatmul.mubr.msk.bf16.gmra.mrb[40].mxu0 %vm14669_vm6, %v14993_v52  ;;  %9519 = vmatmul.mubr.msk.bf16.gmra.mrb[40].mxu1 %vm14669_vm6, %v14993_v52 }
 0x45e   : > { %9330 = vmatprep.mubr.msk.bf16.mxu0 %vm19930_vm14, %v15005_v5  ;;  %9522 = vmatprep.mubr.msk.bf16.mxu1 %vm19930_vm14, %v15005_v5 }
 0x465   : > { %9333 = vmatmul.mubr.msk.bf16.gmra.mrb[44].mxu0 %vm19930_vm14, %v15016_v17  ;;  %9525 = vmatmul.mubr.msk.bf16.gmra.mrb[44].mxu1 %vm19930_vm14, %v15016_v17 }
 0x466   : > { %9336 = vmatprep.mubr.msk.bf16.mxu0 %vm19931_vm10, %v15056_v12  ;;  %9528 = vmatprep.mubr.msk.bf16.mxu1 %vm19931_vm10, %v15056_v12 }
 0x46d   : > { %9339 = vmatmul.mubr.msk.bf16.gmra.mrb[48].mxu0 %vm19931_vm10, %v15071_v53  ;;  %9531 = vmatmul.mubr.msk.bf16.gmra.mrb[48].mxu1 %vm19931_vm10, %v15071_v53 }
 0x46e   : > { %9342 = vmatprep.mubr.msk.bf16.mxu0 %vm19932_vm3, %v15081_v55  ;;  %9534 = vmatprep.mubr.msk.bf16.mxu1 %vm19932_vm3, %v15081_v55 }
 0x475   : > { %9345 = vmatmul.mubr.msk.bf16.gmra.mrb[52].mxu0 %vm19932_vm3, %v15094_v11  ;;  %9537 = vmatmul.mubr.msk.bf16.gmra.mrb[52].mxu1 %vm19932_vm3, %v15094_v11 }
 0x476   : > { %9348 = vmatprep.mubr.msk.bf16.mxu0 %vm19933_vm15, %v15121_v10  ;;  %9540 = vmatprep.mubr.msk.bf16.mxu1 %vm19933_vm15, %v15121_v10 }
 0x47d   : > { %9351 = vmatmul.mubr.msk.bf16.gmra.mrb[56].mxu0 %vm19933_vm15, %v15133_v47  ;;  %9543 = vmatmul.mubr.msk.bf16.gmra.mrb[56].mxu1 %vm19933_vm15, %v15133_v47 }
 0x47e   : > { %9354 = vmatprep.mubr.msk.bf16.mxu0 %vm15024_vm13, %v15142_v51  ;;  %9546 = vmatprep.mubr.msk.bf16.mxu1 %vm15024_vm13, %v15142_v51 }
 0x485   : > { %9357 = vmatmul.mubr.msk.bf16.gmra.mrb[60].mxu0 %vm15024_vm13, %v9356_v56  ;;  %9549 = vmatmul.mubr.msk.bf16.gmra.mrb[60].mxu1 %vm15024_vm13, %v9356_v56 }
 0x4e0   : > { %v4674_v9 = vpop.f32.mrb[0].mxu0  ;;  %v5060_v36 = vpop.f32.mrb[0].mxu1 }
 0x4e1   : > { %5219 = vst [vmem:[%s13665_s25] sm:$0xff] %v4674_v9  ;;  %5221 = vst [vmem:[%s13665_s25 + $0x10] sm:$0xff] %v5060_v36  ;;  %v4676_v39 = vpop.f32.mrb[1].mxu0  ;;  %v5062_v59 = vpop.f32.mrb[1].mxu1 }
 0x4e2   : > { %5220 = vst [vmem:[%s13665_s25 + $0x8] sm:$0xff] %v4676_v39  ;;  %5222 = vst [vmem:[%s13665_s25 + $0x18] sm:$0xff] %v5062_v59  ;;  %v4678_v57 = vpop.f32.mrb[2].mxu0  ;;  %v5064_v35 = vpop.f32.mrb[2].mxu1 }
 0x4e3   : > { %5223 = vst [vmem:[%s13665_s25 + $0x20] sm:$0xff] %v4678_v57  ;;  %v5348_v24 = vadd.f32 %v4678_v57, %v4674_v9  ;;  %5225 = vst [vmem:[%s13665_s25 + $0x30] sm:$0xff] %v5064_v35  ;;  %v5422_v61 = vadd.f32 %v5064_v35, %v5060_v36  ;;  %v4680_v26 = vpop.f32.mrb[3].mxu0  ;;  %v5066_v25 = vpop.f32.mrb[3].mxu1 }
 0x4e4   : > { %5224 = vst [vmem:[%s13665_s25 + $0x28] sm:$0xff] %v4680_v26  ;;  %v5385_v29 = vadd.f32 %v4680_v26, %v4676_v39  ;;  %5226 = vst [vmem:[%s13665_s25 + $0x38] sm:$0xff] %v5066_v25  ;;  %v5459_v31 = vadd.f32 %v5066_v25, %v5062_v59 }
 0x4e8   : > { %v4684_v60 = vpop.f32.mrb[4].mxu0  ;;  %v5070_v19 = vpop.f32.mrb[4].mxu1 }
 0x4e9   : > { %5227 = vst [vmem:[%s13665_s25 + $0x40] sm:$0xff] %v4684_v60  ;;  %v5349_v6 = vadd.f32 %v5348_v24, %v4684_v60  ;;  %5229 = vst [vmem:[%s13665_s25 + $0x50] sm:$0xff] %v5070_v19  ;;  %v5423_v54 = vadd.f32 %v5422_v61, %v5070_v19  ;;  %v4686_v34 = vpop.f32.mrb[5].mxu0  ;;  %v5072_v38 = vpop.f32.mrb[5].mxu1 }
 0x4ea   : > { %5228 = vst [vmem:[%s13665_s25 + $0x48] sm:$0xff] %v4686_v34  ;;  %v5386_v28 = vadd.f32 %v5385_v29, %v4686_v34  ;;  %5230 = vst [vmem:[%s13665_s25 + $0x58] sm:$0xff] %v5072_v38  ;;  %v5460_v52 = vadd.f32 %v5459_v31, %v5072_v38  ;;  %v4688_v5 = vpop.f32.mrb[6].mxu0  ;;  %v5074_v17 = vpop.f32.mrb[6].mxu1 }
 0x4eb   : > { %5231 = vst [vmem:[%s13665_s25 + $0x60] sm:$0xff] %v4688_v5  ;;  %v5350_v30 = vadd.f32 %v5349_v6, %v4688_v5  ;;  %5233 = vst [vmem:[%s13665_s25 + $0x70] sm:$0xff] %v5074_v17  ;;  %v5424_v12 = vadd.f32 %v5423_v54, %v5074_v17  ;;  %v4690_v53 = vpop.f32.mrb[7].mxu0  ;;  %v5076_v55 = vpop.f32.mrb[7].mxu1 }
 0x4ec   : > { %5232 = vst [vmem:[%s13665_s25 + $0x68] sm:$0xff] %v4690_v53  ;;  %v5387_v11 = vadd.f32 %v5386_v28, %v4690_v53  ;;  %5234 = vst [vmem:[%s13665_s25 + $0x78] sm:$0xff] %v5076_v55  ;;  %v5461_v46 = vadd.f32 %v5460_v52, %v5076_v55 }
 0x4f0   : > { %v4694_v62 = vpop.f32.mrb[8].mxu0  ;;  %v5080_v27 = vpop.f32.mrb[8].mxu1 }
 0x4f1   : > { %5235 = vst [vmem:[%s13665_s25 + $0x80] sm:$0xff] %v4694_v62  ;;  %v5351_v58 = vadd.f32 %v5350_v30, %v4694_v62  ;;  %5237 = vst [vmem:[%s13665_s25 + $0x90] sm:$0xff] %v5080_v27  ;;  %v5425_v48 = vadd.f32 %v5424_v12, %v5080_v27  ;;  %v4696_v42 = vpop.f32.mrb[9].mxu0  ;;  %v5082_v63 = vpop.f32.mrb[9].mxu1 }
 0x4f2   : > { %5236 = vst [vmem:[%s13665_s25 + $0x88] sm:$0xff] %v4696_v42  ;;  %v5388_v37 = vadd.f32 %v5387_v11, %v4696_v42  ;;  %5238 = vst [vmem:[%s13665_s25 + $0x98] sm:$0xff] %v5082_v63  ;;  %v5462_v10 = vadd.f32 %v5461_v46, %v5082_v63  ;;  %v4698_v3 = vpop.f32.mrb[10].mxu0  ;;  %v5084_v2 = vpop.f32.mrb[10].mxu1 }
 0x4f3   : > { %5239 = vst [vmem:[%s13665_s25 + $0xa0] sm:$0xff] %v4698_v3  ;;  %v5352_v20 = vadd.f32 %v5351_v58, %v4698_v3  ;;  %5241 = vst [vmem:[%s13665_s25 + $0xb0] sm:$0xff] %v5084_v2  ;;  %v5426_v21 = vadd.f32 %v5425_v48, %v5084_v2  ;;  %v4700_v13 = vpop.f32.mrb[11].mxu0  ;;  %v5086_v44 = vpop.f32.mrb[11].mxu1 }
 0x4f4   : > { %5240 = vst [vmem:[%s13665_s25 + $0xa8] sm:$0xff] %v4700_v13  ;;  %v5389_v50 = vadd.f32 %v5388_v37, %v4700_v13  ;;  %5242 = vst [vmem:[%s13665_s25 + $0xb8] sm:$0xff] %v5086_v44  ;;  %v5463_v14 = vadd.f32 %v5462_v10, %v5086_v44 }
 0x4f8   : > { %v4704_v47 = vpop.f32.mrb[12].mxu0  ;;  %v5090_v15 = vpop.f32.mrb[12].mxu1 }
 0x4f9   : > { %5243 = vst [vmem:[%s13665_s25 + $0xc0] sm:$0xff] %v4704_v47  ;;  %v5353_v32 = vadd.f32 %v5352_v20, %v4704_v47  ;;  %5245 = vst [vmem:[%s13665_s25 + $0xd0] sm:$0xff] %v5090_v15  ;;  %v5427_v23 = vadd.f32 %v5426_v21, %v5090_v15  ;;  %v4706_v41 = vpop.f32.mrb[13].mxu0  ;;  %v5092_v16 = vpop.f32.mrb[13].mxu1 }
 0x4fa   : > { %5244 = vst [vmem:[%s13665_s25 + $0xc8] sm:$0xff] %v4706_v41  ;;  %v5390_v51 = vadd.f32 %v5389_v50, %v4706_v41  ;;  %5246 = vst [vmem:[%s13665_s25 + $0xd8] sm:$0xff] %v5092_v16  ;;  %v5464_v18 = vadd.f32 %v5463_v14, %v5092_v16  ;;  %v4708_v8 = vpop.f32.mrb[14].mxu0  ;;  %v5094_v45 = vpop.f32.mrb[14].mxu1 }
 0x4fb   : > { %5247 = vst [vmem:[%s13665_s25 + $0xe0] sm:$0xff] %v4708_v8  ;;  %v5354_v33 = vadd.f32 %v5353_v32, %v4708_v8  ;;  %5249 = vst [vmem:[%s13665_s25 + $0xf0] sm:$0xff] %v5094_v45  ;;  %v5428_v56 = vadd.f32 %v5427_v23, %v5094_v45  ;;  %v4710_v40 = vpop.f32.mrb[15].mxu0  ;;  %v5096_v0 = vpop.f32.mrb[15].mxu1 }
 0x4fc   : > { %5248 = vst [vmem:[%s13665_s25 + $0xe8] sm:$0xff] %v4710_v40  ;;  %v5391_v7 = vadd.f32 %v5390_v51, %v4710_v40  ;;  %5250 = vst [vmem:[%s13665_s25 + $0xf8] sm:$0xff] %v5096_v0  ;;  %v5465_v43 = vadd.f32 %v5464_v18, %v5096_v0 }
 0x500   : > { %v4714_v4 = vpop.f32.mrb[16].mxu0  ;;  %v5100_v49 = vpop.f32.mrb[16].mxu1 }
 0x501   : > { %5251 = vst [vmem:[%s13665_s25 + $0x100] sm:$0xff] %v4714_v4  ;;  %v5355_v22 = vadd.f32 %v5354_v33, %v4714_v4  ;;  %5253 = vst [vmem:[%s13665_s25 + $0x110] sm:$0xff] %v5100_v49  ;;  %v5429_v1 = vadd.f32 %v5428_v56, %v5100_v49  ;;  %v4716_v9 = vpop.f32.mrb[17].mxu0  ;;  %v5102_v36 = vpop.f32.mrb[17].mxu1 }
 0x502   : > { %5252 = vst [vmem:[%s13665_s25 + $0x108] sm:$0xff] %v4716_v9  ;;  %v5392_v39 = vadd.f32 %v5391_v7, %v4716_v9  ;;  %5254 = vst [vmem:[%s13665_s25 + $0x118] sm:$0xff] %v5102_v36  ;;  %v5466_v59 = vadd.f32 %v5465_v43, %v5102_v36  ;;  %v4718_v57 = vpop.f32.mrb[18].mxu0  ;;  %v5104_v35 = vpop.f32.mrb[18].mxu1 }
 0x503   : > { %5255 = vst [vmem:[%s13665_s25 + $0x120] sm:$0xff] %v4718_v57  ;;  %v5356_v24 = vadd.f32 %v5355_v22, %v4718_v57  ;;  %5257 = vst [vmem:[%s13665_s25 + $0x130] sm:$0xff] %v5104_v35  ;;  %v5430_v61 = vadd.f32 %v5429_v1, %v5104_v35  ;;  %v4720_v26 = vpop.f32.mrb[19].mxu0  ;;  %v5106_v25 = vpop.f32.mrb[19].mxu1 }
 0x504   : > { %5256 = vst [vmem:[%s13665_s25 + $0x128] sm:$0xff] %v4720_v26  ;;  %v5393_v29 = vadd.f32 %v5392_v39, %v4720_v26  ;;  %5258 = vst [vmem:[%s13665_s25 + $0x138] sm:$0xff] %v5106_v25  ;;  %v5467_v31 = vadd.f32 %v5466_v59, %v5106_v25 }
 0x508   : > { %v4724_v60 = vpop.f32.mrb[20].mxu0  ;;  %v5110_v19 = vpop.f32.mrb[20].mxu1 }
 0x509   : > { %5259 = vst [vmem:[%s13665_s25 + $0x140] sm:$0xff] %v4724_v60  ;;  %v5357_v6 = vadd.f32 %v5356_v24, %v4724_v60  ;;  %5261 = vst [vmem:[%s13665_s25 + $0x150] sm:$0xff] %v5110_v19  ;;  %v5431_v54 = vadd.f32 %v5430_v61, %v5110_v19  ;;  %v4726_v34 = vpop.f32.mrb[21].mxu0  ;;  %v5112_v38 = vpop.f32.mrb[21].mxu1 }
 0x50a   : > { %5260 = vst [vmem:[%s13665_s25 + $0x148] sm:$0xff] %v4726_v34  ;;  %v5394_v28 = vadd.f32 %v5393_v29, %v4726_v34  ;;  %5262 = vst [vmem:[%s13665_s25 + $0x158] sm:$0xff] %v5112_v38  ;;  %v5468_v52 = vadd.f32 %v5467_v31, %v5112_v38  ;;  %v4728_v5 = vpop.f32.mrb[22].mxu0  ;;  %v5114_v17 = vpop.f32.mrb[22].mxu1 }
 0x50b   : > { %5263 = vst [vmem:[%s13665_s25 + $0x160] sm:$0xff] %v4728_v5  ;;  %v5358_v30 = vadd.f32 %v5357_v6, %v4728_v5  ;;  %5265 = vst [vmem:[%s13665_s25 + $0x170] sm:$0xff] %v5114_v17  ;;  %v5432_v12 = vadd.f32 %v5431_v54, %v5114_v17  ;;  %v4730_v53 = vpop.f32.mrb[23].mxu0  ;;  %v5116_v55 = vpop.f32.mrb[23].mxu1 }
 0x50c   : > { %5264 = vst [vmem:[%s13665_s25 + $0x168] sm:$0xff] %v4730_v53  ;;  %v5395_v11 = vadd.f32 %v5394_v28, %v4730_v53  ;;  %5266 = vst [vmem:[%s13665_s25 + $0x178] sm:$0xff] %v5116_v55  ;;  %v5469_v46 = vadd.f32 %v5468_v52, %v5116_v55 }
 0x510   : > { %v4734_v62 = vpop.f32.mrb[24].mxu0  ;;  %v5120_v27 = vpop.f32.mrb[24].mxu1 }
 0x511   : > { %5267 = vst [vmem:[%s13665_s25 + $0x180] sm:$0xff] %v4734_v62  ;;  %v5359_v58 = vadd.f32 %v5358_v30, %v4734_v62  ;;  %5269 = vst [vmem:[%s13665_s25 + $0x190] sm:$0xff] %v5120_v27  ;;  %v5433_v48 = vadd.f32 %v5432_v12, %v5120_v27  ;;  %v4736_v42 = vpop.f32.mrb[25].mxu0  ;;  %v5122_v63 = vpop.f32.mrb[25].mxu1 }
 0x512   : > { %5268 = vst [vmem:[%s13665_s25 + $0x188] sm:$0xff] %v4736_v42  ;;  %v5396_v37 = vadd.f32 %v5395_v11, %v4736_v42  ;;  %5270 = vst [vmem:[%s13665_s25 + $0x198] sm:$0xff] %v5122_v63  ;;  %v5470_v10 = vadd.f32 %v5469_v46, %v5122_v63  ;;  %v4738_v3 = vpop.f32.mrb[26].mxu0  ;;  %v5124_v2 = vpop.f32.mrb[26].mxu1 }
 0x513   : > { %5271 = vst [vmem:[%s13665_s25 + $0x1a0] sm:$0xff] %v4738_v3  ;;  %v5360_v20 = vadd.f32 %v5359_v58, %v4738_v3  ;;  %5273 = vst [vmem:[%s13665_s25 + $0x1b0] sm:$0xff] %v5124_v2  ;;  %v5434_v21 = vadd.f32 %v5433_v48, %v5124_v2  ;;  %v4740_v13 = vpop.f32.mrb[27].mxu0  ;;  %v5126_v44 = vpop.f32.mrb[27].mxu1 }
 0x514   : > { %5272 = vst [vmem:[%s13665_s25 + $0x1a8] sm:$0xff] %v4740_v13  ;;  %v5397_v50 = vadd.f32 %v5396_v37, %v4740_v13  ;;  %5274 = vst [vmem:[%s13665_s25 + $0x1b8] sm:$0xff] %v5126_v44  ;;  %v5471_v14 = vadd.f32 %v5470_v10, %v5126_v44 }
 0x518   : > { %v4744_v47 = vpop.f32.mrb[28].mxu0  ;;  %v5130_v15 = vpop.f32.mrb[28].mxu1 }
 0x519   : > { %5275 = vst [vmem:[%s13665_s25 + $0x1c0] sm:$0xff] %v4744_v47  ;;  %v5361_v32 = vadd.f32 %v5360_v20, %v4744_v47  ;;  %5277 = vst [vmem:[%s13665_s25 + $0x1d0] sm:$0xff] %v5130_v15  ;;  %v5435_v23 = vadd.f32 %v5434_v21, %v5130_v15  ;;  %v4746_v41 = vpop.f32.mrb[29].mxu0  ;;  %v5132_v16 = vpop.f32.mrb[29].mxu1 }
 0x51a   : > { %5276 = vst [vmem:[%s13665_s25 + $0x1c8] sm:$0xff] %v4746_v41  ;;  %v5398_v51 = vadd.f32 %v5397_v50, %v4746_v41  ;;  %5278 = vst [vmem:[%s13665_s25 + $0x1d8] sm:$0xff] %v5132_v16  ;;  %v5472_v18 = vadd.f32 %v5471_v14, %v5132_v16  ;;  %v4748_v8 = vpop.f32.mrb[30].mxu0  ;;  %v5134_v45 = vpop.f32.mrb[30].mxu1 }
 0x51b   : > { %5279 = vst [vmem:[%s13665_s25 + $0x1e0] sm:$0xff] %v4748_v8  ;;  %v5362_v33 = vadd.f32 %v5361_v32, %v4748_v8  ;;  %5281 = vst [vmem:[%s13665_s25 + $0x1f0] sm:$0xff] %v5134_v45  ;;  %v5436_v56 = vadd.f32 %v5435_v23, %v5134_v45  ;;  %v4750_v40 = vpop.f32.mrb[31].mxu0  ;;  %v5136_v0 = vpop.f32.mrb[31].mxu1 }
 0x51c   : > { %5280 = vst [vmem:[%s13665_s25 + $0x1e8] sm:$0xff] %v4750_v40  ;;  %v5399_v7 = vadd.f32 %v5398_v51, %v4750_v40  ;;  %5282 = vst [vmem:[%s13665_s25 + $0x1f8] sm:$0xff] %v5136_v0  ;;  %v5473_v43 = vadd.f32 %v5472_v18, %v5136_v0 }
 0x520   : > { %v4754_v4 = vpop.f32.mrb[32].mxu0  ;;  %v5140_v49 = vpop.f32.mrb[32].mxu1 }
 0x521   : > { %5283 = vst [vmem:[%s13665_s25 + $0x200] sm:$0xff] %v4754_v4  ;;  %v5363_v22 = vadd.f32 %v5362_v33, %v4754_v4  ;;  %5285 = vst [vmem:[%s13665_s25 + $0x210] sm:$0xff] %v5140_v49  ;;  %v5437_v1 = vadd.f32 %v5436_v56, %v5140_v49  ;;  %v4756_v9 = vpop.f32.mrb[33].mxu0  ;;  %v5142_v36 = vpop.f32.mrb[33].mxu1 }
 0x522   : > { %5284 = vst [vmem:[%s13665_s25 + $0x208] sm:$0xff] %v4756_v9  ;;  %v5400_v39 = vadd.f32 %v5399_v7, %v4756_v9  ;;  %5286 = vst [vmem:[%s13665_s25 + $0x218] sm:$0xff] %v5142_v36  ;;  %v5474_v59 = vadd.f32 %v5473_v43, %v5142_v36  ;;  %v4758_v57 = vpop.f32.mrb[34].mxu0  ;;  %v5144_v35 = vpop.f32.mrb[34].mxu1 }
 0x523   : > { %5287 = vst [vmem:[%s13665_s25 + $0x220] sm:$0xff] %v4758_v57  ;;  %v5364_v24 = vadd.f32 %v5363_v22, %v4758_v57  ;;  %5289 = vst [vmem:[%s13665_s25 + $0x230] sm:$0xff] %v5144_v35  ;;  %v5438_v61 = vadd.f32 %v5437_v1, %v5144_v35  ;;  %v4760_v26 = vpop.f32.mrb[35].mxu0  ;;  %v5146_v25 = vpop.f32.mrb[35].mxu1 }
 0x524   : > { %5288 = vst [vmem:[%s13665_s25 + $0x228] sm:$0xff] %v4760_v26  ;;  %v5401_v29 = vadd.f32 %v5400_v39, %v4760_v26  ;;  %5290 = vst [vmem:[%s13665_s25 + $0x238] sm:$0xff] %v5146_v25  ;;  %v5475_v31 = vadd.f32 %v5474_v59, %v5146_v25 }
 0x528   : > { %v4764_v60 = vpop.f32.mrb[36].mxu0  ;;  %v5150_v19 = vpop.f32.mrb[36].mxu1 }
 0x529   : > { %5291 = vst [vmem:[%s13665_s25 + $0x240] sm:$0xff] %v4764_v60  ;;  %v5365_v6 = vadd.f32 %v5364_v24, %v4764_v60  ;;  %5293 = vst [vmem:[%s13665_s25 + $0x250] sm:$0xff] %v5150_v19  ;;  %v5439_v54 = vadd.f32 %v5438_v61, %v5150_v19  ;;  %v4766_v34 = vpop.f32.mrb[37].mxu0  ;;  %v5152_v38 = vpop.f32.mrb[37].mxu1 }
 0x52a   : > { %5292 = vst [vmem:[%s13665_s25 + $0x248] sm:$0xff] %v4766_v34  ;;  %v5402_v28 = vadd.f32 %v5401_v29, %v4766_v34  ;;  %5294 = vst [vmem:[%s13665_s25 + $0x258] sm:$0xff] %v5152_v38  ;;  %v5476_v52 = vadd.f32 %v5475_v31, %v5152_v38  ;;  %v4768_v5 = vpop.f32.mrb[38].mxu0  ;;  %v5154_v17 = vpop.f32.mrb[38].mxu1 }
 0x52b   : > { %5295 = vst [vmem:[%s13665_s25 + $0x260] sm:$0xff] %v4768_v5  ;;  %v5366_v30 = vadd.f32 %v5365_v6, %v4768_v5  ;;  %5297 = vst [vmem:[%s13665_s25 + $0x270] sm:$0xff] %v5154_v17  ;;  %v5440_v12 = vadd.f32 %v5439_v54, %v5154_v17  ;;  %v4770_v53 = vpop.f32.mrb[39].mxu0  ;;  %v5156_v55 = vpop.f32.mrb[39].mxu1 }
 0x52c   : > { %5296 = vst [vmem:[%s13665_s25 + $0x268] sm:$0xff] %v4770_v53  ;;  %v5403_v11 = vadd.f32 %v5402_v28, %v4770_v53  ;;  %5298 = vst [vmem:[%s13665_s25 + $0x278] sm:$0xff] %v5156_v55  ;;  %v5477_v46 = vadd.f32 %v5476_v52, %v5156_v55 }
 0x530   : > { %v4774_v62 = vpop.f32.mrb[40].mxu0  ;;  %v5160_v27 = vpop.f32.mrb[40].mxu1 }
 0x531   : > { %5299 = vst [vmem:[%s13665_s25 + $0x280] sm:$0xff] %v4774_v62  ;;  %v5367_v58 = vadd.f32 %v5366_v30, %v4774_v62  ;;  %5301 = vst [vmem:[%s13665_s25 + $0x290] sm:$0xff] %v5160_v27  ;;  %v5441_v48 = vadd.f32 %v5440_v12, %v5160_v27  ;;  %v4776_v42 = vpop.f32.mrb[41].mxu0  ;;  %v5162_v63 = vpop.f32.mrb[41].mxu1 }
 0x532   : > { %5300 = vst [vmem:[%s13665_s25 + $0x288] sm:$0xff] %v4776_v42  ;;  %v5404_v37 = vadd.f32 %v5403_v11, %v4776_v42  ;;  %5302 = vst [vmem:[%s13665_s25 + $0x298] sm:$0xff] %v5162_v63  ;;  %v5478_v10 = vadd.f32 %v5477_v46, %v5162_v63  ;;  %v4778_v3 = vpop.f32.mrb[42].mxu0  ;;  %v5164_v2 = vpop.f32.mrb[42].mxu1 }
 0x533   : > { %5303 = vst [vmem:[%s13665_s25 + $0x2a0] sm:$0xff] %v4778_v3  ;;  %v5368_v20 = vadd.f32 %v5367_v58, %v4778_v3  ;;  %5305 = vst [vmem:[%s13665_s25 + $0x2b0] sm:$0xff] %v5164_v2  ;;  %v5442_v21 = vadd.f32 %v5441_v48, %v5164_v2  ;;  %v4780_v13 = vpop.f32.mrb[43].mxu0  ;;  %v5166_v44 = vpop.f32.mrb[43].mxu1 }
 0x534   : > { %5304 = vst [vmem:[%s13665_s25 + $0x2a8] sm:$0xff] %v4780_v13  ;;  %v5405_v50 = vadd.f32 %v5404_v37, %v4780_v13  ;;  %5306 = vst [vmem:[%s13665_s25 + $0x2b8] sm:$0xff] %v5166_v44  ;;  %v5479_v14 = vadd.f32 %v5478_v10, %v5166_v44 }
 0x538   : > { %v4784_v47 = vpop.f32.mrb[44].mxu0  ;;  %v5170_v15 = vpop.f32.mrb[44].mxu1 }
 0x539   : > { %5307 = vst [vmem:[%s13665_s25 + $0x2c0] sm:$0xff] %v4784_v47  ;;  %v5369_v32 = vadd.f32 %v5368_v20, %v4784_v47  ;;  %5309 = vst [vmem:[%s13665_s25 + $0x2d0] sm:$0xff] %v5170_v15  ;;  %v5443_v23 = vadd.f32 %v5442_v21, %v5170_v15  ;;  %v4786_v41 = vpop.f32.mrb[45].mxu0  ;;  %v5172_v16 = vpop.f32.mrb[45].mxu1 }
 0x53a   : > { %5308 = vst [vmem:[%s13665_s25 + $0x2c8] sm:$0xff] %v4786_v41  ;;  %v5406_v51 = vadd.f32 %v5405_v50, %v4786_v41  ;;  %5310 = vst [vmem:[%s13665_s25 + $0x2d8] sm:$0xff] %v5172_v16  ;;  %v5480_v18 = vadd.f32 %v5479_v14, %v5172_v16  ;;  %v4788_v8 = vpop.f32.mrb[46].mxu0  ;;  %v5174_v45 = vpop.f32.mrb[46].mxu1 }
 0x53b   : > { %5311 = vst [vmem:[%s13665_s25 + $0x2e0] sm:$0xff] %v4788_v8  ;;  %v5370_v33 = vadd.f32 %v5369_v32, %v4788_v8  ;;  %5313 = vst [vmem:[%s13665_s25 + $0x2f0] sm:$0xff] %v5174_v45  ;;  %v5444_v56 = vadd.f32 %v5443_v23, %v5174_v45  ;;  %v4790_v40 = vpop.f32.mrb[47].mxu0  ;;  %v5176_v0 = vpop.f32.mrb[47].mxu1 }
 0x53c   : > { %5312 = vst [vmem:[%s13665_s25 + $0x2e8] sm:$0xff] %v4790_v40  ;;  %v5407_v7 = vadd.f32 %v5406_v51, %v4790_v40  ;;  %5314 = vst [vmem:[%s13665_s25 + $0x2f8] sm:$0xff] %v5176_v0  ;;  %v5481_v43 = vadd.f32 %v5480_v18, %v5176_v0 }
 0x540   : > { %v4794_v4 = vpop.f32.mrb[48].mxu0  ;;  %v5180_v49 = vpop.f32.mrb[48].mxu1 }
 0x541   : > { %5315 = vst [vmem:[%s13665_s25 + $0x300] sm:$0xff] %v4794_v4  ;;  %v5371_v22 = vadd.f32 %v5370_v33, %v4794_v4  ;;  %5317 = vst [vmem:[%s13665_s25 + $0x310] sm:$0xff] %v5180_v49  ;;  %v5445_v1 = vadd.f32 %v5444_v56, %v5180_v49  ;;  %v4796_v9 = vpop.f32.mrb[49].mxu0  ;;  %v5182_v36 = vpop.f32.mrb[49].mxu1 }
 0x542   : > { %5316 = vst [vmem:[%s13665_s25 + $0x308] sm:$0xff] %v4796_v9  ;;  %v5408_v39 = vadd.f32 %v5407_v7, %v4796_v9  ;;  %5318 = vst [vmem:[%s13665_s25 + $0x318] sm:$0xff] %v5182_v36  ;;  %v5482_v59 = vadd.f32 %v5481_v43, %v5182_v36  ;;  %v4798_v57 = vpop.f32.mrb[50].mxu0  ;;  %v5184_v35 = vpop.f32.mrb[50].mxu1 }
 0x543   : > { %5319 = vst [vmem:[%s13665_s25 + $0x320] sm:$0xff] %v4798_v57  ;;  %v5372_v24 = vadd.f32 %v5371_v22, %v4798_v57  ;;  %5321 = vst [vmem:[%s13665_s25 + $0x330] sm:$0xff] %v5184_v35  ;;  %v5446_v61 = vadd.f32 %v5445_v1, %v5184_v35  ;;  %v4800_v26 = vpop.f32.mrb[51].mxu0  ;;  %v5186_v25 = vpop.f32.mrb[51].mxu1 }
 0x544   : > { %5320 = vst [vmem:[%s13665_s25 + $0x328] sm:$0xff] %v4800_v26  ;;  %v5409_v29 = vadd.f32 %v5408_v39, %v4800_v26  ;;  %5322 = vst [vmem:[%s13665_s25 + $0x338] sm:$0xff] %v5186_v25  ;;  %v5483_v31 = vadd.f32 %v5482_v59, %v5186_v25  ;;  %v10924_v59 = vmov 1966171168  }
 0x545   : > { %v5503_v57 = vunpack.c.l.s4 %v10924_v59 }
 0x548   : > { %v4804_v60 = vpop.f32.mrb[52].mxu0  ;;  %v5190_v19 = vpop.f32.mrb[52].mxu1 }
 0x549   : > { %5323 = vst [vmem:[%s13665_s25 + $0x340] sm:$0xff] %v4804_v60  ;;  %v5373_v6 = vadd.f32 %v5372_v24, %v4804_v60  ;;  %5325 = vst [vmem:[%s13665_s25 + $0x350] sm:$0xff] %v5190_v19  ;;  %v5447_v54 = vadd.f32 %v5446_v61, %v5190_v19  ;;  %v4806_v34 = vpop.f32.mrb[53].mxu0  ;;  %v5192_v38 = vpop.f32.mrb[53].mxu1  ;;  %v5504_v19 = vunpack.c.0.s8 %v5503_v57 }
 0x54a   : > { %5324 = vst [vmem:[%s13665_s25 + $0x348] sm:$0xff] %v4806_v34  ;;  %v5410_v28 = vadd.f32 %v5409_v29, %v4806_v34  ;;  %5326 = vst [vmem:[%s13665_s25 + $0x358] sm:$0xff] %v5192_v38  ;;  %v5484_v52 = vadd.f32 %v5483_v31, %v5192_v38  ;;  %v4808_v5 = vpop.f32.mrb[54].mxu0  ;;  %v5194_v17 = vpop.f32.mrb[54].mxu1 }
 0x54b   : > { %5327 = vst [vmem:[%s13665_s25 + $0x360] sm:$0xff] %v4808_v5  ;;  %v5374_v30 = vadd.f32 %v5373_v6, %v4808_v5  ;;  %5329 = vst [vmem:[%s13665_s25 + $0x370] sm:$0xff] %v5194_v17  ;;  %v5448_v12 = vadd.f32 %v5447_v54, %v5194_v17  ;;  %v4810_v53 = vpop.f32.mrb[55].mxu0  ;;  %v5196_v55 = vpop.f32.mrb[55].mxu1 }
 0x54c   : > { %5328 = vst [vmem:[%s13665_s25 + $0x368] sm:$0xff] %v4810_v53  ;;  %v5411_v11 = vadd.f32 %v5410_v28, %v4810_v53  ;;  %5330 = vst [vmem:[%s13665_s25 + $0x378] sm:$0xff] %v5196_v55  ;;  %v5485_v46 = vadd.f32 %v5484_v52, %v5196_v55 }
 0x550   : > { %v4814_v62 = vpop.f32.mrb[56].mxu0  ;;  %v5200_v27 = vpop.f32.mrb[56].mxu1 }
 0x551   : > { %5331 = vst [vmem:[%s13665_s25 + $0x380] sm:$0xff] %v4814_v62  ;;  %v5375_v58 = vadd.f32 %v5374_v30, %v4814_v62  ;;  %5333 = vst [vmem:[%s13665_s25 + $0x390] sm:$0xff] %v5200_v27  ;;  %v5449_v48 = vadd.f32 %v5448_v12, %v5200_v27  ;;  %v4816_v42 = vpop.f32.mrb[57].mxu0  ;;  %v5202_v63 = vpop.f32.mrb[57].mxu1  ;;  %v19934_v30 = vld [vmem:[#allocation9_spill] sm:$0xff] }
 0x552   : > { %5332 = vst [vmem:[%s13665_s25 + $0x388] sm:$0xff] %v4816_v42  ;;  %v5412_v37 = vadd.f32 %v5411_v11, %v4816_v42  ;;  %5334 = vst [vmem:[%s13665_s25 + $0x398] sm:$0xff] %v5202_v63  ;;  %v5486_v10 = vadd.f32 %v5485_v46, %v5202_v63  ;;  %v4818_v3 = vpop.f32.mrb[58].mxu0  ;;  %v5204_v2 = vpop.f32.mrb[58].mxu1  ;;  %v5507_v12 = vsub.s32 %v5504_v19, %v19934_v30  ;;  %v19935_v42 = vlaneseq }
 0x553   : > { %5335 = vst [vmem:[%s13665_s25 + $0x3a0] sm:$0xff] %v4818_v3  ;;  %v5376_v20 = vadd.f32 %v5375_v58, %v4818_v3  ;;  %5337 = vst [vmem:[%s13665_s25 + $0x3b0] sm:$0xff] %v5204_v2  ;;  %v5450_v21 = vadd.f32 %v5449_v48, %v5204_v2  ;;  %v4820_v13 = vpop.f32.mrb[59].mxu0  ;;  %v5206_v44 = vpop.f32.mrb[59].mxu1  ;;  %v5347_v58 = vld [vmem:[#allocation3] sm:$0xf] }
 0x554   : > { %5336 = vst [vmem:[%s13665_s25 + $0x3a8] sm:$0xff] %v4820_v13  ;;  %v5413_v50 = vadd.f32 %v5412_v37, %v4820_v13  ;;  %5338 = vst [vmem:[%s13665_s25 + $0x3b8] sm:$0xff] %v5206_v44  ;;  %v5487_v14 = vadd.f32 %v5486_v10, %v5206_v44  ;;  %vm5528_vm5 = vcmp.lt.s32.totalorder %v19935_v42, 512 }
 0x558   : > { %v4824_v47 = vpop.f32.mrb[60].mxu0  ;;  %v5210_v15 = vpop.f32.mrb[60].mxu1 }
 0x559   : > { %5339 = vst [vmem:[%s13665_s25 + $0x3c0] sm:$0xff] %v4824_v47  ;;  %v5377_v32 = vadd.f32 %v5376_v20, %v4824_v47  ;;  %5341 = vst [vmem:[%s13665_s25 + $0x3d0] sm:$0xff] %v5210_v15  ;;  %v5451_v23 = vadd.f32 %v5450_v21, %v5210_v15  ;;  %v4826_v41 = vpop.f32.mrb[61].mxu0  ;;  %v5212_v16 = vpop.f32.mrb[61].mxu1 }
 0x55a   : > { %5340 = vst [vmem:[%s13665_s25 + $0x3c8] sm:$0xff] %v4826_v41  ;;  %v5414_v51 = vadd.f32 %v5413_v50, %v4826_v41  ;;  %5342 = vst [vmem:[%s13665_s25 + $0x3d8] sm:$0xff] %v5212_v16  ;;  %v5488_v18 = vadd.f32 %v5487_v14, %v5212_v16  ;;  %v4828_v8 = vpop.f32.mrb[62].mxu0  ;;  %v5214_v45 = vpop.f32.mrb[62].mxu1 }
 0x55b   : > { %5343 = vst [vmem:[%s13665_s25 + $0x3e0] sm:$0xff] %v4828_v8  ;;  %v5378_v33 = vadd.f32 %v5377_v32, %v4828_v8  ;;  %5345 = vst [vmem:[%s13665_s25 + $0x3f0] sm:$0xff] %v5214_v45  ;;  %v5452_v56 = vadd.f32 %v5451_v23, %v5214_v45  ;;  %v4830_v40 = vpop.f32.mrb[63].mxu0  ;;  %v5216_v0 = vpop.f32.mrb[63].mxu1 }
 0x55c   : > { %5344 = vst [vmem:[%s13665_s25 + $0x3e8] sm:$0xff] %v4830_v40  ;;  %v5415_v7 = vadd.f32 %v5414_v51, %v4830_v40  ;;  %5346 = vst [vmem:[%s13665_s25 + $0x3f8] sm:$0xff] %v5216_v0  ;;  %v5489_v43 = vadd.f32 %v5488_v18, %v5216_v0 }
 0x55d   : > { %v5379_v4 = vrot.slane %v5378_v33, 4  ;;  %v5453_v49 = vrot.slane %v5452_v56, 4 }
 0x55e   : > { %v5416_v22 = vrot.slane %v5415_v7, 4  ;;  %v5490_v1 = vrot.slane %v5489_v43, 4 }
 0x55f   : > { %v5380_v9 = vadd.f32 %v5379_v4, %v5378_v33  ;;  %v5454_v36 = vadd.f32 %v5453_v49, %v5452_v56 }
 0x560   : > { %v5417_v39 = vadd.f32 %v5416_v22, %v5415_v7  ;;  %v5491_v35 = vadd.f32 %v5490_v1, %v5489_v43 }
 0x561   : > { %v5381_v24 = vrot.slane %v5380_v9, 2  ;;  %v5455_v61 = vrot.slane %v5454_v36, 2 }
 0x562   : > { %v5418_v26 = vrot.slane %v5417_v39, 2  ;;  %v5492_v25 = vrot.slane %v5491_v35, 2 }
 0x563   : > { %v5382_v29 = vadd.f32 %v5381_v24, %v5380_v9  ;;  %v5456_v31 = vadd.f32 %v5455_v61, %v5454_v36 }
 0x564   : > { %v5419_v60 = vadd.f32 %v5418_v26, %v5417_v39  ;;  %v5493_v6 = vadd.f32 %v5492_v25, %v5491_v35 }
 0x565   : > { %v5383_v54 = vrot.slane %v5382_v29, 1  ;;  %v5457_v34 = vrot.slane %v5456_v31, 1 }
 0x566   : > { %v5420_v38 = vrot.slane %v5419_v60, 1  ;;  %v5494_v28 = vrot.slane %v5493_v6, 1 }
 0x567   : > { %v5384_v52 = vadd.f32 %v5383_v54, %v5382_v29  ;;  %v5458_v5 = vadd.f32 %v5457_v34, %v5456_v31 }
 0x568   : > { %v5421_v17 = vadd.f32 %v5420_v38, %v5419_v60  ;;  %v5495_v53 = vadd.f32 %v5494_v28, %v5493_v6 }
 0x56a   : > { %v5500_v55 = vcombine.low %v5384_v52, %v5421_v17  ;;  %v5501_v11 = vcombine.low %v5458_v5, %v5495_v53 }
 0x56c   : > { %v5508_v46 = vrot.slane %v5500_v55, %v5507_v12  ;;  %v5515_v62 = vrot.slane %v5501_v11, %v5507_v12 }
 0x56e   : > { %v5516_v27 = vcombine.low %v5508_v46, %v5515_v62 }
 0x570   : > { %v5523_v48 = vrot.slane %v5516_v27, %v5507_v12 }
 0x572   : > { %v5525_v63 = vadd.f32 %v5523_v48, %v5347_v58 }
 0x574   : > { %5530 = vst.msk [vmem:[#allocation3] sm:$0xf] %vm5528_vm5, %v5525_v63 }
 0x575 PF: > { %p5532_p8 = pnand %p1845_p1, %p444_p9 }
 0x577   : > { %5535 = sbr.rel (%p5532_p8) target bundleno = 1694 (0x69e), region = 87 }
 0x57e   : > { %v5536_v37 = vld [vmem:[#allocation3] sm:$0xf]  ;;  %v15471_v3 = vmov 0.0   ;;  %v15473_v2 = vmov 0.0   ;;  %v15475_v20 = vmov 0.0   ;;  %v15477_v21 = vmov 0.0  }
 0x57f   : > { %v15469_v10 = vmul.f32 0.0026041667, %v5536_v37  ;;  %s15479_s24 = smov 0  }
 0x581   : > { %19936 = vst [vmem:[#allocation200_spill] sm:$0xff] %v15469_v10 }
 0x582 LB: >> { %19938 = vst [vmem:[#allocation201_spill] sm:$0xff] %v10899_v3  ;;  %19939 = vst [vmem:[#allocation202_spill] sm:$0xff] %v10903_v2  ;;  %s9552_s25 = sshll.u32 %s10915_s24, 8  ;;  %s9692_s28 = sshll.u32 %s10915_s24, 10  ;;  %v19942_v44 = vld [vmem:[#allocation9_spill] sm:$0xff]  ;;  %v19943_v23 = vld [vmem:[#allocation10_spill] sm:$0xff]  ;;  %v10899_v3 = vphi %v15471_v3, %v20486_v3   ;;  %s10915_s24 = sphi %s15479_s24, %s5543_s24   ;;  %v10911_v21 = vphi %v15477_v21, %v20489_v21   ;;  %v10907_v20 = vphi %v15475_v20, %v20488_v20   ;;  %v10903_v2 = vphi %v15473_v2, %v20487_v2  }
 0x583   : >> { %19940 = vst [vmem:[#allocation203_spill] sm:$0xff] %v10907_v20  ;;  %19941 = vst [vmem:[#allocation204_spill] sm:$0xff] %v10911_v21  ;;  %v5680_v13 = vstv %s9552_s25  ;;  %v5748_v50 = vsub.s32 0, %v19942_v44  ;;  %v5752_v14 = vsub.s32 1, %v19942_v44  ;;  %v5756_v47 = vsub.s32 2, %v19942_v44  ;;  %v19944_v16 = vld [vmem:[#allocation11_spill] sm:$0xff] }
 0x584   : >> { %v5760_v15 = vsub.s32 3, %v19942_v44  ;;  %v15503_v32 = vadd.s32 %v5680_v13, %v19942_v44  ;;  %v15506_v41 = vadd.s32 %v5680_v13, %v19943_v23  ;;  %v15509_v51 = vadd.s32 %v5680_v13, %v19944_v16  ;;  %v19945_v18 = vld [vmem:[#allocation12_spill] sm:$0xff]  ;;  %v19946_v45 = vld [vmem:[#allocation13_spill] sm:$0xff]  ;;  %v19947_v56 = vld [vmem:[#allocation14_spill] sm:$0xff]  ;;  %s15550_s11 = scalar_lea.vmem [#allocation2], %s9692_s28  ;;  %s5543_s24 = sadd.s32 1, %s10915_s24  }
 0x585   : >> { %v15512_v8 = vadd.s32 %v5680_v13, %v19945_v18  ;;  %v15515_v33 = vadd.s32 %v5680_v13, %v19946_v45  ;;  %v15518_v40 = vadd.s32 %v5680_v13, %v19947_v56  ;;  %v19948_v0 = vld [vmem:[#allocation15_spill] sm:$0xff]  ;;  %v19949_v43 = vld [vmem:[#allocation16_spill] sm:$0xff]  ;;  %v19950_v49 = vld [vmem:[#allocation17_spill] sm:$0xff]  ;;  %p5540_p10 = scmp.ge.s32.totalorder %s5543_s24, 2  }
 0x586   : >> { %v15521_v7 = vadd.s32 %v5680_v13, %v19948_v0  ;;  %v15524_v4 = vadd.s32 %v5680_v13, %v19949_v43  ;;  %v15527_v22 = vadd.s32 %v5680_v13, %v19950_v49  ;;  %v19951_v1 = vld [vmem:[#allocation18_spill] sm:$0xff]  ;;  %v19952_v36 = vld [vmem:[#allocation19_spill] sm:$0xff]  ;;  %v19953_v59 = vld [vmem:[#allocation20_spill] sm:$0xff]  ;;  %vm5713_vm9 = vcmp.lt.s32.totalorder %v15503_v32, 384 }
 0x587   : >> { %v15530_v9 = vadd.s32 %v5680_v13, %v19951_v1  ;;  %v15533_v39 = vadd.s32 %v5680_v13, %v19952_v36  ;;  %v15536_v57 = vadd.s32 %v5680_v13, %v19953_v59  ;;  %v19954_v35 = vld [vmem:[#allocation21_spill] sm:$0xff]  ;;  %v19955_v61 = vld [vmem:[#allocation22_spill] sm:$0xff]  ;;  %v19956_v25 = vld [vmem:[#allocation23_spill] sm:$0xff]  ;;  %vm5714_vm12 = vcmp.lt.s32.totalorder %v15506_v41, 384 }
 0x588   : >> { %v19937_v10 = vld [vmem:[#allocation200_spill] sm:$0xff]  ;;  %v15539_v24 = vadd.s32 %v5680_v13, %v19954_v35  ;;  %v15542_v26 = vadd.s32 %v5680_v13, %v19955_v61  ;;  %v15545_v29 = vadd.s32 %v5680_v13, %v19956_v25  ;;  %v19957_v31 = vld [vmem:[#allocation24_spill] sm:$0xff]  ;;  %v15562_v34 = vld [vmem:[%s15550_s11 + $0x18] sm:$0xff]  ;;  %vm5715_vm11 = vcmp.lt.s32.totalorder %v15509_v51, 384 }
 0x589   : >> { %v15548_v60 = vadd.s32 %v5680_v13, %v19957_v31  ;;  %v15553_v19 = vld [vmem:[%s15550_s11] sm:$0xff]  ;;  %v15556_v6 = vld [vmem:[%s15550_s11 + $0x8] sm:$0xff]  ;;  %v15559_v54 = vld [vmem:[%s15550_s11 + $0x10] sm:$0xff]  ;;  %v15589_v27 = vrot.slane %v19937_v10, %v5748_v50  ;;  %v15592_v58 = vrot.slane %v19937_v10, %v5752_v14  ;;  %v15595_v48 = vrot.slane %v19937_v10, %v5756_v47 }
 0x58a   : >> { %v19959_v38 = vld [vmem:[#allocation25_spill] sm:$0xff]  ;;  %v19961_v52 = vld [vmem:[#allocation26_spill] sm:$0xff]  ;;  %v19963_v17 = vld [vmem:[#allocation27_spill] sm:$0xff]  ;;  %v15598_v42 = vrot.slane %v19937_v10, %v5760_v15  ;;  %vm5716_vm7 = vcmp.lt.s32.totalorder %v15512_v8, 384  ;;  %vm5717_vm8 = vcmp.lt.s32.totalorder %v15515_v33, 384  ;;  %vm5718_vm6 = vcmp.lt.s32.totalorder %v15518_v40, 384 }
 0x58b   : >> { %19958 = vst [vmem:[#allocation205_spill] sm:$0xff] %v15548_v60  ;;  %v15565_v28 = vadd.s32 %v5680_v13, %v19959_v38  ;;  %v15568_v5 = vadd.s32 %v5680_v13, %v19961_v52  ;;  %v15571_v30 = vadd.s32 %v5680_v13, %v19963_v17  ;;  %v19965_v12 = vld [vmem:[#allocation28_spill] sm:$0xff]  ;;  %v15583_v46 = vld [vmem:[%s15550_s11 + $0x30] sm:$0xff]  ;;  %v15586_v62 = vld [vmem:[%s15550_s11 + $0x38] sm:$0xff]  ;;  %vm5719_vm13 = vcmp.lt.s32.totalorder %v15521_v7, 384 }
 0x58c   : >> { %v15574_v53 = vadd.s32 %v5680_v13, %v19965_v12  ;;  %v15577_v55 = vld [vmem:[%s15550_s11 + $0x20] sm:$0xff]  ;;  %v15580_v11 = vld [vmem:[%s15550_s11 + $0x28] sm:$0xff]  ;;  %v15607_v44 = vld [vmem:[%s15550_s11 + $0x50] sm:$0xff]  ;;  %vm5720_vm2 = vcmp.lt.s32.totalorder %v15524_v4, 384  ;;  %vm5721_vm1 = vcmp.lt.s32.totalorder %v15527_v22, 384  ;;  %vm5722_vm0 = vcmp.lt.s32.totalorder %v15530_v9, 384 }
 0x58d   : >> { %19960 = vst [vmem:[#allocation206_spill] sm:$0xff] %v15565_v28  ;;  %19962 = vst [vmem:[#allocation207_spill] sm:$0xff] %v15568_v5  ;;  %v15601_v63 = vld [vmem:[%s15550_s11 + $0x40] sm:$0xff]  ;;  %v15604_v37 = vld [vmem:[%s15550_s11 + $0x48] sm:$0xff]  ;;  %vm5723_vm4 = vcmp.lt.s32.totalorder %v15533_v39, 384  ;;  %vm5724_vm14 = vcmp.lt.s32.totalorder %v15536_v57, 384  ;;  %v20086_v32 = vsub.f32 %v15583_v46, %v15595_v48  ;;  %v20090_v41 = vsub.f32 %v15607_v44, %v15595_v48 }
 0x58e   : >> { %19964 = vst [vmem:[#allocation208_spill] sm:$0xff] %v15571_v30  ;;  %19966 = vst [vmem:[#allocation209_spill] sm:$0xff] %v15574_v53  ;;  %v15610_v50 = vld [vmem:[%s15550_s11 + $0x58] sm:$0xff]  ;;  %v19967_v23 = vld [vmem:[#allocation29_spill] sm:$0xff]  ;;  %vm5725_vm10 = vcmp.lt.s32.totalorder %v15539_v24, 384  ;;  %vm5726_vm3 = vcmp.lt.s32.totalorder %v15542_v26, 384  ;;  %v20089_v46 = vsub.f32 %v15604_v37, %v15592_v58 }
 0x58f   : >> { %v15613_v14 = vadd.s32 %v5680_v13, %v19967_v23  ;;  %v19969_v47 = vld [vmem:[#allocation30_spill] sm:$0xff]  ;;  %v19971_v15 = vld [vmem:[#allocation31_spill] sm:$0xff]  ;;  %v19973_v45 = vld [vmem:[#allocation32_spill] sm:$0xff]  ;;  %vm5727_vm15 = vcmp.lt.s32.totalorder %v15545_v29, 384 }
 0x590   : >> { %v15616_v16 = vadd.s32 %v5680_v13, %v19969_v47  ;;  %v15619_v18 = vadd.s32 %v5680_v13, %v19971_v15  ;;  %v15622_v56 = vadd.s32 %v5680_v13, %v19973_v45  ;;  %v15625_v0 = vld [vmem:[%s15550_s11 + $0x60] sm:$0xff]  ;;  %v15628_v43 = vld [vmem:[%s15550_s11 + $0x68] sm:$0xff]  ;;  %v15631_v49 = vld [vmem:[%s15550_s11 + $0x70] sm:$0xff] }
 0x591   : >> { %19968 = vst [vmem:[#allocation210_spill] sm:$0xff] %v15613_v14  ;;  %19975 = vst [vmem:[#allocation214_spill] sm:$0xff] %v15628_v43  ;;  %v15634_v1 = vld [vmem:[%s15550_s11 + $0x78] sm:$0xff]  ;;  %v19978_v36 = vld [vmem:[#allocation33_spill] sm:$0xff]  ;;  %v20092_v37 = vsub.f32 %v15625_v0, %v15589_v27 }
 0x592   : >> { %19970 = vst [vmem:[#allocation211_spill] sm:$0xff] %v15616_v16  ;;  %19972 = vst [vmem:[#allocation212_spill] sm:$0xff] %v15619_v18  ;;  %v15637_v59 = vadd.s32 %v5680_v13, %v19978_v36  ;;  %v19980_v35 = vld [vmem:[#allocation34_spill] sm:$0xff]  ;;  %v19982_v25 = vld [vmem:[#allocation35_spill] sm:$0xff] }
 0x593   : >> { %19974 = vst [vmem:[#allocation213_spill] sm:$0xff] %v15622_v56  ;;  %19976 = vst [vmem:[#allocation215_spill] sm:$0xff] %v15631_v49  ;;  %v15640_v61 = vadd.s32 %v5680_v13, %v19980_v35  ;;  %v15643_v31 = vadd.s32 %v5680_v13, %v19982_v25  ;;  %v19984_v38 = vld [vmem:[#allocation36_spill] sm:$0xff]  ;;  %v15655_v23 = vld [vmem:[%s15550_s11 + $0x90] sm:$0xff] }
 0x594   : >> { %19977 = vst [vmem:[#allocation216_spill] sm:$0xff] %v15634_v1  ;;  %19979 = vst [vmem:[#allocation217_spill] sm:$0xff] %v15637_v59  ;;  %v15646_v52 = vadd.s32 %v5680_v13, %v19984_v38  ;;  %v15649_v17 = vld [vmem:[%s15550_s11 + $0x80] sm:$0xff]  ;;  %v15652_v12 = vld [vmem:[%s15550_s11 + $0x88] sm:$0xff] }
 0x595   : >> { %19981 = vst [vmem:[#allocation218_spill] sm:$0xff] %v15640_v61  ;;  %19983 = vst [vmem:[#allocation219_spill] sm:$0xff] %v15643_v31  ;;  %v15658_v47 = vld [vmem:[%s15550_s11 + $0x98] sm:$0xff]  ;;  %v19990_v15 = vld [vmem:[#allocation37_spill] sm:$0xff] }
 0x596   : >> { %19985 = vst [vmem:[#allocation220_spill] sm:$0xff] %v15646_v52  ;;  %19986 = vst [vmem:[#allocation221_spill] sm:$0xff] %v15649_v17  ;;  %v15661_v45 = vadd.s32 %v5680_v13, %v19990_v15  ;;  %v19992_v36 = vld [vmem:[#allocation38_spill] sm:$0xff]  ;;  %v19994_v25 = vld [vmem:[#allocation39_spill] sm:$0xff] }
 0x597   : >> { %19987 = vst [vmem:[#allocation222_spill] sm:$0xff] %v15652_v12  ;;  %19988 = vst [vmem:[#allocation223_spill] sm:$0xff] %v15655_v23  ;;  %v15664_v35 = vadd.s32 %v5680_v13, %v19992_v36  ;;  %v15667_v38 = vadd.s32 %v5680_v13, %v19994_v25  ;;  %v19996_v10 = vld [vmem:[#allocation40_spill] sm:$0xff]  ;;  %v15679_v21 = vld [vmem:[%s15550_s11 + $0xb0] sm:$0xff]  ;;  %v20082_v36 = vsub.f32 %v15559_v54, %v15595_v48 }
 0x598   : >> { %19989 = vst [vmem:[#allocation224_spill] sm:$0xff] %v15658_v47  ;;  %19991 = vst [vmem:[#allocation225_spill] sm:$0xff] %v15661_v45  ;;  %v15670_v3 = vadd.s32 %v5680_v13, %v19996_v10  ;;  %v15673_v2 = vld [vmem:[%s15550_s11 + $0xa0] sm:$0xff]  ;;  %v15676_v20 = vld [vmem:[%s15550_s11 + $0xa8] sm:$0xff]  ;;  %v20081_v10 = vsub.f32 %v15556_v6, %v15592_v58  ;;  %v20084_v6 = vsub.f32 %v15577_v55, %v15589_v27 }
 0x599   : >> { %19993 = vst [vmem:[#allocation226_spill] sm:$0xff] %v15664_v35  ;;  %19995 = vst [vmem:[#allocation227_spill] sm:$0xff] %v15667_v38  ;;  %v15682_v15 = vld [vmem:[%s15550_s11 + $0xb8] sm:$0xff]  ;;  %v15696_v38 = vld [vmem:[%s15550_s11 + $0xc8] sm:$0xff]  ;;  %v16283_v25 = vsel %vm5713_vm9, %v20082_v36, 0.0  ;;  %v20085_v54 = vsub.f32 %v15580_v11, %v15592_v58  ;;  %v20087_v55 = vsub.f32 %v15586_v62, %v15598_v42  ;;  %v20088_v11 = vsub.f32 %v15601_v63, %v15589_v27 }
 0x59a   : >> { %19997 = vst [vmem:[#allocation228_spill] sm:$0xff] %v15670_v3  ;;  %19998 = vst [vmem:[#allocation229_spill] sm:$0xff] %v15673_v2  ;;  %v15693_v3 = vld [vmem:[%s15550_s11 + $0xc0] sm:$0xff]  ;;  %v15699_v35 = vld [vmem:[%s15550_s11 + $0xd0] sm:$0xff]  ;;  %v16276_v13 = vsel %vm5713_vm9, %v20081_v10, 0.0  ;;  %v16298_v10 = vsel %vm5714_vm12, %v20084_v6, 0.0  ;;  %v20091_v63 = vsub.f32 %v15610_v50, %v15598_v42 }
 0x59b   : >> { %19999 = vst [vmem:[#allocation230_spill] sm:$0xff] %v15676_v20  ;;  %20000 = vst [vmem:[#allocation231_spill] sm:$0xff] %v15679_v21  ;;  %v15702_v45 = vld [vmem:[%s15550_s11 + $0xd8] sm:$0xff]  ;;  %v15713_v52 = vld [vmem:[%s15550_s11 + $0xe0] sm:$0xff]  ;;  %v16305_v36 = vsel %vm5714_vm12, %v20085_v54, 0.0  ;;  %v16327_v6 = vsel %vm5715_vm11, %v20088_v11, 0.0 }
 0x59c   : >> { %20001 = vst [vmem:[#allocation232_spill] sm:$0xff] %v15682_v15  ;;  %20002 = vst [vmem:[#allocation233_spill] sm:$0xff] %v15693_v3  ;;  %v15716_v31 = vld [vmem:[%s15550_s11 + $0xe8] sm:$0xff]  ;;  %v15719_v61 = vld [vmem:[%s15550_s11 + $0xf0] sm:$0xff]  ;;  %v16334_v54 = vsel %vm5715_vm11, %v20089_v46, 0.0  ;;  %v16341_v62 = vsel %vm5715_vm11, %v20090_v41, 0.0 }
 0x59d   : >> { %20003 = vst [vmem:[#allocation234_spill] sm:$0xff] %v15696_v38  ;;  %20004 = vst [vmem:[#allocation235_spill] sm:$0xff] %v15699_v35  ;;  %v15722_v59 = vld [vmem:[%s15550_s11 + $0xf8] sm:$0xff]  ;;  %v15733_v56 = vld [vmem:[%s15550_s11 + $0x100] sm:$0xff] }
 0x59e   : >> { %20005 = vst [vmem:[#allocation236_spill] sm:$0xff] %v15702_v45  ;;  %20006 = vst [vmem:[#allocation237_spill] sm:$0xff] %v15713_v52  ;;  %v15736_v18 = vld [vmem:[%s15550_s11 + $0x108] sm:$0xff]  ;;  %v15739_v16 = vld [vmem:[%s15550_s11 + $0x110] sm:$0xff] }
 0x59f   : >> { %20007 = vst [vmem:[#allocation238_spill] sm:$0xff] %v15716_v31  ;;  %20008 = vst [vmem:[#allocation239_spill] sm:$0xff] %v15719_v61  ;;  %v15742_v14 = vld [vmem:[%s15550_s11 + $0x118] sm:$0xff]  ;;  %v15753_v53 = vld [vmem:[%s15550_s11 + $0x120] sm:$0xff] }
 0x5a0   : >> { %20009 = vst [vmem:[#allocation240_spill] sm:$0xff] %v15722_v59  ;;  %20010 = vst [vmem:[#allocation241_spill] sm:$0xff] %v15733_v56  ;;  %v15756_v30 = vld [vmem:[%s15550_s11 + $0x128] sm:$0xff]  ;;  %v15759_v5 = vld [vmem:[%s15550_s11 + $0x130] sm:$0xff] }
 0x5a1   : >> { %20011 = vst [vmem:[#allocation242_spill] sm:$0xff] %v15736_v18  ;;  %20012 = vst [vmem:[#allocation243_spill] sm:$0xff] %v15739_v16  ;;  %v15762_v28 = vld [vmem:[%s15550_s11 + $0x138] sm:$0xff]  ;;  %v15773_v60 = vld [vmem:[%s15550_s11 + $0x140] sm:$0xff] }
 0x5a2   : >> { %20013 = vst [vmem:[#allocation244_spill] sm:$0xff] %v15742_v14  ;;  %20014 = vst [vmem:[#allocation245_spill] sm:$0xff] %v15753_v53  ;;  %v15776_v1 = vld [vmem:[%s15550_s11 + $0x148] sm:$0xff]  ;;  %v15779_v49 = vld [vmem:[%s15550_s11 + $0x150] sm:$0xff] }
 0x5a3   : >> { %20015 = vst [vmem:[#allocation246_spill] sm:$0xff] %v15756_v30  ;;  %20016 = vst [vmem:[#allocation247_spill] sm:$0xff] %v15759_v5  ;;  %v15782_v43 = vld [vmem:[%s15550_s11 + $0x158] sm:$0xff]  ;;  %v15793_v47 = vld [vmem:[%s15550_s11 + $0x160] sm:$0xff] }
 0x5a4   : >> { %20017 = vst [vmem:[#allocation248_spill] sm:$0xff] %v15762_v28  ;;  %20018 = vst [vmem:[#allocation249_spill] sm:$0xff] %v15773_v60  ;;  %v15796_v23 = vld [vmem:[%s15550_s11 + $0x168] sm:$0xff]  ;;  %v15799_v12 = vld [vmem:[%s15550_s11 + $0x170] sm:$0xff] }
 0x5a5   : >> { %20019 = vst [vmem:[#allocation250_spill] sm:$0xff] %v15776_v1  ;;  %20020 = vst [vmem:[#allocation251_spill] sm:$0xff] %v15779_v49  ;;  %v15802_v17 = vld [vmem:[%s15550_s11 + $0x178] sm:$0xff]  ;;  %v15813_v15 = vld [vmem:[%s15550_s11 + $0x180] sm:$0xff] }
 0x5a6   : >> { %20021 = vst [vmem:[#allocation252_spill] sm:$0xff] %v15782_v43  ;;  %20022 = vst [vmem:[#allocation253_spill] sm:$0xff] %v15793_v47  ;;  %v15816_v21 = vld [vmem:[%s15550_s11 + $0x188] sm:$0xff]  ;;  %v15819_v20 = vld [vmem:[%s15550_s11 + $0x190] sm:$0xff] }
 0x5a7   : >> { %20023 = vst [vmem:[#allocation254_spill] sm:$0xff] %v15796_v23  ;;  %20024 = vst [vmem:[#allocation255_spill] sm:$0xff] %v15799_v12  ;;  %v15822_v2 = vld [vmem:[%s15550_s11 + $0x198] sm:$0xff]  ;;  %v15833_v45 = vld [vmem:[%s15550_s11 + $0x1a0] sm:$0xff] }
 0x5a8   : >> { %20025 = vst [vmem:[#allocation256_spill] sm:$0xff] %v15802_v17  ;;  %20026 = vst [vmem:[#allocation257_spill] sm:$0xff] %v15813_v15  ;;  %v15836_v35 = vld [vmem:[%s15550_s11 + $0x1a8] sm:$0xff]  ;;  %v15839_v38 = vld [vmem:[%s15550_s11 + $0x1b0] sm:$0xff] }
 0x5a9   : >> { %20027 = vst [vmem:[#allocation258_spill] sm:$0xff] %v15816_v21  ;;  %20028 = vst [vmem:[#allocation259_spill] sm:$0xff] %v15819_v20  ;;  %v15842_v3 = vld [vmem:[%s15550_s11 + $0x1b8] sm:$0xff]  ;;  %v15853_v59 = vld [vmem:[%s15550_s11 + $0x1c0] sm:$0xff] }
 0x5aa   : >> { %20029 = vst [vmem:[#allocation260_spill] sm:$0xff] %v15822_v2  ;;  %20030 = vst [vmem:[#allocation261_spill] sm:$0xff] %v15833_v45  ;;  %v15856_v61 = vld [vmem:[%s15550_s11 + $0x1c8] sm:$0xff]  ;;  %v15859_v31 = vld [vmem:[%s15550_s11 + $0x1d0] sm:$0xff] }
 0x5ab   : >> { %20031 = vst [vmem:[#allocation262_spill] sm:$0xff] %v15836_v35  ;;  %20032 = vst [vmem:[#allocation263_spill] sm:$0xff] %v15839_v38  ;;  %v15862_v52 = vld [vmem:[%s15550_s11 + $0x1d8] sm:$0xff]  ;;  %v15873_v14 = vld [vmem:[%s15550_s11 + $0x1e0] sm:$0xff] }
 0x5ac   : >> { %20033 = vst [vmem:[#allocation264_spill] sm:$0xff] %v15842_v3  ;;  %20034 = vst [vmem:[#allocation265_spill] sm:$0xff] %v15853_v59  ;;  %v15876_v16 = vld [vmem:[%s15550_s11 + $0x1e8] sm:$0xff]  ;;  %v15879_v18 = vld [vmem:[%s15550_s11 + $0x1f0] sm:$0xff] }
 0x5ad   : >> { %20035 = vst [vmem:[#allocation266_spill] sm:$0xff] %v15856_v61  ;;  %20036 = vst [vmem:[#allocation267_spill] sm:$0xff] %v15859_v31  ;;  %v15882_v56 = vld [vmem:[%s15550_s11 + $0x1f8] sm:$0xff]  ;;  %v15893_v28 = vld [vmem:[%s15550_s11 + $0x200] sm:$0xff] }
 0x5ae   : >> { %20037 = vst [vmem:[#allocation268_spill] sm:$0xff] %v15862_v52  ;;  %20038 = vst [vmem:[#allocation269_spill] sm:$0xff] %v15873_v14  ;;  %v15896_v5 = vld [vmem:[%s15550_s11 + $0x208] sm:$0xff]  ;;  %v15899_v30 = vld [vmem:[%s15550_s11 + $0x210] sm:$0xff] }
 0x5af   : >> { %20039 = vst [vmem:[#allocation270_spill] sm:$0xff] %v15876_v16  ;;  %20040 = vst [vmem:[#allocation271_spill] sm:$0xff] %v15879_v18  ;;  %v15902_v53 = vld [vmem:[%s15550_s11 + $0x218] sm:$0xff]  ;;  %v15913_v43 = vld [vmem:[%s15550_s11 + $0x220] sm:$0xff] }
 0x5b0   : >> { %20041 = vst [vmem:[#allocation272_spill] sm:$0xff] %v15882_v56  ;;  %20042 = vst [vmem:[#allocation273_spill] sm:$0xff] %v15893_v28  ;;  %v15916_v49 = vld [vmem:[%s15550_s11 + $0x228] sm:$0xff]  ;;  %v15919_v1 = vld [vmem:[%s15550_s11 + $0x230] sm:$0xff] }
 0x5b1   : >> { %20043 = vst [vmem:[#allocation274_spill] sm:$0xff] %v15896_v5  ;;  %20044 = vst [vmem:[#allocation275_spill] sm:$0xff] %v15899_v30  ;;  %v15922_v60 = vld [vmem:[%s15550_s11 + $0x238] sm:$0xff]  ;;  %v15933_v17 = vld [vmem:[%s15550_s11 + $0x240] sm:$0xff] }
 0x5b2   : >> { %20045 = vst [vmem:[#allocation276_spill] sm:$0xff] %v15902_v53  ;;  %20046 = vst [vmem:[#allocation277_spill] sm:$0xff] %v15913_v43  ;;  %v15936_v12 = vld [vmem:[%s15550_s11 + $0x248] sm:$0xff]  ;;  %v15939_v23 = vld [vmem:[%s15550_s11 + $0x250] sm:$0xff] }
 0x5b3   : >> { %20047 = vst [vmem:[#allocation278_spill] sm:$0xff] %v15916_v49  ;;  %20048 = vst [vmem:[#allocation279_spill] sm:$0xff] %v15919_v1  ;;  %v15942_v47 = vld [vmem:[%s15550_s11 + $0x258] sm:$0xff]  ;;  %v15953_v2 = vld [vmem:[%s15550_s11 + $0x260] sm:$0xff] }
 0x5b4   : >> { %20049 = vst [vmem:[#allocation280_spill] sm:$0xff] %v15922_v60  ;;  %20050 = vst [vmem:[#allocation281_spill] sm:$0xff] %v15933_v17  ;;  %v15956_v20 = vld [vmem:[%s15550_s11 + $0x268] sm:$0xff]  ;;  %v15959_v21 = vld [vmem:[%s15550_s11 + $0x270] sm:$0xff] }
 0x5b5   : >> { %20051 = vst [vmem:[#allocation282_spill] sm:$0xff] %v15936_v12  ;;  %20052 = vst [vmem:[#allocation283_spill] sm:$0xff] %v15939_v23  ;;  %v15962_v15 = vld [vmem:[%s15550_s11 + $0x278] sm:$0xff]  ;;  %v15973_v3 = vld [vmem:[%s15550_s11 + $0x280] sm:$0xff] }
 0x5b6   : >> { %20053 = vst [vmem:[#allocation284_spill] sm:$0xff] %v15942_v47  ;;  %20054 = vst [vmem:[#allocation285_spill] sm:$0xff] %v15956_v20  ;;  %v15976_v38 = vld [vmem:[%s15550_s11 + $0x288] sm:$0xff]  ;;  %v15979_v35 = vld [vmem:[%s15550_s11 + $0x290] sm:$0xff] }
 0x5b7   : >> { %20055 = vst [vmem:[#allocation286_spill] sm:$0xff] %v15959_v21  ;;  %20056 = vst [vmem:[#allocation287_spill] sm:$0xff] %v15962_v15  ;;  %v15982_v45 = vld [vmem:[%s15550_s11 + $0x298] sm:$0xff]  ;;  %v15993_v52 = vld [vmem:[%s15550_s11 + $0x2a0] sm:$0xff] }
 0x5b8   : >> { %20057 = vst [vmem:[#allocation288_spill] sm:$0xff] %v15976_v38  ;;  %20058 = vst [vmem:[#allocation289_spill] sm:$0xff] %v15979_v35  ;;  %v15996_v31 = vld [vmem:[%s15550_s11 + $0x2a8] sm:$0xff]  ;;  %v15999_v61 = vld [vmem:[%s15550_s11 + $0x2b0] sm:$0xff] }
 0x5b9   : >> { %20059 = vst [vmem:[#allocation290_spill] sm:$0xff] %v15982_v45  ;;  %20060 = vst [vmem:[#allocation291_spill] sm:$0xff] %v15996_v31  ;;  %v16002_v59 = vld [vmem:[%s15550_s11 + $0x2b8] sm:$0xff]  ;;  %v16013_v56 = vld [vmem:[%s15550_s11 + $0x2c0] sm:$0xff] }
 0x5ba   : >> { %20061 = vst [vmem:[#allocation292_spill] sm:$0xff] %v15999_v61  ;;  %20062 = vst [vmem:[#allocation293_spill] sm:$0xff] %v16002_v59  ;;  %v16016_v18 = vld [vmem:[%s15550_s11 + $0x2c8] sm:$0xff]  ;;  %v16019_v16 = vld [vmem:[%s15550_s11 + $0x2d0] sm:$0xff] }
 0x5bb   : >> { %20063 = vst [vmem:[#allocation294_spill] sm:$0xff] %v16016_v18  ;;  %20064 = vst [vmem:[#allocation295_spill] sm:$0xff] %v16019_v16  ;;  %v16022_v14 = vld [vmem:[%s15550_s11 + $0x2d8] sm:$0xff]  ;;  %v16033_v53 = vld [vmem:[%s15550_s11 + $0x2e0] sm:$0xff] }
 0x5bc   : >> { %20065 = vst [vmem:[#allocation296_spill] sm:$0xff] %v16022_v14  ;;  %v16036_v30 = vld [vmem:[%s15550_s11 + $0x2e8] sm:$0xff]  ;;  %v16039_v5 = vld [vmem:[%s15550_s11 + $0x2f0] sm:$0xff]  ;;  %v16042_v28 = vld [vmem:[%s15550_s11 + $0x2f8] sm:$0xff] }
 0x5bd   : >> { %20066 = vst [vmem:[#allocation297_spill] sm:$0xff] %v16036_v30  ;;  %20067 = vst [vmem:[#allocation298_spill] sm:$0xff] %v16039_v5  ;;  %v16053_v60 = vld [vmem:[%s15550_s11 + $0x300] sm:$0xff]  ;;  %v16056_v1 = vld [vmem:[%s15550_s11 + $0x308] sm:$0xff] }
 0x5be   : >> { %20068 = vst [vmem:[#allocation299_spill] sm:$0xff] %v16042_v28  ;;  %20069 = vst [vmem:[#allocation300_spill] sm:$0xff] %v16056_v1  ;;  %v16059_v49 = vld [vmem:[%s15550_s11 + $0x310] sm:$0xff]  ;;  %v16062_v43 = vld [vmem:[%s15550_s11 + $0x318] sm:$0xff] }
 0x5bf   : >> { %20070 = vst [vmem:[#allocation301_spill] sm:$0xff] %v16059_v49  ;;  %20071 = vst [vmem:[#allocation302_spill] sm:$0xff] %v16062_v43  ;;  %v16073_v47 = vld [vmem:[%s15550_s11 + $0x320] sm:$0xff]  ;;  %v16076_v23 = vld [vmem:[%s15550_s11 + $0x328] sm:$0xff] }
 0x5c0   : >> { %20072 = vst [vmem:[#allocation303_spill] sm:$0xff] %v16076_v23  ;;  %v16079_v12 = vld [vmem:[%s15550_s11 + $0x330] sm:$0xff]  ;;  %v16082_v17 = vld [vmem:[%s15550_s11 + $0x338] sm:$0xff]  ;;  %v16093_v15 = vld [vmem:[%s15550_s11 + $0x340] sm:$0xff] }
 0x5c1   : >> { %20073 = vst [vmem:[#allocation304_spill] sm:$0xff] %v16079_v12  ;;  %20074 = vst [vmem:[#allocation305_spill] sm:$0xff] %v16082_v17  ;;  %v16096_v21 = vld [vmem:[%s15550_s11 + $0x348] sm:$0xff]  ;;  %v16099_v20 = vld [vmem:[%s15550_s11 + $0x350] sm:$0xff] }
 0x5c2   : >> { %20075 = vst [vmem:[#allocation306_spill] sm:$0xff] %v16096_v21  ;;  %20076 = vst [vmem:[#allocation307_spill] sm:$0xff] %v16099_v20  ;;  %v16111_v45 = vld [vmem:[%s15550_s11 + $0x358] sm:$0xff]  ;;  %v16114_v35 = vld [vmem:[%s15550_s11 + $0x360] sm:$0xff] }
 0x5c3   : >> { %20077 = vst [vmem:[#allocation308_spill] sm:$0xff] %v16111_v45  ;;  %v16117_v38 = vld [vmem:[%s15550_s11 + $0x368] sm:$0xff]  ;;  %v16129_v59 = vld [vmem:[%s15550_s11 + $0x370] sm:$0xff]  ;;  %v16132_v61 = vld [vmem:[%s15550_s11 + $0x378] sm:$0xff] }
 0x5c4   : >> { %20078 = vst [vmem:[#allocation309_spill] sm:$0xff] %v16129_v59  ;;  %20079 = vst [vmem:[#allocation310_spill] sm:$0xff] %v16132_v61  ;;  %v16135_v31 = vld [vmem:[%s15550_s11 + $0x380] sm:$0xff]  ;;  %v16147_v14 = vld [vmem:[%s15550_s11 + $0x388] sm:$0xff]  ;;  %v20080_v61 = vsub.f32 %v15553_v19, %v15589_v27  ;;  %v20083_v19 = vsub.f32 %v15562_v34, %v15598_v42  ;;  %v16312_v34 = vsel %vm5714_vm12, %v20086_v32, 0.0  ;;  %v16348_v32 = vsel %vm5715_vm11, %v20091_v63, 0.0 }
 0x5c5   : >> { %v16150_v16 = vld [vmem:[%s15550_s11 + $0x390] sm:$0xff]  ;;  %v16153_v18 = vld [vmem:[%s15550_s11 + $0x398] sm:$0xff]  ;;  %v16165_v28 = vld [vmem:[%s15550_s11 + $0x3a0] sm:$0xff] }
 0x5c6   : >> { %v16168_v5 = vld [vmem:[%s15550_s11 + $0x3a8] sm:$0xff]  ;;  %v16171_v30 = vld [vmem:[%s15550_s11 + $0x3b0] sm:$0xff]  ;;  %v16183_v43 = vld [vmem:[%s15550_s11 + $0x3b8] sm:$0xff]  ;;  %v16269_v59 = vsel %vm5713_vm9, %v20080_v61, 0.0  ;;  %v16290_v61 = vsel %vm5713_vm9, %v20083_v19, 0.0  ;;  %v16319_v19 = vsel %vm5714_vm12, %v20087_v55, 0.0 }
 0x5c7   : >> { %v16186_v49 = vld [vmem:[%s15550_s11 + $0x3c0] sm:$0xff]  ;;  %v16189_v1 = vld [vmem:[%s15550_s11 + $0x3c8] sm:$0xff]  ;;  %v16201_v17 = vld [vmem:[%s15550_s11 + $0x3d0] sm:$0xff]  ;;  %v16356_v55 = vsel %vm5716_vm7, %v20092_v37, 0.0 }
 0x5c8   : >> { %v16204_v12 = vld [vmem:[%s15550_s11 + $0x3d8] sm:$0xff]  ;;  %v16207_v23 = vld [vmem:[%s15550_s11 + $0x3e0] sm:$0xff]  ;;  %v16219_v45 = vld [vmem:[%s15550_s11 + $0x3e8] sm:$0xff]  ;;  %20093 = vst [vmem:[#allocation311_spill] sm:$0xff] %v16356_v55 }
 0x5c9   : >> { %v16222_v20 = vld [vmem:[%s15550_s11 + $0x3f0] sm:$0xff]  ;;  %v16225_v21 = vld [vmem:[%s15550_s11 + $0x3f8] sm:$0xff]  ;;  %v20097_v50 = vld [vmem:[#allocation215_spill] sm:$0xff] }
 0x5ca   : >> { %v20094_v44 = vld [vmem:[#allocation214_spill] sm:$0xff]  ;;  %v20098_v51 = vsub.f32 %v20097_v50, %v15595_v48  ;;  %v20100_v63 = vld [vmem:[#allocation216_spill] sm:$0xff]  ;;  %v20103_v55 = vld [vmem:[#allocation205_spill] sm:$0xff] }
 0x5cb   : >> { %v20095_v11 = vsub.f32 %v20094_v44, %v15592_v58  ;;  %v20101_v0 = vsub.f32 %v20100_v63, %v15598_v42  ;;  %vm5728_vm5 = vcmp.lt.s32.totalorder %v20103_v55, 384  ;;  %v20104_v44 = vld [vmem:[#allocation221_spill] sm:$0xff]  ;;  %v20107_v50 = vld [vmem:[#allocation222_spill] sm:$0xff]  ;;  %v20110_v63 = vld [vmem:[#allocation223_spill] sm:$0xff] }
 0x5cc   : >> { %v16370_v41 = vsel %vm5716_vm7, %v20098_v51, 0.0  ;;  %v20108_v51 = vsub.f32 %v20107_v50, %v15592_v58  ;;  %v20111_v8 = vsub.f32 %v20110_v63, %v15595_v48  ;;  %v20117_v50 = vld [vmem:[#allocation229_spill] sm:$0xff]  ;;  %v20120_v63 = vld [vmem:[#allocation230_spill] sm:$0xff] }
 0x5cd   : >> { %v16363_v46 = vsel %vm5716_vm7, %v20095_v11, 0.0  ;;  %20099 = vst [vmem:[#allocation215_spill] sm:$0xff] %v16370_v41  ;;  %v16377_v37 = vsel %vm5716_vm7, %v20101_v0, 0.0  ;;  %v20105_v11 = vsub.f32 %v20104_v44, %v15589_v27 }
 0x5ce   : >> { %20096 = vst [vmem:[#allocation214_spill] sm:$0xff] %v16363_v46  ;;  %20102 = vst [vmem:[#allocation216_spill] sm:$0xff] %v16377_v37  ;;  %v16392_v41 = vsel %vm5717_vm8, %v20108_v51, 0.0  ;;  %v16399_v0 = vsel %vm5717_vm8, %v20111_v8, 0.0  ;;  %v20113_v37 = vld [vmem:[#allocation224_spill] sm:$0xff]  ;;  %v20118_v51 = vsub.f32 %v20117_v50, %v15589_v27  ;;  %v20121_v8 = vsub.f32 %v20120_v63, %v15592_v58  ;;  %v20130_v63 = vld [vmem:[#allocation233_spill] sm:$0xff] }
 0x5cf   : >> { %v16385_v46 = vsel %vm5717_vm8, %v20105_v11, 0.0  ;;  %20109 = vst [vmem:[#allocation221_spill] sm:$0xff] %v16392_v41  ;;  %20112 = vst [vmem:[#allocation222_spill] sm:$0xff] %v16399_v0  ;;  %v20114_v44 = vsub.f32 %v20113_v37, %v15598_v42  ;;  %v20123_v37 = vld [vmem:[#allocation231_spill] sm:$0xff] }
 0x5d0   : >> { %20106 = vst [vmem:[#allocation205_spill] sm:$0xff] %v16385_v46  ;;  %v20116_v46 = vld [vmem:[#allocation206_spill] sm:$0xff]  ;;  %v16414_v41 = vsel %vm5718_vm6, %v20118_v51, 0.0  ;;  %v16421_v0 = vsel %vm5718_vm6, %v20121_v8, 0.0  ;;  %v20124_v33 = vsub.f32 %v20123_v37, %v15595_v48  ;;  %v20131_v8 = vsub.f32 %v20130_v63, %v15589_v27 }
 0x5d1   : >> { %v16406_v11 = vsel %vm5717_vm8, %v20114_v44, 0.0  ;;  %vm5729_vm9 = vcmp.lt.s32.totalorder %v20116_v46, 384  ;;  %20119 = vst [vmem:[#allocation224_spill] sm:$0xff] %v16414_v41  ;;  %20122 = vst [vmem:[#allocation206_spill] sm:$0xff] %v16421_v0  ;;  %v20129_v41 = vld [vmem:[#allocation207_spill] sm:$0xff]  ;;  %v20133_v37 = vld [vmem:[#allocation234_spill] sm:$0xff] }
 0x5d2   : >> { %20115 = vst [vmem:[#allocation223_spill] sm:$0xff] %v16406_v11  ;;  %v16428_v44 = vsel %vm5718_vm6, %v20124_v33, 0.0  ;;  %v20126_v11 = vld [vmem:[#allocation232_spill] sm:$0xff]  ;;  %vm5730_vm12 = vcmp.lt.s32.totalorder %v20129_v41, 384  ;;  %v16443_v0 = vsel %vm5719_vm13, %v20131_v8, 0.0  ;;  %v20134_v33 = vsub.f32 %v20133_v37, %v15592_v58  ;;  %v20143_v37 = vld [vmem:[#allocation237_spill] sm:$0xff] }
 0x5d3   : >> { %20125 = vst [vmem:[#allocation229_spill] sm:$0xff] %v16428_v44  ;;  %v20127_v50 = vsub.f32 %v20126_v11, %v15598_v42  ;;  %20132 = vst [vmem:[#allocation231_spill] sm:$0xff] %v16443_v0  ;;  %v20136_v11 = vld [vmem:[#allocation235_spill] sm:$0xff]  ;;  %v20142_v0 = vld [vmem:[#allocation208_spill] sm:$0xff] }
 0x5d4   : >> { %v16450_v44 = vsel %vm5719_vm13, %v20134_v33, 0.0  ;;  %v20137_v40 = vsub.f32 %v20136_v11, %v15595_v48  ;;  %vm5731_vm11 = vcmp.lt.s32.totalorder %v20142_v0, 384  ;;  %v20144_v33 = vsub.f32 %v20143_v37, %v15589_v27  ;;  %v20146_v11 = vld [vmem:[#allocation238_spill] sm:$0xff] }
 0x5d5   : >> { %v16435_v51 = vsel %vm5718_vm6, %v20127_v50, 0.0  ;;  %20135 = vst [vmem:[#allocation232_spill] sm:$0xff] %v16450_v44 }
 0x5d6   : >> { %20128 = vst [vmem:[#allocation230_spill] sm:$0xff] %v16435_v51  ;;  %v16457_v50 = vsel %vm5719_vm13, %v20137_v40, 0.0  ;;  %v20139_v51 = vld [vmem:[#allocation236_spill] sm:$0xff]  ;;  %v16472_v44 = vsel %vm5720_vm2, %v20144_v33, 0.0  ;;  %v20147_v40 = vsub.f32 %v20146_v11, %v15592_v58  ;;  %v20156_v11 = vld [vmem:[#allocation241_spill] sm:$0xff] }
 0x5d7   : >> { %20138 = vst [vmem:[#allocation207_spill] sm:$0xff] %v16457_v50  ;;  %v20140_v63 = vsub.f32 %v20139_v51, %v15598_v42  ;;  %20145 = vst [vmem:[#allocation234_spill] sm:$0xff] %v16472_v44  ;;  %v20149_v51 = vld [vmem:[#allocation239_spill] sm:$0xff]  ;;  %v20155_v44 = vld [vmem:[#allocation209_spill] sm:$0xff] }
 0x5d8   : >> { %v16479_v50 = vsel %vm5720_vm2, %v20147_v40, 0.0  ;;  %v20150_v7 = vsub.f32 %v20149_v51, %v15595_v48  ;;  %vm5732_vm7 = vcmp.lt.s32.totalorder %v20155_v44, 384  ;;  %v20157_v40 = vsub.f32 %v20156_v11, %v15589_v27  ;;  %v20159_v51 = vld [vmem:[#allocation242_spill] sm:$0xff] }
 0x5d9   : >> { %v16464_v8 = vsel %vm5719_vm13, %v20140_v63, 0.0  ;;  %20148 = vst [vmem:[#allocation235_spill] sm:$0xff] %v16479_v50 }
 0x5da   : >> { %20141 = vst [vmem:[#allocation233_spill] sm:$0xff] %v16464_v8  ;;  %v16486_v63 = vsel %vm5720_vm2, %v20150_v7, 0.0  ;;  %v20152_v8 = vld [vmem:[#allocation240_spill] sm:$0xff]  ;;  %v16501_v50 = vsel %vm5721_vm1, %v20157_v40, 0.0  ;;  %v20160_v7 = vsub.f32 %v20159_v51, %v15592_v58  ;;  %v20169_v51 = vld [vmem:[#allocation245_spill] sm:$0xff] }
 0x5db   : >> { %20151 = vst [vmem:[#allocation236_spill] sm:$0xff] %v16486_v63  ;;  %v20153_v37 = vsub.f32 %v20152_v8, %v15598_v42  ;;  %20158 = vst [vmem:[#allocation237_spill] sm:$0xff] %v16501_v50  ;;  %v20162_v8 = vld [vmem:[#allocation243_spill] sm:$0xff]  ;;  %v20168_v50 = vld [vmem:[#allocation210_spill] sm:$0xff] }
 0x5dc   : >> { %v16508_v63 = vsel %vm5721_vm1, %v20160_v7, 0.0  ;;  %v20163_v4 = vsub.f32 %v20162_v8, %v15595_v48  ;;  %vm5733_vm8 = vcmp.lt.s32.totalorder %v20168_v50, 384  ;;  %v20170_v7 = vsub.f32 %v20169_v51, %v15589_v27  ;;  %v20172_v8 = vld [vmem:[#allocation246_spill] sm:$0xff] }
 0x5dd   : >> { %v16493_v33 = vsel %vm5720_vm2, %v20153_v37, 0.0  ;;  %20161 = vst [vmem:[#allocation238_spill] sm:$0xff] %v16508_v63 }
 0x5de   : >> { %20154 = vst [vmem:[#allocation208_spill] sm:$0xff] %v16493_v33  ;;  %v16515_v37 = vsel %vm5721_vm1, %v20163_v4, 0.0  ;;  %v20165_v33 = vld [vmem:[#allocation244_spill] sm:$0xff]  ;;  %v16530_v63 = vsel %vm5722_vm0, %v20170_v7, 0.0  ;;  %v20173_v4 = vsub.f32 %v20172_v8, %v15592_v58  ;;  %v20182_v8 = vld [vmem:[#allocation249_spill] sm:$0xff] }
 0x5df   : >> { %20164 = vst [vmem:[#allocation239_spill] sm:$0xff] %v16515_v37  ;;  %v20166_v11 = vsub.f32 %v20165_v33, %v15598_v42  ;;  %20171 = vst [vmem:[#allocation209_spill] sm:$0xff] %v16530_v63  ;;  %v20175_v33 = vld [vmem:[#allocation247_spill] sm:$0xff] }
 0x5e0   : >> { %v16537_v37 = vsel %vm5722_vm0, %v20173_v4, 0.0  ;;  %v20176_v22 = vsub.f32 %v20175_v33, %v15595_v48  ;;  %v20181_v63 = vld [vmem:[#allocation211_spill] sm:$0xff]  ;;  %v20183_v4 = vsub.f32 %v20182_v8, %v15589_v27  ;;  %v20185_v33 = vld [vmem:[#allocation250_spill] sm:$0xff] }
 0x5e1   : >> { %v16522_v40 = vsel %vm5721_vm1, %v20166_v11, 0.0  ;;  %20174 = vst [vmem:[#allocation241_spill] sm:$0xff] %v16537_v37  ;;  %vm5734_vm6 = vcmp.lt.s32.totalorder %v20181_v63, 384 }
 0x5e2   : >> { %20167 = vst [vmem:[#allocation240_spill] sm:$0xff] %v16522_v40  ;;  %v16544_v11 = vsel %vm5722_vm0, %v20176_v22, 0.0  ;;  %v20178_v40 = vld [vmem:[#allocation248_spill] sm:$0xff]  ;;  %v16559_v37 = vsel %vm5723_vm4, %v20183_v4, 0.0  ;;  %v20186_v22 = vsub.f32 %v20185_v33, %v15592_v58  ;;  %v20195_v33 = vld [vmem:[#allocation253_spill] sm:$0xff] }
 0x5e3   : >> { %20177 = vst [vmem:[#allocation242_spill] sm:$0xff] %v16544_v11  ;;  %v20179_v51 = vsub.f32 %v20178_v40, %v15598_v42  ;;  %20184 = vst [vmem:[#allocation244_spill] sm:$0xff] %v16559_v37  ;;  %v20188_v40 = vld [vmem:[#allocation251_spill] sm:$0xff]  ;;  %v20194_v37 = vld [vmem:[#allocation212_spill] sm:$0xff] }
 0x5e4   : >> { %v16566_v11 = vsel %vm5723_vm4, %v20186_v22, 0.0  ;;  %v20189_v9 = vsub.f32 %v20188_v40, %v15595_v48  ;;  %vm5735_vm13 = vcmp.lt.s32.totalorder %v20194_v37, 384  ;;  %v20196_v22 = vsub.f32 %v20195_v33, %v15589_v27  ;;  %v20198_v40 = vld [vmem:[#allocation254_spill] sm:$0xff] }
 0x5e5   : >> { %v16551_v7 = vsel %vm5722_vm0, %v20179_v51, 0.0  ;;  %20187 = vst [vmem:[#allocation210_spill] sm:$0xff] %v16566_v11 }
 0x5e6   : >> { %20180 = vst [vmem:[#allocation243_spill] sm:$0xff] %v16551_v7  ;;  %v16573_v51 = vsel %vm5723_vm4, %v20189_v9, 0.0  ;;  %v20191_v7 = vld [vmem:[#allocation252_spill] sm:$0xff]  ;;  %v16588_v11 = vsel %vm5724_vm14, %v20196_v22, 0.0  ;;  %v20199_v9 = vsub.f32 %v20198_v40, %v15592_v58  ;;  %v20208_v40 = vld [vmem:[#allocation257_spill] sm:$0xff] }
 0x5e7   : >> { %20190 = vst [vmem:[#allocation245_spill] sm:$0xff] %v16573_v51  ;;  %v20192_v8 = vsub.f32 %v20191_v7, %v15598_v42  ;;  %20197 = vst [vmem:[#allocation247_spill] sm:$0xff] %v16588_v11  ;;  %v20201_v7 = vld [vmem:[#allocation255_spill] sm:$0xff]  ;;  %v20207_v11 = vld [vmem:[#allocation213_spill] sm:$0xff] }
 0x5e8   : >> { %v16595_v51 = vsel %vm5724_vm14, %v20199_v9, 0.0  ;;  %v20202_v39 = vsub.f32 %v20201_v7, %v15595_v48  ;;  %vm5736_vm2 = vcmp.lt.s32.totalorder %v20207_v11, 384  ;;  %v20209_v9 = vsub.f32 %v20208_v40, %v15589_v27  ;;  %v20211_v7 = vld [vmem:[#allocation258_spill] sm:$0xff] }
 0x5e9   : >> { %v16580_v4 = vsel %vm5723_vm4, %v20192_v8, 0.0  ;;  %20200 = vst [vmem:[#allocation248_spill] sm:$0xff] %v16595_v51 }
 0x5ea   : >> { %20193 = vst [vmem:[#allocation246_spill] sm:$0xff] %v16580_v4  ;;  %v16602_v8 = vsel %vm5724_vm14, %v20202_v39, 0.0  ;;  %v20204_v4 = vld [vmem:[#allocation256_spill] sm:$0xff]  ;;  %v16617_v51 = vsel %vm5725_vm10, %v20209_v9, 0.0  ;;  %v20212_v39 = vsub.f32 %v20211_v7, %v15592_v58  ;;  %v20221_v7 = vld [vmem:[#allocation261_spill] sm:$0xff] }
 0x5eb   : >> { %20203 = vst [vmem:[#allocation211_spill] sm:$0xff] %v16602_v8  ;;  %v20205_v33 = vsub.f32 %v20204_v4, %v15598_v42  ;;  %20210 = vst [vmem:[#allocation250_spill] sm:$0xff] %v16617_v51  ;;  %v20214_v4 = vld [vmem:[#allocation259_spill] sm:$0xff]  ;;  %v20220_v51 = vld [vmem:[#allocation217_spill] sm:$0xff] }
 0x5ec   : >> { %v16624_v8 = vsel %vm5725_vm10, %v20212_v39, 0.0  ;;  %v20215_v57 = vsub.f32 %v20214_v4, %v15595_v48  ;;  %vm5737_vm1 = vcmp.lt.s32.totalorder %v20220_v51, 384  ;;  %v20222_v39 = vsub.f32 %v20221_v7, %v15589_v27  ;;  %v20224_v4 = vld [vmem:[#allocation262_spill] sm:$0xff] }
 0x5ed   : >> { %v16609_v22 = vsel %vm5724_vm14, %v20205_v33, 0.0  ;;  %20213 = vst [vmem:[#allocation251_spill] sm:$0xff] %v16624_v8 }
 0x5ee   : >> { %20206 = vst [vmem:[#allocation249_spill] sm:$0xff] %v16609_v22  ;;  %v16631_v33 = vsel %vm5725_vm10, %v20215_v57, 0.0  ;;  %v20217_v22 = vld [vmem:[#allocation260_spill] sm:$0xff]  ;;  %v16646_v8 = vsel %vm5726_vm3, %v20222_v39, 0.0  ;;  %v20225_v57 = vsub.f32 %v20224_v4, %v15592_v58  ;;  %v20234_v4 = vld [vmem:[#allocation265_spill] sm:$0xff] }
 0x5ef   : >> { %20216 = vst [vmem:[#allocation252_spill] sm:$0xff] %v16631_v33  ;;  %v20218_v40 = vsub.f32 %v20217_v22, %v15598_v42  ;;  %20223 = vst [vmem:[#allocation253_spill] sm:$0xff] %v16646_v8  ;;  %v20227_v22 = vld [vmem:[#allocation263_spill] sm:$0xff]  ;;  %v20233_v8 = vld [vmem:[#allocation218_spill] sm:$0xff] }
 0x5f0   : >> { %v16653_v33 = vsel %vm5726_vm3, %v20225_v57, 0.0  ;;  %v20228_v24 = vsub.f32 %v20227_v22, %v15595_v48  ;;  %vm5738_vm0 = vcmp.lt.s32.totalorder %v20233_v8, 384  ;;  %v20235_v57 = vsub.f32 %v20234_v4, %v15589_v27  ;;  %v20237_v22 = vld [vmem:[#allocation266_spill] sm:$0xff] }
 0x5f1   : >> { %v16638_v9 = vsel %vm5725_vm10, %v20218_v40, 0.0  ;;  %20226 = vst [vmem:[#allocation254_spill] sm:$0xff] %v16653_v33 }
 0x5f2   : >> { %20219 = vst [vmem:[#allocation212_spill] sm:$0xff] %v16638_v9  ;;  %v16660_v40 = vsel %vm5726_vm3, %v20228_v24, 0.0  ;;  %v20230_v9 = vld [vmem:[#allocation264_spill] sm:$0xff]  ;;  %v16675_v33 = vsel %vm5727_vm15, %v20235_v57, 0.0  ;;  %v20238_v24 = vsub.f32 %v20237_v22, %v15592_v58  ;;  %v20247_v22 = vld [vmem:[#allocation269_spill] sm:$0xff] }
 0x5f3   : >> { %20229 = vst [vmem:[#allocation255_spill] sm:$0xff] %v16660_v40  ;;  %v20231_v7 = vsub.f32 %v20230_v9, %v15598_v42  ;;  %20236 = vst [vmem:[#allocation213_spill] sm:$0xff] %v16675_v33  ;;  %v20240_v9 = vld [vmem:[#allocation267_spill] sm:$0xff] }
 0x5f4   : >> { %v16682_v40 = vsel %vm5727_vm15, %v20238_v24, 0.0  ;;  %v20241_v26 = vsub.f32 %v20240_v9, %v15595_v48  ;;  %v20246_v33 = vld [vmem:[#allocation219_spill] sm:$0xff]  ;;  %v20248_v24 = vsub.f32 %v20247_v22, %v15589_v27  ;;  %v20250_v9 = vld [vmem:[#allocation270_spill] sm:$0xff] }
 0x5f5   : >> { %v16667_v39 = vsel %vm5726_vm3, %v20231_v7, 0.0  ;;  %20239 = vst [vmem:[#allocation257_spill] sm:$0xff] %v16682_v40  ;;  %vm5739_vm4 = vcmp.lt.s32.totalorder %v20246_v33, 384 }
 0x5f6   : >> { %20232 = vst [vmem:[#allocation256_spill] sm:$0xff] %v16667_v39  ;;  %v16689_v7 = vsel %vm5727_vm15, %v20241_v26, 0.0  ;;  %v20243_v39 = vld [vmem:[#allocation268_spill] sm:$0xff]  ;;  %v16704_v40 = vsel %vm5728_vm5, %v20248_v24, 0.0  ;;  %v20251_v26 = vsub.f32 %v20250_v9, %v15592_v58  ;;  %v20260_v9 = vld [vmem:[#allocation273_spill] sm:$0xff] }
 0x5f7   : >> { %20242 = vst [vmem:[#allocation258_spill] sm:$0xff] %v16689_v7  ;;  %v20244_v4 = vsub.f32 %v20243_v39, %v15598_v42  ;;  %20249 = vst [vmem:[#allocation260_spill] sm:$0xff] %v16704_v40  ;;  %v20253_v39 = vld [vmem:[#allocation271_spill] sm:$0xff]  ;;  %v20259_v40 = vld [vmem:[#allocation220_spill] sm:$0xff] }
 0x5f8   : >> { %v16711_v7 = vsel %vm5728_vm5, %v20251_v26, 0.0  ;;  %v20254_v29 = vsub.f32 %v20253_v39, %v15595_v48  ;;  %vm5740_vm14 = vcmp.lt.s32.totalorder %v20259_v40, 384  ;;  %v20261_v26 = vsub.f32 %v20260_v9, %v15589_v27  ;;  %v20263_v39 = vld [vmem:[#allocation274_spill] sm:$0xff] }
 0x5f9   : >> { %v16696_v57 = vsel %vm5727_vm15, %v20244_v4, 0.0  ;;  %20252 = vst [vmem:[#allocation217_spill] sm:$0xff] %v16711_v7 }
 0x5fa   : >> { %20245 = vst [vmem:[#allocation259_spill] sm:$0xff] %v16696_v57  ;;  %v16718_v4 = vsel %vm5728_vm5, %v20254_v29, 0.0  ;;  %v20256_v57 = vld [vmem:[#allocation272_spill] sm:$0xff]  ;;  %v16733_v7 = vsel %vm5729_vm9, %v20261_v26, 0.0  ;;  %v20264_v29 = vsub.f32 %v20263_v39, %v15592_v58  ;;  %v20273_v39 = vld [vmem:[#allocation277_spill] sm:$0xff] }
 0x5fb   : >> { %20255 = vst [vmem:[#allocation261_spill] sm:$0xff] %v16718_v4  ;;  %v20257_v22 = vsub.f32 %v20256_v57, %v15598_v42  ;;  %20262 = vst [vmem:[#allocation263_spill] sm:$0xff] %v16733_v7  ;;  %v20266_v57 = vld [vmem:[#allocation275_spill] sm:$0xff]  ;;  %v20272_v7 = vld [vmem:[#allocation225_spill] sm:$0xff] }
 0x5fc   : >> { %v16740_v4 = vsel %vm5729_vm9, %v20264_v29, 0.0  ;;  %v20267_v55 = vsub.f32 %v20266_v57, %v15595_v48  ;;  %vm5741_vm10 = vcmp.lt.s32.totalorder %v20272_v7, 384  ;;  %v20274_v29 = vsub.f32 %v20273_v39, %v15589_v27  ;;  %v20276_v57 = vld [vmem:[#allocation278_spill] sm:$0xff] }
 0x5fd   : >> { %v16725_v24 = vsel %vm5728_vm5, %v20257_v22, 0.0  ;;  %20265 = vst [vmem:[#allocation264_spill] sm:$0xff] %v16740_v4 }
 0x5fe   : >> { %20258 = vst [vmem:[#allocation262_spill] sm:$0xff] %v16725_v24  ;;  %v16747_v22 = vsel %vm5729_vm9, %v20267_v55, 0.0  ;;  %v20269_v24 = vld [vmem:[#allocation276_spill] sm:$0xff]  ;;  %v16762_v4 = vsel %vm5730_vm12, %v20274_v29, 0.0  ;;  %v20277_v55 = vsub.f32 %v20276_v57, %v15592_v58  ;;  %v20286_v57 = vld [vmem:[#allocation281_spill] sm:$0xff] }
 0x5ff   : >> { %20268 = vst [vmem:[#allocation218_spill] sm:$0xff] %v16747_v22  ;;  %v20270_v9 = vsub.f32 %v20269_v24, %v15598_v42  ;;  %20275 = vst [vmem:[#allocation266_spill] sm:$0xff] %v16762_v4  ;;  %v20279_v24 = vld [vmem:[#allocation279_spill] sm:$0xff]  ;;  %v20285_v4 = vld [vmem:[#allocation226_spill] sm:$0xff] }
 0x600   : >> { %v16769_v22 = vsel %vm5730_vm12, %v20277_v55, 0.0  ;;  %v20280_v46 = vsub.f32 %v20279_v24, %v15595_v48  ;;  %vm5742_vm3 = vcmp.lt.s32.totalorder %v20285_v4, 384  ;;  %v20287_v55 = vsub.f32 %v20286_v57, %v15589_v27  ;;  %v20289_v24 = vld [vmem:[#allocation282_spill] sm:$0xff] }
 0x601   : >> { %v16754_v26 = vsel %vm5729_vm9, %v20270_v9, 0.0  ;;  %20278 = vst [vmem:[#allocation267_spill] sm:$0xff] %v16769_v22 }
 0x602   : >> { %20271 = vst [vmem:[#allocation265_spill] sm:$0xff] %v16754_v26  ;;  %v16776_v9 = vsel %vm5730_vm12, %v20280_v46, 0.0  ;;  %v20282_v26 = vld [vmem:[#allocation280_spill] sm:$0xff]  ;;  %v16791_v22 = vsel %vm5731_vm11, %v20287_v55, 0.0  ;;  %v20290_v46 = vsub.f32 %v20289_v24, %v15592_v58  ;;  %v20298_v24 = vsub.f32 %v15953_v2, %v15589_v27 }
 0x603   : >> { %20281 = vst [vmem:[#allocation268_spill] sm:$0xff] %v16776_v9  ;;  %v20283_v39 = vsub.f32 %v20282_v26, %v15598_v42  ;;  %20288 = vst [vmem:[#allocation269_spill] sm:$0xff] %v16791_v22  ;;  %v20291_v26 = vld [vmem:[#allocation283_spill] sm:$0xff] }
 0x604   : >> { %v16798_v9 = vsel %vm5731_vm11, %v20290_v46, 0.0  ;;  %v20292_v41 = vsub.f32 %v20291_v26, %v15595_v48  ;;  %v20297_v22 = vld [vmem:[#allocation227_spill] sm:$0xff]  ;;  %v16820_v46 = vsel %vm5732_vm7, %v20298_v24, 0.0  ;;  %v20299_v26 = vld [vmem:[#allocation285_spill] sm:$0xff] }
 0x605   : >> { %v16783_v29 = vsel %vm5730_vm12, %v20283_v39, 0.0  ;;  %vm5743_vm15 = vcmp.lt.s32.totalorder %v20297_v22, 384  ;;  %v6092_v22 = vmul.f32 %v16312_v34, %v16312_v34 }
 0x606   : >> { %20284 = vst [vmem:[#allocation219_spill] sm:$0xff] %v16783_v29  ;;  %v16805_v39 = vsel %vm5731_vm11, %v20292_v41, 0.0  ;;  %v20294_v29 = vld [vmem:[#allocation284_spill] sm:$0xff]  ;;  %v20300_v41 = vsub.f32 %v20299_v26, %v15592_v58  ;;  %v20307_v26 = vsub.f32 %v15973_v3, %v15589_v27 }
 0x607   : >> { %20293 = vst [vmem:[#allocation270_spill] sm:$0xff] %v16805_v39  ;;  %v20295_v57 = vsub.f32 %v20294_v29, %v15598_v42  ;;  %v20302_v29 = vld [vmem:[#allocation286_spill] sm:$0xff] }
 0x608   : >> { %v16827_v39 = vsel %vm5732_vm7, %v20300_v41, 0.0  ;;  %v20303_v0 = vsub.f32 %v20302_v29, %v15595_v48  ;;  %v16848_v41 = vsel %vm5733_vm8, %v20307_v26, 0.0 }
 0x609   : >> { %v16812_v55 = vsel %vm5731_vm11, %v20295_v57, 0.0  ;;  %20301 = vst [vmem:[#allocation272_spill] sm:$0xff] %v16827_v39  ;;  %v20308_v39 = vld [vmem:[#allocation288_spill] sm:$0xff] }
 0x60a   : >> { %20296 = vst [vmem:[#allocation271_spill] sm:$0xff] %v16812_v55  ;;  %v16834_v57 = vsel %vm5732_vm7, %v20303_v0, 0.0  ;;  %v20305_v55 = vld [vmem:[#allocation287_spill] sm:$0xff]  ;;  %v20309_v29 = vsub.f32 %v20308_v39, %v15592_v58  ;;  %v20316_v39 = vsub.f32 %v15993_v52, %v15589_v27 }
 0x60b   : >> { %20304 = vst [vmem:[#allocation220_spill] sm:$0xff] %v16834_v57  ;;  %v20306_v2 = vsub.f32 %v20305_v55, %v15598_v42  ;;  %v20311_v57 = vld [vmem:[#allocation289_spill] sm:$0xff] }
 0x60c   : >> { %v16855_v0 = vsel %vm5733_vm8, %v20309_v29, 0.0  ;;  %v20312_v55 = vsub.f32 %v20311_v57, %v15595_v48  ;;  %v16876_v29 = vsel %vm5734_vm6, %v20316_v39, 0.0 }
 0x60d   : >> { %v16841_v24 = vsel %vm5732_vm7, %v20306_v2, 0.0  ;;  %20310 = vst [vmem:[#allocation273_spill] sm:$0xff] %v16855_v0  ;;  %v20314_v2 = vld [vmem:[#allocation290_spill] sm:$0xff]  ;;  %20317 = vst [vmem:[#allocation275_spill] sm:$0xff] %v16876_v29  ;;  %v20318_v0 = vld [vmem:[#allocation291_spill] sm:$0xff] }
 0x60e   : >> { %v16862_v44 = vsel %vm5733_vm8, %v20312_v55, 0.0  ;;  %v20315_v3 = vsub.f32 %v20314_v2, %v15598_v42  ;;  %v20319_v57 = vsub.f32 %v20318_v0, %v15592_v58  ;;  %v20326_v29 = vld [vmem:[#allocation228_spill] sm:$0xff]  ;;  %v20327_v0 = vsub.f32 %v16013_v56, %v15589_v27 }
 0x60f   : >> { %20313 = vst [vmem:[#allocation274_spill] sm:$0xff] %v16862_v44  ;;  %v20320_v44 = vld [vmem:[#allocation292_spill] sm:$0xff]  ;;  %vm5744_vm5 = vcmp.lt.s32.totalorder %v20326_v29, 384  ;;  %v20400_v29 = vld [vmem:[#allocation215_spill] sm:$0xff] }
 0x610   : >> { %v16869_v26 = vsel %vm5733_vm8, %v20315_v3, 0.0  ;;  %v16883_v55 = vsel %vm5734_vm6, %v20319_v57, 0.0  ;;  %v20321_v2 = vsub.f32 %v20320_v44, %v15595_v48  ;;  %v20323_v3 = vld [vmem:[#allocation293_spill] sm:$0xff]  ;;  %v16905_v57 = vsel %vm5735_vm13, %v20327_v0, 0.0  ;;  %v20328_v44 = vld [vmem:[#allocation294_spill] sm:$0xff] }
 0x611   : >> { %v20324_v52 = vsub.f32 %v20323_v3, %v15598_v42  ;;  %v20331_v3 = vld [vmem:[#allocation295_spill] sm:$0xff] }
 0x612   : >> { %v16890_v50 = vsel %vm5734_vm6, %v20321_v2, 0.0  ;;  %v20329_v2 = vsub.f32 %v20328_v44, %v15592_v58  ;;  %v20332_v63 = vsub.f32 %v20331_v3, %v15595_v48  ;;  %v20336_v44 = vsub.f32 %v16033_v53, %v15589_v27 }
 0x613   : >> { %20322 = vst [vmem:[#allocation276_spill] sm:$0xff] %v16890_v50  ;;  %v16897_v39 = vsel %vm5734_vm6, %v20324_v52, 0.0 }
 0x614   : >> { %20325 = vst [vmem:[#allocation225_spill] sm:$0xff] %v16897_v39  ;;  %v16912_v50 = vsel %vm5735_vm13, %v20329_v2, 0.0  ;;  %v16919_v52 = vsel %vm5735_vm13, %v20332_v63, 0.0  ;;  %v20334_v39 = vld [vmem:[#allocation296_spill] sm:$0xff]  ;;  %v16933_v2 = vsel %vm5736_vm2, %v20336_v44, 0.0 }
 0x615   : >> { %20330 = vst [vmem:[#allocation277_spill] sm:$0xff] %v16912_v50  ;;  %20333 = vst [vmem:[#allocation278_spill] sm:$0xff] %v16919_v52  ;;  %v20335_v56 = vsub.f32 %v20334_v39, %v15598_v42  ;;  %v20337_v50 = vld [vmem:[#allocation297_spill] sm:$0xff]  ;;  %v20340_v52 = vld [vmem:[#allocation298_spill] sm:$0xff] }
 0x616   : >> { %v20338_v3 = vsub.f32 %v20337_v50, %v15592_v58  ;;  %v20341_v39 = vsub.f32 %v20340_v52, %v15595_v48  ;;  %v20345_v50 = vsub.f32 %v16053_v60, %v15589_v27 }
 0x617   : >> { %v16926_v0 = vsel %vm5735_vm13, %v20335_v56, 0.0  ;;  %v20343_v56 = vld [vmem:[#allocation299_spill] sm:$0xff] }
 0x618   : >> { %v16940_v63 = vsel %vm5736_vm2, %v20338_v3, 0.0  ;;  %v16947_v37 = vsel %vm5736_vm2, %v20341_v39, 0.0  ;;  %v20344_v53 = vsub.f32 %v20343_v56, %v15598_v42  ;;  %v16961_v3 = vsel %vm5737_vm1, %v20345_v50, 0.0 }
 0x619   : >> { %20339 = vst [vmem:[#allocation279_spill] sm:$0xff] %v16940_v63  ;;  %20342 = vst [vmem:[#allocation280_spill] sm:$0xff] %v16947_v37  ;;  %v20346_v63 = vld [vmem:[#allocation300_spill] sm:$0xff]  ;;  %v20349_v37 = vld [vmem:[#allocation301_spill] sm:$0xff] }
 0x61a   : >> { %v16954_v44 = vsel %vm5736_vm2, %v20344_v53, 0.0  ;;  %v20347_v52 = vsub.f32 %v20346_v63, %v15592_v58  ;;  %v20350_v56 = vsub.f32 %v20349_v37, %v15595_v48  ;;  %v20352_v53 = vld [vmem:[#allocation302_spill] sm:$0xff]  ;;  %v20354_v63 = vsub.f32 %v16073_v47, %v15589_v27 }
 0x61b   : >> { %v20353_v60 = vsub.f32 %v20352_v53, %v15598_v42 }
 0x61c   : >> { %v16968_v39 = vsel %vm5737_vm1, %v20347_v52, 0.0  ;;  %v16975_v11 = vsel %vm5737_vm1, %v20350_v56, 0.0  ;;  %v16989_v52 = vsel %vm5738_vm0, %v20354_v63, 0.0 }
 0x61d   : >> { %20348 = vst [vmem:[#allocation226_spill] sm:$0xff] %v16968_v39  ;;  %20351 = vst [vmem:[#allocation281_spill] sm:$0xff] %v16975_v11  ;;  %v16982_v50 = vsel %vm5737_vm1, %v20353_v60, 0.0  ;;  %v20355_v39 = vld [vmem:[#allocation303_spill] sm:$0xff]  ;;  %v20358_v11 = vld [vmem:[#allocation304_spill] sm:$0xff] }
 0x61e   : >> { %v20356_v37 = vsub.f32 %v20355_v39, %v15592_v58  ;;  %v20359_v53 = vsub.f32 %v20358_v11, %v15595_v48  ;;  %v20361_v60 = vld [vmem:[#allocation305_spill] sm:$0xff]  ;;  %v20363_v39 = vsub.f32 %v16093_v15, %v15589_v27 }
 0x61f   : >> { %v20362_v47 = vsub.f32 %v20361_v60, %v15598_v42 }
 0x620   : >> { %v16996_v56 = vsel %vm5738_vm0, %v20356_v37, 0.0  ;;  %v17003_v51 = vsel %vm5738_vm0, %v20359_v53, 0.0  ;;  %v17017_v37 = vsel %vm5739_vm4, %v20363_v39, 0.0 }
 0x621   : >> { %20357 = vst [vmem:[#allocation282_spill] sm:$0xff] %v16996_v56  ;;  %20360 = vst [vmem:[#allocation283_spill] sm:$0xff] %v17003_v51  ;;  %v17010_v63 = vsel %vm5738_vm0, %v20362_v47, 0.0  ;;  %v20364_v56 = vld [vmem:[#allocation306_spill] sm:$0xff]  ;;  %v20366_v51 = vld [vmem:[#allocation307_spill] sm:$0xff] }
 0x622   : >> { %v20365_v11 = vsub.f32 %v20364_v56, %v15592_v58  ;;  %v20367_v60 = vsub.f32 %v20366_v51, %v15595_v48  ;;  %v20369_v47 = vld [vmem:[#allocation308_spill] sm:$0xff]  ;;  %v20371_v56 = vsub.f32 %v16114_v35, %v15589_v27  ;;  %v20372_v51 = vsub.f32 %v16117_v38, %v15592_v58 }
 0x623   : >> { %v20370_v15 = vsub.f32 %v20369_v47, %v15598_v42  ;;  %v20377_v38 = vsub.f32 %v16135_v31, %v15589_v27  ;;  %v20380_v31 = vsub.f32 %v16153_v18, %v15598_v42  ;;  %v20383_v18 = vsub.f32 %v16171_v30, %v15595_v48 }
 0x624   : >> { %v17024_v53 = vsel %vm5739_vm4, %v20365_v11, 0.0  ;;  %v17031_v8 = vsel %vm5739_vm4, %v20367_v60, 0.0  ;;  %v17045_v11 = vsel %vm5740_vm14, %v20371_v56, 0.0  ;;  %v17052_v60 = vsel %vm5740_vm14, %v20372_v51, 0.0 }
 0x625   : >> { %20368 = vst [vmem:[#allocation284_spill] sm:$0xff] %v17031_v8  ;;  %v17038_v39 = vsel %vm5739_vm4, %v20370_v15, 0.0  ;;  %v20373_v8 = vld [vmem:[#allocation309_spill] sm:$0xff]  ;;  %v20375_v15 = vld [vmem:[#allocation310_spill] sm:$0xff]  ;;  %v17073_v51 = vsel %vm5741_vm10, %v20377_v38, 0.0  ;;  %v17115_v7 = vsel %vm5742_vm3, %v20383_v18, 0.0  ;;  %v20386_v30 = vsub.f32 %v16189_v1, %v15592_v58 }
 0x626   : >> { %v20374_v47 = vsub.f32 %v20373_v8, %v15595_v48  ;;  %v20376_v35 = vsub.f32 %v20375_v15, %v15598_v42  ;;  %v20378_v8 = vsub.f32 %v16147_v14, %v15592_v58  ;;  %v20379_v15 = vsub.f32 %v16150_v16, %v15595_v48 }
 0x627   : >> { %v20381_v14 = vsub.f32 %v16165_v28, %v15589_v27  ;;  %v20382_v16 = vsub.f32 %v16168_v5, %v15592_v58  ;;  %v20384_v28 = vsub.f32 %v16183_v43, %v15598_v42  ;;  %v20385_v5 = vsub.f32 %v16186_v49, %v15589_v27 }
 0x628   : >> { %v17059_v33 = vsel %vm5740_vm14, %v20374_v47, 0.0  ;;  %v17066_v56 = vsel %vm5740_vm14, %v20376_v35, 0.0  ;;  %v17080_v47 = vsel %vm5741_vm10, %v20378_v8, 0.0  ;;  %v17087_v40 = vsel %vm5741_vm10, %v20379_v15, 0.0 }
 0x629   : >> { %v17094_v35 = vsel %vm5741_vm10, %v20380_v31, 0.0  ;;  %v17101_v38 = vsel %vm5742_vm3, %v20381_v14, 0.0  ;;  %v17108_v8 = vsel %vm5742_vm3, %v20382_v16, 0.0  ;;  %v17122_v15 = vsel %vm5742_vm3, %v20384_v28, 0.0 }
 0x62a   : >> { %v17129_v31 = vsel %vm5743_vm15, %v20385_v5, 0.0  ;;  %v17136_v14 = vsel %vm5743_vm15, %v20386_v30, 0.0  ;;  %v20387_v43 = vsub.f32 %v16201_v17, %v15595_v48  ;;  %v20388_v49 = vsub.f32 %v16204_v12, %v15598_v42 }
 0x62b   : >> { %v6086_v1 = vmul.f32 %v16269_v59, %v16269_v59  ;;  %v6087_v18 = vmul.f32 %v16276_v13, %v16276_v13  ;;  %v6088_v17 = vmul.f32 %v16283_v25, %v16283_v25  ;;  %v6089_v28 = vmul.f32 %v16290_v61, %v16290_v61 }
 0x62c   : >> { %v17143_v4 = vsel %vm5743_vm15, %v20387_v43, 0.0  ;;  %v17150_v16 = vsel %vm5743_vm15, %v20388_v49, 0.0  ;;  %v6090_v5 = vmul.f32 %v16298_v10, %v16298_v10  ;;  %v6091_v12 = vmul.f32 %v16305_v36, %v16305_v36  ;;  %v20401_v49 = vld [vmem:[#allocation216_spill] sm:$0xff] }
 0x62d   : >> { %20389 = vst [vmem:[#allocation227_spill] sm:$0xff] %v17150_v16  ;;  %v6093_v59 = vmul.f32 %v16319_v19, %v16319_v19  ;;  %v20390_v13 = vsub.f32 %v16207_v23, %v15589_v27  ;;  %v20392_v61 = vsub.f32 %v16219_v45, %v15592_v58  ;;  %v20394_v36 = vsub.f32 %v16222_v20, %v15595_v48  ;;  %v20398_v19 = vld [vmem:[#allocation311_spill] sm:$0xff] }
 0x62e   : >> { %v20396_v27 = vsub.f32 %v16225_v21, %v15598_v42  ;;  %v6094_v58 = vmul.f32 %v16327_v6, %v16327_v6  ;;  %v6095_v45 = vmul.f32 %v16334_v54, %v16334_v54  ;;  %v6096_v20 = vmul.f32 %v16341_v62, %v16341_v62  ;;  %v20399_v21 = vld [vmem:[#allocation214_spill] sm:$0xff]  ;;  %v20402_v62 = vld [vmem:[#allocation205_spill] sm:$0xff] }
 0x62f   : >> { %v17173_v25 = vsel %vm5744_vm5, %v20390_v13, 0.0  ;;  %v17180_v10 = vsel %vm5744_vm5, %v20392_v61, 0.0  ;;  %v17187_v34 = vsel %vm5744_vm5, %v20394_v36, 0.0  ;;  %v6097_v48 = vmul.f32 %v16348_v32, %v16348_v32  ;;  %v20403_v32 = vld [vmem:[#allocation221_spill] sm:$0xff] }
 0x630   : >> { %20391 = vst [vmem:[#allocation285_spill] sm:$0xff] %v17173_v25  ;;  %20393 = vst [vmem:[#allocation286_spill] sm:$0xff] %v17180_v10  ;;  %v17194_v23 = vsel %vm5744_vm5, %v20396_v27, 0.0  ;;  %v6098_v30 = vmul.f32 %v20398_v19, %v20398_v19  ;;  %v6099_v42 = vmul.f32 %v20399_v21, %v20399_v21  ;;  %v6100_v43 = vmul.f32 %v20400_v29, %v20400_v29  ;;  %v20404_v19 = vld [vmem:[#allocation222_spill] sm:$0xff]  ;;  %v20405_v21 = vld [vmem:[#allocation223_spill] sm:$0xff] }
 0x631   : >> { %20395 = vst [vmem:[#allocation287_spill] sm:$0xff] %v17187_v34  ;;  %20397 = vst [vmem:[#allocation288_spill] sm:$0xff] %v17194_v23  ;;  %v6101_v6 = vmul.f32 %v20401_v49, %v20401_v49  ;;  %v6214_v13 = vadd.f32 %v6090_v5, %v6086_v1  ;;  %v6251_v54 = vadd.f32 %v6091_v12, %v6087_v18  ;;  %v20406_v1 = vld [vmem:[#allocation224_spill] sm:$0xff]  ;;  %v20408_v5 = vld [vmem:[#allocation229_spill] sm:$0xff] }
 0x632   : >> { %v6288_v61 = vadd.f32 %v6092_v22, %v6088_v17  ;;  %v6325_v36 = vadd.f32 %v6093_v59, %v6089_v28  ;;  %v6102_v27 = vmul.f32 %v20402_v62, %v20402_v62  ;;  %v6103_v23 = vmul.f32 %v20403_v32, %v20403_v32  ;;  %v20407_v17 = vld [vmem:[#allocation206_spill] sm:$0xff] }
 0x633   : >> { %v6104_v34 = vmul.f32 %v20404_v19, %v20404_v19  ;;  %v6105_v10 = vmul.f32 %v20405_v21, %v20405_v21  ;;  %v6215_v29 = vadd.f32 %v6214_v13, %v6094_v58  ;;  %v6252_v25 = vadd.f32 %v6251_v54, %v6095_v45  ;;  %v20409_v22 = vld [vmem:[#allocation230_spill] sm:$0xff]  ;;  %v20410_v58 = vld [vmem:[#allocation231_spill] sm:$0xff] }
 0x634   : >> { %v6289_v16 = vadd.f32 %v6288_v61, %v6096_v20  ;;  %v6326_v49 = vadd.f32 %v6325_v36, %v6097_v48  ;;  %v6106_v18 = vmul.f32 %v20406_v1, %v20406_v1  ;;  %v6107_v28 = vmul.f32 %v20407_v17, %v20407_v17  ;;  %v20411_v20 = vld [vmem:[#allocation232_spill] sm:$0xff]  ;;  %v20412_v13 = vld [vmem:[#allocation207_spill] sm:$0xff]  ;;  %v20413_v61 = vld [vmem:[#allocation233_spill] sm:$0xff] }
 0x635   : >> { %v6108_v12 = vmul.f32 %v20408_v5, %v20408_v5  ;;  %v6109_v59 = vmul.f32 %v20409_v22, %v20409_v22  ;;  %v6216_v62 = vadd.f32 %v6215_v29, %v6098_v30  ;;  %v6253_v32 = vadd.f32 %v6252_v25, %v6099_v42  ;;  %v20414_v30 = vld [vmem:[#allocation234_spill] sm:$0xff]  ;;  %v20415_v25 = vld [vmem:[#allocation235_spill] sm:$0xff]  ;;  %v20417_v29 = vld [vmem:[#allocation208_spill] sm:$0xff] }
 0x636   : >> { %v6290_v19 = vadd.f32 %v6289_v16, %v6100_v43  ;;  %v6327_v21 = vadd.f32 %v6326_v49, %v6101_v6  ;;  %v6110_v45 = vmul.f32 %v20410_v58, %v20410_v58  ;;  %v6111_v48 = vmul.f32 %v20411_v20, %v20411_v20  ;;  %v20416_v43 = vld [vmem:[#allocation236_spill] sm:$0xff] }
 0x637   : >> { %v6112_v54 = vmul.f32 %v20412_v13, %v20412_v13  ;;  %v6113_v36 = vmul.f32 %v20413_v61, %v20413_v61  ;;  %v6217_v1 = vadd.f32 %v6216_v62, %v6102_v27  ;;  %v6254_v17 = vadd.f32 %v6253_v32, %v6103_v23  ;;  %v20418_v27 = vld [vmem:[#allocation237_spill] sm:$0xff]  ;;  %v20420_v62 = vld [vmem:[#allocation239_spill] sm:$0xff] }
 0x638   : >> { %v6291_v5 = vadd.f32 %v6290_v19, %v6104_v34  ;;  %v6328_v22 = vadd.f32 %v6327_v21, %v6105_v10  ;;  %v6114_v16 = vmul.f32 %v20414_v30, %v20414_v30  ;;  %v6115_v42 = vmul.f32 %v20415_v25, %v20415_v25  ;;  %v20419_v10 = vld [vmem:[#allocation238_spill] sm:$0xff]  ;;  %v20421_v19 = vld [vmem:[#allocation240_spill] sm:$0xff] }
 0x639   : >> { %v6116_v6 = vmul.f32 %v20416_v43, %v20416_v43  ;;  %v6117_v49 = vmul.f32 %v20417_v29, %v20417_v29  ;;  %v6218_v58 = vadd.f32 %v6217_v1, %v6106_v18  ;;  %v6255_v20 = vadd.f32 %v6254_v17, %v6107_v28  ;;  %v20422_v18 = vld [vmem:[#allocation209_spill] sm:$0xff]  ;;  %v20424_v1 = vld [vmem:[#allocation242_spill] sm:$0xff] }
 0x63a   : >> { %v6292_v13 = vadd.f32 %v6291_v5, %v6108_v12  ;;  %v6329_v61 = vadd.f32 %v6328_v22, %v6109_v59  ;;  %v6118_v34 = vmul.f32 %v20418_v27, %v20418_v27  ;;  %v6119_v23 = vmul.f32 %v20419_v10, %v20419_v10  ;;  %v20423_v12 = vld [vmem:[#allocation241_spill] sm:$0xff]  ;;  %v20425_v5 = vld [vmem:[#allocation243_spill] sm:$0xff] }
 0x63b   : >> { %v6120_v32 = vmul.f32 %v20420_v62, %v20420_v62  ;;  %v6121_v21 = vmul.f32 %v20421_v19, %v20421_v19  ;;  %v6219_v30 = vadd.f32 %v6218_v58, %v6110_v45  ;;  %v6256_v25 = vadd.f32 %v6255_v20, %v6111_v48  ;;  %v20426_v45 = vld [vmem:[#allocation244_spill] sm:$0xff]  ;;  %v20428_v58 = vld [vmem:[#allocation245_spill] sm:$0xff] }
 0x63c   : >> { %v6293_v43 = vadd.f32 %v6292_v13, %v6112_v54  ;;  %v6330_v29 = vadd.f32 %v6329_v61, %v6113_v36  ;;  %v6122_v28 = vmul.f32 %v20422_v18, %v20422_v18  ;;  %v6123_v59 = vmul.f32 %v20423_v12, %v20423_v12  ;;  %v20427_v54 = vld [vmem:[#allocation210_spill] sm:$0xff] }
 0x63d   : >> { %v6124_v17 = vmul.f32 %v20424_v1, %v20424_v1  ;;  %v6125_v22 = vmul.f32 %v20425_v5, %v20425_v5  ;;  %v6220_v27 = vadd.f32 %v6219_v30, %v6114_v16  ;;  %v6257_v10 = vadd.f32 %v6256_v25, %v6115_v42  ;;  %v20429_v13 = vld [vmem:[#allocation246_spill] sm:$0xff]  ;;  %v20430_v16 = vld [vmem:[#allocation247_spill] sm:$0xff] }
 0x63e   : >> { %v6294_v62 = vadd.f32 %v6293_v43, %v6116_v6  ;;  %v6331_v19 = vadd.f32 %v6330_v29, %v6117_v49  ;;  %v6126_v48 = vmul.f32 %v20426_v45, %v20426_v45  ;;  %v6127_v36 = vmul.f32 %v20427_v54, %v20427_v54  ;;  %v20431_v6 = vld [vmem:[#allocation248_spill] sm:$0xff]  ;;  %v20432_v30 = vld [vmem:[#allocation211_spill] sm:$0xff]  ;;  %v20433_v43 = vld [vmem:[#allocation249_spill] sm:$0xff] }
 0x63f   : >> { %v6128_v20 = vmul.f32 %v20428_v58, %v20428_v58  ;;  %v6129_v61 = vmul.f32 %v20429_v13, %v20429_v13  ;;  %v6221_v18 = vadd.f32 %v6220_v27, %v6118_v34  ;;  %v6258_v12 = vadd.f32 %v6257_v10, %v6119_v23  ;;  %v20434_v34 = vld [vmem:[#allocation250_spill] sm:$0xff]  ;;  %v20436_v27 = vld [vmem:[#allocation252_spill] sm:$0xff] }
 0x640   : >> { %v6295_v1 = vadd.f32 %v6294_v62, %v6120_v32  ;;  %v6332_v5 = vadd.f32 %v6331_v19, %v6121_v21  ;;  %v6130_v42 = vmul.f32 %v20430_v16, %v20430_v16  ;;  %v6131_v49 = vmul.f32 %v20431_v6, %v20431_v6  ;;  %v20435_v32 = vld [vmem:[#allocation251_spill] sm:$0xff]  ;;  %v20437_v62 = vld [vmem:[#allocation212_spill] sm:$0xff] }
 0x641   : >> { %v6132_v25 = vmul.f32 %v20432_v30, %v20432_v30  ;;  %v6133_v29 = vmul.f32 %v20433_v43, %v20433_v43  ;;  %v6222_v45 = vadd.f32 %v6221_v18, %v6122_v28  ;;  %v6259_v54 = vadd.f32 %v6258_v12, %v6123_v59  ;;  %v20438_v28 = vld [vmem:[#allocation253_spill] sm:$0xff]  ;;  %v20440_v18 = vld [vmem:[#allocation255_spill] sm:$0xff] }
 0x642   : >> { %v6296_v58 = vadd.f32 %v6295_v1, %v6124_v17  ;;  %v6333_v13 = vadd.f32 %v6332_v5, %v6125_v22  ;;  %v6134_v23 = vmul.f32 %v20434_v34, %v20434_v34  ;;  %v6135_v21 = vmul.f32 %v20435_v32, %v20435_v32  ;;  %v20439_v17 = vld [vmem:[#allocation254_spill] sm:$0xff]  ;;  %v20441_v1 = vld [vmem:[#allocation256_spill] sm:$0xff] }
 0x643   : >> { %v6136_v10 = vmul.f32 %v20436_v27, %v20436_v27  ;;  %v6137_v19 = vmul.f32 %v20437_v62, %v20437_v62  ;;  %v6223_v16 = vadd.f32 %v6222_v45, %v6126_v48  ;;  %v6260_v6 = vadd.f32 %v6259_v54, %v6127_v36  ;;  %v20442_v48 = vld [vmem:[#allocation213_spill] sm:$0xff]  ;;  %v20444_v45 = vld [vmem:[#allocation258_spill] sm:$0xff] }
 0x644   : >> { %v6297_v30 = vadd.f32 %v6296_v58, %v6128_v20  ;;  %v6334_v43 = vadd.f32 %v6333_v13, %v6129_v61  ;;  %v6138_v59 = vmul.f32 %v20438_v28, %v20438_v28  ;;  %v6139_v22 = vmul.f32 %v20439_v17, %v20439_v17  ;;  %v20443_v20 = vld [vmem:[#allocation257_spill] sm:$0xff]  ;;  %v20445_v58 = vld [vmem:[#allocation259_spill] sm:$0xff] }
 0x645   : >> { %v6140_v12 = vmul.f32 %v20440_v18, %v20440_v18  ;;  %v6141_v5 = vmul.f32 %v20441_v1, %v20441_v1  ;;  %v6224_v34 = vadd.f32 %v6223_v16, %v6130_v42  ;;  %v6261_v32 = vadd.f32 %v6260_v6, %v6131_v49  ;;  %v20446_v42 = vld [vmem:[#allocation260_spill] sm:$0xff]  ;;  %v20448_v16 = vld [vmem:[#allocation261_spill] sm:$0xff] }
 0x646   : >> { %v6298_v27 = vadd.f32 %v6297_v30, %v6132_v25  ;;  %v6335_v62 = vadd.f32 %v6334_v43, %v6133_v29  ;;  %v6142_v36 = vmul.f32 %v20442_v48, %v20442_v48  ;;  %v6143_v61 = vmul.f32 %v20443_v20, %v20443_v20  ;;  %v20447_v25 = vld [vmem:[#allocation217_spill] sm:$0xff]  ;;  %v20449_v30 = vld [vmem:[#allocation262_spill] sm:$0xff] }
 0x647   : >> { %v6144_v54 = vmul.f32 %v20444_v45, %v20444_v45  ;;  %v6145_v13 = vmul.f32 %v20445_v58, %v20445_v58  ;;  %v6225_v28 = vadd.f32 %v6224_v34, %v6134_v23  ;;  %v6262_v17 = vadd.f32 %v6261_v32, %v6135_v21  ;;  %v20450_v23 = vld [vmem:[#allocation263_spill] sm:$0xff]  ;;  %v20452_v34 = vld [vmem:[#allocation218_spill] sm:$0xff] }
 0x648   : >> { %v6299_v18 = vadd.f32 %v6298_v27, %v6136_v10  ;;  %v6336_v1 = vadd.f32 %v6335_v62, %v6137_v19  ;;  %v6146_v49 = vmul.f32 %v20446_v42, %v20446_v42  ;;  %v6147_v29 = vmul.f32 %v20447_v25, %v20447_v25  ;;  %v20451_v10 = vld [vmem:[#allocation264_spill] sm:$0xff]  ;;  %v20453_v27 = vld [vmem:[#allocation265_spill] sm:$0xff] }
 0x649   : >> { %v6148_v6 = vmul.f32 %v20448_v16, %v20448_v16  ;;  %v6149_v43 = vmul.f32 %v20449_v30, %v20449_v30  ;;  %v6226_v48 = vadd.f32 %v6225_v28, %v6138_v59  ;;  %v6263_v20 = vadd.f32 %v6262_v17, %v6139_v22  ;;  %v20454_v59 = vld [vmem:[#allocation266_spill] sm:$0xff]  ;;  %v20456_v28 = vld [vmem:[#allocation268_spill] sm:$0xff] }
 0x64a   : >> { %v6300_v45 = vadd.f32 %v6299_v18, %v6140_v12  ;;  %v6337_v58 = vadd.f32 %v6336_v1, %v6141_v5  ;;  %v6150_v21 = vmul.f32 %v20450_v23, %v20450_v23  ;;  %v6151_v19 = vmul.f32 %v20451_v10, %v20451_v10  ;;  %v20455_v12 = vld [vmem:[#allocation267_spill] sm:$0xff] }
 0x64b   : >> { %v6152_v32 = vmul.f32 %v20452_v34, %v20452_v34  ;;  %v6153_v62 = vmul.f32 %v20453_v27, %v20453_v27  ;;  %v6227_v42 = vadd.f32 %v6226_v48, %v6142_v36  ;;  %v6264_v25 = vadd.f32 %v6263_v20, %v6143_v61  ;;  %v20457_v18 = vld [vmem:[#allocation219_spill] sm:$0xff]  ;;  %v20458_v36 = vld [vmem:[#allocation269_spill] sm:$0xff] }
 0x64c   : >> { %v6301_v16 = vadd.f32 %v6300_v45, %v6144_v54  ;;  %v6338_v30 = vadd.f32 %v6337_v58, %v6145_v13  ;;  %v6154_v22 = vmul.f32 %v20454_v59, %v20454_v59  ;;  %v6155_v5 = vmul.f32 %v20455_v12, %v20455_v12  ;;  %v20459_v13 = vld [vmem:[#allocation270_spill] sm:$0xff]  ;;  %v20460_v20 = vld [vmem:[#allocation271_spill] sm:$0xff] }
 0x64d   : >> { %v6156_v17 = vmul.f32 %v20456_v28, %v20456_v28  ;;  %v6157_v1 = vmul.f32 %v20457_v18, %v20457_v18  ;;  %v6228_v23 = vadd.f32 %v6227_v42, %v6146_v49  ;;  %v6265_v10 = vadd.f32 %v6264_v25, %v6147_v29  ;;  %v20461_v29 = vld [vmem:[#allocation272_spill] sm:$0xff] }
 0x64e   : >> { %v6302_v34 = vadd.f32 %v6301_v16, %v6148_v6  ;;  %v6339_v27 = vadd.f32 %v6338_v30, %v6149_v43  ;;  %v6158_v61 = vmul.f32 %v20458_v36, %v20458_v36  ;;  %v6159_v54 = vmul.f32 %v16798_v9, %v16798_v9  ;;  %v20462_v43 = vld [vmem:[#allocation220_spill] sm:$0xff]  ;;  %v20467_v36 = vld [vmem:[#allocation225_spill] sm:$0xff] }
 0x64f   : >> { %v6160_v48 = vmul.f32 %v20459_v13, %v20459_v13  ;;  %v6161_v45 = vmul.f32 %v20460_v20, %v20460_v20  ;;  %v6229_v58 = vadd.f32 %v6228_v23, %v6150_v21  ;;  %v6266_v59 = vadd.f32 %v6265_v10, %v6151_v19  ;;  %v20463_v19 = vld [vmem:[#allocation273_spill] sm:$0xff] }
 0x650   : >> { %v6303_v12 = vadd.f32 %v6302_v34, %v6152_v32  ;;  %v6340_v28 = vadd.f32 %v6339_v27, %v6153_v62  ;;  %v6162_v49 = vmul.f32 %v16820_v46, %v16820_v46  ;;  %v6163_v6 = vmul.f32 %v20461_v29, %v20461_v29  ;;  %v20464_v46 = vld [vmem:[#allocation274_spill] sm:$0xff] }
 0x651   : >> { %v6164_v42 = vmul.f32 %v20462_v43, %v20462_v43  ;;  %v6165_v9 = vmul.f32 %v16841_v24, %v16841_v24  ;;  %v6230_v25 = vadd.f32 %v6229_v58, %v6154_v22  ;;  %v6267_v16 = vadd.f32 %v6266_v59, %v6155_v5  ;;  %v20465_v22 = vld [vmem:[#allocation275_spill] sm:$0xff] }
 0x652   : >> { %v6304_v30 = vadd.f32 %v6303_v12, %v6156_v17  ;;  %v6341_v18 = vadd.f32 %v6340_v28, %v6157_v1  ;;  %v6166_v21 = vmul.f32 %v16848_v41, %v16848_v41  ;;  %v6167_v32 = vmul.f32 %v20463_v19, %v20463_v19  ;;  %v20466_v41 = vld [vmem:[#allocation276_spill] sm:$0xff] }
 0x653   : >> { %v6168_v62 = vmul.f32 %v20464_v46, %v20464_v46  ;;  %v6169_v23 = vmul.f32 %v16869_v26, %v16869_v26  ;;  %v6231_v10 = vadd.f32 %v6230_v25, %v6158_v61  ;;  %v6268_v34 = vadd.f32 %v6267_v16, %v6159_v54  ;;  %v20468_v54 = vld [vmem:[#allocation277_spill] sm:$0xff] }
 0x654   : >> { %v6305_v27 = vadd.f32 %v6304_v30, %v6160_v48  ;;  %v6342_v24 = vadd.f32 %v6341_v18, %v6161_v45  ;;  %v6170_v5 = vmul.f32 %v20465_v22, %v20465_v22  ;;  %v6171_v17 = vmul.f32 %v16883_v55, %v16883_v55  ;;  %v20469_v45 = vld [vmem:[#allocation278_spill] sm:$0xff] }
 0x655   : >> { %v6172_v1 = vmul.f32 %v20466_v41, %v20466_v41  ;;  %v6173_v13 = vmul.f32 %v20467_v36, %v20467_v36  ;;  %v6232_v20 = vadd.f32 %v6231_v10, %v6162_v49  ;;  %v6269_v58 = vadd.f32 %v6268_v34, %v6163_v6  ;;  %v20470_v6 = vld [vmem:[#allocation279_spill] sm:$0xff]  ;;  %v20474_v22 = vld [vmem:[#allocation282_spill] sm:$0xff] }
 0x656   : >> { %v6306_v59 = vadd.f32 %v6305_v27, %v6164_v42  ;;  %v6343_v26 = vadd.f32 %v6342_v24, %v6165_v9  ;;  %v6174_v61 = vmul.f32 %v16905_v57, %v16905_v57  ;;  %v6175_v48 = vmul.f32 %v20468_v54, %v20468_v54  ;;  %v20471_v57 = vld [vmem:[#allocation280_spill] sm:$0xff] }
 0x657   : >> { %v6176_v12 = vmul.f32 %v20469_v45, %v20469_v45  ;;  %v6177_v55 = vmul.f32 %v16926_v0, %v16926_v0  ;;  %v6233_v28 = vadd.f32 %v6232_v20, %v6166_v21  ;;  %v6270_v29 = vadd.f32 %v6269_v58, %v6167_v32  ;;  %v20472_v32 = vld [vmem:[#allocation226_spill] sm:$0xff] }
 0x658   : >> { %v6307_v43 = vadd.f32 %v6306_v59, %v6168_v62  ;;  %v6344_v25 = vadd.f32 %v6343_v26, %v6169_v23  ;;  %v6178_v49 = vmul.f32 %v16933_v2, %v16933_v2  ;;  %v6179_v42 = vmul.f32 %v20470_v6, %v20470_v6  ;;  %v20473_v2 = vld [vmem:[#allocation281_spill] sm:$0xff] }
 0x659   : >> { %v6180_v9 = vmul.f32 %v20471_v57, %v20471_v57  ;;  %v6181_v16 = vmul.f32 %v16954_v44, %v16954_v44  ;;  %v6234_v30 = vadd.f32 %v6233_v28, %v6170_v5  ;;  %v6271_v18 = vadd.f32 %v6270_v29, %v6171_v17 }
 0x65a   : >> { %v6308_v19 = vadd.f32 %v6307_v43, %v6172_v1  ;;  %v6345_v0 = vadd.f32 %v6344_v25, %v6173_v13  ;;  %v6182_v21 = vmul.f32 %v16961_v3, %v16961_v3  ;;  %v6183_v46 = vmul.f32 %v20472_v32, %v20472_v32  ;;  %v20475_v3 = vld [vmem:[#allocation283_spill] sm:$0xff]  ;;  %v20478_v32 = vld [vmem:[#allocation285_spill] sm:$0xff] }
 0x65b   : >> { %v6184_v62 = vmul.f32 %v20473_v2, %v20473_v2  ;;  %v6185_v23 = vmul.f32 %v16982_v50, %v16982_v50  ;;  %v6235_v10 = vadd.f32 %v6234_v30, %v6174_v61  ;;  %v6272_v34 = vadd.f32 %v6271_v18, %v6175_v48  ;;  %v20479_v2 = vld [vmem:[#allocation286_spill] sm:$0xff] }
 0x65c   : >> { %v6309_v27 = vadd.f32 %v6308_v19, %v6176_v12  ;;  %v6346_v44 = vadd.f32 %v6345_v0, %v6177_v55  ;;  %v6186_v24 = vmul.f32 %v16989_v52, %v16989_v52  ;;  %v6187_v5 = vmul.f32 %v20474_v22, %v20474_v22  ;;  %v20476_v52 = vld [vmem:[#allocation284_spill] sm:$0xff] }
 0x65d   : >> { %v6188_v17 = vmul.f32 %v20475_v3, %v20475_v3  ;;  %v6189_v41 = vmul.f32 %v17010_v63, %v17010_v63  ;;  %v6236_v1 = vadd.f32 %v6235_v10, %v6178_v49  ;;  %v6273_v36 = vadd.f32 %v6272_v34, %v6179_v42 }
 0x65e   : >> { %v6310_v13 = vadd.f32 %v6309_v27, %v6180_v9  ;;  %v6347_v50 = vadd.f32 %v6346_v44, %v6181_v16  ;;  %v6190_v20 = vmul.f32 %v17017_v37, %v17017_v37  ;;  %v6191_v58 = vmul.f32 %v17024_v53, %v17024_v53 }
 0x65f   : >> { %v6192_v59 = vmul.f32 %v20476_v52, %v20476_v52  ;;  %v6193_v26 = vmul.f32 %v17038_v39, %v17038_v39  ;;  %v6237_v61 = vadd.f32 %v6236_v1, %v6182_v21  ;;  %v6274_v54 = vadd.f32 %v6273_v36, %v6183_v46 }
 0x660   : >> { %v6311_v48 = vadd.f32 %v6310_v13, %v6184_v62  ;;  %v6348_v63 = vadd.f32 %v6347_v50, %v6185_v23  ;;  %v6194_v45 = vmul.f32 %v17045_v11, %v17045_v11  ;;  %v6195_v12 = vmul.f32 %v17052_v60, %v17052_v60 }
 0x661   : >> { %v6196_v37 = vmul.f32 %v17059_v33, %v17059_v33  ;;  %v6197_v53 = vmul.f32 %v17066_v56, %v17066_v56  ;;  %v6238_v55 = vadd.f32 %v6237_v61, %v6186_v24  ;;  %v6275_v28 = vadd.f32 %v6274_v54, %v6187_v5 }
 0x662   : >> { %v6312_v29 = vadd.f32 %v6311_v48, %v6188_v17  ;;  %v6349_v39 = vadd.f32 %v6348_v63, %v6189_v41  ;;  %v6198_v43 = vmul.f32 %v17073_v51, %v17073_v51  ;;  %v6199_v25 = vmul.f32 %v17080_v47, %v17080_v47 }
 0x663   : >> { %v6200_v11 = vmul.f32 %v17087_v40, %v17087_v40  ;;  %v6201_v60 = vmul.f32 %v17094_v35, %v17094_v35  ;;  %v6239_v33 = vadd.f32 %v6238_v55, %v6190_v20  ;;  %v6276_v49 = vadd.f32 %v6275_v28, %v6191_v58 }
 0x664   : >> { %v6313_v6 = vadd.f32 %v6312_v29, %v6192_v59  ;;  %v6350_v56 = vadd.f32 %v6349_v39, %v6193_v26  ;;  %v6202_v42 = vmul.f32 %v17101_v38, %v17101_v38  ;;  %v6203_v57 = vmul.f32 %v17108_v8, %v17108_v8  ;;  %v20477_v8 = vld [vmem:[#allocation227_spill] sm:$0xff] }
 0x665   : >> { %v6204_v51 = vmul.f32 %v17115_v7, %v17115_v7  ;;  %v6205_v47 = vmul.f32 %v17122_v15, %v17122_v15  ;;  %v6240_v40 = vadd.f32 %v6239_v33, %v6194_v45  ;;  %v6277_v9 = vadd.f32 %v6276_v49, %v6195_v12  ;;  %v20482_v49 = vld [vmem:[#allocation204_spill] sm:$0xff] }
 0x666   : >> { %v6314_v16 = vadd.f32 %v6313_v6, %v6196_v37  ;;  %v6351_v35 = vadd.f32 %v6350_v56, %v6197_v53  ;;  %v6206_v30 = vmul.f32 %v17129_v31, %v17129_v31  ;;  %v6207_v18 = vmul.f32 %v17136_v14, %v17136_v14  ;;  %v20480_v31 = vld [vmem:[#allocation287_spill] sm:$0xff]  ;;  %v20481_v14 = vld [vmem:[#allocation288_spill] sm:$0xff] }
 0x667   : >> { %v6208_v38 = vmul.f32 %v17143_v4, %v17143_v4  ;;  %v6209_v19 = vmul.f32 %v20477_v8, %v20477_v8  ;;  %v6241_v7 = vadd.f32 %v6240_v40, %v6198_v43  ;;  %v6278_v0 = vadd.f32 %v6277_v9, %v6199_v25  ;;  %v20483_v56 = vld [vmem:[#allocation203_spill] sm:$0xff] }
 0x668   : >> { %v6315_v21 = vadd.f32 %v6314_v16, %v6200_v11  ;;  %v6352_v15 = vadd.f32 %v6351_v35, %v6201_v60  ;;  %v6210_v46 = vmul.f32 %v20478_v32, %v20478_v32  ;;  %v6211_v62 = vmul.f32 %v20479_v2, %v20479_v2 }
 0x669   : >> { %v6212_v23 = vmul.f32 %v20480_v31, %v20480_v31  ;;  %v6213_v10 = vmul.f32 %v20481_v14, %v20481_v14  ;;  %v6242_v4 = vadd.f32 %v6241_v7, %v6202_v42  ;;  %v6279_v34 = vadd.f32 %v6278_v0, %v6203_v57  ;;  %v20484_v57 = vld [vmem:[#allocation202_spill] sm:$0xff] }
 0x66a   : >> { %v6316_v27 = vadd.f32 %v6315_v21, %v6204_v51  ;;  %v6353_v44 = vadd.f32 %v6352_v15, %v6205_v47  ;;  %v20485_v47 = vld [vmem:[#allocation201_spill] sm:$0xff]  ;;  %v20490_v7 = vlaneseq (%p5540_p10)  ;;  %v10926_v15 = vmov (%p5540_p10), 1966171168  }
 0x66b   : >> { %v6243_v24 = vadd.f32 %v6242_v4, %v6206_v30  ;;  %v6280_v22 = vadd.f32 %v6279_v34, %v6207_v18  ;;  %v6386_v32 = vunpack.c.l.s4 (%p5540_p10), %v10926_v15 }
 0x66c   : >> { %v6317_v5 = vadd.f32 %v6316_v27, %v6208_v38  ;;  %v6354_v3 = vadd.f32 %v6353_v44, %v6209_v19  ;;  %vm17452_vm9 = vcmp.lt.s32.totalorder (%p5540_p10), %v20490_v7, 512 }
 0x66d   : >> { %v6244_v17 = vadd.f32 %v6243_v24, %v6210_v46  ;;  %v6281_v41 = vadd.f32 %v6280_v22, %v6211_v62  ;;  %v6387_v46 = vunpack.c.0.s8 (%p5540_p10), %v6386_v32  ;;  %v20493_v62 = vld [vmem:[#allocation9_spill] sm:$0xff] (%p5540_p10)  ;;  %v6370_v22 = vld [vmem:[%s18694_s6] sm:$0xf] (%p5540_p10) }
 0x66e   : >> { %v6318_v1 = vadd.f32 %v6317_v5, %v6212_v23  ;;  %v6355_v36 = vadd.f32 %v6354_v3, %v6213_v10 }
 0x66f   : >> { %v6245_v13 = vrot.slane %v6244_v17, 4  ;;  %v6282_v50 = vrot.slane %v6281_v41, 4  ;;  %v6390_v31 = vsub.s32 (%p5540_p10), %v6387_v46, %v20493_v62 }
 0x670   : >> { %v6319_v20 = vrot.slane %v6318_v1, 4  ;;  %v6356_v58 = vrot.slane %v6355_v36, 4 }
 0x671   : >> { %v6246_v52 = vadd.f32 %v6245_v13, %v6244_v17  ;;  %v6283_v59 = vadd.f32 %v6282_v50, %v6281_v41  ;;  %v6414_v17 = vld [vmem:[%s18695_s7] sm:$0xf] (%p5540_p10)  ;;  %v20494_v41 = vld [vmem:[#allocation200_spill] sm:$0xff] (%p5540_p10) }
 0x672   : >> { %v6320_v26 = vadd.f32 %v6319_v20, %v6318_v1  ;;  %v6357_v61 = vadd.f32 %v6356_v58, %v6355_v36 }
 0x673   : >> { %v6247_v54 = vrot.slane %v6246_v52, 2  ;;  %v6284_v48 = vrot.slane %v6283_v59, 2 }
 0x674   : >> { %v6321_v63 = vrot.slane %v6320_v26, 2  ;;  %v6358_v45 = vrot.slane %v6357_v61, 2 }
 0x675   : >> { %v6248_v12 = vadd.f32 %v6247_v54, %v6246_v52  ;;  %v6285_v37 = vadd.f32 %v6284_v48, %v6283_v59 }
 0x676   : >> { %v6322_v53 = vadd.f32 %v6321_v63, %v6320_v26  ;;  %v6359_v55 = vadd.f32 %v6358_v45, %v6357_v61 }
 0x677   : >> { %v6249_v28 = vrot.slane %v6248_v12, 1  ;;  %v6286_v29 = vrot.slane %v6285_v37, 1 }
 0x678   : >> { %v6323_v39 = vrot.slane %v6322_v53, 1  ;;  %v6360_v43 = vrot.slane %v6359_v55, 1  ;;  %5542 = sbr.rel (!%p5540_p10) target bundleno = 1410 (0x582), region = 157 }
 0x679   : >> { %v6250_v25 = vadd.f32 %v6249_v28, %v6248_v12  ;;  %v6287_v11 = vadd.f32 %v6286_v29, %v6285_v37 }
 0x67a   : >> { %v6324_v60 = vadd.f32 %v6323_v39, %v6322_v53  ;;  %v6361_v33 = vadd.f32 %v6360_v43, %v6359_v55 }
 0x67b   : >> { %v6362_v6 = vadd.f32 %v20482_v49, %v6250_v25   ;;  %v6363_v42 = vadd.f32 %v20483_v56, %v6287_v11  }
 0x67c   : >> { %v6364_v51 = vadd.f32 %v20484_v57, %v6324_v60   ;;  %v6365_v40 = vadd.f32 %v20485_v47, %v6361_v33  }
 0x67d   : >> { %v20488_v20 = vmov %v6363_v42  ;;  %v20489_v21 = vmov %v6362_v6  ;;  %v6366_v9 = vmul.f32 (%p5540_p10), 0.0026041667, %v6362_v6  ;;  %v6367_v16 = vmul.f32 (%p5540_p10), 0.0026041667, %v6363_v42 }
 0x67e   : >> { %v20486_v3 = vmov %v6365_v40  ;;  %v20487_v2 = vmov %v6364_v51  ;;  %v6368_v35 = vmul.f32 (%p5540_p10), 0.0026041667, %v6364_v51  ;;  %v6369_v30 = vmul.f32 (%p5540_p10), 0.0026041667, %v6365_v40 }
 0x67f   : > { %v6371_v18 = vadd.f32 1e-05, %v6366_v9  ;;  %v6372_v38 = vadd.f32 1e-05, %v6367_v16  ;;  %v10925_v21 = vmov 0.0  }
 0x680   : > { %v6373_v8 = vadd.f32 1e-05, %v6368_v35  ;;  %v6374_v19 = vadd.f32 1e-05, %v6369_v30  ;;  %6418 = vst.msk [vmem:[#allocation3] sm:$0xf] %vm17452_vm9, %v10925_v21 }
 0x681   : > { %10563 = vrsqrt.f32 %v6371_v18 }
 0x682   : > { %10565 = vrsqrt.f32 %v6372_v38 }
 0x683   : > { %10567 = vrsqrt.f32 %v6373_v8 }
 0x684   : > { %10569 = vrsqrt.f32 %v6374_v19 }
 0x68b   : > { %v10564_v2 = vpop.eup %10563 }
 0x68c   : > { %v10566_v23 = vpop.eup %10565 }
 0x68d   : > { %v10568_v14 = vpop.eup %10567  ;;  %v6383_v10 = vcombine.low %v10564_v2, %v10566_v23 }
 0x68e   : > { %v10570_v4 = vpop.eup %10569 }
 0x68f   : > { %v6384_v34 = vcombine.low %v10568_v14, %v10570_v4  ;;  %v6391_v27 = vrot.slane %v6383_v10, %v6390_v31 }
 0x691   : > { %v6398_v44 = vrot.slane %v6384_v34, %v6390_v31 }
 0x693   : > { %v6399_v24 = vcombine.low %v6391_v27, %v6398_v44 }
 0x695   : > { %v6406_v5 = vrot.slane %v6399_v24, %v6390_v31 }
 0x697   : > { %v6408_v3 = vmul.f32 %v6406_v5, %v6370_v22 }
 0x699   : > { %6413 = vst.msk [vmem:[#allocation4] sm:$0xf] %vm17452_vm9, %v6408_v3  ;;  %v6415_v1 = vmul.f32 %v6408_v3, %v20494_v41 }
 0x69b   : > { %v6416_v36 = vsub.f32 %v6414_v17, %v6415_v1 }
 0x69d   : > { %6417 = vst.msk [vmem:[#allocation5] sm:$0xf] %vm17452_vm9, %v6416_v36 }
 0x69e PF: > { %p9553_p3 = scmp.ne.s32.totalorder %s10863_s14, 2 }
 0x69f   : > { %v10571_v13 = vld [vmem:[%s18691_s3 + $0x4] ss:$16 sps:$4 sm:$0xff] (!%p9553_p3)   ;;  %v10573_v50 = vld [vmem:[%s18691_s3 + $0xc] ss:$16 sps:$4 sm:$0xff] (!%p9553_p3)   ;;  %v10575_v20 = vld [vmem:[%s18691_s3] ss:$16 sps:$4 sm:$0xff] (!%p9553_p3)  }
 0x6a0   : > { %6421 = sbr.rel (%p9553_p3) target bundleno = 2226 (0x8b2), region = 98  ;;  %7835 = vmatprep.subr.bf16.mxu0 (!%p9553_p3), %v10571_v13  ;;  %v10576_v58 = vld [vmem:[%s18691_s3 + $0x8] ss:$16 sps:$4 sm:$0xff] (!%p9553_p3)   ;;  %8221 = vmatprep.subr.bf16.mxu1 (!%p9553_p3), %v10573_v50  ;;  %v10577_v52 = vld [vmem:[%s18691_s3 + $0x24] ss:$16 sps:$4 sm:$0xff] (!%p9553_p3)   ;;  %s9693_s24 = sshll.u32 (!%p9553_p3), %s10859_s13, 10 }
 0x6a1   : > { %7836 = vmatpush1.bf16.msra.mxu0 (!%p9553_p3), %v10575_v20  ;;  %8222 = vmatpush1.bf16.msra.mxu1 (!%p9553_p3), %v10576_v58  ;;  %v10579_v59 = vld [vmem:[%s18691_s3 + $0x2c] ss:$16 sps:$4 sm:$0xff] (!%p9553_p3)   ;;  %v10581_v26 = vld [vmem:[%s18691_s3 + $0x20] ss:$16 sps:$4 sm:$0xff] (!%p9553_p3)   ;;  %v10582_v61 = vld [vmem:[%s18691_s3 + $0x28] ss:$16 sps:$4 sm:$0xff] (!%p9553_p3)  }
 0x6a2   : > { %7837 = vmatprep.subr.bf16.mxu0 (!%p9553_p3), %v10577_v52  ;;  %8223 = vmatprep.subr.bf16.mxu1 (!%p9553_p3), %v10579_v59  ;;  %v10583_v54 = vld [vmem:[%s18691_s3 + $0x44] ss:$16 sps:$4 sm:$0xff] (!%p9553_p3)   ;;  %v10585_v48 = vld [vmem:[%s18691_s3 + $0x4c] ss:$16 sps:$4 sm:$0xff] (!%p9553_p3)   ;;  %v10587_v63 = vld [vmem:[%s18691_s3 + $0x40] ss:$16 sps:$4 sm:$0xff] (!%p9553_p3)  }
 0x6a3   : > { %v10588_v45 = vld [vmem:[%s18691_s3 + $0x48] ss:$16 sps:$4 sm:$0xff] (!%p9553_p3)   ;;  %v10589_v12 = vld [vmem:[%s18691_s3 + $0x64] ss:$16 sps:$4 sm:$0xff] (!%p9553_p3)   ;;  %v10591_v37 = vld [vmem:[%s18691_s3 + $0x6c] ss:$16 sps:$4 sm:$0xff] (!%p9553_p3)  }
 0x6a4   : > { %v10593_v53 = vld [vmem:[%s18691_s3 + $0x60] ss:$16 sps:$4 sm:$0xff] (!%p9553_p3)   ;;  %v10594_v55 = vld [vmem:[%s18691_s3 + $0x68] ss:$16 sps:$4 sm:$0xff] (!%p9553_p3)   ;;  %v10595_v28 = vld [vmem:[%s18691_s3 + $0x84] ss:$16 sps:$4 sm:$0xff] (!%p9553_p3)  }
 0x6a5   : > { %7838 = vmatpush1.bf16.msra.mxu0 (!%p9553_p3), %v10581_v26  ;;  %8224 = vmatpush1.bf16.msra.mxu1 (!%p9553_p3), %v10582_v61  ;;  %v10597_v29 = vld [vmem:[%s18691_s3 + $0x8c] ss:$16 sps:$4 sm:$0xff] (!%p9553_p3)   ;;  %v10599_v39 = vld [vmem:[%s18691_s3 + $0x80] ss:$16 sps:$4 sm:$0xff] (!%p9553_p3)   ;;  %v10600_v43 = vld [vmem:[%s18691_s3 + $0x88] ss:$16 sps:$4 sm:$0xff] (!%p9553_p3)  }
 0x6a6   : > { %7839 = vmatprep.subr.bf16.mxu0 (!%p9553_p3), %v10583_v54  ;;  %8225 = vmatprep.subr.bf16.mxu1 (!%p9553_p3), %v10585_v48  ;;  %v10601_v25 = vld [vmem:[%s18691_s3 + $0xa4] ss:$16 sps:$4 sm:$0xff] (!%p9553_p3)   ;;  %v10603_v11 = vld [vmem:[%s18691_s3 + $0xac] ss:$16 sps:$4 sm:$0xff] (!%p9553_p3)   ;;  %v10605_v60 = vld [vmem:[%s18691_s3 + $0xa0] ss:$16 sps:$4 sm:$0xff] (!%p9553_p3)  }
 0x6a7   : > { %v10606_v33 = vld [vmem:[%s18691_s3 + $0xa8] ss:$16 sps:$4 sm:$0xff]   ;;  %v10607_v49 = vld [vmem:[%s18691_s3 + $0xc4] ss:$16 sps:$4 sm:$0xff]   ;;  %v10609_v6 = vld [vmem:[%s18691_s3 + $0xcc] ss:$16 sps:$4 sm:$0xff]  }
 0x6a8   : > { %v10611_v56 = vld [vmem:[%s18691_s3 + $0xc0] ss:$16 sps:$4 sm:$0xff]   ;;  %v10612_v42 = vld [vmem:[%s18691_s3 + $0xc8] ss:$16 sps:$4 sm:$0xff]   ;;  %v10613_v57 = vld [vmem:[%s18691_s3 + $0xe4] ss:$16 sps:$4 sm:$0xff]  }
 0x6a9   : > { %7840 = vmatpush1.bf16.msra.mxu0 %v10587_v63  ;;  %8226 = vmatpush1.bf16.msra.mxu1 %v10588_v45  ;;  %v10615_v51 = vld [vmem:[%s18691_s3 + $0xec] ss:$16 sps:$4 sm:$0xff]   ;;  %v10617_v47 = vld [vmem:[%s18691_s3 + $0xe0] ss:$16 sps:$4 sm:$0xff]   ;;  %v10618_v40 = vld [vmem:[%s18691_s3 + $0xe8] ss:$16 sps:$4 sm:$0xff]  }
 0x6aa   : > { %7841 = vmatprep.subr.bf16.mxu0 %v10589_v12  ;;  %8227 = vmatprep.subr.bf16.mxu1 %v10591_v37  ;;  %v10619_v9 = vld [vmem:[%s18691_s3 + $0x104] ss:$16 sps:$4 sm:$0xff]   ;;  %v10621_v16 = vld [vmem:[%s18691_s3 + $0x10c] ss:$16 sps:$4 sm:$0xff]   ;;  %v10623_v35 = vld [vmem:[%s18691_s3 + $0x100] ss:$16 sps:$4 sm:$0xff]  }
 0x6ab   : > { %v10624_v30 = vld [vmem:[%s18691_s3 + $0x108] ss:$16 sps:$4 sm:$0xff]   ;;  %v10625_v18 = vld [vmem:[%s18691_s3 + $0x124] ss:$16 sps:$4 sm:$0xff]   ;;  %v10627_v38 = vld [vmem:[%s18691_s3 + $0x12c] ss:$16 sps:$4 sm:$0xff]  }
 0x6ac   : > { %v10629_v8 = vld [vmem:[%s18691_s3 + $0x120] ss:$16 sps:$4 sm:$0xff]   ;;  %v10630_v19 = vld [vmem:[%s18691_s3 + $0x128] ss:$16 sps:$4 sm:$0xff]   ;;  %v10631_v7 = vld [vmem:[%s18691_s3 + $0x144] ss:$16 sps:$4 sm:$0xff]  }
 0x6ad   : > { %7842 = vmatpush1.bf16.msra.mxu0 %v10593_v53  ;;  %8228 = vmatpush1.bf16.msra.mxu1 %v10594_v55  ;;  %v10633_v0 = vld [vmem:[%s18691_s3 + $0x14c] ss:$16 sps:$4 sm:$0xff]   ;;  %v10635_v21 = vld [vmem:[%s18691_s3 + $0x140] ss:$16 sps:$4 sm:$0xff]   ;;  %v10636_v15 = vld [vmem:[%s18691_s3 + $0x148] ss:$16 sps:$4 sm:$0xff]  }
 0x6ae   : > { %7843 = vmatprep.subr.bf16.mxu0 %v10595_v28  ;;  %8229 = vmatprep.subr.bf16.mxu1 %v10597_v29  ;;  %v10637_v32 = vld [vmem:[%s18691_s3 + $0x164] ss:$16 sps:$4 sm:$0xff]   ;;  %v20495_v46 = vld [vmem:[#allocation9_spill] sm:$0xff]  ;;  %v10642_v14 = vld [vmem:[%s18691_s3 + $0x168] ss:$16 sps:$4 sm:$0xff]   ;;  %s17622_s28 = scalar_lea.vmem [#allocation2], %s9693_s24 }
 0x6af   : > { %v17608_v2 = vsub.s32 1, %v20495_v46  ;;  %v10639_v62 = vld [vmem:[%s18691_s3 + $0x16c] ss:$16 sps:$4 sm:$0xff]   ;;  %v17614_v31 = vsub.s32 0, %v20495_v46  ;;  %v10641_v23 = vld [vmem:[%s18691_s3 + $0x160] ss:$16 sps:$4 sm:$0xff]  }
 0x6b0   : > { %v6426_v10 = vld [vmem:[%s17622_s28 + $0x8] sm:$0xff]  ;;  %v6553_v34 = vld [vmem:[#allocation4] sm:$0xf]  ;;  %v10647_v13 = vld [vmem:[%s18691_s3 + $0x180] ss:$16 sps:$4 sm:$0xff]  }
 0x6b1   : > { %7844 = vmatpush1.bf16.msra.mxu0 %v10599_v39  ;;  %8230 = vmatpush1.bf16.msra.mxu1 %v10600_v43  ;;  %v6430_v4 = vld [vmem:[%s17622_s28 + $0x28] sm:$0xff]  ;;  %v10643_v44 = vld [vmem:[%s18691_s3 + $0x184] ss:$16 sps:$4 sm:$0xff]   ;;  %v17630_v24 = vrot.slane %v6553_v34, %v17608_v2  ;;  %v17641_v41 = vrot.slane %v6553_v34, %v17614_v31  ;;  %v10653_v37 = vld [vmem:[%s18691_s3 + $0x1a0] ss:$16 sps:$4 sm:$0xff]  }
 0x6b2   : > { %7845 = vmatprep.subr.bf16.mxu0 %v10601_v25  ;;  %8231 = vmatprep.subr.bf16.mxu1 %v10603_v11  ;;  %v6703_v27 = vld [vmem:[#allocation5] sm:$0xf]  ;;  %v6425_v5 = vld [vmem:[%s17622_s28] sm:$0xff]  ;;  %v10645_v3 = vld [vmem:[%s18691_s3 + $0x18c] ss:$16 sps:$4 sm:$0xff]  }
 0x6b3   : > { %v17633_v22 = vrot.slane %v6703_v27, %v17608_v2  ;;  %v6429_v17 = vld [vmem:[%s17622_s28 + $0x20] sm:$0xff]  ;;  %v6576_v1 = vmul.f32 %v17630_v24, %v6426_v10  ;;  %v6580_v36 = vmul.f32 %v17630_v24, %v6430_v4  ;;  %v10648_v50 = vld [vmem:[%s18691_s3 + $0x188] ss:$16 sps:$4 sm:$0xff]   ;;  %v6575_v20 = vmul.f32 %v17641_v41, %v6425_v5  ;;  %v10651_v63 = vld [vmem:[%s18691_s3 + $0x1ac] ss:$16 sps:$4 sm:$0xff]  }
 0x6b4   : > { %v17653_v58 = vrot.slane %v6703_v27, %v17614_v31  ;;  %v6579_v26 = vmul.f32 %v17641_v41, %v6429_v17  ;;  %v6434_v61 = vld [vmem:[%s17622_s28 + $0x48] sm:$0xff]  ;;  %v10649_v48 = vld [vmem:[%s18691_s3 + $0x1a4] ss:$16 sps:$4 sm:$0xff]  }
 0x6b5   : > { %7846 = vmatpush1.bf16.msra.mxu0 %v10605_v60  ;;  %8232 = vmatpush1.bf16.msra.mxu1 %v10606_v33  ;;  %v6726_v52 = vadd.f32 %v17633_v22, %v6576_v1  ;;  %v6730_v59 = vadd.f32 %v17633_v22, %v6580_v36  ;;  %v6438_v54 = vld [vmem:[%s17622_s28 + $0x68] sm:$0xff]  ;;  %v6584_v55 = vmul.f32 %v17630_v24, %v6434_v61  ;;  %v10655_v29 = vld [vmem:[%s18691_s3 + $0x1c4] ss:$16 sps:$4 sm:$0xff]   ;;  %v10667_v61 = vld [vmem:[%s18691_s3 + $0x200] ss:$16 sps:$4 sm:$0xff]  }
 0x6b6   : > { %7847 = vmatprep.subr.bf16.mxu0 %v10607_v49  ;;  %8233 = vmatprep.subr.bf16.mxu1 %v10609_v6  ;;  %v10654_v53 = vld [vmem:[%s18691_s3 + $0x1a8] ss:$16 sps:$4 sm:$0xff]   ;;  %v6588_v28 = vmul.f32 %v17630_v24, %v6438_v54  ;;  %v6725_v43 = vadd.f32 %v17653_v58, %v6575_v20  ;;  %v6729_v25 = vadd.f32 %v17653_v58, %v6579_v26  ;;  %v6433_v11 = vld [vmem:[%s17622_s28 + $0x40] sm:$0xff]  ;;  %v10657_v60 = vld [vmem:[%s18691_s3 + $0x1cc] ss:$16 sps:$4 sm:$0xff]  }
 0x6b7   : > { %v6854_v45 = vmax.f32 %v6726_v52, 0.0  ;;  %v6858_v12 = vmax.f32 %v6730_v59, 0.0  ;;  %v6437_v33 = vld [vmem:[%s17622_s28 + $0x60] sm:$0xff]  ;;  %v10660_v6 = vld [vmem:[%s18691_s3 + $0x1c8] ss:$16 sps:$4 sm:$0xff]  }
 0x6b8   : > { %v10659_v49 = vld [vmem:[%s18691_s3 + $0x1c0] ss:$16 sps:$4 sm:$0xff]   ;;  %v6458_v34 = vld [vmem:[%s17622_s28 + $0x108] sm:$0xff] }
 0x6b9   : > { %7848 = vmatpush1.bf16.msra.mxu0 %v10611_v56  ;;  %8234 = vmatpush1.bf16.msra.mxu1 %v10612_v42  ;;  %v6982_v39 = vpack.c.bf16 %v6858_v12, %v6854_v45  ;;  %v10661_v56 = vld [vmem:[%s18691_s3 + $0x1e4] ss:$16 sps:$4 sm:$0xff]   ;;  %v10663_v42 = vld [vmem:[%s18691_s3 + $0x1ec] ss:$16 sps:$4 sm:$0xff]   ;;  %v6608_v26 = vmul.f32 %v17630_v24, %v6458_v34  ;;  %v10670_v54 = vld [vmem:[%s18691_s3 + $0x208] ss:$16 sps:$4 sm:$0xff]  }
 0x6ba   : > { %7849 = vmatprep.subr.bf16.mxu0 %v10613_v57  ;;  %8235 = vmatprep.subr.bf16.mxu1 %v10615_v51  ;;  %v6734_v57 = vadd.f32 %v17633_v22, %v6584_v55  ;;  %v6738_v51 = vadd.f32 %v17633_v22, %v6588_v28  ;;  %v6449_v10 = vld [vmem:[%s17622_s28 + $0xc0] sm:$0xff]  ;;  %v6474_v34 = vld [vmem:[%s17622_s28 + $0x188] sm:$0xff] }
 0x6bb   : > { %7867 = vmatprep.mubr.bf16.mxu0 %v6982_v39  ;;  %8253 = vmatprep.mubr.bf16.mxu1 %v6982_v39  ;;  %v6453_v4 = vld [vmem:[%s17622_s28 + $0xe0] sm:$0xff]  ;;  %v6599_v52 = vmul.f32 %v17641_v41, %v6449_v10  ;;  %v6470_v39 = vld [vmem:[%s17622_s28 + $0x168] sm:$0xff] }
 0x6bc   : > { %v6457_v17 = vld [vmem:[%s17622_s28 + $0x100] sm:$0xff]  ;;  %v6603_v59 = vmul.f32 %v17641_v41, %v6453_v4 }
 0x6bd   : > { %7850 = vmatpush1.bf16.msra.mxu0 %v10617_v47  ;;  %8236 = vmatpush1.bf16.msra.mxu1 %v10618_v40  ;;  %v6583_v47 = vmul.f32 %v17641_v41, %v6433_v11  ;;  %v6442_v40 = vld [vmem:[%s17622_s28 + $0x88] sm:$0xff]  ;;  %v6607_v55 = vmul.f32 %v17641_v41, %v6457_v17 }
 0x6be   : > { %7851 = vmatprep.subr.bf16.mxu0 %v10619_v9  ;;  %8237 = vmatprep.subr.bf16.mxu1 %v10621_v16  ;;  %v6853_v9 = vmax.f32 %v6725_v43, 0.0  ;;  %v6857_v16 = vmax.f32 %v6729_v25, 0.0  ;;  %v10675_v43 = vld [vmem:[%s18691_s3 + $0x224] ss:$16 sps:$4 sm:$0xff]  }
 0x6c0   : > { %v6981_v27 = vpack.c.bf16 %v6857_v16, %v6853_v9 }
 0x6c1   : > { %7852 = vmatpush1.bf16.msra.mxu0 %v10623_v35  ;;  %8238 = vmatpush1.bf16.msra.mxu1 %v10624_v30  ;;  %v6587_v35 = vmul.f32 %v17641_v41, %v6437_v33  ;;  %v6446_v30 = vld [vmem:[%s17622_s28 + $0xa8] sm:$0xff] }
 0x6c2   : > { %7853 = vmatprep.subr.bf16.mxu0 %v10625_v18  ;;  %8239 = vmatprep.subr.bf16.mxu1 %v10627_v38  ;;  %v6441_v18 = vld [vmem:[%s17622_s28 + $0x80] sm:$0xff]  ;;  %v6596_v5 = vmul.f32 %v17630_v24, %v6446_v30  ;;  %v10678_v33 = vld [vmem:[%s18691_s3 + $0x22c] ss:$16 sps:$4 sm:$0xff]  }
 0x6c3   : > { %v6445_v38 = vld [vmem:[%s17622_s28 + $0xa0] sm:$0xff]  ;;  %v6591_v1 = vmul.f32 %v17641_v41, %v6441_v18 }
 0x6c4   : > { %v6595_v36 = vmul.f32 %v17641_v41, %v6445_v38  ;;  %v6469_v30 = vld [vmem:[%s17622_s28 + $0x160] sm:$0xff] }
 0x6c5   : > { %7854 = vmatpush1.bf16.msra.mxu0 %v10629_v8  ;;  %8240 = vmatpush1.bf16.msra.mxu1 %v10630_v19  ;;  %v6450_v8 = vld [vmem:[%s17622_s28 + $0xc8] sm:$0xff]  ;;  %v10665_v19 = vld [vmem:[%s18691_s3 + $0x1e0] ss:$16 sps:$4 sm:$0xff]   ;;  %v6741_v25 = vadd.f32 %v17653_v58, %v6591_v1  ;;  %v6619_v4 = vmul.f32 %v17641_v41, %v6469_v30 }
 0x6c6   : > { %7855 = vmatprep.subr.bf16.mxu0 %v10631_v7  ;;  %8241 = vmatprep.subr.bf16.mxu1 %v10633_v0  ;;  %v10666_v7 = vld [vmem:[%s18691_s3 + $0x1e8] ss:$16 sps:$4 sm:$0xff]   ;;  %v6745_v11 = vadd.f32 %v17653_v58, %v6595_v36 }
 0x6c7   : > { %v6454_v0 = vld [vmem:[%s17622_s28 + $0xe8] sm:$0xff] }
 0x6c8   : > { %v6604_v20 = vmul.f32 %v17630_v24, %v6454_v0  ;;  %v10682_v36 = vld [vmem:[%s18691_s3 + $0x248] ss:$16 sps:$4 sm:$0xff]  }
 0x6c9   : > { %7856 = vmatpush1.bf16.msra.mxu0 %v10635_v21  ;;  %8242 = vmatpush1.bf16.msra.mxu1 %v10636_v15  ;;  %v10669_v21 = vld [vmem:[%s18691_s3 + $0x204] ss:$16 sps:$4 sm:$0xff]   ;;  %v10672_v15 = vld [vmem:[%s18691_s3 + $0x20c] ss:$16 sps:$4 sm:$0xff]  }
 0x6ca   : > { %7857 = vmatprep.subr.bf16.mxu0 %v10637_v32  ;;  %8243 = vmatprep.subr.bf16.mxu1 %v10639_v62  ;;  %v6862_v32 = vmax.f32 %v6734_v57, 0.0  ;;  %v6866_v62 = vmax.f32 %v6738_v51, 0.0  ;;  %v6465_v57 = vld [vmem:[%s17622_s28 + $0x140] sm:$0xff] }
 0x6cb   : > { %v10673_v51 = vld [vmem:[%s18691_s3 + $0x220] ss:$16 sps:$4 sm:$0xff]  }
 0x6cd   : > { %7858 = vmatpush1.bf16.msra.mxu0 %v10641_v23  ;;  %8244 = vmatpush1.bf16.msra.mxu1 %v10642_v14  ;;  %v6733_v23 = vadd.f32 %v17653_v58, %v6583_v47  ;;  %v6592_v14 = vmul.f32 %v17630_v24, %v6442_v40  ;;  %v10676_v47 = vld [vmem:[%s18691_s3 + $0x228] ss:$16 sps:$4 sm:$0xff]  }
 0x6ce   : > { %7859 = vmatprep.subr.bf16.mxu0 %v10643_v44  ;;  %8245 = vmatprep.subr.bf16.mxu1 %v10645_v3  ;;  %v6737_v44 = vadd.f32 %v17653_v58, %v6587_v35  ;;  %v6462_v3 = vld [vmem:[%s17622_s28 + $0x128] sm:$0xff]  ;;  %v6620_v35 = vmul.f32 %v17630_v24, %v6470_v39  ;;  %v6477_v39 = vld [vmem:[%s17622_s28 + $0x1a0] sm:$0xff] }
 0x6cf   : > { %v6742_v45 = vadd.f32 %v17633_v22, %v6592_v14  ;;  %v6612_v12 = vmul.f32 %v17630_v24, %v6462_v3 }
 0x6d0   : > { %v6770_v17 = vadd.f32 %v17633_v22, %v6620_v35  ;;  %v6627_v35 = vmul.f32 %v17641_v41, %v6477_v39  ;;  %v6505_v39 = vld [vmem:[%s17622_s28 + $0x280] sm:$0xff] }
 0x6d1   : > { %7860 = vmatpush1.bf16.msra.mxu0 %v10647_v13  ;;  %8246 = vmatpush1.bf16.msra.mxu1 %v10648_v50  ;;  %v6600_v13 = vmul.f32 %v17630_v24, %v6450_v8  ;;  %v6461_v50 = vld [vmem:[%s17622_s28 + $0x120] sm:$0xff]  ;;  %v6870_v40 = vmax.f32 %v6742_v45, 0.0  ;;  %v6762_v9 = vadd.f32 %v17633_v22, %v6612_v12  ;;  %v10690_v45 = vld [vmem:[%s18691_s3 + $0x26c] ss:$16 sps:$4 sm:$0xff]   ;;  %v6769_v12 = vadd.f32 %v17653_v58, %v6619_v4 }
 0x6d2   : > { %7861 = vmatprep.subr.bf16.mxu0 %v10649_v48  ;;  %8247 = vmatprep.subr.bf16.mxu1 %v10651_v63  ;;  %v6986_v48 = vpack.c.bf16 %v6866_v62, %v6862_v32  ;;  %v6861_v63 = vmax.f32 %v6733_v23, 0.0  ;;  %v6611_v28 = vmul.f32 %v17641_v41, %v6461_v50  ;;  %v10681_v8 = vld [vmem:[%s18691_s3 + $0x244] ss:$16 sps:$4 sm:$0xff]   ;;  %v6615_v62 = vmul.f32 %v17641_v41, %v6465_v57 }
 0x6d3   : > { %v6501_v4 = vld [vmem:[%s17622_s28 + $0x260] sm:$0xff] }
 0x6d4   : > { %v6761_v0 = vadd.f32 %v17653_v58, %v6611_v28  ;;  %v6898_v28 = vmax.f32 %v6770_v17, 0.0 }
 0x6d5   : > { %7862 = vmatpush1.bf16.msra.mxu0 %v10653_v37  ;;  %8248 = vmatpush1.bf16.msra.mxu1 %v10654_v53  ;;  %v6865_v37 = vmax.f32 %v6737_v44, 0.0  ;;  %v6746_v53 = vadd.f32 %v17633_v22, %v6596_v5  ;;  %v6890_v5 = vmax.f32 %v6762_v9, 0.0  ;;  %v10696_v9 = vld [vmem:[%s18691_s3 + $0x28c] ss:$16 sps:$4 sm:$0xff]  }
 0x6d6   : > { %7863 = vmatprep.subr.bf16.mxu0 %v10655_v29  ;;  %8249 = vmatprep.subr.bf16.mxu1 %v10657_v60  ;;  %v6466_v29 = vld [vmem:[%s17622_s28 + $0x148] sm:$0xff]  ;;  %v6750_v60 = vadd.f32 %v17633_v22, %v6600_v13  ;;  %v6889_v50 = vmax.f32 %v6761_v0, 0.0 }
 0x6d7   : > { %v6616_v16 = vmul.f32 %v17630_v24, %v6466_v29  ;;  %v6985_v18 = vpack.c.bf16 %v6865_v37, %v6861_v63  ;;  %v6874_v38 = vmax.f32 %v6746_v53, 0.0  ;;  %v10687_v63 = vld [vmem:[%s18691_s3 + $0x264] ss:$16 sps:$4 sm:$0xff]   ;;  %v10685_v37 = vld [vmem:[%s18691_s3 + $0x260] ss:$16 sps:$4 sm:$0xff]  }
 0x6d8   : > { %v6878_v32 = vmax.f32 %v6750_v60, 0.0 }
 0x6d9   : > { %7864 = vmatpush1.bf16.msra.mxu0 %v10659_v49  ;;  %8250 = vmatpush1.bf16.msra.mxu1 %v10660_v6  ;;  %v6754_v49 = vadd.f32 %v17633_v22, %v6604_v20  ;;  %v6749_v6 = vadd.f32 %v17653_v58, %v6599_v52  ;;  %v6766_v3 = vadd.f32 %v17633_v22, %v6616_v16  ;;  %v6478_v20 = vld [vmem:[%s17622_s28 + $0x1a8] sm:$0xff]  ;;  %v6897_v16 = vmax.f32 %v6769_v12, 0.0 }
 0x6da   : > { %7865 = vmatprep.subr.bf16.mxu0 %v10661_v56  ;;  %8251 = vmatprep.subr.bf16.mxu1 %v10663_v42  ;;  %v6753_v56 = vadd.f32 %v17653_v58, %v6603_v59  ;;  %v6758_v42 = vadd.f32 %v17633_v22, %v6608_v26  ;;  %v6990_v1 = vpack.c.bf16 %v6874_v38, %v6870_v40  ;;  %v6473_v26 = vld [vmem:[%s17622_s28 + $0x180] sm:$0xff]  ;;  %v6506_v12 = vld [vmem:[%s17622_s28 + $0x288] sm:$0xff] }
 0x6db   : > { %v6882_v23 = vmax.f32 %v6754_v49, 0.0  ;;  %v6877_v14 = vmax.f32 %v6749_v6, 0.0  ;;  %v17793_v52 = vadd.f32 %v17653_v58, %v6615_v62  ;;  %v6624_v59 = vmul.f32 %v17630_v24, %v6474_v34  ;;  %v6489_v49 = vld [vmem:[%s17622_s28 + $0x200] sm:$0xff]  ;;  %v10694_v34 = vld [vmem:[%s18691_s3 + $0x288] ss:$16 sps:$4 sm:$0xff]  }
 0x6dc   : > { %v6881_v10 = vmax.f32 %v6753_v56, 0.0  ;;  %v6886_v44 = vmax.f32 %v6758_v42, 0.0  ;;  %v6628_v29 = vmul.f32 %v17630_v24, %v6478_v20  ;;  %v6623_v60 = vmul.f32 %v17641_v41, %v6473_v26  ;;  %v6493_v6 = vld [vmem:[%s17622_s28 + $0x220] sm:$0xff]  ;;  %v10688_v56 = vld [vmem:[%s18691_s3 + $0x268] ss:$16 sps:$4 sm:$0xff]  }
 0x6dd   : > { %7866 = vmatpush1.bf16.msra.mxu0 %v10665_v19  ;;  %8252 = vmatpush1.bf16.msra.mxu1 %v10666_v7  ;;  %v10684_v19 = vld [vmem:[%s18691_s3 + $0x24c] ss:$16 sps:$4 sm:$0xff]   ;;  %v6757_v7 = vadd.f32 %v17653_v58, %v6607_v55  ;;  %v6894_v55 = vmax.f32 %v6766_v3, 0.0  ;;  %v6893_v42 = vmax.f32 %v17793_v52, 0.0  ;;  %v17830_v57 = vadd.f32 %v17633_v22, %v6624_v59  ;;  %v10693_v40 = vld [vmem:[%s18691_s3 + $0x284] ss:$16 sps:$4 sm:$0xff]  }
 0x6de   : > { %8028 = vmatprep.subr.bf16.mxu0 %v10669_v21  ;;  %8414 = vmatprep.subr.bf16.mxu1 %v10672_v15  ;;  %v6869_v21 = vmax.f32 %v6741_v25, 0.0  ;;  %v6873_v15 = vmax.f32 %v6745_v11, 0.0  ;;  %v17813_v53 = vpack.c.bf16 %v6890_v5, %v6886_v44  ;;  %v6494_v25 = vld [vmem:[%s17622_s28 + $0x228] sm:$0xff]  ;;  %v10691_v38 = vld [vmem:[%s18691_s3 + $0x280] ss:$16 sps:$4 sm:$0xff]   ;;  %v6651_v20 = vmul.f32 %v17641_v41, %v6501_v4 }
 0x6df   : > { %v6885_v13 = vmax.f32 %v6757_v7, 0.0  ;;  %v17867_v17 = vpack.c.bf16 %v6897_v16, %v6893_v42  ;;  %v10697_v52 = vld [vmem:[%s18691_s3 + $0x2a0] ss:$16 sps:$4 sm:$0xff]   ;;  %v6902_v59 = vmax.f32 %v17830_v57, 0.0  ;;  %v10708_v42 = vld [vmem:[%s18691_s3 + $0x2cc] ss:$16 sps:$4 sm:$0xff]  }
 0x6e0   : > { %7868 = vmatmul.mubr.bf16.vlgmr.msra.gmra.mrb[0].mxu0 %v6981_v27  ;;  %8254 = vmatmul.mubr.bf16.vlgmr.msra.gmra.mrb[0].mxu1 %v6981_v27  ;;  %v10679_v27 = vld [vmem:[%s18691_s3 + $0x240] ss:$16 sps:$4 sm:$0xff]  }
 0x6e1   : > { %8029 = vmatpush1.bf16.msra.mxu0 %v10667_v61  ;;  %8415 = vmatpush1.bf16.msra.mxu1 %v10670_v54  ;;  %v17797_v61 = vpack.c.bf16 %v6873_v15, %v6869_v21  ;;  %v17799_v54 = vpack.c.bf16 %v6882_v23, %v6878_v32  ;;  %v17819_v11 = vpack.c.bf16 %v6889_v50, %v6885_v13  ;;  %v6498_v21 = vld [vmem:[%s17622_s28 + $0x248] sm:$0xff]  ;;  %v10703_v16 = vld [vmem:[%s18691_s3 + $0x2c0] ss:$16 sps:$4 sm:$0xff]  }
 0x6e2   : > { %7877 = vmatprep.mubr.bf16.mxu0 %v6986_v48  ;;  %8263 = vmatprep.mubr.bf16.mxu1 %v6986_v48  ;;  %v17801_v48 = vpack.c.bf16 %v6881_v10, %v6877_v14  ;;  %v6502_v15 = vld [vmem:[%s17622_s28 + $0x268] sm:$0xff]  ;;  %v17856_v32 = vadd.f32 %v17653_v58, %v6623_v60  ;;  %v6648_v14 = vmul.f32 %v17630_v24, %v6498_v21  ;;  %v6497_v10 = vld [vmem:[%s17622_s28 + $0x240] sm:$0xff] }
 0x6e3   : > { %8030 = vmatprep.subr.bf16.mxu0 %v10675_v43  ;;  %8416 = vmatprep.subr.bf16.mxu1 %v10678_v33  ;;  %v6490_v43 = vld [vmem:[%s17622_s28 + $0x208] sm:$0xff]  ;;  %v6652_v5 = vmul.f32 %v17630_v24, %v6502_v15  ;;  %v6647_v3 = vmul.f32 %v17641_v41, %v6497_v10  ;;  %v6513_v10 = vld [vmem:[%s17622_s28 + $0x2c0] sm:$0xff] }
 0x6e4   : > { %v6640_v33 = vmul.f32 %v17630_v24, %v6490_v43  ;;  %v6798_v50 = vadd.f32 %v17633_v22, %v6648_v14  ;;  %v6509_v43 = vld [vmem:[%s17622_s28 + $0x2a0] sm:$0xff]  ;;  %v6518_v21 = vld [vmem:[%s17622_s28 + $0x2e8] sm:$0xff] }
 0x6e5   : > { %8031 = vmatpush1.bf16.msra.mxu0 %v10673_v51  ;;  %8417 = vmatpush1.bf16.msra.mxu1 %v10676_v47  ;;  %v6644_v51 = vmul.f32 %v17630_v24, %v6494_v25  ;;  %v6639_v47 = vmul.f32 %v17641_v41, %v6489_v49  ;;  %v10700_v25 = vld [vmem:[%s18691_s3 + $0x2a8] ss:$16 sps:$4 sm:$0xff]   ;;  %v6655_v49 = vmul.f32 %v17641_v41, %v6505_v39  ;;  %v6517_v4 = vld [vmem:[%s17622_s28 + $0x2e0] sm:$0xff] }
 0x6e6   : > { %8032 = vmatprep.subr.bf16.mxu0 %v10681_v8  ;;  %8418 = vmatprep.subr.bf16.mxu1 %v10684_v19  ;;  %v6790_v30 = vadd.f32 %v17633_v22, %v6640_v33  ;;  %v17846_v8 = vpack.c.bf16 %v6898_v28, %v6894_v55  ;;  %v17849_v19 = vadd.f32 %v17633_v22, %v6628_v29  ;;  %v6526_v39 = vld [vmem:[%s17622_s28 + $0x328] sm:$0xff] }
 0x6e7   : > { %v6794_v7 = vadd.f32 %v17633_v22, %v6644_v51  ;;  %v6789_v0 = vadd.f32 %v17653_v58, %v6639_v47  ;;  %v6801_v28 = vadd.f32 %v17653_v58, %v6651_v20  ;;  %v6656_v29 = vmul.f32 %v17630_v24, %v6506_v12  ;;  %v10709_v12 = vld [vmem:[%s18691_s3 + $0x2e0] ss:$16 sps:$4 sm:$0xff]  }
 0x6e8   : > { %7878 = vmatmul.mubr.bf16.gmra.mrb[4].mxu0 %v6985_v18  ;;  %8264 = vmatmul.mubr.bf16.gmra.mrb[4].mxu1 %v6985_v18  ;;  %v6643_v18 = vmul.f32 %v17641_v41, %v6493_v6  ;;  %v6918_v62 = vmax.f32 %v6790_v30, 0.0  ;;  %v17903_v6 = vadd.f32 %v17653_v58, %v6627_v35  ;;  %v10706_v35 = vld [vmem:[%s18691_s3 + $0x2c8] ss:$16 sps:$4 sm:$0xff]  }
 0x6e9   : > { %7887 = vmatprep.mubr.bf16.mxu0 %v6990_v1  ;;  %8273 = vmatprep.mubr.bf16.mxu1 %v6990_v1  ;;  %v6917_v44 = vmax.f32 %v6789_v0, 0.0  ;;  %v10699_v1 = vld [vmem:[%s18691_s3 + $0x2a4] ss:$16 sps:$4 sm:$0xff]   ;;  %v6929_v51 = vmax.f32 %v6801_v28, 0.0  ;;  %v6806_v47 = vadd.f32 %v17633_v22, %v6656_v29  ;;  %v6482_v30 = vld [vmem:[%s17622_s28 + $0x1c8] sm:$0xff] }
 0x6ea   : > { %8033 = vmatpush1.bf16.msra.mxu0 %v10679_v27  ;;  %8419 = vmatpush1.bf16.msra.mxu1 %v10682_v36  ;;  %v6793_v23 = vadd.f32 %v17653_v58, %v6643_v18  ;;  %v6922_v27 = vmax.f32 %v6794_v7, 0.0  ;;  %v10702_v36 = vld [vmem:[%s18691_s3 + $0x2ac] ss:$16 sps:$4 sm:$0xff]   ;;  %v6805_v7 = vadd.f32 %v17653_v58, %v6655_v49  ;;  %v10712_v49 = vld [vmem:[%s18691_s3 + $0x2e8] ss:$16 sps:$4 sm:$0xff]  }
 0x6eb   : > { %8034 = vmatprep.subr.bf16.mxu0 %v10687_v63  ;;  %8420 = vmatprep.subr.bf16.mxu1 %v10690_v45  ;;  %v6802_v63 = vadd.f32 %v17633_v22, %v6652_v5  ;;  %v6797_v45 = vadd.f32 %v17653_v58, %v6647_v3  ;;  %v6514_v0 = vld [vmem:[%s17622_s28 + $0x2c8] sm:$0xff]  ;;  %v6668_v5 = vmul.f32 %v17630_v24, %v6518_v21 }
 0x6ec   : > { %v6921_v13 = vmax.f32 %v6793_v23, 0.0  ;;  %v17883_v26 = vpack.c.bf16 %v6922_v27, %v6918_v62  ;;  %v6934_v62 = vmax.f32 %v6806_v47, 0.0  ;;  %v6664_v14 = vmul.f32 %v17630_v24, %v6514_v0  ;;  %v6522_v29 = vld [vmem:[%s17622_s28 + $0x308] sm:$0xff]  ;;  %v10715_v0 = vld [vmem:[%s18691_s3 + $0x300] ss:$16 sps:$4 sm:$0xff]  }
 0x6ed   : > { %v6930_v60 = vmax.f32 %v6802_v63, 0.0  ;;  %v6925_v33 = vmax.f32 %v6797_v45, 0.0  ;;  %v6663_v3 = vmul.f32 %v17641_v41, %v6513_v10  ;;  %v6667_v63 = vmul.f32 %v17641_v41, %v6517_v4  ;;  %v6534_v10 = vld [vmem:[%s17622_s28 + $0x368] sm:$0xff] }
 0x6ee   : > { %8035 = vmatpush1.bf16.msra.mxu0 %v10685_v37  ;;  %8421 = vmatpush1.bf16.msra.mxu1 %v10688_v56  ;;  %v6510_v37 = vld [vmem:[%s17622_s28 + $0x2a8] sm:$0xff]  ;;  %v17891_v55 = vpack.c.bf16 %v6921_v13, %v6917_v44  ;;  %v10705_v56 = vld [vmem:[%s18691_s3 + $0x2c4] ss:$16 sps:$4 sm:$0xff]   ;;  %v6933_v44 = vmax.f32 %v6805_v7, 0.0  ;;  %v6901_v45 = vmax.f32 %v17856_v32, 0.0 }
 0x6ef   : > { %8036 = vmatprep.subr.bf16.mxu0 %v10693_v40  ;;  %8422 = vmatprep.subr.bf16.mxu1 %v10696_v9  ;;  %v6659_v40 = vmul.f32 %v17641_v41, %v6509_v43  ;;  %v6906_v9 = vmax.f32 %v17849_v19, 0.0  ;;  %v17927_v15 = vpack.c.bf16 %v6929_v51, %v6925_v33  ;;  %v10711_v13 = vld [vmem:[%s18691_s3 + $0x2e4] ss:$16 sps:$4 sm:$0xff]   ;;  %v6813_v28 = vadd.f32 %v17653_v58, %v6663_v3  ;;  %v10742_v32 = vld [vmem:[%s18691_s3 + $0x388] ss:$16 sps:$4 sm:$0xff]  }
 0x6f0   : > { %7888 = vmatmul.mubr.bf16.gmra.mrb[8].mxu0 %v17797_v61  ;;  %8274 = vmatmul.mubr.bf16.gmra.mrb[8].mxu1 %v17797_v61  ;;  %v6926_v61 = vmax.f32 %v6798_v50, 0.0  ;;  %v10714_v50 = vld [vmem:[%s18691_s3 + $0x2ec] ss:$16 sps:$4 sm:$0xff]   ;;  %v6521_v33 = vld [vmem:[%s17622_s28 + $0x300] sm:$0xff] }
 0x6f1   : > { %7897 = vmatprep.mubr.bf16.mxu0 %v17799_v54  ;;  %8283 = vmatprep.mubr.bf16.mxu1 %v17799_v54  ;;  %v6660_v54 = vmul.f32 %v17630_v24, %v6510_v37  ;;  %v6809_v23 = vadd.f32 %v17653_v58, %v6659_v40  ;;  %v6671_v51 = vmul.f32 %v17641_v41, %v6521_v33  ;;  %v10717_v40 = vld [vmem:[%s18691_s3 + $0x304] ss:$16 sps:$4 sm:$0xff]  }
 0x6f2   : > { %8037 = vmatpush1.bf16.msra.mxu0 %v10691_v38  ;;  %8423 = vmatpush1.bf16.msra.mxu1 %v10694_v34  ;;  %v17921_v18 = vpack.c.bf16 %v6930_v60, %v6926_v61  ;;  %v6486_v34 = vld [vmem:[%s17622_s28 + $0x1e8] sm:$0xff]  ;;  %v6818_v61 = vadd.f32 %v17633_v22, %v6668_v5  ;;  %v6672_v60 = vmul.f32 %v17630_v24, %v6522_v29  ;;  %v6529_v5 = vld [vmem:[%s17622_s28 + $0x340] sm:$0xff] }
 0x6f3   : > { %8038 = vmatprep.subr.bf16.mxu0 %v10699_v1  ;;  %8424 = vmatprep.subr.bf16.mxu1 %v10702_v36  ;;  %v6810_v38 = vadd.f32 %v17633_v22, %v6660_v54  ;;  %v6632_v1 = vmul.f32 %v17630_v24, %v6482_v30  ;;  %v6481_v36 = vld [vmem:[%s17622_s28 + $0x1c0] sm:$0xff]  ;;  %v6937_v20 = vmax.f32 %v6809_v23, 0.0  ;;  %v17972_v47 = vmul.f32 %v17630_v24, %v6486_v34 }
 0x6f4   : > { %v6525_v54 = vld [vmem:[%s17622_s28 + $0x320] sm:$0xff]  ;;  %v6822_v30 = vadd.f32 %v17633_v22, %v6672_v60  ;;  %v17983_v7 = vmul.f32 %v17641_v41, %v6481_v36  ;;  %v6821_v23 = vadd.f32 %v17653_v58, %v6671_v51  ;;  %v10718_v36 = vld [vmem:[%s18691_s3 + $0x308] ss:$16 sps:$4 sm:$0xff]  }
 0x6f5   : > { %v6938_v27 = vmax.f32 %v6810_v38, 0.0  ;;  %v17960_v43 = vpack.c.bf16 %v6937_v20, %v6933_v44  ;;  %v6675_v38 = vmul.f32 %v17641_v41, %v6525_v54  ;;  %v6533_v3 = vld [vmem:[%s17622_s28 + $0x360] sm:$0xff]  ;;  %v6684_v20 = vmul.f32 %v17630_v24, %v6534_v10  ;;  %v6538_v54 = vld [vmem:[%s17622_s28 + $0x388] sm:$0xff] }
 0x6f6   : > { %8039 = vmatpush1.bf16.msra.mxu0 %v10697_v52  ;;  %8425 = vmatpush1.bf16.msra.mxu1 %v10700_v25  ;;  %v6814_v52 = vadd.f32 %v17633_v22, %v6664_v14  ;;  %v6817_v25 = vadd.f32 %v17653_v58, %v6667_v63  ;;  %v6530_v14 = vld [vmem:[%s17622_s28 + $0x348] sm:$0xff]  ;;  %v6950_v34 = vmax.f32 %v6822_v30, 0.0  ;;  %v18006_v63 = vadd.f32 %v17633_v22, %v6632_v1  ;;  %v6537_v51 = vld [vmem:[%s17622_s28 + $0x380] sm:$0xff] }
 0x6f7   : > { %8040 = vmatprep.subr.bf16.mxu0 %v10705_v56  ;;  %8426 = vmatprep.subr.bf16.mxu1 %v10708_v42  ;;  %v17952_v37 = vpack.c.bf16 %v6938_v27, %v6934_v62  ;;  %v6946_v56 = vmax.f32 %v6818_v61, 0.0  ;;  %v6941_v42 = vmax.f32 %v6813_v28, 0.0  ;;  %v6825_v27 = vadd.f32 %v17653_v58, %v6675_v38  ;;  %v10726_v61 = vld [vmem:[%s18691_s3 + $0x32c] ss:$16 sps:$4 sm:$0xff]  }
 0x6f8   : > { %7898 = vmatmul.mubr.bf16.gmra.mrb[12].mxu0 %v17801_v48  ;;  %8284 = vmatmul.mubr.bf16.gmra.mrb[12].mxu1 %v17801_v48  ;;  %v6942_v48 = vmax.f32 %v6814_v52, 0.0  ;;  %v6680_v44 = vmul.f32 %v17630_v24, %v6530_v14  ;;  %v6679_v52 = vmul.f32 %v17641_v41, %v6529_v5  ;;  %v6905_v1 = vmax.f32 %v17903_v6, 0.0  ;;  %v10732_v14 = vld [vmem:[%s18691_s3 + $0x34c] ss:$16 sps:$4 sm:$0xff]  }
 0x6f9   : > { %7907 = vmatprep.mubr.bf16.mxu0 %v17813_v53  ;;  %8293 = vmatprep.mubr.bf16.mxu1 %v17813_v53  ;;  %v6676_v53 = vmul.f32 %v17630_v24, %v6526_v39  ;;  %v6953_v28 = vmax.f32 %v6825_v27, 0.0  ;;  %v6683_v39 = vmul.f32 %v17641_v41, %v6533_v3  ;;  %v6834_v60 = vadd.f32 %v17633_v22, %v6684_v20  ;;  %v6546_v5 = vld [vmem:[%s17622_s28 + $0x3c8] sm:$0xff] }
 0x6fa   : > { %8041 = vmatpush1.bf16.msra.mxu0 %v10703_v16  ;;  %8427 = vmatpush1.bf16.msra.mxu1 %v10706_v35  ;;  %v10720_v16 = vld [vmem:[%s18691_s3 + $0x30c] ss:$16 sps:$4 sm:$0xff]   ;;  %v6945_v35 = vmax.f32 %v6817_v25, 0.0  ;;  %v17988_v21 = vpack.c.bf16 %v6946_v56, %v6942_v48  ;;  %v6830_v29 = vadd.f32 %v17633_v22, %v6680_v44  ;;  %v10721_v48 = vld [vmem:[%s18691_s3 + $0x320] ss:$16 sps:$4 sm:$0xff]   ;;  %v6829_v33 = vadd.f32 %v17653_v58, %v6679_v52 }
 0x6fb   : > { %8042 = vmatprep.subr.bf16.mxu0 %v10711_v13  ;;  %8428 = vmatprep.subr.bf16.mxu1 %v10714_v50  ;;  %v6826_v62 = vadd.f32 %v17633_v22, %v6676_v53  ;;  %v6949_v50 = vmax.f32 %v6821_v23, 0.0  ;;  %v6688_v53 = vmul.f32 %v17630_v24, %v6538_v54  ;;  %v6962_v30 = vmax.f32 %v6834_v60, 0.0  ;;  %v6550_v3 = vld [vmem:[%s17622_s28 + $0x3e8] sm:$0xff]  ;;  %v6549_v52 = vld [vmem:[%s17622_s28 + $0x3e0] sm:$0xff] }
 0x6fc   : > { %v17994_v4 = vpack.c.bf16 %v6945_v35, %v6941_v42  ;;  %v6958_v56 = vmax.f32 %v6830_v29, 0.0  ;;  %v6833_v42 = vadd.f32 %v17653_v58, %v6683_v39  ;;  %v10724_v35 = vld [vmem:[%s18691_s3 + $0x328] ss:$16 sps:$4 sm:$0xff]   ;;  %v6957_v38 = vmax.f32 %v6829_v33, 0.0  ;;  %v10735_v33 = vld [vmem:[%s18691_s3 + $0x364] ss:$16 sps:$4 sm:$0xff]  }
 0x6fd   : > { %v6954_v13 = vmax.f32 %v6826_v62, 0.0  ;;  %v6687_v62 = vmul.f32 %v17641_v41, %v6537_v51  ;;  %v7006_v23 = vpack.c.bf16 %v6906_v9, %v6902_v59  ;;  %v6786_v19 = vadd.f32 %v17633_v22, %v17972_v47  ;;  %v10727_v59 = vld [vmem:[%s18691_s3 + $0x340] ss:$16 sps:$4 sm:$0xff]   ;;  %v10750_v6 = vld [vmem:[%s18691_s3 + $0x3ac] ss:$16 sps:$4 sm:$0xff]  }
 0x6fe   : > { %8043 = vmatpush1.bf16.msra.mxu0 %v10709_v12  ;;  %8429 = vmatpush1.bf16.msra.mxu1 %v10712_v49  ;;  %v10723_v12 = vld [vmem:[%s18691_s3 + $0x324] ss:$16 sps:$4 sm:$0xff]   ;;  %v6542_v49 = vld [vmem:[%s17622_s28 + $0x3a8] sm:$0xff]  ;;  %v6961_v10 = vmax.f32 %v6833_v42, 0.0  ;;  %v18059_v9 = vpack.c.bf16 %v6962_v30, %v6958_v56  ;;  %v6696_v20 = vmul.f32 %v17630_v24, %v6546_v5  ;;  %v6700_v29 = vmul.f32 %v17630_v24, %v6550_v3  ;;  %v10751_v3 = vld [vmem:[%s18691_s3 + $0x3c0] ss:$16 sps:$4 sm:$0xff]  }
 0x6ff   : > { %8044 = vmatprep.subr.bf16.mxu0 %v10717_v40  ;;  %8430 = vmatprep.subr.bf16.mxu1 %v10720_v16  ;;  %v18022_v25 = vpack.c.bf16 %v6954_v13, %v6950_v34  ;;  %v6541_v40 = vld [vmem:[%s17622_s28 + $0x3a0] sm:$0xff]  ;;  %v6838_v34 = vadd.f32 %v17633_v22, %v6688_v53  ;;  %v6837_v44 = vadd.f32 %v17653_v58, %v6687_v62 }
 0x700   : > { %7908 = vmatmul.mubr.bf16.gmra.mrb[16].mxu0 %v17819_v11  ;;  %8294 = vmatmul.mubr.bf16.gmra.mrb[16].mxu1 %v17819_v11  ;;  %v18030_v11 = vpack.c.bf16 %v6953_v28, %v6949_v50  ;;  %v6485_v16 = vld [vmem:[%s17622_s28 + $0x1e0] sm:$0xff]  ;;  %v6691_v57 = vmul.f32 %v17641_v41, %v6541_v40  ;;  %v6699_v56 = vmul.f32 %v17641_v41, %v6549_v52  ;;  %v6914_v40 = vmax.f32 %v6786_v19, 0.0  ;;  %v10760_v52 = vld [vmem:[%s18691_s3 + $0x3e8] ss:$16 sps:$4 sm:$0xff]  }
 0x701   : > { %7917 = vmatprep.mubr.bf16.mxu0 %v17846_v8  ;;  %8303 = vmatprep.mubr.bf16.mxu1 %v17846_v8  ;;  %v6692_v8 = vmul.f32 %v17630_v24, %v6542_v49  ;;  %v6966_v13 = vmax.f32 %v6838_v34, 0.0  ;;  %v6545_v47 = vld [vmem:[%s17622_s28 + $0x3c0] sm:$0xff]  ;;  %v6965_v28 = vmax.f32 %v6837_v44, 0.0  ;;  %v6635_v60 = vmul.f32 %v17641_v41, %v6485_v16  ;;  %v10756_v44 = vld [vmem:[%s18691_s3 + $0x3cc] ss:$16 sps:$4 sm:$0xff]  }
 0x702   : > { %8045 = vmatpush1.bf16.msra.mxu0 %v10715_v0  ;;  %8431 = vmatpush1.bf16.msra.mxu1 %v10718_v36  ;;  %v10729_v0 = vld [vmem:[%s18691_s3 + $0x344] ss:$16 sps:$4 sm:$0xff]   ;;  %v18065_v36 = vpack.c.bf16 %v6961_v10, %v6957_v38  ;;  %v6841_v50 = vadd.f32 %v17653_v58, %v6691_v57  ;;  %v6695_v39 = vmul.f32 %v17641_v41, %v6545_v47  ;;  %v6910_v24 = vmax.f32 %v18006_v63, 0.0  ;;  %v10739_v19 = vld [vmem:[%s18691_s3 + $0x380] ss:$16 sps:$4 sm:$0xff]  }
 0x703   : > { %8046 = vmatprep.subr.bf16.mxu0 %v10723_v12  ;;  %8432 = vmatprep.subr.bf16.mxu1 %v10726_v61  ;;  %v6842_v27 = vadd.f32 %v17633_v22, %v6692_v8  ;;  %v10730_v12 = vld [vmem:[%s18691_s3 + $0x348] ss:$16 sps:$4 sm:$0xff]   ;;  %v6846_v49 = vadd.f32 %v17633_v22, %v6696_v20  ;;  %v6850_v53 = vadd.f32 %v17633_v22, %v6700_v29  ;;  %v10741_v38 = vld [vmem:[%s18691_s3 + $0x384] ss:$16 sps:$4 sm:$0xff]   ;;  %v10744_v8 = vld [vmem:[%s18691_s3 + $0x38c] ss:$16 sps:$4 sm:$0xff]  }
 0x704   : > { %v6969_v54 = vmax.f32 %v6841_v50, 0.0  ;;  %v6845_v51 = vadd.f32 %v17653_v58, %v6695_v39  ;;  %v6849_v41 = vadd.f32 %v17653_v58, %v6699_v56  ;;  %v10736_v22 = vld [vmem:[%s18691_s3 + $0x368] ss:$16 sps:$4 sm:$0xff]   ;;  %v7010_v34 = vpack.c.bf16 %v6914_v40, %v6910_v24  ;;  %v10759_v50 = vld [vmem:[%s18691_s3 + $0x3e4] ss:$16 sps:$4 sm:$0xff]  }
 0x705   : > { %v6970_v61 = vmax.f32 %v6842_v27, 0.0  ;;  %v6978_v63 = vmax.f32 %v6850_v53, 0.0  ;;  %v10753_v27 = vld [vmem:[%s18691_s3 + $0x3c4] ss:$16 sps:$4 sm:$0xff]   ;;  %v10762_v20 = vld [vmem:[%s18691_s3 + $0x3ec] ss:$16 sps:$4 sm:$0xff]  }
 0x706   : > { %8047 = vmatpush1.bf16.msra.mxu0 %v10721_v48  ;;  %8433 = vmatpush1.bf16.msra.mxu1 %v10724_v35  ;;  %v10738_v48 = vld [vmem:[%s18691_s3 + $0x36c] ss:$16 sps:$4 sm:$0xff]   ;;  %v18092_v16 = vpack.c.bf16 %v6969_v54, %v6965_v28  ;;  %v6974_v35 = vmax.f32 %v6846_v49, 0.0  ;;  %v6973_v30 = vmax.f32 %v6845_v51, 0.0  ;;  %v6977_v62 = vmax.f32 %v6849_v41, 0.0 }
 0x707   : > { %8048 = vmatprep.subr.bf16.mxu0 %v10729_v0  ;;  %8434 = vmatprep.subr.bf16.mxu1 %v10732_v14  ;;  %v18088_v42 = vpack.c.bf16 %v6970_v61, %v6966_v13  ;;  %v6781_v0 = vadd.f32 %v17653_v58, %v17983_v7  ;;  %v6785_v14 = vadd.f32 %v17653_v58, %v6635_v60  ;;  %v10747_v58 = vld [vmem:[%s18691_s3 + $0x3a4] ss:$16 sps:$4 sm:$0xff]   ;;  %v10754_v13 = vld [vmem:[%s18691_s3 + $0x3c8] ss:$16 sps:$4 sm:$0xff]   ;;  %v10757_v47 = vld [vmem:[%s18691_s3 + $0x3e0] ss:$16 sps:$4 sm:$0xff]  }
 0x708   : > { %7918 = vmatmul.mubr.bf16.gmra.mrb[20].mxu0 %v17867_v17  ;;  %8304 = vmatmul.mubr.bf16.gmra.mrb[20].mxu1 %v17867_v17  ;;  %v10733_v17 = vld [vmem:[%s18691_s3 + $0x360] ss:$16 sps:$4 sm:$0xff]   ;;  %v18114_v10 = vpack.c.bf16 %v6978_v63, %v6974_v35  ;;  %v18116_v57 = vpack.c.bf16 %v6977_v62, %v6973_v30  ;;  %v6436_v28 = vld [vmem:[%s17622_s28 + $0x58] sm:$0xff] }
 0x709   : > { %7927 = vmatprep.mubr.bf16.mxu0 %v7006_v23  ;;  %8313 = vmatprep.mubr.bf16.mxu1 %v7006_v23  ;;  %v7005_v23 = vpack.c.bf16 %v6905_v1, %v6901_v45  ;;  %v6909_v45 = vmax.f32 %v6781_v0, 0.0  ;;  %v6913_v7 = vmax.f32 %v6785_v14, 0.0  ;;  %v10745_v1 = vld [vmem:[%s18691_s3 + $0x3a0] ss:$16 sps:$4 sm:$0xff]   ;;  %v6440_v29 = vld [vmem:[%s17622_s28 + $0x78] sm:$0xff] }
 0x70a   : > { %8049 = vmatpush1.bf16.msra.mxu0 %v10727_v59  ;;  %8435 = vmatpush1.bf16.msra.mxu1 %v10730_v12  ;;  %v10748_v59 = vld [vmem:[%s18691_s3 + $0x3a8] ss:$16 sps:$4 sm:$0xff]   ;;  %v6431_v61 = vld [vmem:[%s17622_s28 + $0x30] sm:$0xff] }
 0x70b   : > { %8050 = vmatprep.subr.bf16.mxu0 %v10735_v33  ;;  %8436 = vmatprep.subr.bf16.mxu1 %v10738_v48  ;;  %v7009_v5 = vpack.c.bf16 %v6913_v7, %v6909_v45  ;;  %v6439_v35 = vld [vmem:[%s17622_s28 + $0x70] sm:$0xff]  ;;  %v6444_v41 = vld [vmem:[%s17622_s28 + $0x98] sm:$0xff] }
 0x70c   : > { %v6452_v45 = vld [vmem:[%s17622_s28 + $0xd8] sm:$0xff] }
 0x70d   : > { %v6456_v7 = vld [vmem:[%s17622_s28 + $0xf8] sm:$0xff] }
 0x70e   : > { %8051 = vmatpush1.bf16.msra.mxu0 %v10733_v17  ;;  %8437 = vmatpush1.bf16.msra.mxu1 %v10736_v22  ;;  %v6448_v17 = vld [vmem:[%s17622_s28 + $0xb8] sm:$0xff] }
 0x70f   : > { %8052 = vmatprep.subr.bf16.mxu0 %v10741_v38  ;;  %8438 = vmatprep.subr.bf16.mxu1 %v10744_v8 }
 0x710   : > { %7928 = vmatmul.mubr.bf16.gmra.mrb[24].mxu0 %v7005_v23  ;;  %8314 = vmatmul.mubr.bf16.gmra.mrb[24].mxu1 %v7005_v23 }
 0x711   : > { %7937 = vmatprep.mubr.bf16.mxu0 %v7010_v34  ;;  %8323 = vmatprep.mubr.bf16.mxu1 %v7010_v34 }
 0x712   : > { %8053 = vmatpush1.bf16.msra.mxu0 %v10739_v19  ;;  %8439 = vmatpush1.bf16.msra.mxu1 %v10742_v32 }
 0x713   : > { %8054 = vmatprep.subr.bf16.mxu0 %v10747_v58  ;;  %8440 = vmatprep.subr.bf16.mxu1 %v10750_v6  ;;  %v6443_v58 = vld [vmem:[%s17622_s28 + $0x90] sm:$0xff] }
 0x714   : > { %v6447_v6 = vld [vmem:[%s17622_s28 + $0xb0] sm:$0xff] }
 0x716   : > { %8055 = vmatpush1.bf16.msra.mxu0 %v10745_v1  ;;  %8441 = vmatpush1.bf16.msra.mxu1 %v10748_v59 }
 0x717   : > { %8056 = vmatprep.subr.bf16.mxu0 %v10753_v27  ;;  %8442 = vmatprep.subr.bf16.mxu1 %v10756_v44 }
 0x718   : > { %7938 = vmatmul.mubr.bf16.gmra.mrb[28].mxu0 %v7009_v5  ;;  %8324 = vmatmul.mubr.bf16.gmra.mrb[28].mxu1 %v7009_v5 }
 0x719   : > { %7947 = vmatprep.mubr.bf16.mxu0 %v17883_v26  ;;  %8333 = vmatprep.mubr.bf16.mxu1 %v17883_v26  ;;  %v18183_v26 = vsub.s32 3, %v20495_v46 }
 0x71a   : > { %8057 = vmatpush1.bf16.msra.mxu0 %v10751_v3  ;;  %8443 = vmatpush1.bf16.msra.mxu1 %v10754_v13 }
 0x71b   : > { %8058 = vmatprep.subr.bf16.mxu0 %v10759_v50  ;;  %8444 = vmatprep.subr.bf16.mxu1 %v10762_v20 }
 0x71e   : > { %8059 = vmatpush1.bf16.msra.mxu0 %v10757_v47  ;;  %8445 = vmatpush1.bf16.msra.mxu1 %v10760_v52 }
 0x720   : > { %7948 = vmatmul.mubr.bf16.gmra.mrb[32].mxu0 %v17891_v55  ;;  %8334 = vmatmul.mubr.bf16.gmra.mrb[32].mxu1 %v17891_v55  ;;  %v10763_v55 = vld [vmem:[#allocation4] sm:$0xf] }
 0x721   : > { %7957 = vmatprep.mubr.bf16.mxu0 %v17921_v18  ;;  %8343 = vmatprep.mubr.bf16.mxu1 %v17921_v18  ;;  %v18186_v18 = vrot.slane %v10763_v55, %v18183_v26 }
 0x723   : > { %v6586_v49 = vmul.f32 %v18186_v18, %v6436_v28  ;;  %v6590_v56 = vmul.f32 %v18186_v18, %v6440_v29  ;;  %v6594_v23 = vmul.f32 %v18186_v18, %v6444_v41  ;;  %v6598_v0 = vmul.f32 %v18186_v18, %v6448_v17 }
 0x724   : > { %v6602_v13 = vmul.f32 %v18186_v18, %v6452_v45  ;;  %v6606_v50 = vmul.f32 %v18186_v18, %v6456_v7 }
 0x728   : > { %7958 = vmatmul.mubr.bf16.gmra.mrb[36].mxu0 %v17927_v15  ;;  %8344 = vmatmul.mubr.bf16.gmra.mrb[36].mxu1 %v17927_v15  ;;  %v6428_v15 = vld [vmem:[%s17622_s28 + $0x18] sm:$0xff] }
 0x729   : > { %7967 = vmatprep.mubr.bf16.mxu0 %v17952_v37  ;;  %8353 = vmatprep.mubr.bf16.mxu1 %v17952_v37  ;;  %v6432_v37 = vld [vmem:[%s17622_s28 + $0x38] sm:$0xff] }
 0x730   : > { %7968 = vmatmul.mubr.bf16.gmra.mrb[40].mxu0 %v17960_v43  ;;  %8354 = vmatmul.mubr.bf16.gmra.mrb[40].mxu1 %v17960_v43  ;;  %v18191_v43 = vsub.s32 2, %v20495_v46 }
 0x731   : > { %7977 = vmatprep.mubr.bf16.mxu0 %v17988_v21  ;;  %8363 = vmatprep.mubr.bf16.mxu1 %v17988_v21  ;;  %v6578_v21 = vmul.f32 %v18186_v18, %v6428_v15 }
 0x738   : > { %7978 = vmatmul.mubr.bf16.gmra.mrb[44].mxu0 %v17994_v4  ;;  %8364 = vmatmul.mubr.bf16.gmra.mrb[44].mxu1 %v17994_v4  ;;  %v6582_v4 = vmul.f32 %v18186_v18, %v6432_v37 }
 0x739   : > { %7987 = vmatprep.mubr.bf16.mxu0 %v18022_v25  ;;  %8373 = vmatprep.mubr.bf16.mxu1 %v18022_v25  ;;  %v10764_v25 = vld [vmem:[#allocation5] sm:$0xf] }
 0x73a   : > { %v18212_v39 = vrot.slane %v10764_v25, %v18191_v43 }
 0x740   : > { %7988 = vmatmul.mubr.bf16.gmra.mrb[48].mxu0 %v18030_v11  ;;  %8374 = vmatmul.mubr.bf16.gmra.mrb[48].mxu1 %v18030_v11  ;;  %v18200_v11 = vrot.slane %v10764_v25, %v18183_v26  ;;  %v6460_v25 = vld [vmem:[%s17622_s28 + $0x118] sm:$0xff] }
 0x741   : > { %7997 = vmatprep.mubr.bf16.mxu0 %v18059_v9  ;;  %8383 = vmatprep.mubr.bf16.mxu1 %v18059_v9  ;;  %v18203_v9 = vrot.slane %v10763_v55, %v18191_v43 }
 0x742   : > { %v6728_v46 = vadd.f32 %v18200_v11, %v6578_v21  ;;  %v6732_v12 = vadd.f32 %v18200_v11, %v6582_v4  ;;  %v6736_v51 = vadd.f32 %v18200_v11, %v6586_v49  ;;  %v6740_v40 = vadd.f32 %v18200_v11, %v6590_v56  ;;  %v6451_v21 = vld [vmem:[%s17622_s28 + $0xd0] sm:$0xff] }
 0x743   : > { %v6581_v33 = vmul.f32 %v18203_v9, %v6431_v61  ;;  %v6589_v38 = vmul.f32 %v18203_v9, %v6439_v35  ;;  %v6744_v19 = vadd.f32 %v18200_v11, %v6594_v23  ;;  %v6748_v32 = vadd.f32 %v18200_v11, %v6598_v0  ;;  %v6455_v4 = vld [vmem:[%s17622_s28 + $0xf0] sm:$0xff]  ;;  %v6472_v35 = vld [vmem:[%s17622_s28 + $0x178] sm:$0xff] }
 0x744   : > { %v6856_v48 = vmax.f32 %v6728_v46, 0.0  ;;  %v6860_v54 = vmax.f32 %v6732_v12, 0.0  ;;  %v6864_v8 = vmax.f32 %v6736_v51, 0.0  ;;  %v6868_v62 = vmax.f32 %v6740_v40, 0.0  ;;  %v6464_v46 = vld [vmem:[%s17622_s28 + $0x138] sm:$0xff]  ;;  %v6459_v51 = vld [vmem:[%s17622_s28 + $0x110] sm:$0xff] }
 0x745   : > { %v6739_v34 = vadd.f32 %v18212_v39, %v6589_v38  ;;  %v6593_v27 = vmul.f32 %v18203_v9, %v6443_v58  ;;  %v6597_v44 = vmul.f32 %v18203_v9, %v6447_v6  ;;  %v6872_v5 = vmax.f32 %v6744_v19, 0.0  ;;  %v6463_v40 = vld [vmem:[%s17622_s28 + $0x130] sm:$0xff]  ;;  %v6476_v58 = vld [vmem:[%s17622_s28 + $0x198] sm:$0xff] }
 0x746   : > { %v6984_v53 = vpack.c.bf16 %v6860_v54, %v6856_v48  ;;  %v6876_v3 = vmax.f32 %v6748_v32, 0.0  ;;  %v6752_v15 = vadd.f32 %v18200_v11, %v6602_v13  ;;  %v6756_v37 = vadd.f32 %v18200_v11, %v6606_v50  ;;  %v6467_v19 = vld [vmem:[%s17622_s28 + $0x150] sm:$0xff]  ;;  %v6480_v6 = vld [vmem:[%s17622_s28 + $0x1b8] sm:$0xff] }
 0x747   : > { %v6867_v59 = vmax.f32 %v6739_v34, 0.0  ;;  %v6743_v47 = vadd.f32 %v18212_v39, %v6593_v27  ;;  %v6747_v52 = vadd.f32 %v18212_v39, %v6597_v44  ;;  %v6601_v61 = vmul.f32 %v18203_v9, %v6451_v21  ;;  %v6471_v32 = vld [vmem:[%s17622_s28 + $0x170] sm:$0xff]  ;;  %v6484_v21 = vld [vmem:[%s17622_s28 + $0x1d8] sm:$0xff] }
 0x748   : > { %7998 = vmatmul.mubr.bf16.gmra.mrb[52].mxu0 %v18065_v36  ;;  %8384 = vmatmul.mubr.bf16.gmra.mrb[52].mxu1 %v18065_v36  ;;  %v6427_v36 = vld [vmem:[%s17622_s28 + $0x10] sm:$0xff]  ;;  %v6992_v55 = vpack.c.bf16 %v6876_v3, %v6872_v5  ;;  %v6605_v28 = vmul.f32 %v18203_v9, %v6455_v4  ;;  %v6880_v29 = vmax.f32 %v6752_v15, 0.0  ;;  %v6614_v48 = vmul.f32 %v18186_v18, %v6464_v46  ;;  %v6488_v4 = vld [vmem:[%s17622_s28 + $0x1f8] sm:$0xff] }
 0x749   : > { %8007 = vmatprep.mubr.bf16.mxu0 %v18088_v42  ;;  %8393 = vmatprep.mubr.bf16.mxu1 %v18088_v42  ;;  %v6577_v60 = vmul.f32 %v18203_v9, %v6427_v36  ;;  %v6731_v42 = vadd.f32 %v18212_v39, %v6581_v33  ;;  %v6871_v12 = vmax.f32 %v6743_v47, 0.0  ;;  %v6875_v36 = vmax.f32 %v6747_v52, 0.0  ;;  %v6475_v15 = vld [vmem:[%s17622_s28 + $0x190] sm:$0xff] }
 0x74a   : > { %v6610_v33 = vmul.f32 %v18186_v18, %v6460_v25  ;;  %v6751_v49 = vadd.f32 %v18212_v39, %v6601_v61  ;;  %v6755_v56 = vadd.f32 %v18212_v39, %v6605_v28  ;;  %v6626_v5 = vmul.f32 %v18186_v18, %v6476_v58 }
 0x74b   : > { %v6727_v24 = vadd.f32 %v18212_v39, %v6577_v60  ;;  %v6859_v63 = vmax.f32 %v6731_v42, 0.0  ;;  %v6884_v60 = vmax.f32 %v6756_v37, 0.0  ;;  %v6991_v54 = vpack.c.bf16 %v6875_v36, %v6871_v12  ;;  %v6479_v37 = vld [vmem:[%s17622_s28 + $0x1b0] sm:$0xff] }
 0x74c   : > { %v6760_v42 = vadd.f32 %v18200_v11, %v6610_v33  ;;  %v6879_v41 = vmax.f32 %v6751_v49, 0.0  ;;  %v6883_v17 = vmax.f32 %v6755_v56, 0.0  ;;  %v6630_v3 = vmul.f32 %v18186_v18, %v6480_v6 }
 0x74d   : > { %v6855_v22 = vmax.f32 %v6727_v24, 0.0  ;;  %v6996_v24 = vpack.c.bf16 %v6884_v60, %v6880_v29  ;;  %v6776_v52 = vadd.f32 %v18200_v11, %v6626_v5  ;;  %v6625_v12 = vmul.f32 %v18203_v9, %v6475_v15  ;;  %v6508_v15 = vld [vmem:[%s17622_s28 + $0x298] sm:$0xff] }
 0x74e   : > { %v6995_v23 = vpack.c.bf16 %v6883_v17, %v6879_v41  ;;  %v6629_v36 = vmul.f32 %v18203_v9, %v6479_v37  ;;  %v6634_v29 = vmul.f32 %v18186_v18, %v6484_v21  ;;  %v6638_v60 = vmul.f32 %v18186_v18, %v6488_v4  ;;  %v6512_v37 = vld [vmem:[%s17622_s28 + $0x2b8] sm:$0xff] }
 0x74f   : > { %v6983_v14 = vpack.c.bf16 %v6859_v63, %v6855_v22  ;;  %v6609_v22 = vmul.f32 %v18203_v9, %v6459_v51  ;;  %v6613_v63 = vmul.f32 %v18203_v9, %v6463_v40  ;;  %v6904_v61 = vmax.f32 %v6776_v52, 0.0  ;;  %v6492_v51 = vld [vmem:[%s17622_s28 + $0x218] sm:$0xff]  ;;  %v6499_v52 = vld [vmem:[%s17622_s28 + $0x250] sm:$0xff] }
 0x750   : > { %8008 = vmatmul.mubr.bf16.gmra.mrb[56].mxu0 %v18092_v16  ;;  %8394 = vmatmul.mubr.bf16.gmra.mrb[56].mxu1 %v18092_v16  ;;  %v6435_v16 = vld [vmem:[%s17622_s28 + $0x50] sm:$0xff]  ;;  %v6784_v56 = vadd.f32 %v18200_v11, %v6634_v29  ;;  %v6496_v40 = vld [vmem:[%s17622_s28 + $0x238] sm:$0xff] }
 0x751   : > { %8017 = vmatprep.mubr.bf16.mxu0 %v18114_v10  ;;  %8403 = vmatprep.mubr.bf16.mxu1 %v18114_v10  ;;  %v6585_v30 = vmul.f32 %v18203_v9, %v6435_v16  ;;  %v6468_v16 = vld [vmem:[%s17622_s28 + $0x158] sm:$0xff]  ;;  %v6759_v0 = vadd.f32 %v18212_v39, %v6609_v22 }
 0x752   : > { %v6912_v22 = vmax.f32 %v6784_v56, 0.0  ;;  %v6507_v56 = vld [vmem:[%s17622_s28 + $0x290] sm:$0xff] }
 0x753   : > { %v6735_v10 = vadd.f32 %v18212_v39, %v6585_v30  ;;  %v6888_v30 = vmax.f32 %v6760_v42, 0.0  ;;  %v6887_v45 = vmax.f32 %v6759_v0, 0.0  ;;  %v6483_v42 = vld [vmem:[%s17622_s28 + $0x1d0] sm:$0xff] }
 0x754   : > { %v6633_v41 = vmul.f32 %v18203_v9, %v6483_v42  ;;  %v6516_v42 = vld [vmem:[%s17622_s28 + $0x2d8] sm:$0xff] }
 0x755   : > { %v6863_v1 = vmax.f32 %v6735_v10, 0.0 }
 0x757   : > { %v6987_v20 = vpack.c.bf16 %v6867_v59, %v6863_v1  ;;  %v6617_v1 = vmul.f32 %v18203_v9, %v6467_v19  ;;  %v6621_v59 = vmul.f32 %v18203_v9, %v6471_v32  ;;  %v6500_v19 = vld [vmem:[%s17622_s28 + $0x258] sm:$0xff] }
 0x758   : > { %8018 = vmatmul.mubr.bf16.gmra.mrb[60].mxu0 %v18116_v57  ;;  %8404 = vmatmul.mubr.bf16.gmra.mrb[60].mxu1 %v18116_v57  ;;  %v6988_v57 = vpack.c.bf16 %v6868_v62, %v6864_v8  ;;  %v6618_v8 = vmul.f32 %v18186_v18, %v6468_v16  ;;  %v6622_v62 = vmul.f32 %v18186_v18, %v6472_v35  ;;  %v6504_v32 = vld [vmem:[%s17622_s28 + $0x278] sm:$0xff] }
 0x759   : > { %8060 = vmatprep.mubr.bf16.mxu0 %v6984_v53  ;;  %8446 = vmatprep.mubr.bf16.mxu1 %v6984_v53  ;;  %v6764_v53 = vadd.f32 %v18200_v11, %v6614_v48  ;;  %v6767_v50 = vadd.f32 %v18212_v39, %v6617_v1  ;;  %v6775_v48 = vadd.f32 %v18212_v39, %v6625_v12 }
 0x75a   : > { %v6768_v34 = vadd.f32 %v18200_v11, %v6618_v8 }
 0x75b   : > { %v6892_v38 = vmax.f32 %v6764_v53, 0.0  ;;  %v6895_v25 = vmax.f32 %v6767_v50, 0.0  ;;  %v6487_v53 = vld [vmem:[%s17622_s28 + $0x1f0] sm:$0xff]  ;;  %v6903_v16 = vmax.f32 %v6775_v48, 0.0 }
 0x75c   : > { %v6896_v27 = vmax.f32 %v6768_v34, 0.0  ;;  %v6637_v17 = vmul.f32 %v18203_v9, %v6487_v53  ;;  %v6491_v34 = vld [vmem:[%s17622_s28 + $0x210] sm:$0xff]  ;;  %v6520_v53 = vld [vmem:[%s17622_s28 + $0x2f8] sm:$0xff] }
 0x75d   : > { %v7000_v10 = vpack.c.bf16 %v6892_v38, %v6888_v30  ;;  %v6642_v30 = vmul.f32 %v18186_v18, %v6492_v51  ;;  %v6646_v38 = vmul.f32 %v18186_v18, %v6496_v40 }
 0x760   : > { %8061 = vmatmul.mubr.bf16.vlgmr.msra.gmra.mrb[0].mxu0 %v6983_v14  ;;  %8447 = vmatmul.mubr.bf16.vlgmr.msra.gmra.mrb[0].mxu1 %v6983_v14  ;;  %v6763_v14 = vadd.f32 %v18212_v39, %v6613_v63 }
 0x761   : > { %8070 = vmatprep.mubr.bf16.mxu0 %v6988_v57  ;;  %8456 = vmatprep.mubr.bf16.mxu1 %v6988_v57  ;;  %v6772_v57 = vadd.f32 %v18200_v11, %v6622_v62  ;;  %v6783_v62 = vadd.f32 %v18212_v39, %v6633_v41 }
 0x762   : > { %v6891_v7 = vmax.f32 %v6763_v14, 0.0  ;;  %v6792_v14 = vadd.f32 %v18200_v11, %v6642_v30 }
 0x763   : > { %v6900_v44 = vmax.f32 %v6772_v57, 0.0  ;;  %v6495_v57 = vld [vmem:[%s17622_s28 + $0x230] sm:$0xff]  ;;  %v6911_v58 = vmax.f32 %v6783_v62, 0.0 }
 0x764   : > { %v6999_v13 = vpack.c.bf16 %v6891_v7, %v6887_v45  ;;  %v6641_v45 = vmul.f32 %v18203_v9, %v6491_v34  ;;  %v6645_v7 = vmul.f32 %v18203_v9, %v6495_v57  ;;  %v6920_v1 = vmax.f32 %v6792_v14, 0.0  ;;  %v6515_v14 = vld [vmem:[%s17622_s28 + $0x2d0] sm:$0xff]  ;;  %v6524_v34 = vld [vmem:[%s17622_s28 + $0x318] sm:$0xff] }
 0x765   : > { %v7004_v47 = vpack.c.bf16 %v6900_v44, %v6896_v27  ;;  %v6650_v27 = vmul.f32 %v18186_v18, %v6500_v19  ;;  %v6654_v44 = vmul.f32 %v18186_v18, %v6504_v32  ;;  %v6528_v57 = vld [vmem:[%s17622_s28 + $0x338] sm:$0xff] }
 0x768   : > { %8071 = vmatmul.mubr.bf16.gmra.mrb[4].mxu0 %v6987_v20  ;;  %8457 = vmatmul.mubr.bf16.gmra.mrb[4].mxu1 %v6987_v20  ;;  %v6771_v20 = vadd.f32 %v18212_v39, %v6621_v59 }
 0x769   : > { %8080 = vmatprep.mubr.bf16.mxu0 %v6992_v55  ;;  %8466 = vmatprep.mubr.bf16.mxu1 %v6992_v55  ;;  %v6780_v55 = vadd.f32 %v18200_v11, %v6630_v3  ;;  %v6791_v3 = vadd.f32 %v18212_v39, %v6641_v45 }
 0x76a   : > { %v6899_v46 = vmax.f32 %v6771_v20, 0.0  ;;  %v6800_v20 = vadd.f32 %v18200_v11, %v6650_v27 }
 0x76b   : > { %v6908_v28 = vmax.f32 %v6780_v55, 0.0  ;;  %v6503_v55 = vld [vmem:[%s17622_s28 + $0x270] sm:$0xff]  ;;  %v6919_v21 = vmax.f32 %v6791_v3, 0.0 }
 0x76c   : > { %v7003_v33 = vpack.c.bf16 %v6899_v46, %v6895_v25  ;;  %v6649_v25 = vmul.f32 %v18203_v9, %v6499_v52  ;;  %v6653_v46 = vmul.f32 %v18203_v9, %v6503_v55  ;;  %v6928_v12 = vmax.f32 %v6800_v20, 0.0  ;;  %v6523_v20 = vld [vmem:[%s17622_s28 + $0x310] sm:$0xff]  ;;  %v6532_v52 = vld [vmem:[%s17622_s28 + $0x358] sm:$0xff] }
 0x76d   : > { %v7008_v49 = vpack.c.bf16 %v6908_v28, %v6904_v61  ;;  %v6658_v61 = vmul.f32 %v18186_v18, %v6508_v15  ;;  %v6662_v28 = vmul.f32 %v18186_v18, %v6512_v37  ;;  %v6536_v55 = vld [vmem:[%s17622_s28 + $0x378] sm:$0xff] }
 0x770   : > { %8081 = vmatmul.mubr.bf16.gmra.mrb[8].mxu0 %v6991_v54  ;;  %8467 = vmatmul.mubr.bf16.gmra.mrb[8].mxu1 %v6991_v54  ;;  %v6779_v54 = vadd.f32 %v18212_v39, %v6629_v36 }
 0x771   : > { %8090 = vmatprep.mubr.bf16.mxu0 %v6996_v24  ;;  %8476 = vmatprep.mubr.bf16.mxu1 %v6996_v24  ;;  %v6788_v24 = vadd.f32 %v18200_v11, %v6638_v60  ;;  %v6799_v60 = vadd.f32 %v18212_v39, %v6649_v25 }
 0x772   : > { %v6907_v35 = vmax.f32 %v6779_v54, 0.0  ;;  %v6808_v54 = vadd.f32 %v18200_v11, %v6658_v61 }
 0x773   : > { %v6916_v63 = vmax.f32 %v6788_v24, 0.0  ;;  %v6511_v24 = vld [vmem:[%s17622_s28 + $0x2b0] sm:$0xff]  ;;  %v6927_v51 = vmax.f32 %v6799_v60, 0.0 }
 0x774   : > { %v7007_v8 = vpack.c.bf16 %v6907_v35, %v6903_v16  ;;  %v6657_v16 = vmul.f32 %v18203_v9, %v6507_v56  ;;  %v6661_v35 = vmul.f32 %v18203_v9, %v6511_v24  ;;  %v6936_v41 = vmax.f32 %v6808_v54, 0.0  ;;  %v6531_v54 = vld [vmem:[%s17622_s28 + $0x350] sm:$0xff]  ;;  %v6540_v56 = vld [vmem:[%s17622_s28 + $0x398] sm:$0xff] }
 0x775   : > { %v7012_v0 = vpack.c.bf16 %v6916_v63, %v6912_v22  ;;  %v6666_v22 = vmul.f32 %v18186_v18, %v6516_v42  ;;  %v6670_v63 = vmul.f32 %v18186_v18, %v6520_v53  ;;  %v6544_v24 = vld [vmem:[%s17622_s28 + $0x3b8] sm:$0xff] }
 0x778   : > { %8091 = vmatmul.mubr.bf16.gmra.mrb[12].mxu0 %v6995_v23  ;;  %8477 = vmatmul.mubr.bf16.gmra.mrb[12].mxu1 %v6995_v23  ;;  %v6787_v23 = vadd.f32 %v18212_v39, %v6637_v17 }
 0x779   : > { %8100 = vmatprep.mubr.bf16.mxu0 %v7000_v10  ;;  %8486 = vmatprep.mubr.bf16.mxu1 %v7000_v10  ;;  %v6796_v10 = vadd.f32 %v18200_v11, %v6646_v38  ;;  %v6807_v38 = vadd.f32 %v18212_v39, %v6657_v16 }
 0x77a   : > { %v6915_v6 = vmax.f32 %v6787_v23, 0.0  ;;  %v6816_v23 = vadd.f32 %v18200_v11, %v6666_v22 }
 0x77b   : > { %v6924_v59 = vmax.f32 %v6796_v10, 0.0  ;;  %v6519_v10 = vld [vmem:[%s17622_s28 + $0x2f0] sm:$0xff]  ;;  %v6935_v19 = vmax.f32 %v6807_v38, 0.0 }
 0x77c   : > { %v7011_v5 = vpack.c.bf16 %v6915_v6, %v6911_v58  ;;  %v6665_v58 = vmul.f32 %v18203_v9, %v6515_v14  ;;  %v6669_v6 = vmul.f32 %v18203_v9, %v6519_v10  ;;  %v6944_v45 = vmax.f32 %v6816_v23, 0.0  ;;  %v6539_v23 = vld [vmem:[%s17622_s28 + $0x390] sm:$0xff]  ;;  %v6548_v14 = vld [vmem:[%s17622_s28 + $0x3d8] sm:$0xff] }
 0x77d   : > { %v7016_v50 = vpack.c.bf16 %v6924_v59, %v6920_v1  ;;  %v6674_v1 = vmul.f32 %v18186_v18, %v6524_v34  ;;  %v6678_v59 = vmul.f32 %v18186_v18, %v6528_v57  ;;  %v6552_v10 = vld [vmem:[%s17622_s28 + $0x3f8] sm:$0xff] }
 0x780   : > { %8101 = vmatmul.mubr.bf16.gmra.mrb[16].mxu0 %v6999_v13  ;;  %8487 = vmatmul.mubr.bf16.gmra.mrb[16].mxu1 %v6999_v13  ;;  %v6795_v13 = vadd.f32 %v18212_v39, %v6645_v7 }
 0x781   : > { %8110 = vmatprep.mubr.bf16.mxu0 %v7004_v47  ;;  %8496 = vmatprep.mubr.bf16.mxu1 %v7004_v47  ;;  %v6804_v47 = vadd.f32 %v18200_v11, %v6654_v44  ;;  %v6815_v44 = vadd.f32 %v18212_v39, %v6665_v58 }
 0x782   : > { %v6923_v4 = vmax.f32 %v6795_v13, 0.0  ;;  %v6824_v13 = vadd.f32 %v18200_v11, %v6674_v1 }
 0x783   : > { %v6932_v36 = vmax.f32 %v6804_v47, 0.0  ;;  %v6527_v47 = vld [vmem:[%s17622_s28 + $0x330] sm:$0xff]  ;;  %v6943_v15 = vmax.f32 %v6815_v44, 0.0 }
 0x784   : > { %v7015_v29 = vpack.c.bf16 %v6923_v4, %v6919_v21  ;;  %v6673_v21 = vmul.f32 %v18203_v9, %v6523_v20  ;;  %v6677_v4 = vmul.f32 %v18203_v9, %v6527_v47  ;;  %v6952_v25 = vmax.f32 %v6824_v13, 0.0  ;;  %v6547_v13 = vld [vmem:[%s17622_s28 + $0x3d0] sm:$0xff] }
 0x785   : > { %v7020_v48 = vpack.c.bf16 %v6932_v36, %v6928_v12  ;;  %v6682_v12 = vmul.f32 %v18186_v18, %v6532_v52  ;;  %v6686_v36 = vmul.f32 %v18186_v18, %v6536_v55  ;;  %v6697_v52 = vmul.f32 %v18203_v9, %v6547_v13 }
 0x788   : > { %8111 = vmatmul.mubr.bf16.gmra.mrb[20].mxu0 %v7003_v33  ;;  %8497 = vmatmul.mubr.bf16.gmra.mrb[20].mxu1 %v7003_v33  ;;  %v6803_v33 = vadd.f32 %v18212_v39, %v6653_v46 }
 0x789   : > { %8120 = vmatprep.mubr.bf16.mxu0 %v7008_v49  ;;  %8506 = vmatprep.mubr.bf16.mxu1 %v7008_v49  ;;  %v6812_v49 = vadd.f32 %v18200_v11, %v6662_v28  ;;  %v6823_v28 = vadd.f32 %v18212_v39, %v6673_v21  ;;  %v6847_v21 = vadd.f32 %v18212_v39, %v6697_v52 }
 0x78a   : > { %v6931_v40 = vmax.f32 %v6803_v33, 0.0  ;;  %v6832_v33 = vadd.f32 %v18200_v11, %v6682_v12 }
 0x78b   : > { %v6940_v17 = vmax.f32 %v6812_v49, 0.0  ;;  %v6535_v49 = vld [vmem:[%s17622_s28 + $0x370] sm:$0xff]  ;;  %v6951_v42 = vmax.f32 %v6823_v28, 0.0 }
 0x78c   : > { %v7019_v30 = vpack.c.bf16 %v6931_v40, %v6927_v51  ;;  %v6681_v51 = vmul.f32 %v18203_v9, %v6531_v54  ;;  %v6685_v40 = vmul.f32 %v18203_v9, %v6535_v49  ;;  %v6960_v16 = vmax.f32 %v6832_v33, 0.0 }
 0x78d   : > { %v7024_v62 = vpack.c.bf16 %v6940_v17, %v6936_v41  ;;  %v6690_v41 = vmul.f32 %v18186_v18, %v6540_v56  ;;  %v6694_v17 = vmul.f32 %v18186_v18, %v6544_v24 }
 0x790   : > { %8121 = vmatmul.mubr.bf16.gmra.mrb[24].mxu0 %v7007_v8  ;;  %8507 = vmatmul.mubr.bf16.gmra.mrb[24].mxu1 %v7007_v8  ;;  %v6811_v8 = vadd.f32 %v18212_v39, %v6661_v35 }
 0x791   : > { %8130 = vmatprep.mubr.bf16.mxu0 %v7012_v0  ;;  %8516 = vmatprep.mubr.bf16.mxu1 %v7012_v0  ;;  %v6820_v0 = vadd.f32 %v18200_v11, %v6670_v63  ;;  %v6831_v63 = vadd.f32 %v18212_v39, %v6681_v51 }
 0x792   : > { %v6939_v32 = vmax.f32 %v6811_v8, 0.0  ;;  %v6840_v8 = vadd.f32 %v18200_v11, %v6690_v41 }
 0x793   : > { %v6948_v7 = vmax.f32 %v6820_v0, 0.0  ;;  %v6543_v0 = vld [vmem:[%s17622_s28 + $0x3b0] sm:$0xff]  ;;  %v6959_v34 = vmax.f32 %v6831_v63, 0.0 }
 0x794   : > { %v7023_v27 = vpack.c.bf16 %v6939_v32, %v6935_v19  ;;  %v6689_v19 = vmul.f32 %v18203_v9, %v6539_v23  ;;  %v6693_v32 = vmul.f32 %v18203_v9, %v6543_v0  ;;  %v6968_v58 = vmax.f32 %v6840_v8, 0.0 }
 0x795   : > { %v7028_v3 = vpack.c.bf16 %v6948_v7, %v6944_v45  ;;  %v6698_v45 = vmul.f32 %v18186_v18, %v6548_v14  ;;  %v6702_v7 = vmul.f32 %v18186_v18, %v6552_v10 }
 0x798   : > { %8131 = vmatmul.mubr.bf16.gmra.mrb[28].mxu0 %v7011_v5  ;;  %8517 = vmatmul.mubr.bf16.gmra.mrb[28].mxu1 %v7011_v5  ;;  %v6819_v5 = vadd.f32 %v18212_v39, %v6669_v6 }
 0x799   : > { %8140 = vmatprep.mubr.bf16.mxu0 %v7016_v50  ;;  %8526 = vmatprep.mubr.bf16.mxu1 %v7016_v50  ;;  %v6828_v50 = vadd.f32 %v18200_v11, %v6678_v59  ;;  %v6839_v59 = vadd.f32 %v18212_v39, %v6689_v19 }
 0x79a   : > { %v6947_v37 = vmax.f32 %v6819_v5, 0.0  ;;  %v6848_v5 = vadd.f32 %v18200_v11, %v6698_v45 }
 0x79b   : > { %v6956_v46 = vmax.f32 %v6828_v50, 0.0  ;;  %v6551_v50 = vld [vmem:[%s17622_s28 + $0x3f0] sm:$0xff]  ;;  %v6967_v20 = vmax.f32 %v6839_v59, 0.0 }
 0x79c   : > { %v7027_v61 = vpack.c.bf16 %v6947_v37, %v6943_v15  ;;  %v6701_v18 = vmul.f32 %v18203_v9, %v6551_v50  ;;  %v6976_v55 = vmax.f32 %v6848_v5, 0.0  ;;  %v7173_v9 = vld [vmem:[%s18696_s8] sm:$0xf] }
 0x79d   : > { %v7032_v60 = vpack.c.bf16 %v6956_v46, %v6952_v25  ;;  %v6975_v25 = vmax.f32 %v6847_v21, 0.0  ;;  %v18415_v28 = vrot.slane %v7173_v9, %v18183_v26 }
 0x7a0   : > { %8141 = vmatmul.mubr.bf16.gmra.mrb[32].mxu0 %v7015_v29  ;;  %8527 = vmatmul.mubr.bf16.gmra.mrb[32].mxu1 %v7015_v29  ;;  %v6827_v29 = vadd.f32 %v18212_v39, %v6677_v4  ;;  %v6851_v4 = vadd.f32 %v18212_v39, %v6701_v18 }
 0x7a1   : > { %8150 = vmatprep.mubr.bf16.mxu0 %v7020_v48  ;;  %8536 = vmatprep.mubr.bf16.mxu1 %v7020_v48  ;;  %v6836_v48 = vadd.f32 %v18200_v11, %v6686_v36  ;;  %v18406_v36 = vrot.slane %v7173_v9, %v17614_v31 }
 0x7a2   : > { %v6955_v53 = vmax.f32 %v6827_v29, 0.0  ;;  %v6979_v46 = vmax.f32 %v6851_v4, 0.0 }
 0x7a3   : > { %v6964_v35 = vmax.f32 %v6836_v48, 0.0 }
 0x7a4   : > { %v7031_v22 = vpack.c.bf16 %v6955_v53, %v6951_v42  ;;  %v7043_v12 = vpack.c.bf16 %v6979_v46, %v6975_v25 }
 0x7a5   : > { %v7036_v38 = vpack.c.bf16 %v6964_v35, %v6960_v16 }
 0x7a8   : > { %8151 = vmatmul.mubr.bf16.gmra.mrb[36].mxu0 %v7019_v30  ;;  %8537 = vmatmul.mubr.bf16.gmra.mrb[36].mxu1 %v7019_v30  ;;  %v6835_v30 = vadd.f32 %v18212_v39, %v6685_v40 }
 0x7a9   : > { %8160 = vmatprep.mubr.bf16.mxu0 %v7024_v62  ;;  %8546 = vmatprep.mubr.bf16.mxu1 %v7024_v62  ;;  %v6844_v62 = vadd.f32 %v18200_v11, %v6694_v17 }
 0x7aa   : > { %v6963_v57 = vmax.f32 %v6835_v30, 0.0 }
 0x7ab   : > { %v6972_v6 = vmax.f32 %v6844_v62, 0.0 }
 0x7ac   : > { %v7035_v1 = vpack.c.bf16 %v6963_v57, %v6959_v34 }
 0x7ad   : > { %v7040_v44 = vpack.c.bf16 %v6972_v6, %v6968_v58 }
 0x7b0   : > { %8161 = vmatmul.mubr.bf16.gmra.mrb[40].mxu0 %v7023_v27  ;;  %8547 = vmatmul.mubr.bf16.gmra.mrb[40].mxu1 %v7023_v27  ;;  %v6843_v27 = vadd.f32 %v18212_v39, %v6693_v32  ;;  %v18409_v39 = vrot.slane %v7173_v9, %v18191_v43 }
 0x7b1   : > { %8170 = vmatprep.mubr.bf16.mxu0 %v7028_v3  ;;  %8556 = vmatprep.mubr.bf16.mxu1 %v7028_v3  ;;  %v6852_v3 = vadd.f32 %v18200_v11, %v6702_v7 }
 0x7b2   : > { %v6971_v47 = vmax.f32 %v6843_v27, 0.0 }
 0x7b3   : > { %v6980_v15 = vmax.f32 %v6852_v3, 0.0 }
 0x7b4   : > { %v7039_v37 = vpack.c.bf16 %v6971_v47, %v6967_v20 }
 0x7b5   : > { %v7044_v11 = vpack.c.bf16 %v6980_v15, %v6976_v55 }
 0x7b8   : > { %8171 = vmatmul.mubr.bf16.gmra.mrb[44].mxu0 %v7027_v61  ;;  %8557 = vmatmul.mubr.bf16.gmra.mrb[44].mxu1 %v7027_v61  ;;  %v18412_v61 = vrot.slane %v7173_v9, %v17608_v2 }
 0x7b9   : > { %8180 = vmatprep.mubr.bf16.mxu0 %v7032_v60  ;;  %8566 = vmatprep.mubr.bf16.mxu1 %v7032_v60 }
 0x7c0   : > { %8181 = vmatmul.mubr.bf16.gmra.mrb[48].mxu0 %v7031_v22  ;;  %8567 = vmatmul.mubr.bf16.gmra.mrb[48].mxu1 %v7031_v22 }
 0x7c1   : > { %8190 = vmatprep.mubr.bf16.mxu0 %v7036_v38  ;;  %8576 = vmatprep.mubr.bf16.mxu1 %v7036_v38 }
 0x7c8   : > { %8191 = vmatmul.mubr.bf16.gmra.mrb[52].mxu0 %v7035_v1  ;;  %8577 = vmatmul.mubr.bf16.gmra.mrb[52].mxu1 %v7035_v1 }
 0x7c9   : > { %8200 = vmatprep.mubr.bf16.mxu0 %v7040_v44  ;;  %8586 = vmatprep.mubr.bf16.mxu1 %v7040_v44 }
 0x7d0   : > { %8201 = vmatmul.mubr.bf16.gmra.mrb[56].mxu0 %v7039_v37  ;;  %8587 = vmatmul.mubr.bf16.gmra.mrb[56].mxu1 %v7039_v37 }
 0x7d1   : > { %8210 = vmatprep.mubr.bf16.mxu0 %v7044_v11  ;;  %8596 = vmatprep.mubr.bf16.mxu1 %v7044_v11 }
 0x7d8   : > { %8211 = vmatmul.mubr.bf16.gmra.mrb[60].mxu0 %v7043_v12  ;;  %8597 = vmatmul.mubr.bf16.gmra.mrb[60].mxu1 %v7043_v12 }
 0x833   : > { %v8062_v29 = vpop.f32.mrb[0].mxu0  ;;  %v8448_v60 = vpop.f32.mrb[0].mxu1 }
 0x834   : > { %v9822_v33 = vadd.f32 %v8062_v29, %v18406_v36  ;;  %v9886_v48 = vadd.f32 %v8448_v60, %v18409_v39  ;;  %v8064_v54 = vpop.f32.mrb[1].mxu0  ;;  %v8450_v31 = vpop.f32.mrb[1].mxu1 }
 0x835   : > { %v9823_v43 = vadd.f32 %v8064_v54, %v18412_v61  ;;  %v9887_v2 = vadd.f32 %v8450_v31, %v18415_v28  ;;  %v8066_v26 = vpop.f32.mrb[2].mxu0  ;;  %v8452_v49 = vpop.f32.mrb[2].mxu1 }
 0x836   : > { %8607 = vst [vmem:[%s11310_s30] sm:$0xff] %v9822_v33  ;;  %8609 = vst [vmem:[%s11310_s30 + $0x10] sm:$0xff] %v9886_v48  ;;  %v9824_v56 = vadd.f32 %v8066_v26, %v18406_v36  ;;  %v9888_v24 = vadd.f32 %v8452_v49, %v18409_v39  ;;  %v8068_v42 = vpop.f32.mrb[3].mxu0  ;;  %v8454_v53 = vpop.f32.mrb[3].mxu1 }
 0x837   : > { %8608 = vst [vmem:[%s11310_s30 + $0x8] sm:$0xff] %v9823_v43  ;;  %8610 = vst [vmem:[%s11310_s30 + $0x18] sm:$0xff] %v9887_v2  ;;  %v9825_v51 = vadd.f32 %v8068_v42, %v18412_v61  ;;  %v9889_v40 = vadd.f32 %v8454_v53, %v18415_v28 }
 0x838   : > { %8611 = vst [vmem:[%s11310_s30 + $0x20] sm:$0xff] %v9824_v56  ;;  %8613 = vst [vmem:[%s11310_s30 + $0x30] sm:$0xff] %v9888_v24 }
 0x839   : > { %8612 = vst [vmem:[%s11310_s30 + $0x28] sm:$0xff] %v9825_v51  ;;  %8614 = vst [vmem:[%s11310_s30 + $0x38] sm:$0xff] %v9889_v40 }
 0x83b   : > { %v8072_v16 = vpop.f32.mrb[4].mxu0  ;;  %v8458_v35 = vpop.f32.mrb[4].mxu1 }
 0x83c   : > { %v9826_v41 = vadd.f32 %v8072_v16, %v18406_v36  ;;  %v9890_v17 = vadd.f32 %v8458_v35, %v18409_v39  ;;  %v8074_v22 = vpop.f32.mrb[5].mxu0  ;;  %v8460_v63 = vpop.f32.mrb[5].mxu1 }
 0x83d   : > { %v9827_v30 = vadd.f32 %v8074_v22, %v18412_v61  ;;  %v9891_v38 = vadd.f32 %v8460_v63, %v18415_v28  ;;  %v8076_v8 = vpop.f32.mrb[6].mxu0  ;;  %v8462_v62 = vpop.f32.mrb[6].mxu1 }
 0x83e   : > { %8615 = vst [vmem:[%s11310_s30 + $0x40] sm:$0xff] %v9826_v41  ;;  %8617 = vst [vmem:[%s11310_s30 + $0x50] sm:$0xff] %v9890_v17  ;;  %v9828_v23 = vadd.f32 %v8076_v8, %v18406_v36  ;;  %v9892_v0 = vadd.f32 %v8462_v62, %v18409_v39  ;;  %v8078_v14 = vpop.f32.mrb[7].mxu0  ;;  %v8464_v10 = vpop.f32.mrb[7].mxu1 }
 0x83f   : > { %8616 = vst [vmem:[%s11310_s30 + $0x48] sm:$0xff] %v9827_v30  ;;  %8618 = vst [vmem:[%s11310_s30 + $0x58] sm:$0xff] %v9891_v38  ;;  %v9829_v34 = vadd.f32 %v8078_v14, %v18412_v61  ;;  %v9893_v57 = vadd.f32 %v8464_v10, %v18415_v28 }
 0x840   : > { %8619 = vst [vmem:[%s11310_s30 + $0x60] sm:$0xff] %v9828_v23  ;;  %8621 = vst [vmem:[%s11310_s30 + $0x70] sm:$0xff] %v9892_v0 }
 0x841   : > { %8620 = vst [vmem:[%s11310_s30 + $0x68] sm:$0xff] %v9829_v34  ;;  %8622 = vst [vmem:[%s11310_s30 + $0x78] sm:$0xff] %v9893_v57 }
 0x843   : > { %v8082_v19 = vpop.f32.mrb[8].mxu0  ;;  %v8468_v32 = vpop.f32.mrb[8].mxu1 }
 0x844   : > { %v9830_v58 = vadd.f32 %v8082_v19, %v18406_v36  ;;  %v9894_v6 = vadd.f32 %v8468_v32, %v18409_v39  ;;  %v8084_v45 = vpop.f32.mrb[9].mxu0  ;;  %v8470_v7 = vpop.f32.mrb[9].mxu1 }
 0x845   : > { %v9831_v1 = vadd.f32 %v8084_v45, %v18412_v61  ;;  %v9895_v59 = vadd.f32 %v8470_v7, %v18415_v28  ;;  %v8086_v27 = vpop.f32.mrb[10].mxu0  ;;  %v8472_v44 = vpop.f32.mrb[10].mxu1 }
 0x846   : > { %8623 = vst [vmem:[%s11310_s30 + $0x80] sm:$0xff] %v9830_v58  ;;  %8625 = vst [vmem:[%s11310_s30 + $0x90] sm:$0xff] %v9894_v6  ;;  %v9832_v5 = vadd.f32 %v8086_v27, %v18406_v36  ;;  %v9896_v3 = vadd.f32 %v8472_v44, %v18409_v39  ;;  %v8088_v13 = vpop.f32.mrb[11].mxu0  ;;  %v8474_v50 = vpop.f32.mrb[11].mxu1 }
 0x847   : > { %8624 = vst [vmem:[%s11310_s30 + $0x88] sm:$0xff] %v9831_v1  ;;  %8626 = vst [vmem:[%s11310_s30 + $0x98] sm:$0xff] %v9895_v59  ;;  %v9833_v20 = vadd.f32 %v8088_v13, %v18412_v61  ;;  %v9897_v47 = vadd.f32 %v8474_v50, %v18415_v28 }
 0x848   : > { %8627 = vst [vmem:[%s11310_s30 + $0xa0] sm:$0xff] %v9832_v5  ;;  %8629 = vst [vmem:[%s11310_s30 + $0xb0] sm:$0xff] %v9896_v3 }
 0x849   : > { %8628 = vst [vmem:[%s11310_s30 + $0xa8] sm:$0xff] %v9833_v20  ;;  %8630 = vst [vmem:[%s11310_s30 + $0xb8] sm:$0xff] %v9897_v47 }
 0x84b   : > { %v8092_v52 = vpop.f32.mrb[12].mxu0  ;;  %v8478_v18 = vpop.f32.mrb[12].mxu1 }
 0x84c   : > { %v9834_v55 = vadd.f32 %v8092_v52, %v18406_v36  ;;  %v9898_v15 = vadd.f32 %v8478_v18, %v18409_v39  ;;  %v8094_v37 = vpop.f32.mrb[13].mxu0  ;;  %v8480_v21 = vpop.f32.mrb[13].mxu1 }
 0x84d   : > { %v9835_v4 = vadd.f32 %v8094_v37, %v18412_v61  ;;  %v9899_v11 = vadd.f32 %v8480_v21, %v18415_v28  ;;  %v8096_v25 = vpop.f32.mrb[14].mxu0  ;;  %v8482_v46 = vpop.f32.mrb[14].mxu1 }
 0x84e   : > { %8631 = vst [vmem:[%s11310_s30 + $0xc0] sm:$0xff] %v9834_v55  ;;  %8633 = vst [vmem:[%s11310_s30 + $0xd0] sm:$0xff] %v9898_v15  ;;  %v9836_v12 = vadd.f32 %v8096_v25, %v18406_v36  ;;  %v9900_v9 = vadd.f32 %v8482_v46, %v18409_v39  ;;  %v8098_v29 = vpop.f32.mrb[15].mxu0  ;;  %v8484_v60 = vpop.f32.mrb[15].mxu1 }
 0x84f   : > { %8632 = vst [vmem:[%s11310_s30 + $0xc8] sm:$0xff] %v9835_v4  ;;  %8634 = vst [vmem:[%s11310_s30 + $0xd8] sm:$0xff] %v9899_v11  ;;  %v9837_v33 = vadd.f32 %v8098_v29, %v18412_v61  ;;  %v9901_v48 = vadd.f32 %v8484_v60, %v18415_v28 }
 0x850   : > { %8635 = vst [vmem:[%s11310_s30 + $0xe0] sm:$0xff] %v9836_v12  ;;  %8637 = vst [vmem:[%s11310_s30 + $0xf0] sm:$0xff] %v9900_v9 }
 0x851   : > { %8636 = vst [vmem:[%s11310_s30 + $0xe8] sm:$0xff] %v9837_v33  ;;  %8638 = vst [vmem:[%s11310_s30 + $0xf8] sm:$0xff] %v9901_v48 }
 0x853   : > { %v8102_v54 = vpop.f32.mrb[16].mxu0  ;;  %v8488_v31 = vpop.f32.mrb[16].mxu1 }
 0x854   : > { %v9838_v43 = vadd.f32 %v8102_v54, %v18406_v36  ;;  %v9902_v2 = vadd.f32 %v8488_v31, %v18409_v39  ;;  %v8104_v26 = vpop.f32.mrb[17].mxu0  ;;  %v8490_v49 = vpop.f32.mrb[17].mxu1 }
 0x855   : > { %v9839_v56 = vadd.f32 %v8104_v26, %v18412_v61  ;;  %v9903_v24 = vadd.f32 %v8490_v49, %v18415_v28  ;;  %v8106_v42 = vpop.f32.mrb[18].mxu0  ;;  %v8492_v53 = vpop.f32.mrb[18].mxu1 }
 0x856   : > { %8639 = vst [vmem:[%s11310_s30 + $0x100] sm:$0xff] %v9838_v43  ;;  %8641 = vst [vmem:[%s11310_s30 + $0x110] sm:$0xff] %v9902_v2  ;;  %v9840_v51 = vadd.f32 %v8106_v42, %v18406_v36  ;;  %v9904_v40 = vadd.f32 %v8492_v53, %v18409_v39  ;;  %v8108_v16 = vpop.f32.mrb[19].mxu0  ;;  %v8494_v35 = vpop.f32.mrb[19].mxu1 }
 0x857   : > { %8640 = vst [vmem:[%s11310_s30 + $0x108] sm:$0xff] %v9839_v56  ;;  %8642 = vst [vmem:[%s11310_s30 + $0x118] sm:$0xff] %v9903_v24  ;;  %v9841_v41 = vadd.f32 %v8108_v16, %v18412_v61  ;;  %v9905_v17 = vadd.f32 %v8494_v35, %v18415_v28 }
 0x858   : > { %8643 = vst [vmem:[%s11310_s30 + $0x120] sm:$0xff] %v9840_v51  ;;  %8645 = vst [vmem:[%s11310_s30 + $0x130] sm:$0xff] %v9904_v40 }
 0x859   : > { %8644 = vst [vmem:[%s11310_s30 + $0x128] sm:$0xff] %v9841_v41  ;;  %8646 = vst [vmem:[%s11310_s30 + $0x138] sm:$0xff] %v9905_v17 }
 0x85b   : > { %v8112_v22 = vpop.f32.mrb[20].mxu0  ;;  %v8498_v63 = vpop.f32.mrb[20].mxu1 }
 0x85c   : > { %v9842_v30 = vadd.f32 %v8112_v22, %v18406_v36  ;;  %v9906_v38 = vadd.f32 %v8498_v63, %v18409_v39  ;;  %v8114_v8 = vpop.f32.mrb[21].mxu0  ;;  %v8500_v62 = vpop.f32.mrb[21].mxu1 }
 0x85d   : > { %v9843_v23 = vadd.f32 %v8114_v8, %v18412_v61  ;;  %v9907_v0 = vadd.f32 %v8500_v62, %v18415_v28  ;;  %v8116_v14 = vpop.f32.mrb[22].mxu0  ;;  %v8502_v10 = vpop.f32.mrb[22].mxu1 }
 0x85e   : > { %8647 = vst [vmem:[%s11310_s30 + $0x140] sm:$0xff] %v9842_v30  ;;  %8649 = vst [vmem:[%s11310_s30 + $0x150] sm:$0xff] %v9906_v38  ;;  %v9844_v34 = vadd.f32 %v8116_v14, %v18406_v36  ;;  %v9908_v57 = vadd.f32 %v8502_v10, %v18409_v39  ;;  %v8118_v19 = vpop.f32.mrb[23].mxu0  ;;  %v8504_v32 = vpop.f32.mrb[23].mxu1 }
 0x85f   : > { %8648 = vst [vmem:[%s11310_s30 + $0x148] sm:$0xff] %v9843_v23  ;;  %8650 = vst [vmem:[%s11310_s30 + $0x158] sm:$0xff] %v9907_v0  ;;  %v9845_v58 = vadd.f32 %v8118_v19, %v18412_v61  ;;  %v9909_v6 = vadd.f32 %v8504_v32, %v18415_v28 }
 0x860   : > { %8651 = vst [vmem:[%s11310_s30 + $0x160] sm:$0xff] %v9844_v34  ;;  %8653 = vst [vmem:[%s11310_s30 + $0x170] sm:$0xff] %v9908_v57 }
 0x861   : > { %8652 = vst [vmem:[%s11310_s30 + $0x168] sm:$0xff] %v9845_v58  ;;  %8654 = vst [vmem:[%s11310_s30 + $0x178] sm:$0xff] %v9909_v6 }
 0x863   : > { %v8122_v45 = vpop.f32.mrb[24].mxu0  ;;  %v8508_v7 = vpop.f32.mrb[24].mxu1 }
 0x864   : > { %v9846_v1 = vadd.f32 %v8122_v45, %v18406_v36  ;;  %v9910_v59 = vadd.f32 %v8508_v7, %v18409_v39  ;;  %v8124_v27 = vpop.f32.mrb[25].mxu0  ;;  %v8510_v44 = vpop.f32.mrb[25].mxu1 }
 0x865   : > { %v9847_v5 = vadd.f32 %v8124_v27, %v18412_v61  ;;  %v9911_v3 = vadd.f32 %v8510_v44, %v18415_v28  ;;  %v8126_v13 = vpop.f32.mrb[26].mxu0  ;;  %v8512_v50 = vpop.f32.mrb[26].mxu1 }
 0x866   : > { %8655 = vst [vmem:[%s11310_s30 + $0x180] sm:$0xff] %v9846_v1  ;;  %8657 = vst [vmem:[%s11310_s30 + $0x190] sm:$0xff] %v9910_v59  ;;  %v9848_v20 = vadd.f32 %v8126_v13, %v18406_v36  ;;  %v9912_v47 = vadd.f32 %v8512_v50, %v18409_v39  ;;  %v8128_v52 = vpop.f32.mrb[27].mxu0  ;;  %v8514_v18 = vpop.f32.mrb[27].mxu1 }
 0x867   : > { %8656 = vst [vmem:[%s11310_s30 + $0x188] sm:$0xff] %v9847_v5  ;;  %8658 = vst [vmem:[%s11310_s30 + $0x198] sm:$0xff] %v9911_v3  ;;  %v9849_v55 = vadd.f32 %v8128_v52, %v18412_v61  ;;  %v9913_v15 = vadd.f32 %v8514_v18, %v18415_v28 }
 0x868   : > { %8659 = vst [vmem:[%s11310_s30 + $0x1a0] sm:$0xff] %v9848_v20  ;;  %8661 = vst [vmem:[%s11310_s30 + $0x1b0] sm:$0xff] %v9912_v47 }
 0x869   : > { %8660 = vst [vmem:[%s11310_s30 + $0x1a8] sm:$0xff] %v9849_v55  ;;  %8662 = vst [vmem:[%s11310_s30 + $0x1b8] sm:$0xff] %v9913_v15 }
 0x86b   : > { %v8132_v37 = vpop.f32.mrb[28].mxu0  ;;  %v8518_v21 = vpop.f32.mrb[28].mxu1 }
 0x86c   : > { %v9850_v4 = vadd.f32 %v8132_v37, %v18406_v36  ;;  %v9914_v11 = vadd.f32 %v8518_v21, %v18409_v39  ;;  %v8134_v25 = vpop.f32.mrb[29].mxu0  ;;  %v8520_v46 = vpop.f32.mrb[29].mxu1 }
 0x86d   : > { %v9851_v12 = vadd.f32 %v8134_v25, %v18412_v61  ;;  %v9915_v9 = vadd.f32 %v8520_v46, %v18415_v28  ;;  %v8136_v29 = vpop.f32.mrb[30].mxu0  ;;  %v8522_v60 = vpop.f32.mrb[30].mxu1 }
 0x86e   : > { %8663 = vst [vmem:[%s11310_s30 + $0x1c0] sm:$0xff] %v9850_v4  ;;  %8665 = vst [vmem:[%s11310_s30 + $0x1d0] sm:$0xff] %v9914_v11  ;;  %v9852_v33 = vadd.f32 %v8136_v29, %v18406_v36  ;;  %v9916_v48 = vadd.f32 %v8522_v60, %v18409_v39  ;;  %v8138_v54 = vpop.f32.mrb[31].mxu0  ;;  %v8524_v31 = vpop.f32.mrb[31].mxu1 }
 0x86f   : > { %8664 = vst [vmem:[%s11310_s30 + $0x1c8] sm:$0xff] %v9851_v12  ;;  %8666 = vst [vmem:[%s11310_s30 + $0x1d8] sm:$0xff] %v9915_v9  ;;  %v9853_v43 = vadd.f32 %v8138_v54, %v18412_v61  ;;  %v9917_v2 = vadd.f32 %v8524_v31, %v18415_v28 }
 0x870   : > { %8667 = vst [vmem:[%s11310_s30 + $0x1e0] sm:$0xff] %v9852_v33  ;;  %8669 = vst [vmem:[%s11310_s30 + $0x1f0] sm:$0xff] %v9916_v48 }
 0x871   : > { %8668 = vst [vmem:[%s11310_s30 + $0x1e8] sm:$0xff] %v9853_v43  ;;  %8670 = vst [vmem:[%s11310_s30 + $0x1f8] sm:$0xff] %v9917_v2 }
 0x873   : > { %v8142_v26 = vpop.f32.mrb[32].mxu0  ;;  %v8528_v49 = vpop.f32.mrb[32].mxu1 }
 0x874   : > { %v9854_v56 = vadd.f32 %v8142_v26, %v18406_v36  ;;  %v9918_v24 = vadd.f32 %v8528_v49, %v18409_v39  ;;  %v8144_v42 = vpop.f32.mrb[33].mxu0  ;;  %v8530_v53 = vpop.f32.mrb[33].mxu1 }
 0x875   : > { %v9855_v51 = vadd.f32 %v8144_v42, %v18412_v61  ;;  %v9919_v40 = vadd.f32 %v8530_v53, %v18415_v28  ;;  %v8146_v16 = vpop.f32.mrb[34].mxu0  ;;  %v8532_v35 = vpop.f32.mrb[34].mxu1 }
 0x876   : > { %8671 = vst [vmem:[%s11310_s30 + $0x200] sm:$0xff] %v9854_v56  ;;  %8673 = vst [vmem:[%s11310_s30 + $0x210] sm:$0xff] %v9918_v24  ;;  %v9856_v41 = vadd.f32 %v8146_v16, %v18406_v36  ;;  %v9920_v17 = vadd.f32 %v8532_v35, %v18409_v39  ;;  %v8148_v22 = vpop.f32.mrb[35].mxu0  ;;  %v8534_v63 = vpop.f32.mrb[35].mxu1 }
 0x877   : > { %8672 = vst [vmem:[%s11310_s30 + $0x208] sm:$0xff] %v9855_v51  ;;  %8674 = vst [vmem:[%s11310_s30 + $0x218] sm:$0xff] %v9919_v40  ;;  %v9857_v30 = vadd.f32 %v8148_v22, %v18412_v61  ;;  %v9921_v38 = vadd.f32 %v8534_v63, %v18415_v28 }
 0x878   : > { %8675 = vst [vmem:[%s11310_s30 + $0x220] sm:$0xff] %v9856_v41  ;;  %8677 = vst [vmem:[%s11310_s30 + $0x230] sm:$0xff] %v9920_v17 }
 0x879   : > { %8676 = vst [vmem:[%s11310_s30 + $0x228] sm:$0xff] %v9857_v30  ;;  %8678 = vst [vmem:[%s11310_s30 + $0x238] sm:$0xff] %v9921_v38 }
 0x87b   : > { %v8152_v8 = vpop.f32.mrb[36].mxu0  ;;  %v8538_v62 = vpop.f32.mrb[36].mxu1 }
 0x87c   : > { %v9858_v23 = vadd.f32 %v8152_v8, %v18406_v36  ;;  %v9922_v0 = vadd.f32 %v8538_v62, %v18409_v39  ;;  %v8154_v14 = vpop.f32.mrb[37].mxu0  ;;  %v8540_v10 = vpop.f32.mrb[37].mxu1 }
 0x87d   : > { %v9859_v34 = vadd.f32 %v8154_v14, %v18412_v61  ;;  %v9923_v57 = vadd.f32 %v8540_v10, %v18415_v28  ;;  %v8156_v19 = vpop.f32.mrb[38].mxu0  ;;  %v8542_v32 = vpop.f32.mrb[38].mxu1 }
 0x87e   : > { %8679 = vst [vmem:[%s11310_s30 + $0x240] sm:$0xff] %v9858_v23  ;;  %8681 = vst [vmem:[%s11310_s30 + $0x250] sm:$0xff] %v9922_v0  ;;  %v9860_v58 = vadd.f32 %v8156_v19, %v18406_v36  ;;  %v9924_v6 = vadd.f32 %v8542_v32, %v18409_v39  ;;  %v8158_v45 = vpop.f32.mrb[39].mxu0  ;;  %v8544_v7 = vpop.f32.mrb[39].mxu1 }
 0x87f   : > { %8680 = vst [vmem:[%s11310_s30 + $0x248] sm:$0xff] %v9859_v34  ;;  %8682 = vst [vmem:[%s11310_s30 + $0x258] sm:$0xff] %v9923_v57  ;;  %v9861_v1 = vadd.f32 %v8158_v45, %v18412_v61  ;;  %v9925_v59 = vadd.f32 %v8544_v7, %v18415_v28 }
 0x880   : > { %8683 = vst [vmem:[%s11310_s30 + $0x260] sm:$0xff] %v9860_v58  ;;  %8685 = vst [vmem:[%s11310_s30 + $0x270] sm:$0xff] %v9924_v6 }
 0x881   : > { %8684 = vst [vmem:[%s11310_s30 + $0x268] sm:$0xff] %v9861_v1  ;;  %8686 = vst [vmem:[%s11310_s30 + $0x278] sm:$0xff] %v9925_v59 }
 0x883   : > { %v8162_v27 = vpop.f32.mrb[40].mxu0  ;;  %v8548_v44 = vpop.f32.mrb[40].mxu1 }
 0x884   : > { %v9862_v5 = vadd.f32 %v8162_v27, %v18406_v36  ;;  %v9926_v3 = vadd.f32 %v8548_v44, %v18409_v39  ;;  %v8164_v13 = vpop.f32.mrb[41].mxu0  ;;  %v8550_v50 = vpop.f32.mrb[41].mxu1 }
 0x885   : > { %v9863_v20 = vadd.f32 %v8164_v13, %v18412_v61  ;;  %v9927_v47 = vadd.f32 %v8550_v50, %v18415_v28  ;;  %v8166_v52 = vpop.f32.mrb[42].mxu0  ;;  %v8552_v18 = vpop.f32.mrb[42].mxu1 }
 0x886   : > { %8687 = vst [vmem:[%s11310_s30 + $0x280] sm:$0xff] %v9862_v5  ;;  %8689 = vst [vmem:[%s11310_s30 + $0x290] sm:$0xff] %v9926_v3  ;;  %v9864_v55 = vadd.f32 %v8166_v52, %v18406_v36  ;;  %v9928_v15 = vadd.f32 %v8552_v18, %v18409_v39  ;;  %v8168_v37 = vpop.f32.mrb[43].mxu0  ;;  %v8554_v21 = vpop.f32.mrb[43].mxu1 }
 0x887   : > { %8688 = vst [vmem:[%s11310_s30 + $0x288] sm:$0xff] %v9863_v20  ;;  %8690 = vst [vmem:[%s11310_s30 + $0x298] sm:$0xff] %v9927_v47  ;;  %v9865_v4 = vadd.f32 %v8168_v37, %v18412_v61  ;;  %v9929_v11 = vadd.f32 %v8554_v21, %v18415_v28 }
 0x888   : > { %8691 = vst [vmem:[%s11310_s30 + $0x2a0] sm:$0xff] %v9864_v55  ;;  %8693 = vst [vmem:[%s11310_s30 + $0x2b0] sm:$0xff] %v9928_v15 }
 0x889   : > { %8692 = vst [vmem:[%s11310_s30 + $0x2a8] sm:$0xff] %v9865_v4  ;;  %8694 = vst [vmem:[%s11310_s30 + $0x2b8] sm:$0xff] %v9929_v11 }
 0x88b   : > { %v8172_v25 = vpop.f32.mrb[44].mxu0  ;;  %v8558_v46 = vpop.f32.mrb[44].mxu1 }
 0x88c   : > { %v9866_v12 = vadd.f32 %v8172_v25, %v18406_v36  ;;  %v9930_v9 = vadd.f32 %v8558_v46, %v18409_v39  ;;  %v8174_v29 = vpop.f32.mrb[45].mxu0  ;;  %v8560_v60 = vpop.f32.mrb[45].mxu1 }
 0x88d   : > { %v9867_v33 = vadd.f32 %v8174_v29, %v18412_v61  ;;  %v9931_v48 = vadd.f32 %v8560_v60, %v18415_v28  ;;  %v8176_v54 = vpop.f32.mrb[46].mxu0  ;;  %v8562_v31 = vpop.f32.mrb[46].mxu1 }
 0x88e   : > { %8695 = vst [vmem:[%s11310_s30 + $0x2c0] sm:$0xff] %v9866_v12  ;;  %8697 = vst [vmem:[%s11310_s30 + $0x2d0] sm:$0xff] %v9930_v9  ;;  %v9868_v43 = vadd.f32 %v8176_v54, %v18406_v36  ;;  %v9932_v2 = vadd.f32 %v8562_v31, %v18409_v39  ;;  %v8178_v26 = vpop.f32.mrb[47].mxu0  ;;  %v8564_v49 = vpop.f32.mrb[47].mxu1 }
 0x88f   : > { %8696 = vst [vmem:[%s11310_s30 + $0x2c8] sm:$0xff] %v9867_v33  ;;  %8698 = vst [vmem:[%s11310_s30 + $0x2d8] sm:$0xff] %v9931_v48  ;;  %v9869_v56 = vadd.f32 %v8178_v26, %v18412_v61  ;;  %v9933_v24 = vadd.f32 %v8564_v49, %v18415_v28 }
 0x890   : > { %8699 = vst [vmem:[%s11310_s30 + $0x2e0] sm:$0xff] %v9868_v43  ;;  %8701 = vst [vmem:[%s11310_s30 + $0x2f0] sm:$0xff] %v9932_v2 }
 0x891   : > { %8700 = vst [vmem:[%s11310_s30 + $0x2e8] sm:$0xff] %v9869_v56  ;;  %8702 = vst [vmem:[%s11310_s30 + $0x2f8] sm:$0xff] %v9933_v24 }
 0x893   : > { %v8182_v42 = vpop.f32.mrb[48].mxu0  ;;  %v8568_v53 = vpop.f32.mrb[48].mxu1 }
 0x894   : > { %v9870_v51 = vadd.f32 %v8182_v42, %v18406_v36  ;;  %v9934_v40 = vadd.f32 %v8568_v53, %v18409_v39  ;;  %v8184_v16 = vpop.f32.mrb[49].mxu0  ;;  %v8570_v35 = vpop.f32.mrb[49].mxu1 }
 0x895   : > { %v9871_v41 = vadd.f32 %v8184_v16, %v18412_v61  ;;  %v9935_v17 = vadd.f32 %v8570_v35, %v18415_v28  ;;  %v8186_v22 = vpop.f32.mrb[50].mxu0  ;;  %v8572_v63 = vpop.f32.mrb[50].mxu1 }
 0x896   : > { %8703 = vst [vmem:[%s11310_s30 + $0x300] sm:$0xff] %v9870_v51  ;;  %8705 = vst [vmem:[%s11310_s30 + $0x310] sm:$0xff] %v9934_v40  ;;  %v9872_v30 = vadd.f32 %v8186_v22, %v18406_v36  ;;  %v9936_v38 = vadd.f32 %v8572_v63, %v18409_v39  ;;  %v8188_v8 = vpop.f32.mrb[51].mxu0  ;;  %v8574_v62 = vpop.f32.mrb[51].mxu1 }
 0x897   : > { %8704 = vst [vmem:[%s11310_s30 + $0x308] sm:$0xff] %v9871_v41  ;;  %8706 = vst [vmem:[%s11310_s30 + $0x318] sm:$0xff] %v9935_v17  ;;  %v9873_v23 = vadd.f32 %v8188_v8, %v18412_v61  ;;  %v9937_v0 = vadd.f32 %v8574_v62, %v18415_v28 }
 0x898   : > { %8707 = vst [vmem:[%s11310_s30 + $0x320] sm:$0xff] %v9872_v30  ;;  %8709 = vst [vmem:[%s11310_s30 + $0x330] sm:$0xff] %v9936_v38 }
 0x899   : > { %8708 = vst [vmem:[%s11310_s30 + $0x328] sm:$0xff] %v9873_v23  ;;  %8710 = vst [vmem:[%s11310_s30 + $0x338] sm:$0xff] %v9937_v0 }
 0x89b   : > { %v8192_v14 = vpop.f32.mrb[52].mxu0  ;;  %v8578_v10 = vpop.f32.mrb[52].mxu1 }
 0x89c   : > { %v9874_v34 = vadd.f32 %v8192_v14, %v18406_v36  ;;  %v9938_v57 = vadd.f32 %v8578_v10, %v18409_v39  ;;  %v8194_v19 = vpop.f32.mrb[53].mxu0  ;;  %v8580_v32 = vpop.f32.mrb[53].mxu1 }
 0x89d   : > { %v9875_v58 = vadd.f32 %v8194_v19, %v18412_v61  ;;  %v9939_v6 = vadd.f32 %v8580_v32, %v18415_v28  ;;  %v8196_v45 = vpop.f32.mrb[54].mxu0  ;;  %v8582_v7 = vpop.f32.mrb[54].mxu1 }
 0x89e   : > { %8711 = vst [vmem:[%s11310_s30 + $0x340] sm:$0xff] %v9874_v34  ;;  %8713 = vst [vmem:[%s11310_s30 + $0x350] sm:$0xff] %v9938_v57  ;;  %v9876_v1 = vadd.f32 %v8196_v45, %v18406_v36  ;;  %v9940_v59 = vadd.f32 %v8582_v7, %v18409_v39  ;;  %v8198_v27 = vpop.f32.mrb[55].mxu0  ;;  %v8584_v44 = vpop.f32.mrb[55].mxu1 }
 0x89f   : > { %8712 = vst [vmem:[%s11310_s30 + $0x348] sm:$0xff] %v9875_v58  ;;  %8714 = vst [vmem:[%s11310_s30 + $0x358] sm:$0xff] %v9939_v6  ;;  %v9877_v5 = vadd.f32 %v8198_v27, %v18412_v61  ;;  %v9941_v3 = vadd.f32 %v8584_v44, %v18415_v28 }
 0x8a0   : > { %8715 = vst [vmem:[%s11310_s30 + $0x360] sm:$0xff] %v9876_v1  ;;  %8717 = vst [vmem:[%s11310_s30 + $0x370] sm:$0xff] %v9940_v59 }
 0x8a1   : > { %8716 = vst [vmem:[%s11310_s30 + $0x368] sm:$0xff] %v9877_v5  ;;  %8718 = vst [vmem:[%s11310_s30 + $0x378] sm:$0xff] %v9941_v3 }
 0x8a3   : > { %v8202_v13 = vpop.f32.mrb[56].mxu0  ;;  %v8588_v50 = vpop.f32.mrb[56].mxu1 }
 0x8a4   : > { %v9878_v20 = vadd.f32 %v8202_v13, %v18406_v36  ;;  %v9942_v47 = vadd.f32 %v8588_v50, %v18409_v39  ;;  %v8204_v52 = vpop.f32.mrb[57].mxu0  ;;  %v8590_v18 = vpop.f32.mrb[57].mxu1 }
 0x8a5   : > { %v9879_v55 = vadd.f32 %v8204_v52, %v18412_v61  ;;  %v9943_v15 = vadd.f32 %v8590_v18, %v18415_v28  ;;  %v8206_v37 = vpop.f32.mrb[58].mxu0  ;;  %v8592_v21 = vpop.f32.mrb[58].mxu1 }
 0x8a6   : > { %8719 = vst [vmem:[%s11310_s30 + $0x380] sm:$0xff] %v9878_v20  ;;  %8721 = vst [vmem:[%s11310_s30 + $0x390] sm:$0xff] %v9942_v47  ;;  %v9880_v4 = vadd.f32 %v8206_v37, %v18406_v36  ;;  %v9944_v11 = vadd.f32 %v8592_v21, %v18409_v39  ;;  %v8208_v25 = vpop.f32.mrb[59].mxu0  ;;  %v8594_v46 = vpop.f32.mrb[59].mxu1 }
 0x8a7   : > { %8720 = vst [vmem:[%s11310_s30 + $0x388] sm:$0xff] %v9879_v55  ;;  %8722 = vst [vmem:[%s11310_s30 + $0x398] sm:$0xff] %v9943_v15  ;;  %v9881_v12 = vadd.f32 %v8208_v25, %v18412_v61  ;;  %v9945_v9 = vadd.f32 %v8594_v46, %v18415_v28 }
 0x8a8   : > { %8723 = vst [vmem:[%s11310_s30 + $0x3a0] sm:$0xff] %v9880_v4  ;;  %8725 = vst [vmem:[%s11310_s30 + $0x3b0] sm:$0xff] %v9944_v11 }
 0x8a9   : > { %8724 = vst [vmem:[%s11310_s30 + $0x3a8] sm:$0xff] %v9881_v12  ;;  %8726 = vst [vmem:[%s11310_s30 + $0x3b8] sm:$0xff] %v9945_v9 }
 0x8ab   : > { %v8212_v29 = vpop.f32.mrb[60].mxu0  ;;  %v8598_v60 = vpop.f32.mrb[60].mxu1 }
 0x8ac   : > { %v9882_v33 = vadd.f32 %v8212_v29, %v18406_v36  ;;  %v9946_v48 = vadd.f32 %v8598_v60, %v18409_v39  ;;  %v8214_v54 = vpop.f32.mrb[61].mxu0  ;;  %v8600_v31 = vpop.f32.mrb[61].mxu1 }
 0x8ad   : > { %v9883_v43 = vadd.f32 %v8214_v54, %v18412_v61  ;;  %v9947_v2 = vadd.f32 %v8600_v31, %v18415_v28  ;;  %v8216_v26 = vpop.f32.mrb[62].mxu0  ;;  %v8602_v49 = vpop.f32.mrb[62].mxu1 }
 0x8ae   : > { %8727 = vst [vmem:[%s11310_s30 + $0x3c0] sm:$0xff] %v9882_v33  ;;  %8729 = vst [vmem:[%s11310_s30 + $0x3d0] sm:$0xff] %v9946_v48  ;;  %v9884_v56 = vadd.f32 %v8216_v26, %v18406_v36  ;;  %v9948_v24 = vadd.f32 %v8602_v49, %v18409_v39  ;;  %v8218_v42 = vpop.f32.mrb[63].mxu0  ;;  %v8604_v53 = vpop.f32.mrb[63].mxu1 }
 0x8af   : > { %8728 = vst [vmem:[%s11310_s30 + $0x3c8] sm:$0xff] %v9883_v43  ;;  %8730 = vst [vmem:[%s11310_s30 + $0x3d8] sm:$0xff] %v9947_v2  ;;  %v9885_v51 = vadd.f32 %v8218_v42, %v18412_v61  ;;  %v9949_v40 = vadd.f32 %v8604_v53, %v18415_v28 }
 0x8b0   : > { %8731 = vst [vmem:[%s11310_s30 + $0x3e0] sm:$0xff] %v9884_v56  ;;  %8733 = vst [vmem:[%s11310_s30 + $0x3f0] sm:$0xff] %v9948_v24 }
 0x8b1   : > { %8732 = vst [vmem:[%s11310_s30 + $0x3e8] sm:$0xff] %v9885_v51  ;;  %8734 = vst [vmem:[%s11310_s30 + $0x3f8] sm:$0xff] %v9949_v40 }
 0x8b2 PF: > { %s22_s17 = sadd.s32 1, %s10875_s17   ;;  %s20496_s13 = smov %s10867_s15 }
 0x8b3   : > { %p19_p5 = scmp.ge.s32.totalorder %s22_s17, 8   ;;  %s20497_s14 = smov %s10871_s16 }
 0x8b4   : > { %s20498_s15 = smov %s20501_s19  ;;  %s20499_s16 = smov %s20505_s20 }
 0x8b5   :  { %21 = sbr.rel (!%p19_p5) target bundleno = 3 (0x3), region = 168 }
 0x8bc   :  { %8796 = vsyncpa [#allocation7], 1 }
 0x8bd   :  { %8798 = vsyncpa [#allocation7 + $0x1], 1 }

</bundles_post_ra>
